<compile_context>
chip_gen: v7x
topology: tpu7x:2x2x1
jax: 0.10.0
libtpu: 0.0.40
codegen_flags: <defaults>
</compile_context>

<pallas_src>
import functools

import jax
import jax.numpy as jnp
from jax.experimental import pallas as pl
from jax.experimental.pallas import tpu as pltpu


# ---------------------------------------------------------------------------
# Pallas kernels
# ---------------------------------------------------------------------------

def _fused_conv_bn_relu_pool_kernel(p_ref, w_ref, g_ref, b_ref, o_ref, acc_ref,
                                    *, q, inv_m, eps):
    """Fused conv-matmul + BatchNorm(batch stats) + ReLU + 2x2 max-pool.

    p_ref:   (4*q, K) bf16 im2col patches, rows ordered (hpar, wpar, n, ho, wo)
             so the four pooling partners of output row r are rows
             {r, r+q, r+2q, r+3q}.  Rows with wo >= Wo are all-zero padding.
    w_ref:   (K, C) bf16 conv weight.     g_ref/b_ref: (1, C) f32 gamma/beta.
    o_ref:   (q, C) bf16 pooled output.   acc_ref: (4*q, C) f32 VMEM scratch.
    """
    # Conv matmul, f32 accumulation, activation stays resident in VMEM.
    acc_ref[...] = jnp.dot(p_ref[...], w_ref[...],
                           preferred_element_type=jnp.float32)

    # BatchNorm batch statistics (biased variance).  Zero padded rows add 0 to
    # both sums; dividing by the true element count keeps the stats exact.
    a = acc_ref[...]
    mean = jnp.sum(a, axis=0, keepdims=True) * inv_m            # (1, C)
    ex2 = jnp.sum(a * a, axis=0, keepdims=True) * inv_m         # (1, C)
    var = jnp.maximum(ex2 - mean * mean, 0.0)
    scale = g_ref[...] * jax.lax.rsqrt(var + eps)               # EUP rsqrt
    shift = b_ref[...] - mean * scale

    def bnrelu(k):
        blk = acc_ref[pl.ds(k * q, q), :]                       # 8-aligned slice
        return jnp.maximum(blk * scale + shift, 0.0)            # f32 math

    pooled = jnp.maximum(jnp.maximum(bnrelu(0), bnrelu(1)),
                         jnp.maximum(bnrelu(2), bnrelu(3)))
    o_ref[...] = pooled.astype(o_ref.dtype)                     # bf16 at store


def _fc_kernel(x_ref, w_ref, b_ref, o_ref):
    o_ref[...] = (
        jnp.dot(x_ref[...], w_ref[...], preferred_element_type=jnp.float32)
        + b_ref[...]
    )


# ---------------------------------------------------------------------------
# Layer wrappers (im2col / layout plumbing in plain JAX)
# ---------------------------------------------------------------------------

def _pick_wo_pad(n_ho, wo):
    """Smallest Wo_pad >= Wo with N*Ho*Wo_pad a multiple of 8 (aligned slices)."""
    wp = wo
    while (n_ho * wp) % 8 != 0:
        wp += 1
    return wp


def _im2col_pool_order(x, KH, KW, wo_pad):
    """im2col with rows ordered (h-parity, w-parity, n, ho, wo_pad).

    K order is (kh, kw, cin).  Rows for wo >= Wo are zero (stats-neutral,
    since the conv carries no bias)."""
    N, H, W, Cin = x.shape
    ph, pw = KH // 2, KW // 2
    Ho, Wo = H // 2, W // 2
    K = KH * KW * Cin
    xp = jnp.pad(x, ((0, 0), (ph, ph), (pw, pw), (0, 0)))
    cols = [xp[:, kh:kh + H, kw:kw + W, :] for kh in range(KH) for kw in range(KW)]
    p = jnp.stack(cols, axis=3)                        # (N, H, W, KH*KW, Cin)
    p = p.reshape(N, Ho, 2, Wo, 2, K)                  # h=(ho,hp), w=(wo,wp)
    p = jnp.pad(p, ((0, 0), (0, 0), (0, 0), (0, wo_pad - Wo), (0, 0), (0, 0)))
    p = jnp.transpose(p, (2, 4, 0, 1, 3, 5))           # (hp, wp, N, Ho, Wo_pad, K)
    return p.reshape(4 * N * Ho * wo_pad, K)


def conv_bn_relu_pool_layer(x, w, gamma, beta, eps=1e-5):
    """x: (N,H,W,Cin) bf16; w: (Cout,Cin,KH,KW) torch layout -> (N,H/2,W/2,Cout) bf16."""
    N, H, W, Cin = x.shape
    Cout, _, KH, KW = w.shape
    assert H % 2 == 0 and W % 2 == 0
    Ho, Wo = H // 2, W // 2
    wo_pad = _pick_wo_pad(N * Ho, Wo)
    Q = N * Ho * wo_pad                                  # pooled rows (8-aligned)
    M_true = N * H * W                                   # true element count / channel

    patches = _im2col_pool_order(x, KH, KW, wo_pad)      # (4Q, K) bf16
    K = patches.shape[1]
    wmat = jnp.transpose(w, (2, 3, 1, 0)).reshape(K, Cout).astype(jnp.bfloat16)

    pooled = pl.pallas_call(
        functools.partial(_fused_conv_bn_relu_pool_kernel,
                          q=Q, inv_m=1.0 / M_true, eps=eps),
        out_shape=jax.ShapeDtypeStruct((Q, Cout), jnp.bfloat16),
        grid=(1,),                                       # single full block: the
        in_specs=[                                       # whole layer fits in VMEM
            pl.BlockSpec((4 * Q, K), lambda i: (0, 0)),
            pl.BlockSpec((K, Cout), lambda i: (0, 0)),
            pl.BlockSpec((1, Cout), lambda i: (0, 0)),
            pl.BlockSpec((1, Cout), lambda i: (0, 0)),
        ],
        out_specs=pl.BlockSpec((Q, Cout), lambda i: (0, 0)),
        scratch_shapes=[pltpu.VMEM((4 * Q, Cout), jnp.float32)],
        compiler_params=pltpu.CompilerParams(dimension_semantics=("arbitrary",)),
    )(patches, wmat, gamma.reshape(1, Cout), beta.reshape(1, Cout))

    # Rows are already in (n, ho, wo) order; just drop the wo padding.
    return pooled.reshape(N, Ho, wo_pad, Cout)[:, :, :Wo, :]


def fc_layer(x, w_t, b):
    """x: (N,K); w_t: (K,C) Linear weight pre-permuted to NHWC flatten order."""
    N, K = x.shape
    C = w_t.shape[1]
    return pl.pallas_call(
        _fc_kernel,
        out_shape=jax.ShapeDtypeStruct((N, C), jnp.float32),
        grid=(1,),
        in_specs=[
            pl.BlockSpec((N, K), lambda i: (0, 0)),
            pl.BlockSpec((K, C), lambda i: (0, 0)),
            pl.BlockSpec((1, C), lambda i: (0, 0)),
        ],
        out_specs=pl.BlockSpec((N, C), lambda i: (0, 0)),
        compiler_params=pltpu.CompilerParams(dimension_semantics=("arbitrary",)),
    )(x.astype(jnp.bfloat16), w_t.astype(jnp.bfloat16), b.reshape(1, C))


# ---------------------------------------------------------------------------
# Parameters & forward
# ---------------------------------------------------------------------------

def init_params(key):
    k1, k2, k3 = jax.random.split(key, 3)
    # FC weight in torch layout (out_features, 32*7*7), then its columns are
    # permuted ONCE to the NHWC flatten order (h, w, c) and transposed, so the
    # forward pass needs no NHWC->NCHW transpose before the matmul.
    wfc = jax.random.normal(k3, (10, 7 * 7 * 32), jnp.float32) * 0.02
    wfc_t = jnp.transpose(wfc.reshape(10, 32, 7, 7), (2, 3, 1, 0)).reshape(7 * 7 * 32, 10)
    return {
        "w1": jax.random.normal(k1, (16, 1, 5, 5), jnp.float32) * 0.1,
        "gamma1": jnp.ones((16,), jnp.float32),   # BatchNorm default init
        "beta1": jnp.zeros((16,), jnp.float32),
        "w2": jax.random.normal(k2, (32, 16, 5, 5), jnp.float32) * 0.05,
        "gamma2": jnp.ones((32,), jnp.float32),
        "beta2": jnp.zeros((32,), jnp.float32),
        "wfc_t": wfc_t,
        "bfc": jnp.zeros((10,), jnp.float32),
        # Conv biases omitted: with training-mode (batch-statistics) BatchNorm
        # immediately after each conv they cancel exactly (dead compute).
    }


def convnet_forward(params, x_nchw):
    # NCHW -> NHWC, bf16 straight away so the 25x-expanded im2col is bf16 too.
    x = jnp.transpose(x_nchw, (0, 2, 3, 1)).astype(jnp.bfloat16)
    out = conv_bn_relu_pool_layer(x, params["w1"], params["gamma1"], params["beta1"])
    out = conv_bn_relu_pool_layer(out, params["w2"], params["gamma2"], params["beta2"])
    N = out.shape[0]
    flat = out.reshape(N, -1)            # NHWC flatten; FC weight rows match it
    return fc_layer(flat, params["wfc_t"], params["bfc"])


if __name__ == "__main__":
    key = jax.random.PRNGKey(0)
    kx, kp = jax.random.split(key)
    # Module's fc layer implies 28x28 MNIST-sized input; batch kept small.
    x = jax.random.normal(kx, (2, 1, 28, 28), jnp.float32)
    params = init_params(kp)

    logits = jax.jit(convnet_forward)(params, x)
    jax.block_until_ready(logits)
    assert logits.shape == (2, 10) and logits.dtype == jnp.float32
    print("KERNEL_OK")
</pallas_src>

<mosaic_0001>
module attributes {stable_mosaic.version = 11 : i64} {
  func.func @_fused_conv_bn_relu_pool_kernel(%arg0: i32, %arg1: memref<1568x25xbf16, #tpu.memory_space<vmem>>, %arg2: memref<25x16xbf16, #tpu.memory_space<vmem>>, %arg3: memref<1x16xf32, #tpu.memory_space<vmem>>, %arg4: memref<1x16xf32, #tpu.memory_space<vmem>>, %arg5: memref<392x16xbf16, #tpu.memory_space<vmem>>, %arg6: memref<1568x16xf32, #tpu.memory_space<vmem>>) attributes {dimension_semantics = [#tpu.dimension_semantics<arbitrary>], iteration_bounds = array<i64: 1>, scalar_prefetch = 0 : i64, scratch_operands = 1 : i64, tpu.core_type = #tpu.core_type<tc>, window_params = [{pipeline_mode = #tpu.pipeline_mode<synchronous>, transform_indices = @transform_0, window_bounds = array<i64: 1568, 25>}, {pipeline_mode = #tpu.pipeline_mode<synchronous>, transform_indices = @transform_1, window_bounds = array<i64: 25, 16>}, {pipeline_mode = #tpu.pipeline_mode<synchronous>, transform_indices = @transform_2, window_bounds = array<i64: 1, 16>}, {pipeline_mode = #tpu.pipeline_mode<synchronous>, transform_indices = @transform_3, window_bounds = array<i64: 1, 16>}, {pipeline_mode = #tpu.pipeline_mode<synchronous>, transform_indices = @transform_4, window_bounds = array<i64: 392, 16>}]} {
    %c0 = arith.constant 0 : index
    %c0_0 = arith.constant 0 : index
    %0 = vector.load %arg1[%c0, %c0_0] : memref<1568x25xbf16, #tpu.memory_space<vmem>>, vector<1568x25xbf16>
    %c0_1 = arith.constant 0 : index
    %c0_2 = arith.constant 0 : index
    %1 = vector.load %arg2[%c0_1, %c0_2] : memref<25x16xbf16, #tpu.memory_space<vmem>>, vector<25x16xbf16>
    %cst = arith.constant dense<0.000000e+00> : vector<1568x16xf32>
    %2 = tpu.matmul %0, %1, %cst {dimension_numbers = #tpu.dot_dimension_numbers<[1], [0], [0], [1], [0, 0, 1, 1], [], []>} : vector<1568x25xbf16>, vector<25x16xbf16>, vector<1568x16xf32> -> vector<1568x16xf32>
    %c0_3 = arith.constant 0 : index
    %c0_4 = arith.constant 0 : index
    %3 = vector.load %arg6[%c0_3, %c0_4] : memref<1568x16xf32, #tpu.memory_space<vmem>>, vector<1568x16xf32>
    tpu.vector_store %arg6[%c0_3, %c0_4], %2 {strides = array<i32>} : memref<1568x16xf32, #tpu.memory_space<vmem>>, vector<1568x16xf32>,
    %c0_5 = arith.constant 0 : index
    %c0_6 = arith.constant 0 : index
    %4 = vector.load %arg6[%c0_5, %c0_6] : memref<1568x16xf32, #tpu.memory_space<vmem>>, vector<1568x16xf32>
    %cst_7 = arith.constant dense<0.000000e+00> : vector<16xf32>
    %5 = vector.multi_reduction <add>, %4, %cst_7 [0] : vector<1568x16xf32> to vector<16xf32>
    %6 = vector.shape_cast %5 : vector<16xf32> to vector<1x16xf32>
    %cst_8 = arith.constant 6.37755089E-4 : f32
    %7 = vector.broadcast %cst_8 : f32 to vector<1x16xf32>
    %8 = arith.mulf %6, %7 : vector<1x16xf32>
    %9 = arith.mulf %4, %4 : vector<1568x16xf32>
    %cst_9 = arith.constant dense<0.000000e+00> : vector<16xf32>
    %10 = vector.multi_reduction <add>, %9, %cst_9 [0] : vector<1568x16xf32> to vector<16xf32>
    %11 = vector.shape_cast %10 : vector<16xf32> to vector<1x16xf32>
    %cst_10 = arith.constant 6.37755089E-4 : f32
    %12 = vector.broadcast %cst_10 : f32 to vector<1x16xf32>
    %13 = arith.mulf %11, %12 : vector<1x16xf32>
    %14 = arith.mulf %8, %8 : vector<1x16xf32>
    %15 = arith.subf %13, %14 : vector<1x16xf32>
    %cst_11 = arith.constant 0.000000e+00 : f32
    %16 = vector.broadcast %cst_11 : f32 to vector<1x16xf32>
    %17 = arith.maximumf %15, %16 : vector<1x16xf32>
    %c0_12 = arith.constant 0 : index
    %c0_13 = arith.constant 0 : index
    %18 = vector.load %arg3[%c0_12, %c0_13] : memref<1x16xf32, #tpu.memory_space<vmem>>, vector<1x16xf32>
    %cst_14 = arith.constant 9.99999974E-6 : f32
    %19 = vector.broadcast %cst_14 : f32 to vector<1x16xf32>
    %20 = arith.addf %17, %19 : vector<1x16xf32>
    %21 = math.rsqrt %20 : vector<1x16xf32>
    %22 = arith.mulf %18, %21 : vector<1x16xf32>
    %c0_15 = arith.constant 0 : index
    %c0_16 = arith.constant 0 : index
    %23 = vector.load %arg4[%c0_15, %c0_16] : memref<1x16xf32, #tpu.memory_space<vmem>>, vector<1x16xf32>
    %24 = arith.mulf %8, %22 : vector<1x16xf32>
    %25 = arith.subf %23, %24 : vector<1x16xf32>
    %c0_17 = arith.constant 0 : index
    %c0_18 = arith.constant 0 : index
    %26 = vector.load %arg6[%c0_17, %c0_18] : memref<1568x16xf32, #tpu.memory_space<vmem>>, vector<392x16xf32>
    %27 = vector.broadcast %22 : vector<1x16xf32> to vector<392x16xf32>
    %28 = arith.mulf %26, %27 : vector<392x16xf32>
    %29 = vector.broadcast %25 : vector<1x16xf32> to vector<392x16xf32>
    %30 = arith.addf %28, %29 : vector<392x16xf32>
    %cst_19 = arith.constant 0.000000e+00 : f32
    %31 = vector.broadcast %cst_19 : f32 to vector<392x16xf32>
    %32 = arith.maximumf %30, %31 : vector<392x16xf32>
    %c392 = arith.constant 392 : index
    %c0_20 = arith.constant 0 : index
    %33 = vector.load %arg6[%c392, %c0_20] : memref<1568x16xf32, #tpu.memory_space<vmem>>, vector<392x16xf32>
    %34 = vector.broadcast %22 : vector<1x16xf32> to vector<392x16xf32>
    %35 = arith.mulf %33, %34 : vector<392x16xf32>
    %36 = vector.broadcast %25 : vector<1x16xf32> to vector<392x16xf32>
    %37 = arith.addf %35, %36 : vector<392x16xf32>
    %cst_21 = arith.constant 0.000000e+00 : f32
    %38 = vector.broadcast %cst_21 : f32 to vector<392x16xf32>
    %39 = arith.maximumf %37, %38 : vector<392x16xf32>
    %40 = arith.maximumf %32, %39 : vector<392x16xf32>
    %c784 = arith.constant 784 : index
    %c0_22 = arith.constant 0 : index
    %41 = vector.load %arg6[%c784, %c0_22] : memref<1568x16xf32, #tpu.memory_space<vmem>>, vector<392x16xf32>
    %42 = vector.broadcast %22 : vector<1x16xf32> to vector<392x16xf32>
    %43 = arith.mulf %41, %42 : vector<392x16xf32>
    %44 = vector.broadcast %25 : vector<1x16xf32> to vector<392x16xf32>
    %45 = arith.addf %43, %44 : vector<392x16xf32>
    %cst_23 = arith.constant 0.000000e+00 : f32
    %46 = vector.broadcast %cst_23 : f32 to vector<392x16xf32>
    %47 = arith.maximumf %45, %46 : vector<392x16xf32>
    %c1176 = arith.constant 1176 : index
    %c0_24 = arith.constant 0 : index
    %48 = vector.load %arg6[%c1176, %c0_24] : memref<1568x16xf32, #tpu.memory_space<vmem>>, vector<392x16xf32>
    %49 = vector.broadcast %22 : vector<1x16xf32> to vector<392x16xf32>
    %50 = arith.mulf %48, %49 : vector<392x16xf32>
    %51 = vector.broadcast %25 : vector<1x16xf32> to vector<392x16xf32>
    %52 = arith.addf %50, %51 : vector<392x16xf32>
    %cst_25 = arith.constant 0.000000e+00 : f32
    %53 = vector.broadcast %cst_25 : f32 to vector<392x16xf32>
    %54 = arith.maximumf %52, %53 : vector<392x16xf32>
    %55 = arith.maximumf %47, %54 : vector<392x16xf32>
    %56 = arith.maximumf %40, %55 : vector<392x16xf32>
    %57 = arith.truncf %56 : vector<392x16xf32> to vector<392x16xbf16>
    %c0_26 = arith.constant 0 : index
    %c0_27 = arith.constant 0 : index
    %58 = vector.load %arg5[%c0_26, %c0_27] : memref<392x16xbf16, #tpu.memory_space<vmem>>, vector<392x16xbf16>
    tpu.vector_store %arg5[%c0_26, %c0_27], %57 {strides = array<i32>} : memref<392x16xbf16, #tpu.memory_space<vmem>>, vector<392x16xbf16>,
    return
  }
  func.func @transform_0(%arg0: i32) -> (i32, i32) {
    %c0_i32 = arith.constant 0 : i32
    %c0_i32_0 = arith.constant 0 : i32
    %c0_i32_1 = arith.constant 0 : i32
    return %c0_i32, %c0_i32_0 : i32, i32
  }
  func.func @transform_1(%arg0: i32) -> (i32, i32) {
    %c0_i32 = arith.constant 0 : i32
    %c0_i32_0 = arith.constant 0 : i32
    %c0_i32_1 = arith.constant 0 : i32
    return %c0_i32, %c0_i32_0 : i32, i32
  }
  func.func @transform_2(%arg0: i32) -> (i32, i32) {
    %c0_i32 = arith.constant 0 : i32
    %c0_i32_0 = arith.constant 0 : i32
    %c0_i32_1 = arith.constant 0 : i32
    return %c0_i32, %c0_i32_0 : i32, i32
  }
  func.func @transform_3(%arg0: i32) -> (i32, i32) {
    %c0_i32 = arith.constant 0 : i32
    %c0_i32_0 = arith.constant 0 : i32
    %c0_i32_1 = arith.constant 0 : i32
    return %c0_i32, %c0_i32_0 : i32, i32
  }
  func.func @transform_4(%arg0: i32) -> (i32, i32) {
    %c0_i32 = arith.constant 0 : i32
    %c0_i32_0 = arith.constant 0 : i32
    %c0_i32_1 = arith.constant 0 : i32
    return %c0_i32, %c0_i32_0 : i32, i32
  }
}

module attributes {stable_mosaic.version = 11 : i64} {
  func.func @_fused_conv_bn_relu_pool_kernel(%arg0: i32, %arg1: memref<448x400xbf16, #tpu.memory_space<vmem>>, %arg2: memref<400x32xbf16, #tpu.memory_space<vmem>>, %arg3: memref<1x32xf32, #tpu.memory_space<vmem>>, %arg4: memref<1x32xf32, #tpu.memory_space<vmem>>, %arg5: memref<112x32xbf16, #tpu.memory_space<vmem>>, %arg6: memref<448x32xf32, #tpu.memory_space<vmem>>) attributes {dimension_semantics = [#tpu.dimension_semantics<arbitrary>], iteration_bounds = array<i64: 1>, scalar_prefetch = 0 : i64, scratch_operands = 1 : i64, tpu.core_type = #tpu.core_type<tc>, window_params = [{pipeline_mode = #tpu.pipeline_mode<synchronous>, transform_indices = @transform_0, window_bounds = array<i64: 448, 400>}, {pipeline_mode = #tpu.pipeline_mode<synchronous>, transform_indices = @transform_1, window_bounds = array<i64: 400, 32>}, {pipeline_mode = #tpu.pipeline_mode<synchronous>, transform_indices = @transform_2, window_bounds = array<i64: 1, 32>}, {pipeline_mode = #tpu.pipeline_mode<synchronous>, transform_indices = @transform_3, window_bounds = array<i64: 1, 32>}, {pipeline_mode = #tpu.pipeline_mode<synchronous>, transform_indices = @transform_4, window_bounds = array<i64: 112, 32>}]} {
    %c0 = arith.constant 0 : index
    %c0_0 = arith.constant 0 : index
    %0 = vector.load %arg1[%c0, %c0_0] : memref<448x400xbf16, #tpu.memory_space<vmem>>, vector<448x400xbf16>
    %c0_1 = arith.constant 0 : index
    %c0_2 = arith.constant 0 : index
    %1 = vector.load %arg2[%c0_1, %c0_2] : memref<400x32xbf16, #tpu.memory_space<vmem>>, vector<400x32xbf16>
    %cst = arith.constant dense<0.000000e+00> : vector<448x32xf32>
    %2 = tpu.matmul %0, %1, %cst {dimension_numbers = #tpu.dot_dimension_numbers<[1], [0], [0], [1], [0, 0, 1, 1], [], []>} : vector<448x400xbf16>, vector<400x32xbf16>, vector<448x32xf32> -> vector<448x32xf32>
    %c0_3 = arith.constant 0 : index
    %c0_4 = arith.constant 0 : index
    %3 = vector.load %arg6[%c0_3, %c0_4] : memref<448x32xf32, #tpu.memory_space<vmem>>, vector<448x32xf32>
    tpu.vector_store %arg6[%c0_3, %c0_4], %2 {strides = array<i32>} : memref<448x32xf32, #tpu.memory_space<vmem>>, vector<448x32xf32>,
    %c0_5 = arith.constant 0 : index
    %c0_6 = arith.constant 0 : index
    %4 = vector.load %arg6[%c0_5, %c0_6] : memref<448x32xf32, #tpu.memory_space<vmem>>, vector<448x32xf32>
    %cst_7 = arith.constant dense<0.000000e+00> : vector<32xf32>
    %5 = vector.multi_reduction <add>, %4, %cst_7 [0] : vector<448x32xf32> to vector<32xf32>
    %6 = vector.shape_cast %5 : vector<32xf32> to vector<1x32xf32>
    %cst_8 = arith.constant 0.00255102036 : f32
    %7 = vector.broadcast %cst_8 : f32 to vector<1x32xf32>
    %8 = arith.mulf %6, %7 : vector<1x32xf32>
    %9 = arith.mulf %4, %4 : vector<448x32xf32>
    %cst_9 = arith.constant dense<0.000000e+00> : vector<32xf32>
    %10 = vector.multi_reduction <add>, %9, %cst_9 [0] : vector<448x32xf32> to vector<32xf32>
    %11 = vector.shape_cast %10 : vector<32xf32> to vector<1x32xf32>
    %cst_10 = arith.constant 0.00255102036 : f32
    %12 = vector.broadcast %cst_10 : f32 to vector<1x32xf32>
    %13 = arith.mulf %11, %12 : vector<1x32xf32>
    %14 = arith.mulf %8, %8 : vector<1x32xf32>
    %15 = arith.subf %13, %14 : vector<1x32xf32>
    %cst_11 = arith.constant 0.000000e+00 : f32
    %16 = vector.broadcast %cst_11 : f32 to vector<1x32xf32>
    %17 = arith.maximumf %15, %16 : vector<1x32xf32>
    %c0_12 = arith.constant 0 : index
    %c0_13 = arith.constant 0 : index
    %18 = vector.load %arg3[%c0_12, %c0_13] : memref<1x32xf32, #tpu.memory_space<vmem>>, vector<1x32xf32>
    %cst_14 = arith.constant 9.99999974E-6 : f32
    %19 = vector.broadcast %cst_14 : f32 to vector<1x32xf32>
    %20 = arith.addf %17, %19 : vector<1x32xf32>
    %21 = math.rsqrt %20 : vector<1x32xf32>
    %22 = arith.mulf %18, %21 : vector<1x32xf32>
    %c0_15 = arith.constant 0 : index
    %c0_16 = arith.constant 0 : index
    %23 = vector.load %arg4[%c0_15, %c0_16] : memref<1x32xf32, #tpu.memory_space<vmem>>, vector<1x32xf32>
    %24 = arith.mulf %8, %22 : vector<1x32xf32>
    %25 = arith.subf %23, %24 : vector<1x32xf32>
    %c0_17 = arith.constant 0 : index
    %c0_18 = arith.constant 0 : index
    %26 = vector.load %arg6[%c0_17, %c0_18] : memref<448x32xf32, #tpu.memory_space<vmem>>, vector<112x32xf32>
    %27 = vector.broadcast %22 : vector<1x32xf32> to vector<112x32xf32>
    %28 = arith.mulf %26, %27 : vector<112x32xf32>
    %29 = vector.broadcast %25 : vector<1x32xf32> to vector<112x32xf32>
    %30 = arith.addf %28, %29 : vector<112x32xf32>
    %cst_19 = arith.constant 0.000000e+00 : f32
    %31 = vector.broadcast %cst_19 : f32 to vector<112x32xf32>
    %32 = arith.maximumf %30, %31 : vector<112x32xf32>
    %c112 = arith.constant 112 : index
    %c0_20 = arith.constant 0 : index
    %33 = vector.load %arg6[%c112, %c0_20] : memref<448x32xf32, #tpu.memory_space<vmem>>, vector<112x32xf32>
    %34 = vector.broadcast %22 : vector<1x32xf32> to vector<112x32xf32>
    %35 = arith.mulf %33, %34 : vector<112x32xf32>
    %36 = vector.broadcast %25 : vector<1x32xf32> to vector<112x32xf32>
    %37 = arith.addf %35, %36 : vector<112x32xf32>
    %cst_21 = arith.constant 0.000000e+00 : f32
    %38 = vector.broadcast %cst_21 : f32 to vector<112x32xf32>
    %39 = arith.maximumf %37, %38 : vector<112x32xf32>
    %40 = arith.maximumf %32, %39 : vector<112x32xf32>
    %c224 = arith.constant 224 : index
    %c0_22 = arith.constant 0 : index
    %41 = vector.load %arg6[%c224, %c0_22] : memref<448x32xf32, #tpu.memory_space<vmem>>, vector<112x32xf32>
    %42 = vector.broadcast %22 : vector<1x32xf32> to vector<112x32xf32>
    %43 = arith.mulf %41, %42 : vector<112x32xf32>
    %44 = vector.broadcast %25 : vector<1x32xf32> to vector<112x32xf32>
    %45 = arith.addf %43, %44 : vector<112x32xf32>
    %cst_23 = arith.constant 0.000000e+00 : f32
    %46 = vector.broadcast %cst_23 : f32 to vector<112x32xf32>
    %47 = arith.maximumf %45, %46 : vector<112x32xf32>
    %c336 = arith.constant 336 : index
    %c0_24 = arith.constant 0 : index
    %48 = vector.load %arg6[%c336, %c0_24] : memref<448x32xf32, #tpu.memory_space<vmem>>, vector<112x32xf32>
    %49 = vector.broadcast %22 : vector<1x32xf32> to vector<112x32xf32>
    %50 = arith.mulf %48, %49 : vector<112x32xf32>
    %51 = vector.broadcast %25 : vector<1x32xf32> to vector<112x32xf32>
    %52 = arith.addf %50, %51 : vector<112x32xf32>
    %cst_25 = arith.constant 0.000000e+00 : f32
    %53 = vector.broadcast %cst_25 : f32 to vector<112x32xf32>
    %54 = arith.maximumf %52, %53 : vector<112x32xf32>
    %55 = arith.maximumf %47, %54 : vector<112x32xf32>
    %56 = arith.maximumf %40, %55 : vector<112x32xf32>
    %57 = arith.truncf %56 : vector<112x32xf32> to vector<112x32xbf16>
    %c0_26 = arith.constant 0 : index
    %c0_27 = arith.constant 0 : index
    %58 = vector.load %arg5[%c0_26, %c0_27] : memref<112x32xbf16, #tpu.memory_space<vmem>>, vector<112x32xbf16>
    tpu.vector_store %arg5[%c0_26, %c0_27], %57 {strides = array<i32>} : memref<112x32xbf16, #tpu.memory_space<vmem>>, vector<112x32xbf16>,
    return
  }
  func.func @transform_0(%arg0: i32) -> (i32, i32) {
    %c0_i32 = arith.constant 0 : i32
    %c0_i32_0 = arith.constant 0 : i32
    %c0_i32_1 = arith.constant 0 : i32
    return %c0_i32, %c0_i32_0 : i32, i32
  }
  func.func @transform_1(%arg0: i32) -> (i32, i32) {
    %c0_i32 = arith.constant 0 : i32
    %c0_i32_0 = arith.constant 0 : i32
    %c0_i32_1 = arith.constant 0 : i32
    return %c0_i32, %c0_i32_0 : i32, i32
  }
  func.func @transform_2(%arg0: i32) -> (i32, i32) {
    %c0_i32 = arith.constant 0 : i32
    %c0_i32_0 = arith.constant 0 : i32
    %c0_i32_1 = arith.constant 0 : i32
    return %c0_i32, %c0_i32_0 : i32, i32
  }
  func.func @transform_3(%arg0: i32) -> (i32, i32) {
    %c0_i32 = arith.constant 0 : i32
    %c0_i32_0 = arith.constant 0 : i32
    %c0_i32_1 = arith.constant 0 : i32
    return %c0_i32, %c0_i32_0 : i32, i32
  }
  func.func @transform_4(%arg0: i32) -> (i32, i32) {
    %c0_i32 = arith.constant 0 : i32
    %c0_i32_0 = arith.constant 0 : i32
    %c0_i32_1 = arith.constant 0 : i32
    return %c0_i32, %c0_i32_0 : i32, i32
  }
}

module attributes {stable_mosaic.version = 11 : i64} {
  func.func @_fc_kernel(%arg0: i32, %arg1: memref<2x1568xbf16, #tpu.memory_space<vmem>>, %arg2: memref<1568x10xbf16, #tpu.memory_space<vmem>>, %arg3: memref<1x10xf32, #tpu.memory_space<vmem>>, %arg4: memref<2x10xf32, #tpu.memory_space<vmem>>) attributes {dimension_semantics = [#tpu.dimension_semantics<arbitrary>], iteration_bounds = array<i64: 1>, scalar_prefetch = 0 : i64, scratch_operands = 0 : i64, tpu.core_type = #tpu.core_type<tc>, window_params = [{pipeline_mode = #tpu.pipeline_mode<synchronous>, transform_indices = @transform_0, window_bounds = array<i64: 2, 1568>}, {pipeline_mode = #tpu.pipeline_mode<synchronous>, transform_indices = @transform_1, window_bounds = array<i64: 1568, 10>}, {pipeline_mode = #tpu.pipeline_mode<synchronous>, transform_indices = @transform_2, window_bounds = array<i64: 1, 10>}, {pipeline_mode = #tpu.pipeline_mode<synchronous>, transform_indices = @transform_3, window_bounds = array<i64: 2, 10>}]} {
    %c0 = arith.constant 0 : index
    %c0_0 = arith.constant 0 : index
    %0 = vector.load %arg1[%c0, %c0_0] : memref<2x1568xbf16, #tpu.memory_space<vmem>>, vector<2x1568xbf16>
    %c0_1 = arith.constant 0 : index
    %c0_2 = arith.constant 0 : index
    %1 = vector.load %arg2[%c0_1, %c0_2] : memref<1568x10xbf16, #tpu.memory_space<vmem>>, vector<1568x10xbf16>
    %cst = arith.constant dense<0.000000e+00> : vector<2x10xf32>
    %2 = tpu.matmul %0, %1, %cst {dimension_numbers = #tpu.dot_dimension_numbers<[1], [0], [0], [1], [0, 0, 1, 1], [], []>} : vector<2x1568xbf16>, vector<1568x10xbf16>, vector<2x10xf32> -> vector<2x10xf32>
    %c0_3 = arith.constant 0 : index
    %c0_4 = arith.constant 0 : index
    %3 = vector.load %arg3[%c0_3, %c0_4] : memref<1x10xf32, #tpu.memory_space<vmem>>, vector<1x10xf32>
    %4 = vector.broadcast %3 : vector<1x10xf32> to vector<2x10xf32>
    %5 = arith.addf %2, %4 : vector<2x10xf32>
    %c0_5 = arith.constant 0 : index
    %c0_6 = arith.constant 0 : index
    %6 = vector.load %arg4[%c0_5, %c0_6] : memref<2x10xf32, #tpu.memory_space<vmem>>, vector<2x10xf32>
    tpu.vector_store %arg4[%c0_5, %c0_6], %5 {strides = array<i32>} : memref<2x10xf32, #tpu.memory_space<vmem>>, vector<2x10xf32>,
    return
  }
  func.func @transform_0(%arg0: i32) -> (i32, i32) {
    %c0_i32 = arith.constant 0 : i32
    %c0_i32_0 = arith.constant 0 : i32
    %c0_i32_1 = arith.constant 0 : i32
    return %c0_i32, %c0_i32_0 : i32, i32
  }
  func.func @transform_1(%arg0: i32) -> (i32, i32) {
    %c0_i32 = arith.constant 0 : i32
    %c0_i32_0 = arith.constant 0 : i32
    %c0_i32_1 = arith.constant 0 : i32
    return %c0_i32, %c0_i32_0 : i32, i32
  }
  func.func @transform_2(%arg0: i32) -> (i32, i32) {
    %c0_i32 = arith.constant 0 : i32
    %c0_i32_0 = arith.constant 0 : i32
    %c0_i32_1 = arith.constant 0 : i32
    return %c0_i32, %c0_i32_0 : i32, i32
  }
  func.func @transform_3(%arg0: i32) -> (i32, i32) {
    %c0_i32 = arith.constant 0 : i32
    %c0_i32_0 = arith.constant 0 : i32
    %c0_i32_1 = arith.constant 0 : i32
    return %c0_i32, %c0_i32_0 : i32, i32
  }
}

</mosaic_0001>

<bundles_post_ra>
// kernel: convnet_forward.3
= control target key start
LH: loop header
LB: loop body
LE: loop exit
PB: predicated region body
PF: predicated region fallthrough
CT: control target
= control target key end

     0   :  { %vm1014_vm0 = vcmask 1043456   ;;  %vm1015_vm1 = vcmask 1044480   ;;  %vm719_vm2 = vcmask 203776   ;;  %v5130_v1 = vmov 65535   ;;  %s8336_s1 = inlined_call_operand.vmem [shape: bf16[25,16], index: 1, kind: input, shape index: {}]   ;;  %s8337_s0 = inlined_call_operand.vmem [shape: bf16[1568,25], index: 0, kind: input, shape index: {}]   ;;  %s8338_s2 = inlined_call_operand.vmem [shape: f32[1,16], index: 2, kind: input, shape index: {}]   ;;  %s8339_s3 = inlined_call_operand.vmem [shape: f32[1,16], index: 3, kind: input, shape index: {}]   ;;  %s8340_s4 = inlined_call_operand.vmem [shape: bf16[392,16], index: 4, kind: output, shape index: {}]  }
   0x1   :  { %v4832_v0 = vld [vmem:[%s8336_s1] sm:$0xff]   ;;  %v1016_v2 = vsel %vm1014_vm0, 4294967295, %v5130_v1  ;;  %v4833_v3 = vld [vmem:[%s8336_s1 + $0x8] sm:$0x1f]   ;;  %v4836_v8 = vld [vmem:[%s8337_s0 + $0x10] sm:$0xff]   ;;  %vm1838_vm3 = vcmask 130048  }
   0x2   :  { %4627 = vmatprep.subr.bf16.mxu0 %v4832_v0  ;;  %v1017_v4 = vsel %vm1015_vm1, %v1016_v2, 0  ;;  %v4834_v5 = vld [vmem:[%s8337_s0] sm:$0xff]   ;;  %4827 = vmatprep.subr.bf16.mxu1 %v4832_v0  ;;  %v4835_v7 = vld [vmem:[%s8337_s0 + $0x8] sm:$0xff]   ;;  %v4837_v9 = vld [vmem:[%s8337_s0 + $0x18] sm:$0xff]   ;;  %vm4177_vm4 = vcmask 125952  }
   0x3   :  { %4628 = vmatpush3.bf16.msra.mxu0 %v4832_v0  ;;  %v1019_v6 = vand.u32 %v4833_v3, %v1017_v4  ;;  %4829 = vmatpush3.bf16.msra.mxu1 %v4832_v0  ;;  %v4838_v10 = vld [vmem:[%s8337_s0 + $0x20] sm:$0xff]   ;;  %v4839_v11 = vld [vmem:[%s8337_s0 + $0x28] sm:$0xff]   ;;  %v4840_v12 = vld [vmem:[%s8337_s0 + $0x30] sm:$0xff]  }
   0x4   :  { %4631 = vmatprep.mubr.msk.bf16.mxu0 %vm719_vm2, %v4834_v5  ;;  %v4841_v13 = vld [vmem:[%s8337_s0 + $0x38] sm:$0xff]   ;;  %v4842_v14 = vld [vmem:[%s8337_s0 + $0x40] sm:$0xff]   ;;  %v4843_v15 = vld [vmem:[%s8337_s0 + $0x48] sm:$0xff]  }
   0x5   :  { %4629 = vmatprep.subr.bf16.mxu0 %v1019_v6  ;;  %4828 = vmatprep.subr.bf16.mxu1 %v1019_v6  ;;  %v4844_v16 = vld [vmem:[%s8337_s0 + $0x50] sm:$0xff]   ;;  %v4845_v17 = vld [vmem:[%s8337_s0 + $0x58] sm:$0xff]   ;;  %v4846_v18 = vld [vmem:[%s8337_s0 + $0x60] sm:$0xff]  }
   0x6   :  { %v4847_v19 = vld [vmem:[%s8337_s0 + $0x68] sm:$0xff]   ;;  %v4848_v20 = vld [vmem:[%s8337_s0 + $0x70] sm:$0xff]   ;;  %v4849_v21 = vld [vmem:[%s8337_s0 + $0x78] sm:$0xff]  }
   0x7   :  { %4630 = vmatpush3.bf16.msra.mxu0 %v1019_v6  ;;  %4830 = vmatpush3.bf16.msra.mxu1 %v1019_v6  ;;  %v4850_v22 = vld [vmem:[%s8337_s0 + $0x80] sm:$0xff]   ;;  %v4851_v23 = vld [vmem:[%s8337_s0 + $0x88] sm:$0xff]   ;;  %v4852_v24 = vld [vmem:[%s8337_s0 + $0x90] sm:$0xff]  }
   0x8   :  { %v4884_v25 = vld [vmem:[%s8337_s0 + $0x190] sm:$0xff]   ;;  %v4885_v26 = vld [vmem:[%s8337_s0 + $0x198] sm:$0xff]   ;;  %v4886_v27 = vld [vmem:[%s8337_s0 + $0x1a0] sm:$0xff]  }
   0x9   :  { %v4853_v28 = vld [vmem:[%s8337_s0 + $0x98] sm:$0xff]   ;;  %4731 = vmatprep.mubr.msk.bf16.mxu1 %vm719_vm2, %v4884_v25  ;;  %v4854_v29 = vld [vmem:[%s8337_s0 + $0xa0] sm:$0xff]   ;;  %v4887_v30 = vld [vmem:[%s8337_s0 + $0x1a8] sm:$0xff]  }
   0xa   :  { %4632 = vmatmul.mubr.msk.bf16.vlgmr.msra.gmra.mrb[0].mxu0 %vm719_vm2, %v4835_v7  ;;  %4732 = vmatmul.mubr.msk.bf16.vlgmr.msra.gmra.mrb[0].mxu1 %vm719_vm2, %v4885_v26  ;;  %v4855_v31 = vld [vmem:[%s8337_s0 + $0xa8] sm:$0xff]   ;;  %v4856_v32 = vld [vmem:[%s8337_s0 + $0xb0] sm:$0xff]   ;;  %v4889_v34 = vld [vmem:[%s8337_s0 + $0x1b8] sm:$0xff]  }
   0xb   :  { %4635 = vmatprep.mubr.msk.bf16.mxu0 %vm719_vm2, %v4836_v8  ;;  %4735 = vmatprep.mubr.msk.bf16.mxu1 %vm719_vm2, %v4886_v27  ;;  %v4888_v33 = vld [vmem:[%s8337_s0 + $0x1b0] sm:$0xff]   ;;  %v4857_v35 = vld [vmem:[%s8337_s0 + $0xb8] sm:$0xff]   ;;  %v4858_v36 = vld [vmem:[%s8337_s0 + $0xc0] sm:$0xff]  }
   0xc   :  { %v4890_v37 = vld [vmem:[%s8337_s0 + $0x1c0] sm:$0xff]   ;;  %v4859_v38 = vld [vmem:[%s8337_s0 + $0xc8] sm:$0xff]   ;;  %v4860_v40 = vld [vmem:[%s8337_s0 + $0xd0] sm:$0xff]  }
   0xd   :  { %v4891_v39 = vld [vmem:[%s8337_s0 + $0x1c8] sm:$0xff]   ;;  %v4892_v41 = vld [vmem:[%s8337_s0 + $0x1d0] sm:$0xff]   ;;  %v4861_v42 = vld [vmem:[%s8337_s0 + $0xd8] sm:$0xff]  }
   0xe   :  { %v4893_v43 = vld [vmem:[%s8337_s0 + $0x1d8] sm:$0xff]   ;;  %v4862_v44 = vld [vmem:[%s8337_s0 + $0xe0] sm:$0xff]   ;;  %v4863_v46 = vld [vmem:[%s8337_s0 + $0xe8] sm:$0xff]  }
   0xf   :  { %v4894_v45 = vld [vmem:[%s8337_s0 + $0x1e0] sm:$0xff]   ;;  %v4895_v47 = vld [vmem:[%s8337_s0 + $0x1e8] sm:$0xff]   ;;  %v4864_v48 = vld [vmem:[%s8337_s0 + $0xf0] sm:$0xff]  }
  0x10   :  { %v4896_v49 = vld [vmem:[%s8337_s0 + $0x1f0] sm:$0xff]   ;;  %v4865_v50 = vld [vmem:[%s8337_s0 + $0xf8] sm:$0xff]   ;;  %v4866_v52 = vld [vmem:[%s8337_s0 + $0x100] sm:$0xff]  }
  0x11   :  { %v4897_v51 = vld [vmem:[%s8337_s0 + $0x1f8] sm:$0xff]   ;;  %v4898_v53 = vld [vmem:[%s8337_s0 + $0x200] sm:$0xff]   ;;  %v4867_v54 = vld [vmem:[%s8337_s0 + $0x108] sm:$0xff]  }
  0x12   :  { %4636 = vmatmul.mubr.msk.bf16.gmra.mrb[4].mxu0 %vm719_vm2, %v4837_v9  ;;  %4736 = vmatmul.mubr.msk.bf16.gmra.mrb[4].mxu1 %vm719_vm2, %v4887_v30  ;;  %v4899_v55 = vld [vmem:[%s8337_s0 + $0x208] sm:$0xff]   ;;  %v4868_v56 = vld [vmem:[%s8337_s0 + $0x110] sm:$0xff]   ;;  %v4869_v58 = vld [vmem:[%s8337_s0 + $0x118] sm:$0xff]  }
  0x13   :  { %4639 = vmatprep.mubr.msk.bf16.mxu0 %vm719_vm2, %v4838_v10  ;;  %4739 = vmatprep.mubr.msk.bf16.mxu1 %vm719_vm2, %v4888_v33  ;;  %v4900_v57 = vld [vmem:[%s8337_s0 + $0x210] sm:$0xff]   ;;  %v4901_v59 = vld [vmem:[%s8337_s0 + $0x218] sm:$0xff]   ;;  %v4870_v60 = vld [vmem:[%s8337_s0 + $0x120] sm:$0xff]  }
  0x14   :  { %v4902_v61 = vld [vmem:[%s8337_s0 + $0x220] sm:$0xff]   ;;  %v4871_v62 = vld [vmem:[%s8337_s0 + $0x128] sm:$0xff]   ;;  %v4872_v0 = vld [vmem:[%s8337_s0 + $0x130] sm:$0xff]  }
  0x15   :  { %v4903_v63 = vld [vmem:[%s8337_s0 + $0x228] sm:$0xff]   ;;  %v4904_v1 = vld [vmem:[%s8337_s0 + $0x230] sm:$0xff]   ;;  %v4873_v2 = vld [vmem:[%s8337_s0 + $0x138] sm:$0xff]  }
  0x16   :  { %v4905_v3 = vld [vmem:[%s8337_s0 + $0x238] sm:$0xff]   ;;  %v4874_v4 = vld [vmem:[%s8337_s0 + $0x140] sm:$0xff]   ;;  %v4875_v6 = vld [vmem:[%s8337_s0 + $0x148] sm:$0xff]  }
  0x17   :  { %v4906_v5 = vld [vmem:[%s8337_s0 + $0x240] sm:$0xff]   ;;  %v4907_v7 = vld [vmem:[%s8337_s0 + $0x248] sm:$0xff]   ;;  %v4876_v8 = vld [vmem:[%s8337_s0 + $0x150] sm:$0xff]  }
  0x18   :  { %v4908_v9 = vld [vmem:[%s8337_s0 + $0x250] sm:$0xff]   ;;  %v4877_v10 = vld [vmem:[%s8337_s0 + $0x158] sm:$0xff]   ;;  %v4918_v26 = vld [vmem:[%s8337_s0 + $0x2a0] sm:$0xff]  }
  0x19   :  { %v4917_v25 = vld [vmem:[%s8337_s0 + $0x298] sm:$0xff]   ;;  %v4919_v27 = vld [vmem:[%s8337_s0 + $0x2a8] sm:$0xff]  }
  0x1a   :  { %4640 = vmatmul.mubr.msk.bf16.gmra.mrb[8].mxu0 %vm719_vm2, %v4839_v11  ;;  %4740 = vmatmul.mubr.msk.bf16.gmra.mrb[8].mxu1 %vm719_vm2, %v4889_v34  ;;  %v4909_v11 = vld [vmem:[%s8337_s0 + $0x258] sm:$0xff]  }
  0x1b   :  { %4643 = vmatprep.mubr.msk.bf16.mxu0 %vm719_vm2, %v4840_v12  ;;  %4743 = vmatprep.mubr.msk.bf16.mxu1 %vm719_vm2, %v4890_v37  ;;  %v4878_v12 = vld [vmem:[%s8337_s0 + $0x160] sm:$0xff]  }
  0x22   :  { %4644 = vmatmul.mubr.msk.bf16.gmra.mrb[12].mxu0 %vm719_vm2, %v4841_v13  ;;  %4744 = vmatmul.mubr.msk.bf16.gmra.mrb[12].mxu1 %vm719_vm2, %v4891_v39  ;;  %v4910_v13 = vld [vmem:[%s8337_s0 + $0x260] sm:$0xff]   ;;  %v4923_v39 = vld [vmem:[%s8337_s0 + $0x2c8] sm:$0xff]  }
  0x23   :  { %4647 = vmatprep.mubr.msk.bf16.mxu0 %vm719_vm2, %v4842_v14  ;;  %4747 = vmatprep.mubr.msk.bf16.mxu1 %vm719_vm2, %v4892_v41  ;;  %v4879_v14 = vld [vmem:[%s8337_s0 + $0x168] sm:$0xff]  }
  0x2a   :  { %4648 = vmatmul.mubr.msk.bf16.gmra.mrb[16].mxu0 %vm719_vm2, %v4843_v15  ;;  %4748 = vmatmul.mubr.msk.bf16.gmra.mrb[16].mxu1 %vm719_vm2, %v4893_v43  ;;  %v4911_v15 = vld [vmem:[%s8337_s0 + $0x268] sm:$0xff]  }
  0x2b   :  { %4651 = vmatprep.mubr.msk.bf16.mxu0 %vm719_vm2, %v4844_v16  ;;  %4751 = vmatprep.mubr.msk.bf16.mxu1 %vm719_vm2, %v4894_v45  ;;  %v4880_v16 = vld [vmem:[%s8337_s0 + $0x170] sm:$0xff]  }
  0x32   :  { %4652 = vmatmul.mubr.msk.bf16.gmra.mrb[20].mxu0 %vm719_vm2, %v4845_v17  ;;  %4752 = vmatmul.mubr.msk.bf16.gmra.mrb[20].mxu1 %vm719_vm2, %v4895_v47  ;;  %v4912_v17 = vld [vmem:[%s8337_s0 + $0x270] sm:$0xff]  }
  0x33   :  { %4655 = vmatprep.mubr.msk.bf16.mxu0 %vm719_vm2, %v4846_v18  ;;  %4755 = vmatprep.mubr.msk.bf16.mxu1 %vm719_vm2, %v4896_v49  ;;  %v4881_v18 = vld [vmem:[%s8337_s0 + $0x178] sm:$0xff]  }
  0x3a   :  { %4656 = vmatmul.mubr.msk.bf16.gmra.mrb[24].mxu0 %vm719_vm2, %v4847_v19  ;;  %4756 = vmatmul.mubr.msk.bf16.gmra.mrb[24].mxu1 %vm719_vm2, %v4897_v51  ;;  %v4913_v19 = vld [vmem:[%s8337_s0 + $0x278] sm:$0xff]  }
  0x3b   :  { %4659 = vmatprep.mubr.msk.bf16.mxu0 %vm719_vm2, %v4848_v20  ;;  %4759 = vmatprep.mubr.msk.bf16.mxu1 %vm719_vm2, %v4898_v53  ;;  %v4882_v20 = vld [vmem:[%s8337_s0 + $0x180] sm:$0xff]  }
  0x42   :  { %4660 = vmatmul.mubr.msk.bf16.gmra.mrb[28].mxu0 %vm719_vm2, %v4849_v21  ;;  %4760 = vmatmul.mubr.msk.bf16.gmra.mrb[28].mxu1 %vm719_vm2, %v4899_v55  ;;  %v4914_v21 = vld [vmem:[%s8337_s0 + $0x280] sm:$0xff]  }
  0x43   :  { %4663 = vmatprep.mubr.msk.bf16.mxu0 %vm719_vm2, %v4850_v22  ;;  %4763 = vmatprep.mubr.msk.bf16.mxu1 %vm719_vm2, %v4900_v57  ;;  %v4883_v22 = vld [vmem:[%s8337_s0 + $0x188] sm:$0xff]  }
  0x4a   :  { %4664 = vmatmul.mubr.msk.bf16.gmra.mrb[32].mxu0 %vm719_vm2, %v4851_v23  ;;  %4764 = vmatmul.mubr.msk.bf16.gmra.mrb[32].mxu1 %vm719_vm2, %v4901_v59  ;;  %v4915_v23 = vld [vmem:[%s8337_s0 + $0x288] sm:$0xff]   ;;  %v4924_v59 = vld [vmem:[%s8337_s0 + $0x2d0] sm:$0xff]  }
  0x4b   :  { %4667 = vmatprep.mubr.msk.bf16.mxu0 %vm719_vm2, %v4852_v24  ;;  %4767 = vmatprep.mubr.msk.bf16.mxu1 %vm719_vm2, %v4902_v61  ;;  %v4916_v24 = vld [vmem:[%s8337_s0 + $0x290] sm:$0xff]  }
  0x52   :  { %4668 = vmatmul.mubr.msk.bf16.gmra.mrb[36].mxu0 %vm719_vm2, %v4853_v28  ;;  %4768 = vmatmul.mubr.msk.bf16.gmra.mrb[36].mxu1 %vm719_vm2, %v4903_v63 }
  0x53   :  { %4671 = vmatprep.mubr.msk.bf16.mxu0 %vm719_vm2, %v4854_v29  ;;  %4771 = vmatprep.mubr.msk.bf16.mxu1 %vm719_vm2, %v4904_v1  ;;  %v4920_v29 = vld [vmem:[%s8337_s0 + $0x2b0] sm:$0xff]   ;;  %v4925_v1 = vld [vmem:[%s8337_s0 + $0x2d8] sm:$0xff]  }
  0x5a   :  { %4672 = vmatmul.mubr.msk.bf16.gmra.mrb[40].mxu0 %vm719_vm2, %v4855_v31  ;;  %4772 = vmatmul.mubr.msk.bf16.gmra.mrb[40].mxu1 %vm719_vm2, %v4905_v3  ;;  %v4921_v31 = vld [vmem:[%s8337_s0 + $0x2b8] sm:$0xff]  }
  0x5b   :  { %4675 = vmatprep.mubr.msk.bf16.mxu0 %vm719_vm2, %v4856_v32  ;;  %4775 = vmatprep.mubr.msk.bf16.mxu1 %vm719_vm2, %v4906_v5 }
  0x62   :  { %4676 = vmatmul.mubr.msk.bf16.gmra.mrb[44].mxu0 %vm719_vm2, %v4857_v35  ;;  %4776 = vmatmul.mubr.msk.bf16.gmra.mrb[44].mxu1 %vm719_vm2, %v4907_v7  ;;  %v4922_v35 = vld [vmem:[%s8337_s0 + $0x2c0] sm:$0xff]  }
  0x63   :  { %4679 = vmatprep.mubr.msk.bf16.mxu0 %vm719_vm2, %v4858_v36  ;;  %4779 = vmatprep.mubr.msk.bf16.mxu1 %vm719_vm2, %v4908_v9 }
  0x6a   :  { %4680 = vmatmul.mubr.msk.bf16.gmra.mrb[48].mxu0 %vm719_vm2, %v4859_v38  ;;  %4780 = vmatmul.mubr.msk.bf16.gmra.mrb[48].mxu1 %vm719_vm2, %v4909_v11 }
  0x6b   :  { %4683 = vmatprep.mubr.msk.bf16.mxu0 %vm719_vm2, %v4860_v40  ;;  %4783 = vmatprep.mubr.msk.bf16.mxu1 %vm719_vm2, %v4910_v13 }
  0x72   :  { %4684 = vmatmul.mubr.msk.bf16.gmra.mrb[52].mxu0 %vm719_vm2, %v4861_v42  ;;  %4784 = vmatmul.mubr.msk.bf16.gmra.mrb[52].mxu1 %vm719_vm2, %v4911_v15 }
  0x73   :  { %4687 = vmatprep.mubr.msk.bf16.mxu0 %vm719_vm2, %v4862_v44  ;;  %4787 = vmatprep.mubr.msk.bf16.mxu1 %vm719_vm2, %v4912_v17 }
  0x7a   :  { %4688 = vmatmul.mubr.msk.bf16.gmra.mrb[56].mxu0 %vm719_vm2, %v4863_v46  ;;  %4788 = vmatmul.mubr.msk.bf16.gmra.mrb[56].mxu1 %vm719_vm2, %v4913_v19 }
  0x7b   :  { %4691 = vmatprep.mubr.msk.bf16.mxu0 %vm719_vm2, %v4864_v48  ;;  %4791 = vmatprep.mubr.msk.bf16.mxu1 %vm719_vm2, %v4914_v21 }
  0x82   :  { %4692 = vmatmul.mubr.msk.bf16.gmra.mrb[60].mxu0 %vm719_vm2, %v4865_v50  ;;  %4792 = vmatmul.mubr.msk.bf16.gmra.mrb[60].mxu1 %vm719_vm2, %v4915_v23 }
  0x83   :  { %4695 = vmatprep.mubr.msk.bf16.mxu0 %vm719_vm2, %v4866_v52  ;;  %4795 = vmatprep.mubr.msk.bf16.mxu1 %vm719_vm2, %v4916_v24 }
  0x8a   :  { %4696 = vmatmul.mubr.msk.bf16.gmra.mrb[64].mxu0 %vm719_vm2, %v4867_v54  ;;  %4796 = vmatmul.mubr.msk.bf16.gmra.mrb[64].mxu1 %vm719_vm2, %v4917_v25  ;;  %v4926_v25 = vld [vmem:[%s8337_s0 + $0x2e0] sm:$0xff]  }
  0x8b   :  { %4699 = vmatprep.mubr.msk.bf16.mxu0 %vm719_vm2, %v4868_v56  ;;  %4799 = vmatprep.mubr.msk.bf16.mxu1 %vm719_vm2, %v4918_v26 }
  0x92   :  { %4700 = vmatmul.mubr.msk.bf16.gmra.mrb[68].mxu0 %vm719_vm2, %v4869_v58  ;;  %4800 = vmatmul.mubr.msk.bf16.gmra.mrb[68].mxu1 %vm719_vm2, %v4919_v27 }
  0x93   :  { %4703 = vmatprep.mubr.msk.bf16.mxu0 %vm719_vm2, %v4870_v60  ;;  %4803 = vmatprep.mubr.msk.bf16.mxu1 %vm719_vm2, %v4920_v29 }
  0x9a   :  { %4704 = vmatmul.mubr.msk.bf16.gmra.mrb[72].mxu0 %vm719_vm2, %v4871_v62  ;;  %4804 = vmatmul.mubr.msk.bf16.gmra.mrb[72].mxu1 %vm719_vm2, %v4921_v31  ;;  %v4927_v31 = vld [vmem:[%s8337_s0 + $0x2e8] sm:$0xff]  }
  0x9b   :  { %4707 = vmatprep.mubr.msk.bf16.mxu0 %vm719_vm2, %v4872_v0  ;;  %4807 = vmatprep.mubr.msk.bf16.mxu1 %vm719_vm2, %v4922_v35 }
  0xa2   :  { %4708 = vmatmul.mubr.msk.bf16.gmra.mrb[76].mxu0 %vm719_vm2, %v4873_v2  ;;  %4808 = vmatmul.mubr.msk.bf16.gmra.mrb[76].mxu1 %vm719_vm2, %v4923_v39 }
  0xa3   :  { %4711 = vmatprep.mubr.msk.bf16.mxu0 %vm719_vm2, %v4874_v4  ;;  %4811 = vmatprep.mubr.msk.bf16.mxu1 %vm719_vm2, %v4924_v59 }
  0xaa   :  { %4712 = vmatmul.mubr.msk.bf16.gmra.mrb[80].mxu0 %vm719_vm2, %v4875_v6  ;;  %4812 = vmatmul.mubr.msk.bf16.gmra.mrb[80].mxu1 %vm719_vm2, %v4925_v1 }
  0xab   :  { %4715 = vmatprep.mubr.msk.bf16.mxu0 %vm719_vm2, %v4876_v8  ;;  %4815 = vmatprep.mubr.msk.bf16.mxu1 %vm719_vm2, %v4926_v25 }
  0xb2   :  { %4716 = vmatmul.mubr.msk.bf16.gmra.mrb[84].mxu0 %vm719_vm2, %v4877_v10  ;;  %4816 = vmatmul.mubr.msk.bf16.gmra.mrb[84].mxu1 %vm719_vm2, %v4927_v31 }
  0xb3   :  { %4719 = vmatprep.mubr.msk.bf16.mxu0 %vm719_vm2, %v4878_v12 }
  0xba   :  { %4720 = vmatmul.mubr.msk.bf16.gmra.mrb[88].mxu0 %vm719_vm2, %v4879_v14 }
  0xbb   :  { %4723 = vmatprep.mubr.msk.bf16.mxu0 %vm719_vm2, %v4880_v16 }
  0xc2   :  { %4724 = vmatmul.mubr.msk.bf16.gmra.mrb[92].mxu0 %vm719_vm2, %v4881_v18 }
  0xc3   :  { %4727 = vmatprep.mubr.msk.bf16.mxu0 %vm719_vm2, %v4882_v20 }
  0xca   :  { %4728 = vmatmul.mubr.msk.bf16.gmra.mrb[96].mxu0 %vm719_vm2, %v4883_v22 }
  0xdd   :  { %v4633_v28 = vpop.f32.mrb[0].mxu0 }
  0xde   :  { %1841 = vst.msk [vmem:[#allocation2 + $0x10] sm:$0xff] %vm1838_vm3, %v4633_v28  ;;  %v1055_v30 = vpop.f32.mrb[1].mxu0 }
  0xdf   :  { %1839 = vst.msk [vmem:[#allocation2] sm:$0xff] %vm1838_vm3, %v1055_v30  ;;  %v4634_v32 = vpop.f32.mrb[2].mxu0 }
  0xe0   :  { %1842 = vst.msk [vmem:[#allocation2 + $0x18] sm:$0xff] %vm1838_vm3, %v4634_v32  ;;  %v1058_v33 = vpop.f32.mrb[3].mxu0 }
  0xe1   :  { %1840 = vst.msk [vmem:[#allocation2 + $0x8] sm:$0xff] %vm1838_vm3, %v1058_v33 }
  0xe5   :  { %v4637_v34 = vpop.f32.mrb[4].mxu0  ;;  %v2037_v36 = vld [vmem:[#allocation2 + $0x10] sm:$0xff] }
  0xe6   :  { %v2035_v37 = vld [vmem:[#allocation2] sm:$0xff]  ;;  %1845 = vst.msk [vmem:[#allocation2 + $0x30] sm:$0xff] %vm1838_vm3, %v4637_v34  ;;  %v1071_v38 = vpop.f32.mrb[5].mxu0  ;;  %v2631_v45 = vmul.f32 %v2037_v36, %v2037_v36  ;;  %v2234_v50 = vsel %vm1838_vm3, %v2037_v36, 0.0 }
  0xe7   :  { %v2629_v40 = vmul.f32 %v2035_v37, %v2035_v37  ;;  %1843 = vst.msk [vmem:[#allocation2 + $0x20] sm:$0xff] %vm1838_vm3, %v1071_v38  ;;  %v4638_v41 = vpop.f32.mrb[6].mxu0  ;;  %v2038_v42 = vld [vmem:[#allocation2 + $0x18] sm:$0xff]  ;;  %v2231_v46 = vsel %vm1838_vm3, %v2035_v37, 0.0 }
  0xe8   :  { %v2036_v43 = vld [vmem:[#allocation2 + $0x8] sm:$0xff]  ;;  %1846 = vst.msk [vmem:[#allocation2 + $0x38] sm:$0xff] %vm1838_vm3, %v4638_v41  ;;  %v1074_v44 = vpop.f32.mrb[7].mxu0  ;;  %v2632_v52 = vmul.f32 %v2038_v42, %v2038_v42  ;;  %v2828_v56 = vsel %vm1838_vm3, %v2631_v45, 0.0  ;;  %v2236_v57 = vsel %vm1838_vm3, %v2038_v42, 0.0 }
  0xe9   :  { %v2232_v47 = vsel %vm1838_vm3, %v2036_v43, 0.0  ;;  %v2630_v48 = vmul.f32 %v2036_v43, %v2036_v43  ;;  %1844 = vst.msk [vmem:[#allocation2 + $0x28] sm:$0xff] %vm1838_vm3, %v1074_v44  ;;  %v2825_v51 = vsel %vm1838_vm3, %v2629_v40, 0.0 }
  0xea   :  { %v2233_v49 = vadd.f32 %v2232_v47, %v2231_v46  ;;  %v2830_v2 = vsel %vm1838_vm3, %v2632_v52, 0.0 }
  0xeb   :  { %v2826_v53 = vsel %vm1838_vm3, %v2630_v48, 0.0 }
  0xec   :  { %v2235_v54 = vadd.f32 %v2234_v50, %v2233_v49  ;;  %v2827_v55 = vadd.f32 %v2826_v53, %v2825_v51 }
  0xed   :  { %v4641_v58 = vpop.f32.mrb[8].mxu0  ;;  %v2041_v62 = vld [vmem:[#allocation2 + $0x30] sm:$0xff] }
  0xee   :  { %v2237_v60 = vadd.f32 %v2236_v57, %v2235_v54  ;;  %v2829_v61 = vadd.f32 %v2828_v56, %v2827_v55  ;;  %v2039_v63 = vld [vmem:[#allocation2 + $0x20] sm:$0xff]  ;;  %1849 = vst.msk [vmem:[#allocation2 + $0x50] sm:$0xff] %vm1838_vm3, %v4641_v58  ;;  %v1087_v0 = vpop.f32.mrb[9].mxu0  ;;  %v2635_v11 = vmul.f32 %v2041_v62, %v2041_v62  ;;  %v2242_v17 = vsel %vm1838_vm3, %v2041_v62, 0.0  ;;  %v4928_v55 = vld [vmem:[%s8337_s0 + $0x2f0] sm:$0xff]  }
  0xef   :  { %v2238_v3 = vsel %vm1838_vm3, %v2039_v63, 0.0  ;;  %v2633_v4 = vmul.f32 %v2039_v63, %v2039_v63  ;;  %1847 = vst.msk [vmem:[#allocation2 + $0x40] sm:$0xff] %vm1838_vm3, %v1087_v0  ;;  %v4642_v5 = vpop.f32.mrb[10].mxu0  ;;  %v2042_v8 = vld [vmem:[#allocation2 + $0x38] sm:$0xff]  ;;  %4819 = vmatprep.mubr.msk.bf16.mxu1 %vm719_vm2, %v4928_v55 }
  0xf0   :  { %v2831_v6 = vadd.f32 %v2830_v2, %v2829_v61  ;;  %v2239_v7 = vadd.f32 %v2238_v3, %v2237_v60  ;;  %v2040_v9 = vld [vmem:[#allocation2 + $0x28] sm:$0xff]  ;;  %1850 = vst.msk [vmem:[#allocation2 + $0x58] sm:$0xff] %vm1838_vm3, %v4642_v5  ;;  %v1090_v10 = vpop.f32.mrb[11].mxu0  ;;  %v2636_v18 = vmul.f32 %v2042_v8, %v2042_v8  ;;  %v2836_v22 = vsel %vm1838_vm3, %v2635_v11, 0.0  ;;  %v4929_v61 = vld [vmem:[%s8337_s0 + $0x2f8] sm:$0xff]  }
  0xf1   :  { %v2832_v12 = vsel %vm1838_vm3, %v2633_v4, 0.0  ;;  %v2240_v13 = vsel %vm1838_vm3, %v2040_v9, 0.0  ;;  %v2634_v14 = vmul.f32 %v2040_v9, %v2040_v9  ;;  %1848 = vst.msk [vmem:[#allocation2 + $0x48] sm:$0xff] %vm1838_vm3, %v1090_v10  ;;  %v2244_v23 = vsel %vm1838_vm3, %v2042_v8, 0.0  ;;  %4820 = vmatmul.mubr.msk.bf16.gmra.mrb[88].mxu1 %vm719_vm2, %v4929_v61 }
  0xf2   :  { %v2833_v15 = vadd.f32 %v2832_v12, %v2831_v6  ;;  %v2241_v16 = vadd.f32 %v2240_v13, %v2239_v7  ;;  %v2838_v32 = vsel %vm1838_vm3, %v2636_v18, 0.0 }
  0xf3   :  { %v2834_v19 = vsel %vm1838_vm3, %v2634_v14, 0.0 }
  0xf4   :  { %v2243_v20 = vadd.f32 %v2242_v17, %v2241_v16  ;;  %v2835_v21 = vadd.f32 %v2834_v19, %v2833_v15 }
  0xf5   :  { %v4645_v24 = vpop.f32.mrb[12].mxu0  ;;  %v2045_v28 = vld [vmem:[#allocation2 + $0x50] sm:$0xff] }
  0xf6   :  { %v2245_v26 = vadd.f32 %v2244_v23, %v2243_v20  ;;  %v2837_v27 = vadd.f32 %v2836_v22, %v2835_v21  ;;  %v2043_v29 = vld [vmem:[#allocation2 + $0x40] sm:$0xff]  ;;  %1853 = vst.msk [vmem:[#allocation2 + $0x70] sm:$0xff] %vm1838_vm3, %v4645_v24  ;;  %v1103_v30 = vpop.f32.mrb[13].mxu0  ;;  %v2639_v41 = vmul.f32 %v2045_v28, %v2045_v28  ;;  %v2250_v47 = vsel %vm1838_vm3, %v2045_v28, 0.0 }
  0xf7   :  { %v2246_v33 = vsel %vm1838_vm3, %v2043_v29, 0.0  ;;  %v2637_v34 = vmul.f32 %v2043_v29, %v2043_v29  ;;  %1851 = vst.msk [vmem:[#allocation2 + $0x60] sm:$0xff] %vm1838_vm3, %v1103_v30  ;;  %v4646_v35 = vpop.f32.mrb[14].mxu0  ;;  %v2046_v38 = vld [vmem:[#allocation2 + $0x58] sm:$0xff]  ;;  %v4930_v21 = vld [vmem:[%s8337_s0 + $0x300] sm:$0xff]  }
  0xf8   :  { %v2839_v36 = vadd.f32 %v2838_v32, %v2837_v27  ;;  %v2247_v37 = vadd.f32 %v2246_v33, %v2245_v26  ;;  %v2044_v39 = vld [vmem:[#allocation2 + $0x48] sm:$0xff]  ;;  %1854 = vst.msk [vmem:[#allocation2 + $0x78] sm:$0xff] %vm1838_vm3, %v4646_v35  ;;  %v1106_v40 = vpop.f32.mrb[15].mxu0  ;;  %v2640_v48 = vmul.f32 %v2046_v38, %v2046_v38  ;;  %v2844_v52 = vsel %vm1838_vm3, %v2639_v41, 0.0  ;;  %4823 = vmatprep.mubr.msk.bf16.mxu1 %vm719_vm2, %v4930_v21 }
  0xf9   :  { %v2840_v42 = vsel %vm1838_vm3, %v2637_v34, 0.0  ;;  %v2248_v43 = vsel %vm1838_vm3, %v2044_v39, 0.0  ;;  %v2638_v44 = vmul.f32 %v2044_v39, %v2044_v39  ;;  %1852 = vst.msk [vmem:[#allocation2 + $0x68] sm:$0xff] %vm1838_vm3, %v1106_v40  ;;  %v2252_v53 = vsel %vm1838_vm3, %v2046_v38, 0.0  ;;  %v4931_v27 = vld [vmem:[%s8337_s0 + $0x308] sm:$0xff]  }
  0xfa   :  { %v2841_v45 = vadd.f32 %v2840_v42, %v2839_v36  ;;  %v2249_v46 = vadd.f32 %v2248_v43, %v2247_v37  ;;  %v2846_v62 = vsel %vm1838_vm3, %v2640_v48, 0.0  ;;  %4824 = vmatmul.mubr.msk.bf16.gmra.mrb[92].mxu1 %vm719_vm2, %v4931_v27 }
  0xfb   :  { %v2842_v49 = vsel %vm1838_vm3, %v2638_v44, 0.0 }
  0xfc   :  { %v2251_v50 = vadd.f32 %v2250_v47, %v2249_v46  ;;  %v2843_v51 = vadd.f32 %v2842_v49, %v2841_v45 }
  0xfd   :  { %v4649_v54 = vpop.f32.mrb[16].mxu0  ;;  %v2049_v58 = vld [vmem:[#allocation2 + $0x70] sm:$0xff] }
  0xfe   :  { %v2253_v56 = vadd.f32 %v2252_v53, %v2251_v50  ;;  %v2845_v57 = vadd.f32 %v2844_v52, %v2843_v51  ;;  %v2047_v59 = vld [vmem:[#allocation2 + $0x60] sm:$0xff]  ;;  %1857 = vst.msk [vmem:[#allocation2 + $0x90] sm:$0xff] %vm1838_vm3, %v4649_v54  ;;  %v1119_v60 = vpop.f32.mrb[17].mxu0  ;;  %v2643_v7 = vmul.f32 %v2049_v58, %v2049_v58  ;;  %v2258_v13 = vsel %vm1838_vm3, %v2049_v58, 0.0 }
  0xff   :  { %v2254_v63 = vsel %vm1838_vm3, %v2047_v59, 0.0  ;;  %v2641_v0 = vmul.f32 %v2047_v59, %v2047_v59  ;;  %1855 = vst.msk [vmem:[#allocation2 + $0x80] sm:$0xff] %vm1838_vm3, %v1119_v60  ;;  %v4650_v1 = vpop.f32.mrb[18].mxu0  ;;  %v2050_v4 = vld [vmem:[#allocation2 + $0x78] sm:$0xff] }
 0x100   :  { %v2847_v2 = vadd.f32 %v2846_v62, %v2845_v57  ;;  %v2255_v3 = vadd.f32 %v2254_v63, %v2253_v56  ;;  %v2048_v5 = vld [vmem:[#allocation2 + $0x68] sm:$0xff]  ;;  %1858 = vst.msk [vmem:[#allocation2 + $0x98] sm:$0xff] %vm1838_vm3, %v4650_v1  ;;  %v1122_v6 = vpop.f32.mrb[19].mxu0  ;;  %v2644_v14 = vmul.f32 %v2050_v4, %v2050_v4  ;;  %v2852_v18 = vsel %vm1838_vm3, %v2643_v7, 0.0 }
 0x101   :  { %v2848_v8 = vsel %vm1838_vm3, %v2641_v0, 0.0  ;;  %v2256_v9 = vsel %vm1838_vm3, %v2048_v5, 0.0  ;;  %v2642_v10 = vmul.f32 %v2048_v5, %v2048_v5  ;;  %1856 = vst.msk [vmem:[#allocation2 + $0x88] sm:$0xff] %vm1838_vm3, %v1122_v6  ;;  %v2260_v19 = vsel %vm1838_vm3, %v2050_v4, 0.0 }
 0x102   :  { %v2849_v11 = vadd.f32 %v2848_v8, %v2847_v2  ;;  %v2257_v12 = vadd.f32 %v2256_v9, %v2255_v3  ;;  %v2854_v28 = vsel %vm1838_vm3, %v2644_v14, 0.0 }
 0x103   :  { %v2850_v15 = vsel %vm1838_vm3, %v2642_v10, 0.0 }
 0x104   :  { %v2259_v16 = vadd.f32 %v2258_v13, %v2257_v12  ;;  %v2851_v17 = vadd.f32 %v2850_v15, %v2849_v11 }
 0x105   :  { %v4653_v20 = vpop.f32.mrb[20].mxu0  ;;  %v2053_v24 = vld [vmem:[#allocation2 + $0x90] sm:$0xff] }
 0x106   :  { %v2261_v22 = vadd.f32 %v2260_v19, %v2259_v16  ;;  %v2853_v23 = vadd.f32 %v2852_v18, %v2851_v17  ;;  %v2051_v25 = vld [vmem:[#allocation2 + $0x80] sm:$0xff]  ;;  %1861 = vst.msk [vmem:[#allocation2 + $0xb0] sm:$0xff] %vm1838_vm3, %v4653_v20  ;;  %v1135_v26 = vpop.f32.mrb[21].mxu0  ;;  %v2647_v37 = vmul.f32 %v2053_v24, %v2053_v24  ;;  %v2266_v43 = vsel %vm1838_vm3, %v2053_v24, 0.0 }
 0x107   :  { %v2262_v29 = vsel %vm1838_vm3, %v2051_v25, 0.0  ;;  %v2645_v30 = vmul.f32 %v2051_v25, %v2051_v25  ;;  %1859 = vst.msk [vmem:[#allocation2 + $0xa0] sm:$0xff] %vm1838_vm3, %v1135_v26  ;;  %v4654_v31 = vpop.f32.mrb[22].mxu0  ;;  %v2054_v34 = vld [vmem:[#allocation2 + $0x98] sm:$0xff] }
 0x108   :  { %v2855_v32 = vadd.f32 %v2854_v28, %v2853_v23  ;;  %v2263_v33 = vadd.f32 %v2262_v29, %v2261_v22  ;;  %v2052_v35 = vld [vmem:[#allocation2 + $0x88] sm:$0xff]  ;;  %1862 = vst.msk [vmem:[#allocation2 + $0xb8] sm:$0xff] %vm1838_vm3, %v4654_v31  ;;  %v1138_v36 = vpop.f32.mrb[23].mxu0  ;;  %v2648_v44 = vmul.f32 %v2054_v34, %v2054_v34  ;;  %v2860_v48 = vsel %vm1838_vm3, %v2647_v37, 0.0 }
 0x109   :  { %v2856_v38 = vsel %vm1838_vm3, %v2645_v30, 0.0  ;;  %v2264_v39 = vsel %vm1838_vm3, %v2052_v35, 0.0  ;;  %v2646_v40 = vmul.f32 %v2052_v35, %v2052_v35  ;;  %1860 = vst.msk [vmem:[#allocation2 + $0xa8] sm:$0xff] %vm1838_vm3, %v1138_v36  ;;  %v2268_v49 = vsel %vm1838_vm3, %v2054_v34, 0.0 }
 0x10a   :  { %v2857_v41 = vadd.f32 %v2856_v38, %v2855_v32  ;;  %v2265_v42 = vadd.f32 %v2264_v39, %v2263_v33  ;;  %v2862_v56 = vsel %vm1838_vm3, %v2648_v44, 0.0 }
 0x10b   :  { %v2858_v45 = vsel %vm1838_vm3, %v2646_v40, 0.0 }
 0x10c   :  { %v2267_v46 = vadd.f32 %v2266_v43, %v2265_v42  ;;  %v2859_v47 = vadd.f32 %v2858_v45, %v2857_v41 }
 0x10d   :  { %v4657_v50 = vpop.f32.mrb[24].mxu0  ;;  %v2057_v53 = vld [vmem:[#allocation2 + $0xb0] sm:$0xff] }
 0x10e   :  { %v2269_v51 = vadd.f32 %v2268_v49, %v2267_v46  ;;  %v2861_v52 = vadd.f32 %v2860_v48, %v2859_v47  ;;  %v2055_v54 = vld [vmem:[#allocation2 + $0xa0] sm:$0xff]  ;;  %1865 = vst.msk [vmem:[#allocation2 + $0xd0] sm:$0xff] %vm1838_vm3, %v4657_v50  ;;  %v1151_v55 = vpop.f32.mrb[25].mxu0  ;;  %v2651_v1 = vmul.f32 %v2057_v53, %v2057_v53  ;;  %v2274_v7 = vsel %vm1838_vm3, %v2057_v53, 0.0 }
 0x10f   :  { %v2270_v57 = vsel %vm1838_vm3, %v2055_v54, 0.0  ;;  %v2649_v58 = vmul.f32 %v2055_v54, %v2055_v54  ;;  %1863 = vst.msk [vmem:[#allocation2 + $0xc0] sm:$0xff] %vm1838_vm3, %v1151_v55  ;;  %v4658_v59 = vpop.f32.mrb[26].mxu0  ;;  %v2058_v62 = vld [vmem:[#allocation2 + $0xb8] sm:$0xff] }
 0x110   :  { %v2863_v60 = vadd.f32 %v2862_v56, %v2861_v52  ;;  %v2271_v61 = vadd.f32 %v2270_v57, %v2269_v51  ;;  %v2056_v63 = vld [vmem:[#allocation2 + $0xa8] sm:$0xff]  ;;  %1866 = vst.msk [vmem:[#allocation2 + $0xd8] sm:$0xff] %vm1838_vm3, %v4658_v59  ;;  %v1154_v0 = vpop.f32.mrb[27].mxu0  ;;  %v2652_v8 = vmul.f32 %v2058_v62, %v2058_v62  ;;  %v2868_v12 = vsel %vm1838_vm3, %v2651_v1, 0.0 }
 0x111   :  { %v2864_v2 = vsel %vm1838_vm3, %v2649_v58, 0.0  ;;  %v2272_v3 = vsel %vm1838_vm3, %v2056_v63, 0.0  ;;  %v2650_v4 = vmul.f32 %v2056_v63, %v2056_v63  ;;  %1864 = vst.msk [vmem:[#allocation2 + $0xc8] sm:$0xff] %vm1838_vm3, %v1154_v0  ;;  %v2276_v13 = vsel %vm1838_vm3, %v2058_v62, 0.0 }
 0x112   :  { %v2865_v5 = vadd.f32 %v2864_v2, %v2863_v60  ;;  %v2273_v6 = vadd.f32 %v2272_v3, %v2271_v61  ;;  %v2870_v20 = vsel %vm1838_vm3, %v2652_v8, 0.0  ;;  %v4733_v2 = vpop.f32.mrb[0].mxu1 }
 0x113   :  { %v2866_v9 = vsel %vm1838_vm3, %v2650_v4, 0.0  ;;  %1941 = vst.msk [vmem:[#allocation2 + $0x330] sm:$0xff] %vm1838_vm3, %v4733_v2 }
 0x114   :  { %v2275_v10 = vadd.f32 %v2274_v7, %v2273_v6  ;;  %v2867_v11 = vadd.f32 %v2866_v9, %v2865_v5  ;;  %v1455_v5 = vpop.f32.mrb[1].mxu1 }
 0x115   :  { %v4661_v14 = vpop.f32.mrb[28].mxu0  ;;  %v2061_v17 = vld [vmem:[#allocation2 + $0xd0] sm:$0xff]  ;;  %1939 = vst.msk [vmem:[#allocation2 + $0x320] sm:$0xff] %vm1838_vm3, %v1455_v5  ;;  %v4734_v9 = vpop.f32.mrb[2].mxu1 }
 0x116   :  { %v2277_v15 = vadd.f32 %v2276_v13, %v2275_v10  ;;  %v2869_v16 = vadd.f32 %v2868_v12, %v2867_v11  ;;  %v2059_v18 = vld [vmem:[#allocation2 + $0xc0] sm:$0xff]  ;;  %1869 = vst.msk [vmem:[#allocation2 + $0xf0] sm:$0xff] %vm1838_vm3, %v4661_v14  ;;  %v1167_v19 = vpop.f32.mrb[29].mxu0  ;;  %v2655_v29 = vmul.f32 %v2061_v17, %v2061_v17  ;;  %v2282_v35 = vsel %vm1838_vm3, %v2061_v17, 0.0  ;;  %1942 = vst.msk [vmem:[#allocation2 + $0x338] sm:$0xff] %vm1838_vm3, %v4734_v9 }
 0x117   :  { %v2278_v21 = vsel %vm1838_vm3, %v2059_v18, 0.0  ;;  %v2653_v22 = vmul.f32 %v2059_v18, %v2059_v18  ;;  %1867 = vst.msk [vmem:[#allocation2 + $0xe0] sm:$0xff] %vm1838_vm3, %v1167_v19  ;;  %v4662_v23 = vpop.f32.mrb[30].mxu0  ;;  %v2062_v26 = vld [vmem:[#allocation2 + $0xd8] sm:$0xff] }
 0x118   :  { %v2871_v24 = vadd.f32 %v2870_v20, %v2869_v16  ;;  %v2279_v25 = vadd.f32 %v2278_v21, %v2277_v15  ;;  %v2060_v27 = vld [vmem:[#allocation2 + $0xc8] sm:$0xff]  ;;  %1870 = vst.msk [vmem:[#allocation2 + $0xf8] sm:$0xff] %vm1838_vm3, %v4662_v23  ;;  %v1170_v28 = vpop.f32.mrb[31].mxu0  ;;  %v2656_v36 = vmul.f32 %v2062_v26, %v2062_v26  ;;  %v2876_v40 = vsel %vm1838_vm3, %v2655_v29, 0.0  ;;  %v1458_v15 = vpop.f32.mrb[3].mxu1 }
 0x119   :  { %v2872_v30 = vsel %vm1838_vm3, %v2653_v22, 0.0  ;;  %v2280_v31 = vsel %vm1838_vm3, %v2060_v27, 0.0  ;;  %v2654_v32 = vmul.f32 %v2060_v27, %v2060_v27  ;;  %1868 = vst.msk [vmem:[#allocation2 + $0xe8] sm:$0xff] %vm1838_vm3, %v1170_v28  ;;  %v2284_v41 = vsel %vm1838_vm3, %v2062_v26, 0.0  ;;  %1940 = vst.msk [vmem:[#allocation2 + $0x328] sm:$0xff] %vm1838_vm3, %v1458_v15 }
 0x11a   :  { %v2873_v33 = vadd.f32 %v2872_v30, %v2871_v24  ;;  %v2281_v34 = vadd.f32 %v2280_v31, %v2279_v25  ;;  %v2878_v48 = vsel %vm1838_vm3, %v2656_v36, 0.0 }
 0x11b   :  { %v2874_v37 = vsel %vm1838_vm3, %v2654_v32, 0.0 }
 0x11c   :  { %v2283_v38 = vadd.f32 %v2282_v35, %v2281_v34  ;;  %v2875_v39 = vadd.f32 %v2874_v37, %v2873_v33  ;;  %v4737_v34 = vpop.f32.mrb[4].mxu1 }
 0x11d   :  { %v4665_v42 = vpop.f32.mrb[32].mxu0  ;;  %v2065_v45 = vld [vmem:[#allocation2 + $0xf0] sm:$0xff]  ;;  %1945 = vst.msk [vmem:[#allocation2 + $0x350] sm:$0xff] %vm1838_vm3, %v4737_v34  ;;  %v1471_v37 = vpop.f32.mrb[5].mxu1 }
 0x11e   :  { %v2285_v43 = vadd.f32 %v2284_v41, %v2283_v38  ;;  %v2877_v44 = vadd.f32 %v2876_v40, %v2875_v39  ;;  %v2063_v46 = vld [vmem:[#allocation2 + $0xe0] sm:$0xff]  ;;  %1873 = vst.msk [vmem:[#allocation2 + $0x110] sm:$0xff] %vm1838_vm3, %v4665_v42  ;;  %v1183_v47 = vpop.f32.mrb[33].mxu0  ;;  %v2659_v57 = vmul.f32 %v2065_v45, %v2065_v45  ;;  %v2290_v63 = vsel %vm1838_vm3, %v2065_v45, 0.0  ;;  %1943 = vst.msk [vmem:[#allocation2 + $0x340] sm:$0xff] %vm1838_vm3, %v1471_v37  ;;  %v4738_v41 = vpop.f32.mrb[6].mxu1 }
 0x11f   :  { %v2286_v49 = vsel %vm1838_vm3, %v2063_v46, 0.0  ;;  %v2657_v50 = vmul.f32 %v2063_v46, %v2063_v46  ;;  %1871 = vst.msk [vmem:[#allocation2 + $0x100] sm:$0xff] %vm1838_vm3, %v1183_v47  ;;  %v4666_v51 = vpop.f32.mrb[34].mxu0  ;;  %v2066_v54 = vld [vmem:[#allocation2 + $0xf8] sm:$0xff]  ;;  %1946 = vst.msk [vmem:[#allocation2 + $0x358] sm:$0xff] %vm1838_vm3, %v4738_v41  ;;  %v1474_v47 = vpop.f32.mrb[7].mxu1 }
 0x120   :  { %v2879_v52 = vadd.f32 %v2878_v48, %v2877_v44  ;;  %v2287_v53 = vadd.f32 %v2286_v49, %v2285_v43  ;;  %v2064_v55 = vld [vmem:[#allocation2 + $0xe8] sm:$0xff]  ;;  %1874 = vst.msk [vmem:[#allocation2 + $0x118] sm:$0xff] %vm1838_vm3, %v4666_v51  ;;  %v1186_v56 = vpop.f32.mrb[35].mxu0  ;;  %v2660_v0 = vmul.f32 %v2066_v54, %v2066_v54  ;;  %v2884_v6 = vsel %vm1838_vm3, %v2659_v57, 0.0  ;;  %1944 = vst.msk [vmem:[#allocation2 + $0x348] sm:$0xff] %vm1838_vm3, %v1474_v47  ;;  %v4741_v2 = vpop.f32.mrb[8].mxu1 }
 0x121   :  { %v2880_v58 = vsel %vm1838_vm3, %v2657_v50, 0.0  ;;  %v2288_v59 = vsel %vm1838_vm3, %v2064_v55, 0.0  ;;  %v2658_v60 = vmul.f32 %v2064_v55, %v2064_v55  ;;  %1872 = vst.msk [vmem:[#allocation2 + $0x108] sm:$0xff] %vm1838_vm3, %v1186_v56  ;;  %v2292_v7 = vsel %vm1838_vm3, %v2066_v54, 0.0  ;;  %1949 = vst.msk [vmem:[#allocation2 + $0x370] sm:$0xff] %vm1838_vm3, %v4741_v2  ;;  %v1487_v5 = vpop.f32.mrb[9].mxu1 }
 0x122   :  { %v2881_v61 = vadd.f32 %v2880_v58, %v2879_v52  ;;  %v2289_v62 = vadd.f32 %v2288_v59, %v2287_v53  ;;  %v2886_v16 = vsel %vm1838_vm3, %v2660_v0, 0.0  ;;  %1947 = vst.msk [vmem:[#allocation2 + $0x360] sm:$0xff] %vm1838_vm3, %v1487_v5  ;;  %v4742_v9 = vpop.f32.mrb[10].mxu1 }
 0x123   :  { %v2882_v1 = vsel %vm1838_vm3, %v2658_v60, 0.0  ;;  %1950 = vst.msk [vmem:[#allocation2 + $0x378] sm:$0xff] %vm1838_vm3, %v4742_v9  ;;  %v1490_v15 = vpop.f32.mrb[11].mxu1 }
 0x124   :  { %v2291_v3 = vadd.f32 %v2290_v63, %v2289_v62  ;;  %v2883_v4 = vadd.f32 %v2882_v1, %v2881_v61  ;;  %1948 = vst.msk [vmem:[#allocation2 + $0x368] sm:$0xff] %vm1838_vm3, %v1490_v15  ;;  %v4745_v34 = vpop.f32.mrb[12].mxu1 }
 0x125   :  { %v4669_v8 = vpop.f32.mrb[36].mxu0  ;;  %v2069_v12 = vld [vmem:[#allocation2 + $0x110] sm:$0xff]  ;;  %1953 = vst.msk [vmem:[#allocation2 + $0x390] sm:$0xff] %vm1838_vm3, %v4745_v34  ;;  %v1503_v37 = vpop.f32.mrb[13].mxu1 }
 0x126   :  { %v2293_v10 = vadd.f32 %v2292_v7, %v2291_v3  ;;  %v2885_v11 = vadd.f32 %v2884_v6, %v2883_v4  ;;  %v2067_v13 = vld [vmem:[#allocation2 + $0x100] sm:$0xff]  ;;  %1877 = vst.msk [vmem:[#allocation2 + $0x130] sm:$0xff] %vm1838_vm3, %v4669_v8  ;;  %v1199_v14 = vpop.f32.mrb[37].mxu0  ;;  %v2663_v25 = vmul.f32 %v2069_v12, %v2069_v12  ;;  %v2298_v31 = vsel %vm1838_vm3, %v2069_v12, 0.0  ;;  %1951 = vst.msk [vmem:[#allocation2 + $0x380] sm:$0xff] %vm1838_vm3, %v1503_v37  ;;  %v4746_v41 = vpop.f32.mrb[14].mxu1 }
 0x127   :  { %v2294_v17 = vsel %vm1838_vm3, %v2067_v13, 0.0  ;;  %v2661_v18 = vmul.f32 %v2067_v13, %v2067_v13  ;;  %1875 = vst.msk [vmem:[#allocation2 + $0x120] sm:$0xff] %vm1838_vm3, %v1199_v14  ;;  %v4670_v19 = vpop.f32.mrb[38].mxu0  ;;  %v2070_v22 = vld [vmem:[#allocation2 + $0x118] sm:$0xff]  ;;  %1954 = vst.msk [vmem:[#allocation2 + $0x398] sm:$0xff] %vm1838_vm3, %v4746_v41  ;;  %v1506_v47 = vpop.f32.mrb[15].mxu1 }
 0x128   :  { %v2887_v20 = vadd.f32 %v2886_v16, %v2885_v11  ;;  %v2295_v21 = vadd.f32 %v2294_v17, %v2293_v10  ;;  %v2068_v23 = vld [vmem:[#allocation2 + $0x108] sm:$0xff]  ;;  %1878 = vst.msk [vmem:[#allocation2 + $0x138] sm:$0xff] %vm1838_vm3, %v4670_v19  ;;  %v1202_v24 = vpop.f32.mrb[39].mxu0  ;;  %v2664_v32 = vmul.f32 %v2070_v22, %v2070_v22  ;;  %v2892_v38 = vsel %vm1838_vm3, %v2663_v25, 0.0  ;;  %1952 = vst.msk [vmem:[#allocation2 + $0x388] sm:$0xff] %vm1838_vm3, %v1506_v47  ;;  %v4749_v2 = vpop.f32.mrb[16].mxu1 }
 0x129   :  { %v2888_v26 = vsel %vm1838_vm3, %v2661_v18, 0.0  ;;  %v2296_v27 = vsel %vm1838_vm3, %v2068_v23, 0.0  ;;  %v2662_v28 = vmul.f32 %v2068_v23, %v2068_v23  ;;  %1876 = vst.msk [vmem:[#allocation2 + $0x128] sm:$0xff] %vm1838_vm3, %v1202_v24  ;;  %v2300_v39 = vsel %vm1838_vm3, %v2070_v22, 0.0  ;;  %1957 = vst.msk [vmem:[#allocation2 + $0x3b0] sm:$0xff] %vm1838_vm3, %v4749_v2  ;;  %v1519_v5 = vpop.f32.mrb[17].mxu1 }
 0x12a   :  { %v2889_v29 = vadd.f32 %v2888_v26, %v2887_v20  ;;  %v2297_v30 = vadd.f32 %v2296_v27, %v2295_v21  ;;  %v2894_v48 = vsel %vm1838_vm3, %v2664_v32, 0.0  ;;  %1955 = vst.msk [vmem:[#allocation2 + $0x3a0] sm:$0xff] %vm1838_vm3, %v1519_v5  ;;  %v4750_v9 = vpop.f32.mrb[18].mxu1 }
 0x12b   :  { %v2890_v33 = vsel %vm1838_vm3, %v2662_v28, 0.0  ;;  %1958 = vst.msk [vmem:[#allocation2 + $0x3b8] sm:$0xff] %vm1838_vm3, %v4750_v9  ;;  %v1522_v15 = vpop.f32.mrb[19].mxu1 }
 0x12c   :  { %v2299_v35 = vadd.f32 %v2298_v31, %v2297_v30  ;;  %v2891_v36 = vadd.f32 %v2890_v33, %v2889_v29  ;;  %1956 = vst.msk [vmem:[#allocation2 + $0x3a8] sm:$0xff] %vm1838_vm3, %v1522_v15  ;;  %v4753_v34 = vpop.f32.mrb[20].mxu1 }
 0x12d   :  { %v4673_v40 = vpop.f32.mrb[40].mxu0  ;;  %v2073_v44 = vld [vmem:[#allocation2 + $0x130] sm:$0xff]  ;;  %1961 = vst.msk [vmem:[#allocation2 + $0x3d0] sm:$0xff] %vm1838_vm3, %v4753_v34  ;;  %v1535_v37 = vpop.f32.mrb[21].mxu1 }
 0x12e   :  { %v2301_v42 = vadd.f32 %v2300_v39, %v2299_v35  ;;  %v2893_v43 = vadd.f32 %v2892_v38, %v2891_v36  ;;  %v2071_v45 = vld [vmem:[#allocation2 + $0x120] sm:$0xff]  ;;  %1881 = vst.msk [vmem:[#allocation2 + $0x150] sm:$0xff] %vm1838_vm3, %v4673_v40  ;;  %v1215_v46 = vpop.f32.mrb[41].mxu0  ;;  %v2667_v57 = vmul.f32 %v2073_v44, %v2073_v44  ;;  %v2306_v63 = vsel %vm1838_vm3, %v2073_v44, 0.0  ;;  %1959 = vst.msk [vmem:[#allocation2 + $0x3c0] sm:$0xff] %vm1838_vm3, %v1535_v37  ;;  %v4754_v41 = vpop.f32.mrb[22].mxu1 }
 0x12f   :  { %v2302_v49 = vsel %vm1838_vm3, %v2071_v45, 0.0  ;;  %v2665_v50 = vmul.f32 %v2071_v45, %v2071_v45  ;;  %1879 = vst.msk [vmem:[#allocation2 + $0x140] sm:$0xff] %vm1838_vm3, %v1215_v46  ;;  %v4674_v51 = vpop.f32.mrb[42].mxu0  ;;  %v2074_v54 = vld [vmem:[#allocation2 + $0x138] sm:$0xff]  ;;  %1962 = vst.msk [vmem:[#allocation2 + $0x3d8] sm:$0xff] %vm1838_vm3, %v4754_v41  ;;  %v1538_v47 = vpop.f32.mrb[23].mxu1 }
 0x130   :  { %v2895_v52 = vadd.f32 %v2894_v48, %v2893_v43  ;;  %v2303_v53 = vadd.f32 %v2302_v49, %v2301_v42  ;;  %v2072_v55 = vld [vmem:[#allocation2 + $0x128] sm:$0xff]  ;;  %1882 = vst.msk [vmem:[#allocation2 + $0x158] sm:$0xff] %vm1838_vm3, %v4674_v51  ;;  %v1218_v56 = vpop.f32.mrb[43].mxu0  ;;  %v2668_v0 = vmul.f32 %v2074_v54, %v2074_v54  ;;  %v2900_v6 = vsel %vm1838_vm3, %v2667_v57, 0.0  ;;  %1960 = vst.msk [vmem:[#allocation2 + $0x3c8] sm:$0xff] %vm1838_vm3, %v1538_v47  ;;  %v4757_v2 = vpop.f32.mrb[24].mxu1 }
 0x131   :  { %v2896_v58 = vsel %vm1838_vm3, %v2665_v50, 0.0  ;;  %v2304_v59 = vsel %vm1838_vm3, %v2072_v55, 0.0  ;;  %v2666_v60 = vmul.f32 %v2072_v55, %v2072_v55  ;;  %1880 = vst.msk [vmem:[#allocation2 + $0x148] sm:$0xff] %vm1838_vm3, %v1218_v56  ;;  %v2308_v7 = vsel %vm1838_vm3, %v2074_v54, 0.0  ;;  %1965 = vst.msk [vmem:[#allocation2 + $0x3f0] sm:$0xff] %vm1838_vm3, %v4757_v2  ;;  %v1551_v5 = vpop.f32.mrb[25].mxu1 }
 0x132   :  { %v2897_v61 = vadd.f32 %v2896_v58, %v2895_v52  ;;  %v2305_v62 = vadd.f32 %v2304_v59, %v2303_v53  ;;  %v2902_v16 = vsel %vm1838_vm3, %v2668_v0, 0.0  ;;  %1963 = vst.msk [vmem:[#allocation2 + $0x3e0] sm:$0xff] %vm1838_vm3, %v1551_v5  ;;  %v4758_v9 = vpop.f32.mrb[26].mxu1 }
 0x133   :  { %v2898_v1 = vsel %vm1838_vm3, %v2666_v60, 0.0  ;;  %1966 = vst.msk [vmem:[#allocation2 + $0x3f8] sm:$0xff] %vm1838_vm3, %v4758_v9  ;;  %v1554_v15 = vpop.f32.mrb[27].mxu1 }
 0x134   :  { %v2307_v3 = vadd.f32 %v2306_v63, %v2305_v62  ;;  %v2899_v4 = vadd.f32 %v2898_v1, %v2897_v61  ;;  %1964 = vst.msk [vmem:[#allocation2 + $0x3e8] sm:$0xff] %vm1838_vm3, %v1554_v15  ;;  %v4761_v34 = vpop.f32.mrb[28].mxu1 }
 0x135   :  { %v4677_v8 = vpop.f32.mrb[44].mxu0  ;;  %v2077_v12 = vld [vmem:[#allocation2 + $0x150] sm:$0xff]  ;;  %1969 = vst.msk [vmem:[#allocation2 + $0x410] sm:$0xff] %vm1838_vm3, %v4761_v34  ;;  %v1567_v37 = vpop.f32.mrb[29].mxu1 }
 0x136   :  { %v2309_v10 = vadd.f32 %v2308_v7, %v2307_v3  ;;  %v2901_v11 = vadd.f32 %v2900_v6, %v2899_v4  ;;  %v2075_v13 = vld [vmem:[#allocation2 + $0x140] sm:$0xff]  ;;  %1885 = vst.msk [vmem:[#allocation2 + $0x170] sm:$0xff] %vm1838_vm3, %v4677_v8  ;;  %v1231_v14 = vpop.f32.mrb[45].mxu0  ;;  %v2671_v25 = vmul.f32 %v2077_v12, %v2077_v12  ;;  %v2314_v31 = vsel %vm1838_vm3, %v2077_v12, 0.0  ;;  %1967 = vst.msk [vmem:[#allocation2 + $0x400] sm:$0xff] %vm1838_vm3, %v1567_v37  ;;  %v4762_v41 = vpop.f32.mrb[30].mxu1 }
 0x137   :  { %v2310_v17 = vsel %vm1838_vm3, %v2075_v13, 0.0  ;;  %v2669_v18 = vmul.f32 %v2075_v13, %v2075_v13  ;;  %1883 = vst.msk [vmem:[#allocation2 + $0x160] sm:$0xff] %vm1838_vm3, %v1231_v14  ;;  %v4678_v19 = vpop.f32.mrb[46].mxu0  ;;  %v2078_v22 = vld [vmem:[#allocation2 + $0x158] sm:$0xff]  ;;  %1970 = vst.msk [vmem:[#allocation2 + $0x418] sm:$0xff] %vm1838_vm3, %v4762_v41  ;;  %v1570_v47 = vpop.f32.mrb[31].mxu1 }
 0x138   :  { %v2903_v20 = vadd.f32 %v2902_v16, %v2901_v11  ;;  %v2311_v21 = vadd.f32 %v2310_v17, %v2309_v10  ;;  %v2076_v23 = vld [vmem:[#allocation2 + $0x148] sm:$0xff]  ;;  %1886 = vst.msk [vmem:[#allocation2 + $0x178] sm:$0xff] %vm1838_vm3, %v4678_v19  ;;  %v1234_v24 = vpop.f32.mrb[47].mxu0  ;;  %v2672_v32 = vmul.f32 %v2078_v22, %v2078_v22  ;;  %v2908_v38 = vsel %vm1838_vm3, %v2671_v25, 0.0  ;;  %1968 = vst.msk [vmem:[#allocation2 + $0x408] sm:$0xff] %vm1838_vm3, %v1570_v47  ;;  %v4765_v2 = vpop.f32.mrb[32].mxu1 }
 0x139   :  { %v2904_v26 = vsel %vm1838_vm3, %v2669_v18, 0.0  ;;  %v2312_v27 = vsel %vm1838_vm3, %v2076_v23, 0.0  ;;  %v2670_v28 = vmul.f32 %v2076_v23, %v2076_v23  ;;  %1884 = vst.msk [vmem:[#allocation2 + $0x168] sm:$0xff] %vm1838_vm3, %v1234_v24  ;;  %v2316_v39 = vsel %vm1838_vm3, %v2078_v22, 0.0  ;;  %1973 = vst.msk [vmem:[#allocation2 + $0x430] sm:$0xff] %vm1838_vm3, %v4765_v2  ;;  %v1583_v5 = vpop.f32.mrb[33].mxu1 }
 0x13a   :  { %v2905_v29 = vadd.f32 %v2904_v26, %v2903_v20  ;;  %v2313_v30 = vadd.f32 %v2312_v27, %v2311_v21  ;;  %v2910_v48 = vsel %vm1838_vm3, %v2672_v32, 0.0  ;;  %1971 = vst.msk [vmem:[#allocation2 + $0x420] sm:$0xff] %vm1838_vm3, %v1583_v5  ;;  %v4766_v9 = vpop.f32.mrb[34].mxu1 }
 0x13b   :  { %v2906_v33 = vsel %vm1838_vm3, %v2670_v28, 0.0  ;;  %1974 = vst.msk [vmem:[#allocation2 + $0x438] sm:$0xff] %vm1838_vm3, %v4766_v9  ;;  %v1586_v15 = vpop.f32.mrb[35].mxu1 }
 0x13c   :  { %v2315_v35 = vadd.f32 %v2314_v31, %v2313_v30  ;;  %v2907_v36 = vadd.f32 %v2906_v33, %v2905_v29  ;;  %1972 = vst.msk [vmem:[#allocation2 + $0x428] sm:$0xff] %vm1838_vm3, %v1586_v15  ;;  %v4769_v34 = vpop.f32.mrb[36].mxu1 }
 0x13d   :  { %v4681_v40 = vpop.f32.mrb[48].mxu0  ;;  %v2081_v44 = vld [vmem:[#allocation2 + $0x170] sm:$0xff]  ;;  %1977 = vst.msk [vmem:[#allocation2 + $0x450] sm:$0xff] %vm1838_vm3, %v4769_v34  ;;  %v1599_v37 = vpop.f32.mrb[37].mxu1 }
 0x13e   :  { %v2317_v42 = vadd.f32 %v2316_v39, %v2315_v35  ;;  %v2909_v43 = vadd.f32 %v2908_v38, %v2907_v36  ;;  %v2079_v45 = vld [vmem:[#allocation2 + $0x160] sm:$0xff]  ;;  %1889 = vst.msk [vmem:[#allocation2 + $0x190] sm:$0xff] %vm1838_vm3, %v4681_v40  ;;  %v1247_v46 = vpop.f32.mrb[49].mxu0  ;;  %v2675_v57 = vmul.f32 %v2081_v44, %v2081_v44  ;;  %v2322_v63 = vsel %vm1838_vm3, %v2081_v44, 0.0  ;;  %1975 = vst.msk [vmem:[#allocation2 + $0x440] sm:$0xff] %vm1838_vm3, %v1599_v37  ;;  %v4770_v41 = vpop.f32.mrb[38].mxu1 }
 0x13f   :  { %v2318_v49 = vsel %vm1838_vm3, %v2079_v45, 0.0  ;;  %v2673_v50 = vmul.f32 %v2079_v45, %v2079_v45  ;;  %1887 = vst.msk [vmem:[#allocation2 + $0x180] sm:$0xff] %vm1838_vm3, %v1247_v46  ;;  %v4682_v51 = vpop.f32.mrb[50].mxu0  ;;  %v2082_v54 = vld [vmem:[#allocation2 + $0x178] sm:$0xff]  ;;  %1978 = vst.msk [vmem:[#allocation2 + $0x458] sm:$0xff] %vm1838_vm3, %v4770_v41  ;;  %v1602_v47 = vpop.f32.mrb[39].mxu1 }
 0x140   :  { %v2911_v52 = vadd.f32 %v2910_v48, %v2909_v43  ;;  %v2319_v53 = vadd.f32 %v2318_v49, %v2317_v42  ;;  %v2080_v55 = vld [vmem:[#allocation2 + $0x168] sm:$0xff]  ;;  %1890 = vst.msk [vmem:[#allocation2 + $0x198] sm:$0xff] %vm1838_vm3, %v4682_v51  ;;  %v1250_v56 = vpop.f32.mrb[51].mxu0  ;;  %v2676_v0 = vmul.f32 %v2082_v54, %v2082_v54  ;;  %v2916_v6 = vsel %vm1838_vm3, %v2675_v57, 0.0  ;;  %1976 = vst.msk [vmem:[#allocation2 + $0x448] sm:$0xff] %vm1838_vm3, %v1602_v47  ;;  %v4773_v2 = vpop.f32.mrb[40].mxu1 }
 0x141   :  { %v2912_v58 = vsel %vm1838_vm3, %v2673_v50, 0.0  ;;  %v2320_v59 = vsel %vm1838_vm3, %v2080_v55, 0.0  ;;  %v2674_v60 = vmul.f32 %v2080_v55, %v2080_v55  ;;  %1888 = vst.msk [vmem:[#allocation2 + $0x188] sm:$0xff] %vm1838_vm3, %v1250_v56  ;;  %v2324_v7 = vsel %vm1838_vm3, %v2082_v54, 0.0  ;;  %1981 = vst.msk [vmem:[#allocation2 + $0x470] sm:$0xff] %vm1838_vm3, %v4773_v2  ;;  %v1615_v5 = vpop.f32.mrb[41].mxu1 }
 0x142   :  { %v2913_v61 = vadd.f32 %v2912_v58, %v2911_v52  ;;  %v2321_v62 = vadd.f32 %v2320_v59, %v2319_v53  ;;  %v2918_v16 = vsel %vm1838_vm3, %v2676_v0, 0.0  ;;  %1979 = vst.msk [vmem:[#allocation2 + $0x460] sm:$0xff] %vm1838_vm3, %v1615_v5  ;;  %v4774_v9 = vpop.f32.mrb[42].mxu1 }
 0x143   :  { %v2914_v1 = vsel %vm1838_vm3, %v2674_v60, 0.0  ;;  %1982 = vst.msk [vmem:[#allocation2 + $0x478] sm:$0xff] %vm1838_vm3, %v4774_v9  ;;  %v1618_v15 = vpop.f32.mrb[43].mxu1 }
 0x144   :  { %v2323_v3 = vadd.f32 %v2322_v63, %v2321_v62  ;;  %v2915_v4 = vadd.f32 %v2914_v1, %v2913_v61  ;;  %1980 = vst.msk [vmem:[#allocation2 + $0x468] sm:$0xff] %vm1838_vm3, %v1618_v15  ;;  %v4777_v34 = vpop.f32.mrb[44].mxu1 }
 0x145   :  { %v4685_v8 = vpop.f32.mrb[52].mxu0  ;;  %v2085_v12 = vld [vmem:[#allocation2 + $0x190] sm:$0xff]  ;;  %1985 = vst.msk [vmem:[#allocation2 + $0x490] sm:$0xff] %vm1838_vm3, %v4777_v34  ;;  %v1631_v37 = vpop.f32.mrb[45].mxu1 }
 0x146   :  { %v2325_v10 = vadd.f32 %v2324_v7, %v2323_v3  ;;  %v2917_v11 = vadd.f32 %v2916_v6, %v2915_v4  ;;  %v2083_v13 = vld [vmem:[#allocation2 + $0x180] sm:$0xff]  ;;  %1893 = vst.msk [vmem:[#allocation2 + $0x1b0] sm:$0xff] %vm1838_vm3, %v4685_v8  ;;  %v1263_v14 = vpop.f32.mrb[53].mxu0  ;;  %v2679_v25 = vmul.f32 %v2085_v12, %v2085_v12  ;;  %v2330_v31 = vsel %vm1838_vm3, %v2085_v12, 0.0  ;;  %1983 = vst.msk [vmem:[#allocation2 + $0x480] sm:$0xff] %vm1838_vm3, %v1631_v37  ;;  %v4778_v41 = vpop.f32.mrb[46].mxu1 }
 0x147   :  { %v2326_v17 = vsel %vm1838_vm3, %v2083_v13, 0.0  ;;  %v2677_v18 = vmul.f32 %v2083_v13, %v2083_v13  ;;  %1891 = vst.msk [vmem:[#allocation2 + $0x1a0] sm:$0xff] %vm1838_vm3, %v1263_v14  ;;  %v4686_v19 = vpop.f32.mrb[54].mxu0  ;;  %v2086_v22 = vld [vmem:[#allocation2 + $0x198] sm:$0xff]  ;;  %1986 = vst.msk [vmem:[#allocation2 + $0x498] sm:$0xff] %vm1838_vm3, %v4778_v41  ;;  %v1634_v47 = vpop.f32.mrb[47].mxu1 }
 0x148   :  { %v2919_v20 = vadd.f32 %v2918_v16, %v2917_v11  ;;  %v2327_v21 = vadd.f32 %v2326_v17, %v2325_v10  ;;  %v2084_v23 = vld [vmem:[#allocation2 + $0x188] sm:$0xff]  ;;  %1894 = vst.msk [vmem:[#allocation2 + $0x1b8] sm:$0xff] %vm1838_vm3, %v4686_v19  ;;  %v1266_v24 = vpop.f32.mrb[55].mxu0  ;;  %v2680_v32 = vmul.f32 %v2086_v22, %v2086_v22  ;;  %v2924_v38 = vsel %vm1838_vm3, %v2679_v25, 0.0  ;;  %1984 = vst.msk [vmem:[#allocation2 + $0x488] sm:$0xff] %vm1838_vm3, %v1634_v47  ;;  %v4781_v2 = vpop.f32.mrb[48].mxu1 }
 0x149   :  { %v2920_v26 = vsel %vm1838_vm3, %v2677_v18, 0.0  ;;  %v2328_v27 = vsel %vm1838_vm3, %v2084_v23, 0.0  ;;  %v2678_v28 = vmul.f32 %v2084_v23, %v2084_v23  ;;  %1892 = vst.msk [vmem:[#allocation2 + $0x1a8] sm:$0xff] %vm1838_vm3, %v1266_v24  ;;  %v2332_v39 = vsel %vm1838_vm3, %v2086_v22, 0.0  ;;  %1989 = vst.msk [vmem:[#allocation2 + $0x4b0] sm:$0xff] %vm1838_vm3, %v4781_v2  ;;  %v1647_v5 = vpop.f32.mrb[49].mxu1 }
 0x14a   :  { %v2921_v29 = vadd.f32 %v2920_v26, %v2919_v20  ;;  %v2329_v30 = vadd.f32 %v2328_v27, %v2327_v21  ;;  %v2926_v48 = vsel %vm1838_vm3, %v2680_v32, 0.0  ;;  %1987 = vst.msk [vmem:[#allocation2 + $0x4a0] sm:$0xff] %vm1838_vm3, %v1647_v5  ;;  %v4782_v9 = vpop.f32.mrb[50].mxu1 }
 0x14b   :  { %v2922_v33 = vsel %vm1838_vm3, %v2678_v28, 0.0  ;;  %1990 = vst.msk [vmem:[#allocation2 + $0x4b8] sm:$0xff] %vm1838_vm3, %v4782_v9  ;;  %v1650_v15 = vpop.f32.mrb[51].mxu1 }
 0x14c   :  { %v2331_v35 = vadd.f32 %v2330_v31, %v2329_v30  ;;  %v2923_v36 = vadd.f32 %v2922_v33, %v2921_v29  ;;  %1988 = vst.msk [vmem:[#allocation2 + $0x4a8] sm:$0xff] %vm1838_vm3, %v1650_v15  ;;  %v4785_v34 = vpop.f32.mrb[52].mxu1 }
 0x14d   :  { %v4689_v40 = vpop.f32.mrb[56].mxu0  ;;  %v2089_v44 = vld [vmem:[#allocation2 + $0x1b0] sm:$0xff]  ;;  %1993 = vst.msk [vmem:[#allocation2 + $0x4d0] sm:$0xff] %vm1838_vm3, %v4785_v34  ;;  %v1663_v37 = vpop.f32.mrb[53].mxu1 }
 0x14e   :  { %v2333_v42 = vadd.f32 %v2332_v39, %v2331_v35  ;;  %v2925_v43 = vadd.f32 %v2924_v38, %v2923_v36  ;;  %v2087_v45 = vld [vmem:[#allocation2 + $0x1a0] sm:$0xff]  ;;  %1897 = vst.msk [vmem:[#allocation2 + $0x1d0] sm:$0xff] %vm1838_vm3, %v4689_v40  ;;  %v1279_v46 = vpop.f32.mrb[57].mxu0  ;;  %v2683_v57 = vmul.f32 %v2089_v44, %v2089_v44  ;;  %v2338_v63 = vsel %vm1838_vm3, %v2089_v44, 0.0  ;;  %1991 = vst.msk [vmem:[#allocation2 + $0x4c0] sm:$0xff] %vm1838_vm3, %v1663_v37  ;;  %v4786_v41 = vpop.f32.mrb[54].mxu1 }
 0x14f   :  { %v2334_v49 = vsel %vm1838_vm3, %v2087_v45, 0.0  ;;  %v2681_v50 = vmul.f32 %v2087_v45, %v2087_v45  ;;  %1895 = vst.msk [vmem:[#allocation2 + $0x1c0] sm:$0xff] %vm1838_vm3, %v1279_v46  ;;  %v4690_v51 = vpop.f32.mrb[58].mxu0  ;;  %v2090_v54 = vld [vmem:[#allocation2 + $0x1b8] sm:$0xff]  ;;  %1994 = vst.msk [vmem:[#allocation2 + $0x4d8] sm:$0xff] %vm1838_vm3, %v4786_v41  ;;  %v1666_v47 = vpop.f32.mrb[55].mxu1 }
 0x150   :  { %v2927_v52 = vadd.f32 %v2926_v48, %v2925_v43  ;;  %v2335_v53 = vadd.f32 %v2334_v49, %v2333_v42  ;;  %v2088_v55 = vld [vmem:[#allocation2 + $0x1a8] sm:$0xff]  ;;  %1898 = vst.msk [vmem:[#allocation2 + $0x1d8] sm:$0xff] %vm1838_vm3, %v4690_v51  ;;  %v1282_v56 = vpop.f32.mrb[59].mxu0  ;;  %v2684_v0 = vmul.f32 %v2090_v54, %v2090_v54  ;;  %v2932_v6 = vsel %vm1838_vm3, %v2683_v57, 0.0  ;;  %1992 = vst.msk [vmem:[#allocation2 + $0x4c8] sm:$0xff] %vm1838_vm3, %v1666_v47  ;;  %v4789_v2 = vpop.f32.mrb[56].mxu1 }
 0x151   :  { %v2928_v58 = vsel %vm1838_vm3, %v2681_v50, 0.0  ;;  %v2336_v59 = vsel %vm1838_vm3, %v2088_v55, 0.0  ;;  %v2682_v60 = vmul.f32 %v2088_v55, %v2088_v55  ;;  %1896 = vst.msk [vmem:[#allocation2 + $0x1c8] sm:$0xff] %vm1838_vm3, %v1282_v56  ;;  %v2340_v7 = vsel %vm1838_vm3, %v2090_v54, 0.0  ;;  %1997 = vst.msk [vmem:[#allocation2 + $0x4f0] sm:$0xff] %vm1838_vm3, %v4789_v2  ;;  %v1679_v5 = vpop.f32.mrb[57].mxu1 }
 0x152   :  { %v2929_v61 = vadd.f32 %v2928_v58, %v2927_v52  ;;  %v2337_v62 = vadd.f32 %v2336_v59, %v2335_v53  ;;  %v2934_v16 = vsel %vm1838_vm3, %v2684_v0, 0.0  ;;  %1995 = vst.msk [vmem:[#allocation2 + $0x4e0] sm:$0xff] %vm1838_vm3, %v1679_v5  ;;  %v4790_v9 = vpop.f32.mrb[58].mxu1 }
 0x153   :  { %v2930_v1 = vsel %vm1838_vm3, %v2682_v60, 0.0  ;;  %1998 = vst.msk [vmem:[#allocation2 + $0x4f8] sm:$0xff] %vm1838_vm3, %v4790_v9  ;;  %v1682_v15 = vpop.f32.mrb[59].mxu1 }
 0x154   :  { %v2339_v3 = vadd.f32 %v2338_v63, %v2337_v62  ;;  %v2931_v4 = vadd.f32 %v2930_v1, %v2929_v61  ;;  %1996 = vst.msk [vmem:[#allocation2 + $0x4e8] sm:$0xff] %vm1838_vm3, %v1682_v15 }
 0x155   :  { %v4693_v8 = vpop.f32.mrb[60].mxu0  ;;  %v2093_v12 = vld [vmem:[#allocation2 + $0x1d0] sm:$0xff]  ;;  %v4793_v34 = vpop.f32.mrb[60].mxu1 }
 0x156   :  { %v2341_v10 = vadd.f32 %v2340_v7, %v2339_v3  ;;  %v2933_v11 = vadd.f32 %v2932_v6, %v2931_v4  ;;  %v2091_v13 = vld [vmem:[#allocation2 + $0x1c0] sm:$0xff]  ;;  %1901 = vst.msk [vmem:[#allocation2 + $0x1f0] sm:$0xff] %vm1838_vm3, %v4693_v8  ;;  %v1295_v14 = vpop.f32.mrb[61].mxu0  ;;  %v2687_v25 = vmul.f32 %v2093_v12, %v2093_v12  ;;  %v2346_v31 = vsel %vm1838_vm3, %v2093_v12, 0.0  ;;  %2001 = vst.msk [vmem:[#allocation2 + $0x510] sm:$0xff] %vm1838_vm3, %v4793_v34  ;;  %v1695_v37 = vpop.f32.mrb[61].mxu1 }
 0x157   :  { %v2342_v17 = vsel %vm1838_vm3, %v2091_v13, 0.0  ;;  %v2685_v18 = vmul.f32 %v2091_v13, %v2091_v13  ;;  %1899 = vst.msk [vmem:[#allocation2 + $0x1e0] sm:$0xff] %vm1838_vm3, %v1295_v14  ;;  %v4694_v19 = vpop.f32.mrb[62].mxu0  ;;  %v2094_v22 = vld [vmem:[#allocation2 + $0x1d8] sm:$0xff]  ;;  %1999 = vst.msk [vmem:[#allocation2 + $0x500] sm:$0xff] %vm1838_vm3, %v1695_v37  ;;  %v4794_v41 = vpop.f32.mrb[62].mxu1 }
 0x158   :  { %v2935_v20 = vadd.f32 %v2934_v16, %v2933_v11  ;;  %v2343_v21 = vadd.f32 %v2342_v17, %v2341_v10  ;;  %v2092_v23 = vld [vmem:[#allocation2 + $0x1c8] sm:$0xff]  ;;  %1902 = vst.msk [vmem:[#allocation2 + $0x1f8] sm:$0xff] %vm1838_vm3, %v4694_v19  ;;  %v1298_v24 = vpop.f32.mrb[63].mxu0  ;;  %v2688_v32 = vmul.f32 %v2094_v22, %v2094_v22  ;;  %v2940_v38 = vsel %vm1838_vm3, %v2687_v25, 0.0  ;;  %2002 = vst.msk [vmem:[#allocation2 + $0x518] sm:$0xff] %vm1838_vm3, %v4794_v41  ;;  %v1698_v47 = vpop.f32.mrb[63].mxu1 }
 0x159   :  { %v2936_v26 = vsel %vm1838_vm3, %v2685_v18, 0.0  ;;  %v2344_v27 = vsel %vm1838_vm3, %v2092_v23, 0.0  ;;  %v2686_v28 = vmul.f32 %v2092_v23, %v2092_v23  ;;  %1900 = vst.msk [vmem:[#allocation2 + $0x1e8] sm:$0xff] %vm1838_vm3, %v1298_v24  ;;  %v2348_v39 = vsel %vm1838_vm3, %v2094_v22, 0.0  ;;  %2000 = vst.msk [vmem:[#allocation2 + $0x508] sm:$0xff] %vm1838_vm3, %v1698_v47 }
 0x15a   :  { %v2937_v29 = vadd.f32 %v2936_v26, %v2935_v20  ;;  %v2345_v30 = vadd.f32 %v2344_v27, %v2343_v21  ;;  %v2942_v48 = vsel %vm1838_vm3, %v2688_v32, 0.0 }
 0x15b   :  { %v2938_v33 = vsel %vm1838_vm3, %v2686_v28, 0.0 }
 0x15c   :  { %v2347_v35 = vadd.f32 %v2346_v31, %v2345_v30  ;;  %v2939_v36 = vadd.f32 %v2938_v33, %v2937_v29 }
 0x15d   :  { %v4697_v40 = vpop.f32.mrb[64].mxu0  ;;  %v2097_v44 = vld [vmem:[#allocation2 + $0x1f0] sm:$0xff]  ;;  %v4797_v2 = vpop.f32.mrb[64].mxu1 }
 0x15e   :  { %v2349_v42 = vadd.f32 %v2348_v39, %v2347_v35  ;;  %v2941_v43 = vadd.f32 %v2940_v38, %v2939_v36  ;;  %v2095_v45 = vld [vmem:[#allocation2 + $0x1e0] sm:$0xff]  ;;  %1905 = vst.msk [vmem:[#allocation2 + $0x210] sm:$0xff] %vm1838_vm3, %v4697_v40  ;;  %v1311_v46 = vpop.f32.mrb[65].mxu0  ;;  %v2691_v57 = vmul.f32 %v2097_v44, %v2097_v44  ;;  %v2354_v63 = vsel %vm1838_vm3, %v2097_v44, 0.0  ;;  %2005 = vst.msk [vmem:[#allocation2 + $0x530] sm:$0xff] %vm1838_vm3, %v4797_v2  ;;  %v1711_v5 = vpop.f32.mrb[65].mxu1 }
 0x15f   :  { %v2350_v49 = vsel %vm1838_vm3, %v2095_v45, 0.0  ;;  %v2689_v50 = vmul.f32 %v2095_v45, %v2095_v45  ;;  %1903 = vst.msk [vmem:[#allocation2 + $0x200] sm:$0xff] %vm1838_vm3, %v1311_v46  ;;  %v4698_v51 = vpop.f32.mrb[66].mxu0  ;;  %v2098_v54 = vld [vmem:[#allocation2 + $0x1f8] sm:$0xff]  ;;  %2003 = vst.msk [vmem:[#allocation2 + $0x520] sm:$0xff] %vm1838_vm3, %v1711_v5 }
 0x160   :  { %v2943_v52 = vadd.f32 %v2942_v48, %v2941_v43  ;;  %v2351_v53 = vadd.f32 %v2350_v49, %v2349_v42  ;;  %v2096_v55 = vld [vmem:[#allocation2 + $0x1e8] sm:$0xff]  ;;  %1906 = vst.msk [vmem:[#allocation2 + $0x218] sm:$0xff] %vm1838_vm3, %v4698_v51  ;;  %v1314_v56 = vpop.f32.mrb[67].mxu0  ;;  %v2692_v0 = vmul.f32 %v2098_v54, %v2098_v54  ;;  %v2948_v6 = vsel %vm1838_vm3, %v2691_v57, 0.0 }
 0x161   :  { %v2944_v58 = vsel %vm1838_vm3, %v2689_v50, 0.0  ;;  %v2352_v59 = vsel %vm1838_vm3, %v2096_v55, 0.0  ;;  %v2690_v60 = vmul.f32 %v2096_v55, %v2096_v55  ;;  %1904 = vst.msk [vmem:[#allocation2 + $0x208] sm:$0xff] %vm1838_vm3, %v1314_v56  ;;  %v2356_v7 = vsel %vm1838_vm3, %v2098_v54, 0.0 }
 0x162   :  { %v2945_v61 = vadd.f32 %v2944_v58, %v2943_v52  ;;  %v2353_v62 = vadd.f32 %v2352_v59, %v2351_v53  ;;  %v2950_v16 = vsel %vm1838_vm3, %v2692_v0, 0.0 }
 0x163   :  { %v2946_v1 = vsel %vm1838_vm3, %v2690_v60, 0.0 }
 0x164   :  { %v2355_v3 = vadd.f32 %v2354_v63, %v2353_v62  ;;  %v2947_v4 = vadd.f32 %v2946_v1, %v2945_v61 }
 0x165   :  { %v4701_v8 = vpop.f32.mrb[68].mxu0  ;;  %v2101_v12 = vld [vmem:[#allocation2 + $0x210] sm:$0xff] }
 0x166   :  { %v2357_v10 = vadd.f32 %v2356_v7, %v2355_v3  ;;  %v2949_v11 = vadd.f32 %v2948_v6, %v2947_v4  ;;  %v2099_v13 = vld [vmem:[#allocation2 + $0x200] sm:$0xff]  ;;  %1909 = vst.msk [vmem:[#allocation2 + $0x230] sm:$0xff] %vm1838_vm3, %v4701_v8  ;;  %v1327_v14 = vpop.f32.mrb[69].mxu0  ;;  %v2695_v25 = vmul.f32 %v2101_v12, %v2101_v12  ;;  %v2362_v31 = vsel %vm1838_vm3, %v2101_v12, 0.0 }
 0x167   :  { %v2358_v17 = vsel %vm1838_vm3, %v2099_v13, 0.0  ;;  %v2693_v18 = vmul.f32 %v2099_v13, %v2099_v13  ;;  %1907 = vst.msk [vmem:[#allocation2 + $0x220] sm:$0xff] %vm1838_vm3, %v1327_v14  ;;  %v4702_v19 = vpop.f32.mrb[70].mxu0  ;;  %v2102_v22 = vld [vmem:[#allocation2 + $0x218] sm:$0xff] }
 0x168   :  { %v2951_v20 = vadd.f32 %v2950_v16, %v2949_v11  ;;  %v2359_v21 = vadd.f32 %v2358_v17, %v2357_v10  ;;  %v2100_v23 = vld [vmem:[#allocation2 + $0x208] sm:$0xff]  ;;  %1910 = vst.msk [vmem:[#allocation2 + $0x238] sm:$0xff] %vm1838_vm3, %v4702_v19  ;;  %v1330_v24 = vpop.f32.mrb[71].mxu0  ;;  %v2696_v32 = vmul.f32 %v2102_v22, %v2102_v22  ;;  %v2956_v38 = vsel %vm1838_vm3, %v2695_v25, 0.0 }
 0x169   :  { %v2952_v26 = vsel %vm1838_vm3, %v2693_v18, 0.0  ;;  %v2360_v27 = vsel %vm1838_vm3, %v2100_v23, 0.0  ;;  %v2694_v28 = vmul.f32 %v2100_v23, %v2100_v23  ;;  %1908 = vst.msk [vmem:[#allocation2 + $0x228] sm:$0xff] %vm1838_vm3, %v1330_v24  ;;  %v2364_v39 = vsel %vm1838_vm3, %v2102_v22, 0.0 }
 0x16a   :  { %v2953_v29 = vadd.f32 %v2952_v26, %v2951_v20  ;;  %v2361_v30 = vadd.f32 %v2360_v27, %v2359_v21  ;;  %v2958_v48 = vsel %vm1838_vm3, %v2696_v32, 0.0 }
 0x16b   :  { %v2954_v33 = vsel %vm1838_vm3, %v2694_v28, 0.0 }
 0x16c   :  { %v2363_v35 = vadd.f32 %v2362_v31, %v2361_v30  ;;  %v2955_v36 = vadd.f32 %v2954_v33, %v2953_v29 }
 0x16d   :  { %v4705_v40 = vpop.f32.mrb[72].mxu0  ;;  %v2105_v44 = vld [vmem:[#allocation2 + $0x230] sm:$0xff] }
 0x16e   :  { %v2365_v42 = vadd.f32 %v2364_v39, %v2363_v35  ;;  %v2957_v43 = vadd.f32 %v2956_v38, %v2955_v36  ;;  %v2103_v45 = vld [vmem:[#allocation2 + $0x220] sm:$0xff]  ;;  %1913 = vst.msk [vmem:[#allocation2 + $0x250] sm:$0xff] %vm1838_vm3, %v4705_v40  ;;  %v1343_v46 = vpop.f32.mrb[73].mxu0  ;;  %v2699_v57 = vmul.f32 %v2105_v44, %v2105_v44  ;;  %v2370_v63 = vsel %vm1838_vm3, %v2105_v44, 0.0 }
 0x16f   :  { %v2366_v49 = vsel %vm1838_vm3, %v2103_v45, 0.0  ;;  %v2697_v50 = vmul.f32 %v2103_v45, %v2103_v45  ;;  %1911 = vst.msk [vmem:[#allocation2 + $0x240] sm:$0xff] %vm1838_vm3, %v1343_v46  ;;  %v4706_v51 = vpop.f32.mrb[74].mxu0  ;;  %v2106_v54 = vld [vmem:[#allocation2 + $0x238] sm:$0xff] }
 0x170   :  { %v2959_v52 = vadd.f32 %v2958_v48, %v2957_v43  ;;  %v2367_v53 = vadd.f32 %v2366_v49, %v2365_v42  ;;  %v2104_v55 = vld [vmem:[#allocation2 + $0x228] sm:$0xff]  ;;  %1914 = vst.msk [vmem:[#allocation2 + $0x258] sm:$0xff] %vm1838_vm3, %v4706_v51  ;;  %v1346_v56 = vpop.f32.mrb[75].mxu0  ;;  %v2700_v0 = vmul.f32 %v2106_v54, %v2106_v54  ;;  %v2964_v6 = vsel %vm1838_vm3, %v2699_v57, 0.0 }
 0x171   :  { %v2960_v58 = vsel %vm1838_vm3, %v2697_v50, 0.0  ;;  %v2368_v59 = vsel %vm1838_vm3, %v2104_v55, 0.0  ;;  %v2698_v60 = vmul.f32 %v2104_v55, %v2104_v55  ;;  %1912 = vst.msk [vmem:[#allocation2 + $0x248] sm:$0xff] %vm1838_vm3, %v1346_v56  ;;  %v2372_v7 = vsel %vm1838_vm3, %v2106_v54, 0.0 }
 0x172   :  { %v2961_v61 = vadd.f32 %v2960_v58, %v2959_v52  ;;  %v2369_v62 = vadd.f32 %v2368_v59, %v2367_v53  ;;  %v2966_v16 = vsel %vm1838_vm3, %v2700_v0, 0.0 }
 0x173   :  { %v2962_v1 = vsel %vm1838_vm3, %v2698_v60, 0.0 }
 0x174   :  { %v2371_v3 = vadd.f32 %v2370_v63, %v2369_v62  ;;  %v2963_v4 = vadd.f32 %v2962_v1, %v2961_v61 }
 0x175   :  { %v4709_v8 = vpop.f32.mrb[76].mxu0  ;;  %v2109_v12 = vld [vmem:[#allocation2 + $0x250] sm:$0xff] }
 0x176   :  { %v2373_v10 = vadd.f32 %v2372_v7, %v2371_v3  ;;  %v2965_v11 = vadd.f32 %v2964_v6, %v2963_v4  ;;  %v2107_v13 = vld [vmem:[#allocation2 + $0x240] sm:$0xff]  ;;  %1917 = vst.msk [vmem:[#allocation2 + $0x270] sm:$0xff] %vm1838_vm3, %v4709_v8  ;;  %v1359_v14 = vpop.f32.mrb[77].mxu0  ;;  %v2703_v25 = vmul.f32 %v2109_v12, %v2109_v12  ;;  %v2378_v31 = vsel %vm1838_vm3, %v2109_v12, 0.0 }
 0x177   :  { %v2374_v17 = vsel %vm1838_vm3, %v2107_v13, 0.0  ;;  %v2701_v18 = vmul.f32 %v2107_v13, %v2107_v13  ;;  %1915 = vst.msk [vmem:[#allocation2 + $0x260] sm:$0xff] %vm1838_vm3, %v1359_v14  ;;  %v4710_v19 = vpop.f32.mrb[78].mxu0  ;;  %v2110_v22 = vld [vmem:[#allocation2 + $0x258] sm:$0xff] }
 0x178   :  { %v2967_v20 = vadd.f32 %v2966_v16, %v2965_v11  ;;  %v2375_v21 = vadd.f32 %v2374_v17, %v2373_v10  ;;  %v2108_v23 = vld [vmem:[#allocation2 + $0x248] sm:$0xff]  ;;  %1918 = vst.msk [vmem:[#allocation2 + $0x278] sm:$0xff] %vm1838_vm3, %v4710_v19  ;;  %v1362_v24 = vpop.f32.mrb[79].mxu0  ;;  %v2704_v32 = vmul.f32 %v2110_v22, %v2110_v22  ;;  %v2972_v38 = vsel %vm1838_vm3, %v2703_v25, 0.0 }
 0x179   :  { %v2968_v26 = vsel %vm1838_vm3, %v2701_v18, 0.0  ;;  %v2376_v27 = vsel %vm1838_vm3, %v2108_v23, 0.0  ;;  %v2702_v28 = vmul.f32 %v2108_v23, %v2108_v23  ;;  %1916 = vst.msk [vmem:[#allocation2 + $0x268] sm:$0xff] %vm1838_vm3, %v1362_v24  ;;  %v2380_v39 = vsel %vm1838_vm3, %v2110_v22, 0.0 }
 0x17a   :  { %v2969_v29 = vadd.f32 %v2968_v26, %v2967_v20  ;;  %v2377_v30 = vadd.f32 %v2376_v27, %v2375_v21  ;;  %v2974_v48 = vsel %vm1838_vm3, %v2704_v32, 0.0 }
 0x17b   :  { %v2970_v33 = vsel %vm1838_vm3, %v2702_v28, 0.0 }
 0x17c   :  { %v2379_v35 = vadd.f32 %v2378_v31, %v2377_v30  ;;  %v2971_v36 = vadd.f32 %v2970_v33, %v2969_v29 }
 0x17d   :  { %v4713_v40 = vpop.f32.mrb[80].mxu0  ;;  %v2113_v44 = vld [vmem:[#allocation2 + $0x270] sm:$0xff] }
 0x17e   :  { %v2381_v42 = vadd.f32 %v2380_v39, %v2379_v35  ;;  %v2973_v43 = vadd.f32 %v2972_v38, %v2971_v36  ;;  %v2111_v45 = vld [vmem:[#allocation2 + $0x260] sm:$0xff]  ;;  %1921 = vst.msk [vmem:[#allocation2 + $0x290] sm:$0xff] %vm1838_vm3, %v4713_v40  ;;  %v1375_v46 = vpop.f32.mrb[81].mxu0  ;;  %v2707_v57 = vmul.f32 %v2113_v44, %v2113_v44  ;;  %v2386_v63 = vsel %vm1838_vm3, %v2113_v44, 0.0 }
 0x17f   :  { %v2382_v49 = vsel %vm1838_vm3, %v2111_v45, 0.0  ;;  %v2705_v50 = vmul.f32 %v2111_v45, %v2111_v45  ;;  %1919 = vst.msk [vmem:[#allocation2 + $0x280] sm:$0xff] %vm1838_vm3, %v1375_v46  ;;  %v4714_v51 = vpop.f32.mrb[82].mxu0  ;;  %v2114_v54 = vld [vmem:[#allocation2 + $0x278] sm:$0xff] }
 0x180   :  { %v2975_v52 = vadd.f32 %v2974_v48, %v2973_v43  ;;  %v2383_v53 = vadd.f32 %v2382_v49, %v2381_v42  ;;  %v2112_v55 = vld [vmem:[#allocation2 + $0x268] sm:$0xff]  ;;  %1922 = vst.msk [vmem:[#allocation2 + $0x298] sm:$0xff] %vm1838_vm3, %v4714_v51  ;;  %v1378_v56 = vpop.f32.mrb[83].mxu0  ;;  %v2708_v0 = vmul.f32 %v2114_v54, %v2114_v54  ;;  %v2980_v6 = vsel %vm1838_vm3, %v2707_v57, 0.0 }
 0x181   :  { %v2976_v58 = vsel %vm1838_vm3, %v2705_v50, 0.0  ;;  %v2384_v59 = vsel %vm1838_vm3, %v2112_v55, 0.0  ;;  %v2706_v60 = vmul.f32 %v2112_v55, %v2112_v55  ;;  %1920 = vst.msk [vmem:[#allocation2 + $0x288] sm:$0xff] %vm1838_vm3, %v1378_v56  ;;  %v2388_v7 = vsel %vm1838_vm3, %v2114_v54, 0.0 }
 0x182   :  { %v2977_v61 = vadd.f32 %v2976_v58, %v2975_v52  ;;  %v2385_v62 = vadd.f32 %v2384_v59, %v2383_v53  ;;  %v2982_v16 = vsel %vm1838_vm3, %v2708_v0, 0.0 }
 0x183   :  { %v2978_v1 = vsel %vm1838_vm3, %v2706_v60, 0.0 }
 0x184   :  { %v2387_v3 = vadd.f32 %v2386_v63, %v2385_v62  ;;  %v2979_v4 = vadd.f32 %v2978_v1, %v2977_v61 }
 0x185   :  { %v4717_v8 = vpop.f32.mrb[84].mxu0  ;;  %v2117_v12 = vld [vmem:[#allocation2 + $0x290] sm:$0xff] }
 0x186   :  { %v2389_v10 = vadd.f32 %v2388_v7, %v2387_v3  ;;  %v2981_v11 = vadd.f32 %v2980_v6, %v2979_v4  ;;  %v2115_v13 = vld [vmem:[#allocation2 + $0x280] sm:$0xff]  ;;  %1925 = vst.msk [vmem:[#allocation2 + $0x2b0] sm:$0xff] %vm1838_vm3, %v4717_v8  ;;  %v1391_v14 = vpop.f32.mrb[85].mxu0  ;;  %v2711_v25 = vmul.f32 %v2117_v12, %v2117_v12  ;;  %v2394_v31 = vsel %vm1838_vm3, %v2117_v12, 0.0 }
 0x187   :  { %v2390_v17 = vsel %vm1838_vm3, %v2115_v13, 0.0  ;;  %v2709_v18 = vmul.f32 %v2115_v13, %v2115_v13  ;;  %1923 = vst.msk [vmem:[#allocation2 + $0x2a0] sm:$0xff] %vm1838_vm3, %v1391_v14  ;;  %v4718_v19 = vpop.f32.mrb[86].mxu0  ;;  %v2118_v22 = vld [vmem:[#allocation2 + $0x298] sm:$0xff] }
 0x188   :  { %v2983_v20 = vadd.f32 %v2982_v16, %v2981_v11  ;;  %v2391_v21 = vadd.f32 %v2390_v17, %v2389_v10  ;;  %v2116_v23 = vld [vmem:[#allocation2 + $0x288] sm:$0xff]  ;;  %1926 = vst.msk [vmem:[#allocation2 + $0x2b8] sm:$0xff] %vm1838_vm3, %v4718_v19  ;;  %v1394_v24 = vpop.f32.mrb[87].mxu0  ;;  %v2712_v32 = vmul.f32 %v2118_v22, %v2118_v22  ;;  %v2988_v38 = vsel %vm1838_vm3, %v2711_v25, 0.0 }
 0x189   :  { %v2984_v26 = vsel %vm1838_vm3, %v2709_v18, 0.0  ;;  %v2392_v27 = vsel %vm1838_vm3, %v2116_v23, 0.0  ;;  %v2710_v28 = vmul.f32 %v2116_v23, %v2116_v23  ;;  %1924 = vst.msk [vmem:[#allocation2 + $0x2a8] sm:$0xff] %vm1838_vm3, %v1394_v24  ;;  %v2396_v39 = vsel %vm1838_vm3, %v2118_v22, 0.0 }
 0x18a   :  { %v2985_v29 = vadd.f32 %v2984_v26, %v2983_v20  ;;  %v2393_v30 = vadd.f32 %v2392_v27, %v2391_v21  ;;  %v2990_v48 = vsel %vm1838_vm3, %v2712_v32, 0.0 }
 0x18b   :  { %v2986_v33 = vsel %vm1838_vm3, %v2710_v28, 0.0 }
 0x18c   :  { %v2395_v35 = vadd.f32 %v2394_v31, %v2393_v30  ;;  %v2987_v36 = vadd.f32 %v2986_v33, %v2985_v29 }
 0x18d   :  { %v4721_v40 = vpop.f32.mrb[88].mxu0  ;;  %v2121_v44 = vld [vmem:[#allocation2 + $0x2b0] sm:$0xff] }
 0x18e   :  { %v2397_v42 = vadd.f32 %v2396_v39, %v2395_v35  ;;  %v2989_v43 = vadd.f32 %v2988_v38, %v2987_v36  ;;  %v2119_v45 = vld [vmem:[#allocation2 + $0x2a0] sm:$0xff]  ;;  %1929 = vst.msk [vmem:[#allocation2 + $0x2d0] sm:$0xff] %vm1838_vm3, %v4721_v40  ;;  %v1407_v46 = vpop.f32.mrb[89].mxu0  ;;  %v2715_v57 = vmul.f32 %v2121_v44, %v2121_v44  ;;  %v2402_v63 = vsel %vm1838_vm3, %v2121_v44, 0.0 }
 0x18f   :  { %v2398_v49 = vsel %vm1838_vm3, %v2119_v45, 0.0  ;;  %v2713_v50 = vmul.f32 %v2119_v45, %v2119_v45  ;;  %1927 = vst.msk [vmem:[#allocation2 + $0x2c0] sm:$0xff] %vm1838_vm3, %v1407_v46  ;;  %v4722_v51 = vpop.f32.mrb[90].mxu0  ;;  %v2122_v54 = vld [vmem:[#allocation2 + $0x2b8] sm:$0xff] }
 0x190   :  { %v2991_v52 = vadd.f32 %v2990_v48, %v2989_v43  ;;  %v2399_v53 = vadd.f32 %v2398_v49, %v2397_v42  ;;  %v2120_v55 = vld [vmem:[#allocation2 + $0x2a8] sm:$0xff]  ;;  %1930 = vst.msk [vmem:[#allocation2 + $0x2d8] sm:$0xff] %vm1838_vm3, %v4722_v51  ;;  %v1410_v56 = vpop.f32.mrb[91].mxu0  ;;  %v2716_v0 = vmul.f32 %v2122_v54, %v2122_v54  ;;  %v2996_v6 = vsel %vm1838_vm3, %v2715_v57, 0.0 }
 0x191   :  { %v2992_v58 = vsel %vm1838_vm3, %v2713_v50, 0.0  ;;  %v2400_v59 = vsel %vm1838_vm3, %v2120_v55, 0.0  ;;  %v2714_v60 = vmul.f32 %v2120_v55, %v2120_v55  ;;  %1928 = vst.msk [vmem:[#allocation2 + $0x2c8] sm:$0xff] %vm1838_vm3, %v1410_v56  ;;  %v2404_v7 = vsel %vm1838_vm3, %v2122_v54, 0.0 }
 0x192   :  { %v2993_v61 = vadd.f32 %v2992_v58, %v2991_v52  ;;  %v2401_v62 = vadd.f32 %v2400_v59, %v2399_v53  ;;  %v2998_v16 = vsel %vm1838_vm3, %v2716_v0, 0.0 }
 0x193   :  { %v2994_v1 = vsel %vm1838_vm3, %v2714_v60, 0.0 }
 0x194   :  { %v2403_v3 = vadd.f32 %v2402_v63, %v2401_v62  ;;  %v2995_v4 = vadd.f32 %v2994_v1, %v2993_v61 }
 0x195   :  { %v4725_v8 = vpop.f32.mrb[92].mxu0  ;;  %v2125_v12 = vld [vmem:[#allocation2 + $0x2d0] sm:$0xff] }
 0x196   :  { %v2405_v10 = vadd.f32 %v2404_v7, %v2403_v3  ;;  %v2997_v11 = vadd.f32 %v2996_v6, %v2995_v4  ;;  %v2123_v13 = vld [vmem:[#allocation2 + $0x2c0] sm:$0xff]  ;;  %1933 = vst.msk [vmem:[#allocation2 + $0x2f0] sm:$0xff] %vm1838_vm3, %v4725_v8  ;;  %v1423_v14 = vpop.f32.mrb[93].mxu0  ;;  %v2719_v25 = vmul.f32 %v2125_v12, %v2125_v12  ;;  %v2410_v31 = vsel %vm1838_vm3, %v2125_v12, 0.0  ;;  %v4798_v8 = vpop.f32.mrb[66].mxu1 }
 0x197   :  { %v2406_v17 = vsel %vm1838_vm3, %v2123_v13, 0.0  ;;  %v2717_v18 = vmul.f32 %v2123_v13, %v2123_v13  ;;  %1931 = vst.msk [vmem:[#allocation2 + $0x2e0] sm:$0xff] %vm1838_vm3, %v1423_v14  ;;  %v4726_v19 = vpop.f32.mrb[94].mxu0  ;;  %v2126_v22 = vld [vmem:[#allocation2 + $0x2d8] sm:$0xff]  ;;  %2006 = vst.msk [vmem:[#allocation2 + $0x538] sm:$0xff] %vm1838_vm3, %v4798_v8  ;;  %v1714_v13 = vpop.f32.mrb[67].mxu1 }
 0x198   :  { %v2999_v20 = vadd.f32 %v2998_v16, %v2997_v11  ;;  %v2407_v21 = vadd.f32 %v2406_v17, %v2405_v10  ;;  %v2124_v23 = vld [vmem:[#allocation2 + $0x2c8] sm:$0xff]  ;;  %1934 = vst.msk [vmem:[#allocation2 + $0x2f8] sm:$0xff] %vm1838_vm3, %v4726_v19  ;;  %v1426_v24 = vpop.f32.mrb[95].mxu0  ;;  %v2720_v32 = vmul.f32 %v2126_v22, %v2126_v22  ;;  %v3004_v38 = vsel %vm1838_vm3, %v2719_v25, 0.0  ;;  %2004 = vst.msk [vmem:[#allocation2 + $0x528] sm:$0xff] %vm1838_vm3, %v1714_v13 }
 0x199   :  { %v3000_v26 = vsel %vm1838_vm3, %v2717_v18, 0.0  ;;  %v2408_v27 = vsel %vm1838_vm3, %v2124_v23, 0.0  ;;  %v2718_v28 = vmul.f32 %v2124_v23, %v2124_v23  ;;  %1932 = vst.msk [vmem:[#allocation2 + $0x2e8] sm:$0xff] %vm1838_vm3, %v1426_v24  ;;  %v2412_v39 = vsel %vm1838_vm3, %v2126_v22, 0.0 }
 0x19a   :  { %v3001_v29 = vadd.f32 %v3000_v26, %v2999_v20  ;;  %v2409_v30 = vadd.f32 %v2408_v27, %v2407_v21  ;;  %v3006_v48 = vsel %vm1838_vm3, %v2720_v32, 0.0  ;;  %v2135_v21 = vld [vmem:[#allocation2 + $0x320] sm:$0xff]  ;;  %v4801_v32 = vpop.f32.mrb[68].mxu1 }
 0x19b   :  { %v3002_v33 = vsel %vm1838_vm3, %v2718_v28, 0.0  ;;  %2009 = vst.msk [vmem:[#allocation2 + $0x550] sm:$0xff] %vm1838_vm3, %v4801_v32 }
 0x19c   :  { %v2411_v35 = vadd.f32 %v2410_v31, %v2409_v30  ;;  %v3003_v36 = vadd.f32 %v3002_v33, %v3001_v29  ;;  %v2729_v31 = vmul.f32 %v2135_v21, %v2135_v21 }
 0x19d   :  { %v4729_v40 = vpop.f32.mrb[96].mxu0  ;;  %v2129_v44 = vld [vmem:[#allocation2 + $0x2f0] sm:$0xff] }
 0x19e   :  { %v2413_v42 = vadd.f32 %v2412_v39, %v2411_v35  ;;  %v3005_v43 = vadd.f32 %v3004_v38, %v3003_v36  ;;  %v2127_v45 = vld [vmem:[#allocation2 + $0x2e0] sm:$0xff]  ;;  %1937 = vst.msk [vmem:[#allocation2 + $0x310] sm:$0xff] %vm1838_vm3, %v4729_v40  ;;  %v1439_v46 = vpop.f32.mrb[97].mxu0  ;;  %v2723_v57 = vmul.f32 %v2129_v44, %v2129_v44  ;;  %v2418_v63 = vsel %vm1838_vm3, %v2129_v44, 0.0  ;;  %v2136_v35 = vld [vmem:[#allocation2 + $0x328] sm:$0xff]  ;;  %v1727_v36 = vpop.f32.mrb[69].mxu1 }
 0x19f   :  { %v2414_v49 = vsel %vm1838_vm3, %v2127_v45, 0.0  ;;  %v2721_v50 = vmul.f32 %v2127_v45, %v2127_v45  ;;  %1935 = vst.msk [vmem:[#allocation2 + $0x300] sm:$0xff] %vm1838_vm3, %v1439_v46  ;;  %v4730_v51 = vpop.f32.mrb[98].mxu0  ;;  %v2130_v54 = vld [vmem:[#allocation2 + $0x2f8] sm:$0xff]  ;;  %v2430_v39 = vsel %vm1838_vm3, %v2135_v21, 0.0  ;;  %2007 = vst.msk [vmem:[#allocation2 + $0x540] sm:$0xff] %vm1838_vm3, %v1727_v36  ;;  %v2730_v47 = vmul.f32 %v2136_v35, %v2136_v35 }
 0x1a0   :  { %v3007_v52 = vadd.f32 %v3006_v48, %v3005_v43  ;;  %v2415_v53 = vadd.f32 %v2414_v49, %v2413_v42  ;;  %v2128_v55 = vld [vmem:[#allocation2 + $0x2e8] sm:$0xff]  ;;  %1938 = vst.msk [vmem:[#allocation2 + $0x318] sm:$0xff] %vm1838_vm3, %v4730_v51  ;;  %v1442_v56 = vpop.f32.mrb[99].mxu0  ;;  %v2724_v0 = vmul.f32 %v2130_v54, %v2130_v54  ;;  %v3012_v6 = vsel %vm1838_vm3, %v2723_v57, 0.0  ;;  %v4802_v40 = vpop.f32.mrb[70].mxu1  ;;  %v2137_v43 = vld [vmem:[#allocation2 + $0x330] sm:$0xff] }
 0x1a1   :  { %v3008_v58 = vsel %vm1838_vm3, %v2721_v50, 0.0  ;;  %v2416_v59 = vsel %vm1838_vm3, %v2128_v55, 0.0  ;;  %v2722_v60 = vmul.f32 %v2128_v55, %v2128_v55  ;;  %1936 = vst.msk [vmem:[#allocation2 + $0x308] sm:$0xff] %vm1838_vm3, %v1442_v56  ;;  %v2420_v7 = vsel %vm1838_vm3, %v2130_v54, 0.0  ;;  %2010 = vst.msk [vmem:[#allocation2 + $0x558] sm:$0xff] %vm1838_vm3, %v4802_v40  ;;  %v1730_v44 = vpop.f32.mrb[71].mxu1 }
 0x1a2   :  { %v3009_v61 = vadd.f32 %v3008_v58, %v3007_v52  ;;  %v2417_v62 = vadd.f32 %v2416_v59, %v2415_v53  ;;  %v3014_v14 = vsel %vm1838_vm3, %v2724_v0, 0.0  ;;  %v3024_v46 = vsel %vm1838_vm3, %v2729_v31, 0.0  ;;  %2008 = vst.msk [vmem:[#allocation2 + $0x548] sm:$0xff] %vm1838_vm3, %v1730_v44  ;;  %v2138_v50 = vld [vmem:[#allocation2 + $0x338] sm:$0xff]  ;;  %v2139_v51 = vld [vmem:[#allocation2 + $0x340] sm:$0xff] }
 0x1a3   :  { %v3010_v1 = vsel %vm1838_vm3, %v2722_v60, 0.0  ;;  %v2731_v52 = vmul.f32 %v2137_v43, %v2137_v43  ;;  %v2432_v53 = vsel %vm1838_vm3, %v2136_v35, 0.0  ;;  %v2434_v56 = vsel %vm1838_vm3, %v2137_v43, 0.0  ;;  %v4805_v60 = vpop.f32.mrb[72].mxu1  ;;  %v2145_v35 = vld [vmem:[#allocation2 + $0x370] sm:$0xff]  ;;  %v2147_v43 = vld [vmem:[#allocation2 + $0x380] sm:$0xff] }
 0x1a4   :  { %v2419_v3 = vadd.f32 %v2418_v63, %v2417_v62  ;;  %v3011_v4 = vadd.f32 %v3010_v1, %v3009_v61  ;;  %v2732_v57 = vmul.f32 %v2138_v50, %v2138_v50  ;;  %v3026_v58 = vsel %vm1838_vm3, %v2730_v47, 0.0  ;;  %v2140_v63 = vld [vmem:[#allocation2 + $0x348] sm:$0xff]  ;;  %2013 = vst.msk [vmem:[#allocation2 + $0x570] sm:$0xff] %vm1838_vm3, %v4805_v60  ;;  %v1743_v0 = vpop.f32.mrb[73].mxu1 }
 0x1a5   :  { %v2133_v11 = vld [vmem:[#allocation2 + $0x310] sm:$0xff]  ;;  %v2733_v59 = vmul.f32 %v2139_v51, %v2139_v51  ;;  %v3028_v1 = vsel %vm1838_vm3, %v2731_v52, 0.0  ;;  %v2436_v2 = vsel %vm1838_vm3, %v2138_v50, 0.0  ;;  %2011 = vst.msk [vmem:[#allocation2 + $0x560] sm:$0xff] %vm1838_vm3, %v1743_v0  ;;  %v2739_v44 = vmul.f32 %v2145_v35, %v2145_v35 }
 0x1a6   :  { %v2421_v9 = vadd.f32 %v2420_v7, %v2419_v3  ;;  %v3013_v10 = vadd.f32 %v3012_v6, %v3011_v4  ;;  %v2131_v12 = vld [vmem:[#allocation2 + $0x300] sm:$0xff]  ;;  %v2727_v22 = vmul.f32 %v2133_v11, %v2133_v11  ;;  %v2426_v28 = vsel %vm1838_vm3, %v2133_v11, 0.0  ;;  %v4806_v4 = vpop.f32.mrb[74].mxu1  ;;  %v2141_v7 = vld [vmem:[#allocation2 + $0x350] sm:$0xff] }
 0x1a7   :  { %v2422_v15 = vsel %vm1838_vm3, %v2131_v12, 0.0  ;;  %v2725_v16 = vmul.f32 %v2131_v12, %v2131_v12  ;;  %v2134_v19 = vld [vmem:[#allocation2 + $0x318] sm:$0xff]  ;;  %v2438_v3 = vsel %vm1838_vm3, %v2139_v51, 0.0  ;;  %2014 = vst.msk [vmem:[#allocation2 + $0x578] sm:$0xff] %vm1838_vm3, %v4806_v4  ;;  %v1746_v8 = vpop.f32.mrb[75].mxu1  ;;  %v2734_v11 = vmul.f32 %v2140_v63, %v2140_v63 }
 0x1a8   :  { %v3015_v17 = vadd.f32 %v3014_v14, %v3013_v10  ;;  %v2423_v18 = vadd.f32 %v2422_v15, %v2421_v9  ;;  %v2132_v20 = vld [vmem:[#allocation2 + $0x308] sm:$0xff]  ;;  %v2728_v29 = vmul.f32 %v2134_v19, %v2134_v19  ;;  %v3020_v37 = vsel %vm1838_vm3, %v2727_v22, 0.0  ;;  %2012 = vst.msk [vmem:[#allocation2 + $0x568] sm:$0xff] %vm1838_vm3, %v1746_v8  ;;  %v2142_v14 = vld [vmem:[#allocation2 + $0x358] sm:$0xff]  ;;  %v2143_v15 = vld [vmem:[#allocation2 + $0x360] sm:$0xff] }
 0x1a9   :  { %v3016_v23 = vsel %vm1838_vm3, %v2725_v16, 0.0  ;;  %v2424_v24 = vsel %vm1838_vm3, %v2132_v20, 0.0  ;;  %v2726_v25 = vmul.f32 %v2132_v20, %v2132_v20  ;;  %v2428_v38 = vsel %vm1838_vm3, %v2134_v19, 0.0 }
 0x1aa   :  { %v3017_v26 = vadd.f32 %v3016_v23, %v3015_v17  ;;  %v2425_v27 = vadd.f32 %v2424_v24, %v2423_v18  ;;  %v3022_v45 = vsel %vm1838_vm3, %v2728_v29, 0.0  ;;  %v3030_v9 = vsel %vm1838_vm3, %v2732_v57, 0.0  ;;  %v4809_v24 = vpop.f32.mrb[76].mxu1 }
 0x1ab   :  { %v3018_v30 = vsel %vm1838_vm3, %v2726_v25, 0.0  ;;  %v3032_v10 = vsel %vm1838_vm3, %v2733_v59, 0.0  ;;  %v2735_v16 = vmul.f32 %v2141_v7, %v2141_v7  ;;  %v2440_v17 = vsel %vm1838_vm3, %v2140_v63, 0.0  ;;  %2017 = vst.msk [vmem:[#allocation2 + $0x590] sm:$0xff] %vm1838_vm3, %v4809_v24  ;;  %v2149_v63 = vld [vmem:[#allocation2 + $0x390] sm:$0xff] }
 0x1ac   :  { %v2427_v33 = vadd.f32 %v2426_v28, %v2425_v27  ;;  %v3019_v34 = vadd.f32 %v3018_v30, %v3017_v26  ;;  %v2442_v20 = vsel %vm1838_vm3, %v2141_v7, 0.0  ;;  %v2736_v21 = vmul.f32 %v2142_v14, %v2142_v14  ;;  %v2144_v27 = vld [vmem:[#allocation2 + $0x368] sm:$0xff]  ;;  %v1759_v28 = vpop.f32.mrb[77].mxu1  ;;  %v2151_v7 = vld [vmem:[#allocation2 + $0x3a0] sm:$0xff] }
 0x1ad   :  { %v3034_v22 = vsel %vm1838_vm3, %v2734_v11, 0.0  ;;  %v2737_v23 = vmul.f32 %v2143_v15, %v2143_v15  ;;  %v3036_v29 = vsel %vm1838_vm3, %v2735_v16, 0.0  ;;  %v2444_v30 = vsel %vm1838_vm3, %v2142_v14, 0.0  ;;  %2015 = vst.msk [vmem:[#allocation2 + $0x580] sm:$0xff] %vm1838_vm3, %v1759_v28  ;;  %v4810_v32 = vpop.f32.mrb[78].mxu1 }
 0x1ae   :  { %v2429_v41 = vadd.f32 %v2428_v38, %v2427_v33  ;;  %v3021_v42 = vadd.f32 %v3020_v37, %v3019_v34  ;;  %v2446_v31 = vsel %vm1838_vm3, %v2143_v15, 0.0  ;;  %2018 = vst.msk [vmem:[#allocation2 + $0x598] sm:$0xff] %vm1838_vm3, %v4810_v32  ;;  %v1762_v36 = vpop.f32.mrb[79].mxu1  ;;  %v3038_v37 = vsel %vm1838_vm3, %v2736_v21, 0.0 }
 0x1af   :  { %v3040_v38 = vsel %vm1838_vm3, %v2737_v23, 0.0  ;;  %2016 = vst.msk [vmem:[#allocation2 + $0x588] sm:$0xff] %vm1838_vm3, %v1762_v36  ;;  %v2741_v51 = vmul.f32 %v2147_v43, %v2147_v43  ;;  %v4813_v52 = vpop.f32.mrb[80].mxu1  ;;  %v3044_v57 = vsel %vm1838_vm3, %v2739_v44, 0.0  ;;  %v2454_v59 = vsel %vm1838_vm3, %v2147_v43, 0.0 }
 0x1b0   :  { %v3023_v48 = vadd.f32 %v3022_v45, %v3021_v42  ;;  %v2431_v49 = vadd.f32 %v2430_v39, %v2429_v41  ;;  %v2738_v39 = vmul.f32 %v2144_v27, %v2144_v27  ;;  %v2146_v42 = vld [vmem:[#allocation2 + $0x378] sm:$0xff]  ;;  %v2448_v45 = vsel %vm1838_vm3, %v2144_v27, 0.0  ;;  %2021 = vst.msk [vmem:[#allocation2 + $0x5b0] sm:$0xff] %vm1838_vm3, %v4813_v52  ;;  %v2153_v27 = vld [vmem:[#allocation2 + $0x3b0] sm:$0xff] }
 0x1b1   :  { %v2743_v8 = vmul.f32 %v2149_v63, %v2149_v63  ;;  %v2745_v15 = vmul.f32 %v2151_v7, %v2151_v7  ;;  %v2462_v23 = vsel %vm1838_vm3, %v2151_v7, 0.0  ;;  %v2747_v36 = vmul.f32 %v2153_v27, %v2153_v27 }
 0x1b2   :  { %v3025_v54 = vadd.f32 %v3024_v46, %v3023_v48  ;;  %v2433_v55 = vadd.f32 %v2432_v53, %v2431_v49  ;;  %v2450_v48 = vsel %vm1838_vm3, %v2145_v35, 0.0  ;;  %v2740_v49 = vmul.f32 %v2146_v42, %v2146_v42  ;;  %v2155_v35 = vld [vmem:[#allocation2 + $0x3c0] sm:$0xff] }
 0x1b3   :  { %v3042_v50 = vsel %vm1838_vm3, %v2738_v39, 0.0  ;;  %v3052_v21 = vsel %vm1838_vm3, %v2743_v8, 0.0  ;;  %v2749_v43 = vmul.f32 %v2155_v35, %v2155_v35 }
 0x1b4   :  { %v2435_v61 = vadd.f32 %v2434_v56, %v2433_v55  ;;  %v3027_v62 = vadd.f32 %v3026_v58, %v3025_v54  ;;  %v2148_v55 = vld [vmem:[#allocation2 + $0x388] sm:$0xff]  ;;  %v1775_v56 = vpop.f32.mrb[81].mxu1  ;;  %v2452_v58 = vsel %vm1838_vm3, %v2146_v42, 0.0 }
 0x1b5   :  { %2019 = vst.msk [vmem:[#allocation2 + $0x5a0] sm:$0xff] %vm1838_vm3, %v1775_v56  ;;  %v4814_v60 = vpop.f32.mrb[82].mxu1 }
 0x1b6   :  { %v2437_v5 = vadd.f32 %v2436_v2, %v2435_v61  ;;  %v3029_v6 = vadd.f32 %v3028_v1, %v3027_v62  ;;  %2022 = vst.msk [vmem:[#allocation2 + $0x5b8] sm:$0xff] %vm1838_vm3, %v4814_v60  ;;  %v1778_v0 = vpop.f32.mrb[83].mxu1  ;;  %v3046_v1 = vsel %vm1838_vm3, %v2740_v49, 0.0  ;;  %v3048_v2 = vsel %vm1838_vm3, %v2741_v51, 0.0 }
 0x1b7   :  { %2020 = vst.msk [vmem:[#allocation2 + $0x5a8] sm:$0xff] %vm1838_vm3, %v1778_v0  ;;  %v4817_v16 = vpop.f32.mrb[84].mxu1  ;;  %v3060_v49 = vsel %vm1838_vm3, %v2747_v36, 0.0  ;;  %v2470_v51 = vsel %vm1838_vm3, %v2155_v35, 0.0 }
 0x1b8   :  { %v3031_v12 = vadd.f32 %v3030_v9, %v3029_v6  ;;  %v2439_v13 = vadd.f32 %v2438_v3, %v2437_v5  ;;  %v2742_v3 = vmul.f32 %v2148_v55, %v2148_v55  ;;  %v2150_v6 = vld [vmem:[#allocation2 + $0x398] sm:$0xff]  ;;  %v2456_v9 = vsel %vm1838_vm3, %v2148_v55, 0.0  ;;  %2025 = vst.msk [vmem:[#allocation2 + $0x5d0] sm:$0xff] %vm1838_vm3, %v4817_v16  ;;  %v2157_v55 = vld [vmem:[#allocation2 + $0x3d0] sm:$0xff] }
 0x1b9   :  { %v2751_v0 = vmul.f32 %v2157_v55, %v2157_v55 }
 0x1ba   :  { %v3033_v18 = vadd.f32 %v3032_v10, %v3031_v12  ;;  %v2441_v19 = vadd.f32 %v2440_v17, %v2439_v13  ;;  %v2458_v12 = vsel %vm1838_vm3, %v2149_v63, 0.0  ;;  %v2744_v13 = vmul.f32 %v2150_v6, %v2150_v6  ;;  %v2159_v63 = vld [vmem:[#allocation2 + $0x3e0] sm:$0xff] }
 0x1bb   :  { %v3050_v14 = vsel %vm1838_vm3, %v2742_v3, 0.0  ;;  %v2753_v7 = vmul.f32 %v2159_v63, %v2159_v63 }
 0x1bc   :  { %v2443_v25 = vadd.f32 %v2442_v20, %v2441_v19  ;;  %v3035_v26 = vadd.f32 %v3034_v22, %v3033_v18  ;;  %v2152_v19 = vld [vmem:[#allocation2 + $0x3a8] sm:$0xff]  ;;  %v1791_v20 = vpop.f32.mrb[85].mxu1  ;;  %v2460_v22 = vsel %vm1838_vm3, %v2150_v6, 0.0 }
 0x1bd   :  { %2023 = vst.msk [vmem:[#allocation2 + $0x5c0] sm:$0xff] %vm1838_vm3, %v1791_v20  ;;  %v4818_v24 = vpop.f32.mrb[86].mxu1 }
 0x1be   :  { %v2445_v33 = vadd.f32 %v2444_v30, %v2443_v25  ;;  %v3037_v34 = vadd.f32 %v3036_v29, %v3035_v26  ;;  %2026 = vst.msk [vmem:[#allocation2 + $0x5d8] sm:$0xff] %vm1838_vm3, %v4818_v24  ;;  %v1794_v28 = vpop.f32.mrb[87].mxu1  ;;  %v3054_v29 = vsel %vm1838_vm3, %v2744_v13, 0.0  ;;  %v3056_v30 = vsel %vm1838_vm3, %v2745_v15, 0.0 }
 0x1bf   :  { %2024 = vst.msk [vmem:[#allocation2 + $0x5c8] sm:$0xff] %vm1838_vm3, %v1794_v28  ;;  %v3068_v13 = vsel %vm1838_vm3, %v2751_v0, 0.0  ;;  %v2478_v15 = vsel %vm1838_vm3, %v2159_v63, 0.0 }
 0x1c0   :  { %v3039_v40 = vadd.f32 %v3038_v37, %v3037_v34  ;;  %v2447_v41 = vadd.f32 %v2446_v31, %v2445_v33  ;;  %v2746_v31 = vmul.f32 %v2152_v19, %v2152_v19  ;;  %v2154_v34 = vld [vmem:[#allocation2 + $0x3b8] sm:$0xff]  ;;  %v2464_v37 = vsel %vm1838_vm3, %v2152_v19, 0.0  ;;  %v2161_v19 = vld [vmem:[#allocation2 + $0x3f0] sm:$0xff] }
 0x1c1   :  { %v2755_v28 = vmul.f32 %v2161_v19, %v2161_v19 }
 0x1c2   :  { %v3041_v46 = vadd.f32 %v3040_v38, %v3039_v40  ;;  %v2449_v47 = vadd.f32 %v2448_v45, %v2447_v41  ;;  %v2466_v40 = vsel %vm1838_vm3, %v2153_v27, 0.0  ;;  %v2748_v41 = vmul.f32 %v2154_v34, %v2154_v34  ;;  %v2163_v27 = vld [vmem:[#allocation2 + $0x400] sm:$0xff] }
 0x1c3   :  { %v3058_v42 = vsel %vm1838_vm3, %v2746_v31, 0.0  ;;  %v2757_v35 = vmul.f32 %v2163_v27, %v2163_v27 }
 0x1c4   :  { %v2451_v53 = vadd.f32 %v2450_v48, %v2449_v47  ;;  %v3043_v54 = vadd.f32 %v3042_v50, %v3041_v46  ;;  %v4821_v44 = vpop.f32.mrb[88].mxu1  ;;  %v2156_v47 = vld [vmem:[#allocation2 + $0x3c8] sm:$0xff]  ;;  %v2468_v50 = vsel %vm1838_vm3, %v2154_v34, 0.0 }
 0x1c5   :  { %2029 = vst.msk [vmem:[#allocation2 + $0x5f0] sm:$0xff] %vm1838_vm3, %v4821_v44  ;;  %v1807_v48 = vpop.f32.mrb[89].mxu1  ;;  %v2165_v44 = vld [vmem:[#allocation2 + $0x410] sm:$0xff] }
 0x1c6   :  { %v2453_v61 = vadd.f32 %v2452_v58, %v2451_v53  ;;  %v3045_v62 = vadd.f32 %v3044_v57, %v3043_v54  ;;  %2027 = vst.msk [vmem:[#allocation2 + $0x5e0] sm:$0xff] %vm1838_vm3, %v1807_v48  ;;  %v4822_v52 = vpop.f32.mrb[90].mxu1  ;;  %v3062_v57 = vsel %vm1838_vm3, %v2748_v41, 0.0  ;;  %v3064_v58 = vsel %vm1838_vm3, %v2749_v43, 0.0 }
 0x1c7   :  { %2030 = vst.msk [vmem:[#allocation2 + $0x5f8] sm:$0xff] %vm1838_vm3, %v4822_v52  ;;  %v1810_v56 = vpop.f32.mrb[91].mxu1  ;;  %v2486_v41 = vsel %vm1838_vm3, %v2163_v27, 0.0  ;;  %v2759_v52 = vmul.f32 %v2165_v44, %v2165_v44  ;;  %v2173_v27 = vld [vmem:[#allocation2 + $0x450] sm:$0xff] }
 0x1c8   :  { %v3047_v4 = vadd.f32 %v3046_v1, %v3045_v62  ;;  %v2455_v5 = vadd.f32 %v2454_v59, %v2453_v61  ;;  %v2750_v59 = vmul.f32 %v2156_v47, %v2156_v47  ;;  %2028 = vst.msk [vmem:[#allocation2 + $0x5e8] sm:$0xff] %vm1838_vm3, %v1810_v56  ;;  %v2158_v62 = vld [vmem:[#allocation2 + $0x3d8] sm:$0xff]  ;;  %v2472_v1 = vsel %vm1838_vm3, %v2156_v47, 0.0 }
 0x1c9   :  { %v2490_v56 = vsel %vm1838_vm3, %v2165_v44, 0.0  ;;  %v3084_v63 = vsel %vm1838_vm3, %v2759_v52, 0.0 }
 0x1ca   :  { %v3049_v10 = vadd.f32 %v3048_v2, %v3047_v4  ;;  %v2457_v11 = vadd.f32 %v2456_v9, %v2455_v5  ;;  %v2474_v4 = vsel %vm1838_vm3, %v2157_v55, 0.0  ;;  %v2752_v5 = vmul.f32 %v2158_v62, %v2158_v62 }
 0x1cb   :  { %v3066_v6 = vsel %vm1838_vm3, %v2750_v59, 0.0 }
 0x1cc   :  { %v2459_v17 = vadd.f32 %v2458_v12, %v2457_v11  ;;  %v3051_v18 = vadd.f32 %v3050_v14, %v3049_v10  ;;  %v2160_v11 = vld [vmem:[#allocation2 + $0x3e8] sm:$0xff]  ;;  %v2476_v14 = vsel %vm1838_vm3, %v2158_v62, 0.0 }
 0x1cd   :  { %v4825_v8 = vpop.f32.mrb[92].mxu1  ;;  %v2168_v62 = vld [vmem:[#allocation2 + $0x428] sm:$0xff] }
 0x1ce   :  { %v2461_v25 = vadd.f32 %v2460_v22, %v2459_v17  ;;  %v3053_v26 = vadd.f32 %v3052_v21, %v3051_v18  ;;  %2033 = vst.msk [vmem:[#allocation2 + $0x610] sm:$0xff] %vm1838_vm3, %v4825_v8  ;;  %v1823_v12 = vpop.f32.mrb[93].mxu1  ;;  %v3070_v21 = vsel %vm1838_vm3, %v2752_v5, 0.0  ;;  %v3072_v22 = vsel %vm1838_vm3, %v2753_v7, 0.0 }
 0x1cf   :  { %2031 = vst.msk [vmem:[#allocation2 + $0x600] sm:$0xff] %vm1838_vm3, %v1823_v12  ;;  %v4826_v16 = vpop.f32.mrb[94].mxu1  ;;  %v2762_v7 = vmul.f32 %v2168_v62, %v2168_v62 }
 0x1d0   :  { %v3055_v32 = vadd.f32 %v3054_v29, %v3053_v26  ;;  %v2463_v33 = vadd.f32 %v2462_v23, %v2461_v25  ;;  %2034 = vst.msk [vmem:[#allocation2 + $0x618] sm:$0xff] %vm1838_vm3, %v4826_v16  ;;  %v1826_v20 = vpop.f32.mrb[95].mxu1  ;;  %v2754_v23 = vmul.f32 %v2160_v11, %v2160_v11  ;;  %v2162_v26 = vld [vmem:[#allocation2 + $0x3f8] sm:$0xff]  ;;  %v2480_v29 = vsel %vm1838_vm3, %v2160_v11, 0.0  ;;  %v2171_v11 = vld [vmem:[#allocation2 + $0x440] sm:$0xff] }
 0x1d1   :  { %2032 = vst.msk [vmem:[#allocation2 + $0x608] sm:$0xff] %vm1838_vm3, %v1826_v20 }
 0x1d2   :  { %v3057_v38 = vadd.f32 %v3056_v30, %v3055_v32  ;;  %v2465_v39 = vadd.f32 %v2464_v37, %v2463_v33  ;;  %v2482_v32 = vsel %vm1838_vm3, %v2161_v19, 0.0  ;;  %v2756_v33 = vmul.f32 %v2162_v26, %v2162_v26 }
 0x1d3   :  { %v3074_v34 = vsel %vm1838_vm3, %v2754_v23, 0.0  ;;  %v2765_v19 = vmul.f32 %v2171_v11, %v2171_v11 }
 0x1d4   :  { %v2467_v45 = vadd.f32 %v2466_v40, %v2465_v39  ;;  %v3059_v46 = vadd.f32 %v3058_v42, %v3057_v38  ;;  %v2164_v38 = vld [vmem:[#allocation2 + $0x408] sm:$0xff]  ;;  %v3076_v39 = vsel %vm1838_vm3, %v2755_v28, 0.0  ;;  %v2484_v40 = vsel %vm1838_vm3, %v2162_v26, 0.0 }
 0x1d5   :  { %v2758_v47 = vmul.f32 %v2164_v38, %v2164_v38 }
 0x1d6   :  { %v2469_v53 = vadd.f32 %v2468_v50, %v2467_v45  ;;  %v3061_v54 = vadd.f32 %v3060_v49, %v3059_v46  ;;  %v3078_v45 = vsel %vm1838_vm3, %v2756_v33, 0.0  ;;  %v3080_v46 = vsel %vm1838_vm3, %v2757_v35, 0.0  ;;  %v2166_v50 = vld [vmem:[#allocation2 + $0x418] sm:$0xff]  ;;  %v2175_v35 = vld [vmem:[#allocation2 + $0x460] sm:$0xff] }
 0x1d7   :  { %v2492_v0 = vsel %vm1838_vm3, %v2166_v50, 0.0 }
 0x1d8   :  { %v3063_v60 = vadd.f32 %v3062_v57, %v3061_v54  ;;  %v2471_v61 = vadd.f32 %v2470_v51, %v2469_v53  ;;  %v2167_v51 = vld [vmem:[#allocation2 + $0x420] sm:$0xff]  ;;  %v2488_v53 = vsel %vm1838_vm3, %v2164_v38, 0.0  ;;  %v2760_v57 = vmul.f32 %v2166_v50, %v2166_v50 }
 0x1d9   :  { %v2761_v59 = vmul.f32 %v2167_v51, %v2167_v51 }
 0x1da   :  { %v3065_v2 = vadd.f32 %v3064_v58, %v3063_v60  ;;  %v2473_v3 = vadd.f32 %v2472_v1, %v2471_v61  ;;  %v3082_v58 = vsel %vm1838_vm3, %v2758_v47, 0.0  ;;  %v2494_v1 = vsel %vm1838_vm3, %v2167_v51, 0.0  ;;  %v2177_v51 = vld [vmem:[#allocation2 + $0x470] sm:$0xff] }
 0x1db   :  { %v3086_v5 = vsel %vm1838_vm3, %v2760_v57, 0.0 }
 0x1dc   :  { %v2475_v9 = vadd.f32 %v2474_v4, %v2473_v3  ;;  %v3067_v10 = vadd.f32 %v3066_v6, %v3065_v2  ;;  %v2169_v4 = vld [vmem:[#allocation2 + $0x430] sm:$0xff]  ;;  %v3088_v6 = vsel %vm1838_vm3, %v2761_v59, 0.0  ;;  %v2179_v59 = vld [vmem:[#allocation2 + $0x480] sm:$0xff] }
 0x1dd   :  { %v2763_v12 = vmul.f32 %v2169_v4, %v2169_v4  ;;  %v2498_v16 = vsel %vm1838_vm3, %v2169_v4, 0.0 }
 0x1de   :  { %v2477_v17 = vadd.f32 %v2476_v14, %v2475_v9  ;;  %v3069_v18 = vadd.f32 %v3068_v13, %v3067_v10  ;;  %v2170_v10 = vld [vmem:[#allocation2 + $0x438] sm:$0xff]  ;;  %v2496_v13 = vsel %vm1838_vm3, %v2168_v62, 0.0 }
 0x1df   :  { %v3092_v23 = vsel %vm1838_vm3, %v2763_v12, 0.0 }
 0x1e0   :  { %v3071_v24 = vadd.f32 %v3070_v21, %v3069_v18  ;;  %v2479_v25 = vadd.f32 %v2478_v15, %v2477_v17  ;;  %v2764_v17 = vmul.f32 %v2170_v10, %v2170_v10  ;;  %v3090_v18 = vsel %vm1838_vm3, %v2762_v7, 0.0 }
 0x1e2   :  { %v3073_v30 = vadd.f32 %v3072_v22, %v3071_v24  ;;  %v2481_v31 = vadd.f32 %v2480_v29, %v2479_v25  ;;  %v2172_v22 = vld [vmem:[#allocation2 + $0x448] sm:$0xff]  ;;  %v2500_v24 = vsel %vm1838_vm3, %v2170_v10, 0.0  ;;  %v2502_v25 = vsel %vm1838_vm3, %v2171_v11, 0.0  ;;  %v2181_v11 = vld [vmem:[#allocation2 + $0x490] sm:$0xff] }
 0x1e3   :  { %v3094_v29 = vsel %vm1838_vm3, %v2764_v17, 0.0 }
 0x1e4   :  { %v2483_v36 = vadd.f32 %v2482_v32, %v2481_v31  ;;  %v3075_v37 = vadd.f32 %v3074_v34, %v3073_v30  ;;  %v3096_v30 = vsel %vm1838_vm3, %v2765_v19, 0.0  ;;  %v2766_v31 = vmul.f32 %v2172_v22, %v2172_v22  ;;  %v2174_v34 = vld [vmem:[#allocation2 + $0x458] sm:$0xff]  ;;  %v2183_v19 = vld [vmem:[#allocation2 + $0x4a0] sm:$0xff] }
 0x1e6   :  { %v2485_v42 = vadd.f32 %v2484_v40, %v2483_v36  ;;  %v3077_v43 = vadd.f32 %v3076_v39, %v3075_v37  ;;  %v2767_v36 = vmul.f32 %v2173_v27, %v2173_v27  ;;  %v2504_v37 = vsel %vm1838_vm3, %v2172_v22, 0.0 }
 0x1e7   :  { %v2506_v40 = vsel %vm1838_vm3, %v2173_v27, 0.0  ;;  %v2777_v27 = vmul.f32 %v2183_v19, %v2183_v19 }
 0x1e8   :  { %v3079_v48 = vadd.f32 %v3078_v45, %v3077_v43  ;;  %v2487_v49 = vadd.f32 %v2486_v41, %v2485_v42  ;;  %v2768_v41 = vmul.f32 %v2174_v34, %v2174_v34  ;;  %v3098_v42 = vsel %vm1838_vm3, %v2766_v31, 0.0 }
 0x1e9   :  { %v2769_v43 = vmul.f32 %v2175_v35, %v2175_v35  ;;  %v3100_v47 = vsel %vm1838_vm3, %v2767_v36, 0.0 }
 0x1ea   :  { %v3081_v54 = vadd.f32 %v3080_v46, %v3079_v48  ;;  %v2489_v55 = vadd.f32 %v2488_v53, %v2487_v49  ;;  %v2176_v46 = vld [vmem:[#allocation2 + $0x468] sm:$0xff]  ;;  %v2508_v48 = vsel %vm1838_vm3, %v2174_v34, 0.0  ;;  %v2510_v49 = vsel %vm1838_vm3, %v2175_v35, 0.0  ;;  %v2185_v35 = vld [vmem:[#allocation2 + $0x4b0] sm:$0xff] }
 0x1eb   :  { %v3102_v53 = vsel %vm1838_vm3, %v2768_v41, 0.0 }
 0x1ec   :  { %v2491_v60 = vadd.f32 %v2490_v56, %v2489_v55  ;;  %v3083_v61 = vadd.f32 %v3082_v58, %v3081_v54  ;;  %v3104_v54 = vsel %vm1838_vm3, %v2769_v43, 0.0  ;;  %v2770_v55 = vmul.f32 %v2176_v46, %v2176_v46  ;;  %v2178_v58 = vld [vmem:[#allocation2 + $0x478] sm:$0xff]  ;;  %v2187_v43 = vld [vmem:[#allocation2 + $0x4c0] sm:$0xff] }
 0x1ee   :  { %v2493_v2 = vadd.f32 %v2492_v0, %v2491_v60  ;;  %v3085_v3 = vadd.f32 %v3084_v63, %v3083_v61  ;;  %v2771_v60 = vmul.f32 %v2177_v51, %v2177_v51  ;;  %v2512_v61 = vsel %vm1838_vm3, %v2176_v46, 0.0 }
 0x1ef   :  { %v2514_v0 = vsel %vm1838_vm3, %v2177_v51, 0.0  ;;  %v2781_v51 = vmul.f32 %v2187_v43, %v2187_v43 }
 0x1f0   :  { %v3087_v8 = vadd.f32 %v3086_v5, %v3085_v3  ;;  %v2495_v9 = vadd.f32 %v2494_v1, %v2493_v2  ;;  %v2772_v1 = vmul.f32 %v2178_v58, %v2178_v58  ;;  %v3106_v2 = vsel %vm1838_vm3, %v2770_v55, 0.0 }
 0x1f1   :  { %v2773_v3 = vmul.f32 %v2179_v59, %v2179_v59  ;;  %v3108_v7 = vsel %vm1838_vm3, %v2771_v60, 0.0 }
 0x1f2   :  { %v3089_v14 = vadd.f32 %v3088_v6, %v3087_v8  ;;  %v2497_v15 = vadd.f32 %v2496_v13, %v2495_v9  ;;  %v2180_v6 = vld [vmem:[#allocation2 + $0x488] sm:$0xff]  ;;  %v2516_v8 = vsel %vm1838_vm3, %v2178_v58, 0.0  ;;  %v2518_v9 = vsel %vm1838_vm3, %v2179_v59, 0.0  ;;  %v2189_v59 = vld [vmem:[#allocation2 + $0x4d0] sm:$0xff] }
 0x1f3   :  { %v3110_v13 = vsel %vm1838_vm3, %v2772_v1, 0.0 }
 0x1f4   :  { %v2499_v20 = vadd.f32 %v2498_v16, %v2497_v15  ;;  %v3091_v21 = vadd.f32 %v3090_v18, %v3089_v14  ;;  %v3112_v14 = vsel %vm1838_vm3, %v2773_v3, 0.0  ;;  %v2774_v15 = vmul.f32 %v2180_v6, %v2180_v6  ;;  %v2182_v18 = vld [vmem:[#allocation2 + $0x498] sm:$0xff]  ;;  %v2191_v3 = vld [vmem:[#allocation2 + $0x4e0] sm:$0xff] }
 0x1f6   :  { %v3093_v26 = vadd.f32 %v3092_v23, %v3091_v21  ;;  %v2501_v28 = vadd.f32 %v2500_v24, %v2499_v20  ;;  %v2775_v20 = vmul.f32 %v2181_v11, %v2181_v11  ;;  %v2520_v21 = vsel %vm1838_vm3, %v2180_v6, 0.0 }
 0x1f7   :  { %v2522_v24 = vsel %vm1838_vm3, %v2181_v11, 0.0  ;;  %v2785_v11 = vmul.f32 %v2191_v3, %v2191_v3 }
 0x1f8   :  { %v2503_v32 = vadd.f32 %v2502_v25, %v2501_v28  ;;  %v3095_v33 = vadd.f32 %v3094_v29, %v3093_v26  ;;  %v2776_v25 = vmul.f32 %v2182_v18, %v2182_v18  ;;  %v3114_v26 = vsel %vm1838_vm3, %v2774_v15, 0.0 }
 0x1f9   :  { %v3116_v31 = vsel %vm1838_vm3, %v2775_v20, 0.0 }
 0x1fa   :  { %v3097_v38 = vadd.f32 %v3096_v30, %v3095_v33  ;;  %v2505_v39 = vadd.f32 %v2504_v37, %v2503_v32  ;;  %v2184_v30 = vld [vmem:[#allocation2 + $0x4a8] sm:$0xff]  ;;  %v2524_v32 = vsel %vm1838_vm3, %v2182_v18, 0.0  ;;  %v2526_v33 = vsel %vm1838_vm3, %v2183_v19, 0.0  ;;  %v2193_v19 = vld [vmem:[#allocation2 + $0x4f0] sm:$0xff] }
 0x1fb   :  { %v3118_v37 = vsel %vm1838_vm3, %v2776_v25, 0.0 }
 0x1fc   :  { %v2507_v44 = vadd.f32 %v2506_v40, %v2505_v39  ;;  %v3099_v45 = vadd.f32 %v3098_v42, %v3097_v38  ;;  %v3120_v38 = vsel %vm1838_vm3, %v2777_v27, 0.0  ;;  %v2778_v39 = vmul.f32 %v2184_v30, %v2184_v30  ;;  %v2186_v42 = vld [vmem:[#allocation2 + $0x4b8] sm:$0xff]  ;;  %v2195_v27 = vld [vmem:[#allocation2 + $0x500] sm:$0xff] }
 0x1fe   :  { %v3101_v50 = vadd.f32 %v3100_v47, %v3099_v45  ;;  %v2509_v52 = vadd.f32 %v2508_v48, %v2507_v44  ;;  %v2779_v44 = vmul.f32 %v2185_v35, %v2185_v35  ;;  %v2528_v45 = vsel %vm1838_vm3, %v2184_v30, 0.0 }
 0x1ff   :  { %v2530_v48 = vsel %vm1838_vm3, %v2185_v35, 0.0  ;;  %v2789_v35 = vmul.f32 %v2195_v27, %v2195_v27 }
 0x200   :  { %v2511_v56 = vadd.f32 %v2510_v49, %v2509_v52  ;;  %v3103_v57 = vadd.f32 %v3102_v53, %v3101_v50  ;;  %v2780_v49 = vmul.f32 %v2186_v42, %v2186_v42  ;;  %v3122_v50 = vsel %vm1838_vm3, %v2778_v39, 0.0 }
 0x201   :  { %v3124_v55 = vsel %vm1838_vm3, %v2779_v44, 0.0 }
 0x202   :  { %v3105_v62 = vadd.f32 %v3104_v54, %v3103_v57  ;;  %v2513_v63 = vadd.f32 %v2512_v61, %v2511_v56  ;;  %v2188_v54 = vld [vmem:[#allocation2 + $0x4c8] sm:$0xff]  ;;  %v2532_v56 = vsel %vm1838_vm3, %v2186_v42, 0.0  ;;  %v2534_v57 = vsel %vm1838_vm3, %v2187_v43, 0.0  ;;  %v2197_v43 = vld [vmem:[#allocation2 + $0x510] sm:$0xff] }
 0x203   :  { %v3126_v61 = vsel %vm1838_vm3, %v2780_v49, 0.0 }
 0x204   :  { %v2515_v4 = vadd.f32 %v2514_v0, %v2513_v63  ;;  %v3107_v5 = vadd.f32 %v3106_v2, %v3105_v62  ;;  %v3128_v62 = vsel %vm1838_vm3, %v2781_v51, 0.0  ;;  %v2782_v63 = vmul.f32 %v2188_v54, %v2188_v54  ;;  %v2190_v2 = vld [vmem:[#allocation2 + $0x4d8] sm:$0xff]  ;;  %v2199_v51 = vld [vmem:[#allocation2 + $0x520] sm:$0xff] }
 0x206   :  { %v3109_v10 = vadd.f32 %v3108_v7, %v3107_v5  ;;  %v2517_v12 = vadd.f32 %v2516_v8, %v2515_v4  ;;  %v2783_v4 = vmul.f32 %v2189_v59, %v2189_v59  ;;  %v2536_v5 = vsel %vm1838_vm3, %v2188_v54, 0.0 }
 0x207   :  { %v2538_v8 = vsel %vm1838_vm3, %v2189_v59, 0.0  ;;  %v2793_v59 = vmul.f32 %v2199_v51, %v2199_v51 }
 0x208   :  { %v2519_v16 = vadd.f32 %v2518_v9, %v2517_v12  ;;  %v3111_v17 = vadd.f32 %v3110_v13, %v3109_v10  ;;  %v2784_v9 = vmul.f32 %v2190_v2, %v2190_v2  ;;  %v3130_v10 = vsel %vm1838_vm3, %v2782_v63, 0.0 }
 0x209   :  { %v3132_v15 = vsel %vm1838_vm3, %v2783_v4, 0.0 }
 0x20a   :  { %v3113_v22 = vadd.f32 %v3112_v14, %v3111_v17  ;;  %v2521_v23 = vadd.f32 %v2520_v21, %v2519_v16  ;;  %v2192_v14 = vld [vmem:[#allocation2 + $0x4e8] sm:$0xff]  ;;  %v2540_v16 = vsel %vm1838_vm3, %v2190_v2, 0.0  ;;  %v2542_v17 = vsel %vm1838_vm3, %v2191_v3, 0.0  ;;  %v2201_v3 = vld [vmem:[#allocation2 + $0x530] sm:$0xff] }
 0x20b   :  { %v3134_v21 = vsel %vm1838_vm3, %v2784_v9, 0.0 }
 0x20c   :  { %v2523_v28 = vadd.f32 %v2522_v24, %v2521_v23  ;;  %v3115_v29 = vadd.f32 %v3114_v26, %v3113_v22  ;;  %v3136_v22 = vsel %vm1838_vm3, %v2785_v11, 0.0  ;;  %v2786_v23 = vmul.f32 %v2192_v14, %v2192_v14  ;;  %v2194_v26 = vld [vmem:[#allocation2 + $0x4f8] sm:$0xff]  ;;  %v2203_v11 = vld [vmem:[#allocation2 + $0x540] sm:$0xff] }
 0x20e   :  { %v3117_v34 = vadd.f32 %v3116_v31, %v3115_v29  ;;  %v2525_v36 = vadd.f32 %v2524_v32, %v2523_v28  ;;  %v2787_v28 = vmul.f32 %v2193_v19, %v2193_v19  ;;  %v2544_v29 = vsel %vm1838_vm3, %v2192_v14, 0.0 }
 0x20f   :  { %v2546_v32 = vsel %vm1838_vm3, %v2193_v19, 0.0  ;;  %v2797_v19 = vmul.f32 %v2203_v11, %v2203_v11 }
 0x210   :  { %v2527_v40 = vadd.f32 %v2526_v33, %v2525_v36  ;;  %v3119_v41 = vadd.f32 %v3118_v37, %v3117_v34  ;;  %v2788_v33 = vmul.f32 %v2194_v26, %v2194_v26  ;;  %v3138_v34 = vsel %vm1838_vm3, %v2786_v23, 0.0 }
 0x211   :  { %v3140_v39 = vsel %vm1838_vm3, %v2787_v28, 0.0 }
 0x212   :  { %v3121_v46 = vadd.f32 %v3120_v38, %v3119_v41  ;;  %v2529_v47 = vadd.f32 %v2528_v45, %v2527_v40  ;;  %v2196_v38 = vld [vmem:[#allocation2 + $0x508] sm:$0xff]  ;;  %v2548_v40 = vsel %vm1838_vm3, %v2194_v26, 0.0  ;;  %v2550_v41 = vsel %vm1838_vm3, %v2195_v27, 0.0  ;;  %v2205_v27 = vld [vmem:[#allocation2 + $0x550] sm:$0xff] }
 0x213   :  { %v3142_v45 = vsel %vm1838_vm3, %v2788_v33, 0.0 }
 0x214   :  { %v2531_v52 = vadd.f32 %v2530_v48, %v2529_v47  ;;  %v3123_v53 = vadd.f32 %v3122_v50, %v3121_v46  ;;  %v3144_v46 = vsel %vm1838_vm3, %v2789_v35, 0.0  ;;  %v2790_v47 = vmul.f32 %v2196_v38, %v2196_v38  ;;  %v2198_v50 = vld [vmem:[#allocation2 + $0x518] sm:$0xff]  ;;  %v2207_v35 = vld [vmem:[#allocation2 + $0x560] sm:$0xff] }
 0x216   :  { %v3125_v58 = vadd.f32 %v3124_v55, %v3123_v53  ;;  %v2533_v60 = vadd.f32 %v2532_v56, %v2531_v52  ;;  %v2791_v52 = vmul.f32 %v2197_v43, %v2197_v43  ;;  %v2552_v53 = vsel %vm1838_vm3, %v2196_v38, 0.0 }
 0x217   :  { %v2554_v56 = vsel %vm1838_vm3, %v2197_v43, 0.0  ;;  %v2801_v43 = vmul.f32 %v2207_v35, %v2207_v35 }
 0x218   :  { %v2535_v0 = vadd.f32 %v2534_v57, %v2533_v60  ;;  %v3127_v1 = vadd.f32 %v3126_v61, %v3125_v58  ;;  %v2792_v57 = vmul.f32 %v2198_v50, %v2198_v50  ;;  %v3146_v58 = vsel %vm1838_vm3, %v2790_v47, 0.0 }
 0x219   :  { %v3148_v63 = vsel %vm1838_vm3, %v2791_v52, 0.0 }
 0x21a   :  { %v3129_v6 = vadd.f32 %v3128_v62, %v3127_v1  ;;  %v2537_v7 = vadd.f32 %v2536_v5, %v2535_v0  ;;  %v2200_v62 = vld [vmem:[#allocation2 + $0x528] sm:$0xff]  ;;  %v2556_v0 = vsel %vm1838_vm3, %v2198_v50, 0.0  ;;  %v2558_v1 = vsel %vm1838_vm3, %v2199_v51, 0.0  ;;  %v2209_v51 = vld [vmem:[#allocation2 + $0x570] sm:$0xff] }
 0x21b   :  { %v3150_v5 = vsel %vm1838_vm3, %v2792_v57, 0.0 }
 0x21c   :  { %v2539_v12 = vadd.f32 %v2538_v8, %v2537_v7  ;;  %v3131_v13 = vadd.f32 %v3130_v10, %v3129_v6  ;;  %v3152_v6 = vsel %vm1838_vm3, %v2793_v59, 0.0  ;;  %v2794_v7 = vmul.f32 %v2200_v62, %v2200_v62  ;;  %v2202_v10 = vld [vmem:[#allocation2 + $0x538] sm:$0xff]  ;;  %v2211_v59 = vld [vmem:[#allocation2 + $0x580] sm:$0xff] }
 0x21e   :  { %v3133_v18 = vadd.f32 %v3132_v15, %v3131_v13  ;;  %v2541_v20 = vadd.f32 %v2540_v16, %v2539_v12  ;;  %v2795_v12 = vmul.f32 %v2201_v3, %v2201_v3  ;;  %v2560_v13 = vsel %vm1838_vm3, %v2200_v62, 0.0 }
 0x21f   :  { %v2562_v16 = vsel %vm1838_vm3, %v2201_v3, 0.0  ;;  %v2805_v3 = vmul.f32 %v2211_v59, %v2211_v59 }
 0x220   :  { %v2543_v24 = vadd.f32 %v2542_v17, %v2541_v20  ;;  %v3135_v25 = vadd.f32 %v3134_v21, %v3133_v18  ;;  %v2796_v17 = vmul.f32 %v2202_v10, %v2202_v10  ;;  %v3154_v18 = vsel %vm1838_vm3, %v2794_v7, 0.0 }
 0x221   :  { %v3156_v23 = vsel %vm1838_vm3, %v2795_v12, 0.0 }
 0x222   :  { %v3137_v30 = vadd.f32 %v3136_v22, %v3135_v25  ;;  %v2545_v31 = vadd.f32 %v2544_v29, %v2543_v24  ;;  %v2204_v22 = vld [vmem:[#allocation2 + $0x548] sm:$0xff]  ;;  %v2564_v24 = vsel %vm1838_vm3, %v2202_v10, 0.0  ;;  %v2566_v25 = vsel %vm1838_vm3, %v2203_v11, 0.0  ;;  %v2213_v11 = vld [vmem:[#allocation2 + $0x590] sm:$0xff] }
 0x223   :  { %v3158_v29 = vsel %vm1838_vm3, %v2796_v17, 0.0 }
 0x224   :  { %v2547_v36 = vadd.f32 %v2546_v32, %v2545_v31  ;;  %v3139_v37 = vadd.f32 %v3138_v34, %v3137_v30  ;;  %v3160_v30 = vsel %vm1838_vm3, %v2797_v19, 0.0  ;;  %v2798_v31 = vmul.f32 %v2204_v22, %v2204_v22  ;;  %v2206_v34 = vld [vmem:[#allocation2 + $0x558] sm:$0xff]  ;;  %v2215_v19 = vld [vmem:[#allocation2 + $0x5a0] sm:$0xff] }
 0x226   :  { %v3141_v42 = vadd.f32 %v3140_v39, %v3139_v37  ;;  %v2549_v44 = vadd.f32 %v2548_v40, %v2547_v36  ;;  %v2799_v36 = vmul.f32 %v2205_v27, %v2205_v27  ;;  %v2568_v37 = vsel %vm1838_vm3, %v2204_v22, 0.0 }
 0x227   :  { %v2570_v40 = vsel %vm1838_vm3, %v2205_v27, 0.0  ;;  %v2809_v27 = vmul.f32 %v2215_v19, %v2215_v19 }
 0x228   :  { %v2551_v48 = vadd.f32 %v2550_v41, %v2549_v44  ;;  %v3143_v49 = vadd.f32 %v3142_v45, %v3141_v42  ;;  %v2800_v41 = vmul.f32 %v2206_v34, %v2206_v34  ;;  %v3162_v42 = vsel %vm1838_vm3, %v2798_v31, 0.0 }
 0x229   :  { %v3164_v47 = vsel %vm1838_vm3, %v2799_v36, 0.0 }
 0x22a   :  { %v3145_v54 = vadd.f32 %v3144_v46, %v3143_v49  ;;  %v2553_v55 = vadd.f32 %v2552_v53, %v2551_v48  ;;  %v2208_v46 = vld [vmem:[#allocation2 + $0x568] sm:$0xff]  ;;  %v2572_v48 = vsel %vm1838_vm3, %v2206_v34, 0.0  ;;  %v2574_v49 = vsel %vm1838_vm3, %v2207_v35, 0.0  ;;  %v2217_v35 = vld [vmem:[#allocation2 + $0x5b0] sm:$0xff] }
 0x22b   :  { %v3166_v53 = vsel %vm1838_vm3, %v2800_v41, 0.0 }
 0x22c   :  { %v2555_v60 = vadd.f32 %v2554_v56, %v2553_v55  ;;  %v3147_v61 = vadd.f32 %v3146_v58, %v3145_v54  ;;  %v3168_v54 = vsel %vm1838_vm3, %v2801_v43, 0.0  ;;  %v2802_v55 = vmul.f32 %v2208_v46, %v2208_v46  ;;  %v2210_v58 = vld [vmem:[#allocation2 + $0x578] sm:$0xff]  ;;  %v2219_v43 = vld [vmem:[#allocation2 + $0x5c0] sm:$0xff] }
 0x22e   :  { %v3149_v2 = vadd.f32 %v3148_v63, %v3147_v61  ;;  %v2557_v4 = vadd.f32 %v2556_v0, %v2555_v60  ;;  %v2803_v60 = vmul.f32 %v2209_v51, %v2209_v51  ;;  %v2576_v61 = vsel %vm1838_vm3, %v2208_v46, 0.0 }
 0x22f   :  { %v2578_v0 = vsel %vm1838_vm3, %v2209_v51, 0.0  ;;  %v2813_v51 = vmul.f32 %v2219_v43, %v2219_v43 }
 0x230   :  { %v2559_v8 = vadd.f32 %v2558_v1, %v2557_v4  ;;  %v3151_v9 = vadd.f32 %v3150_v5, %v3149_v2  ;;  %v2804_v1 = vmul.f32 %v2210_v58, %v2210_v58  ;;  %v3170_v2 = vsel %vm1838_vm3, %v2802_v55, 0.0 }
 0x231   :  { %v3172_v7 = vsel %vm1838_vm3, %v2803_v60, 0.0 }
 0x232   :  { %v3153_v14 = vadd.f32 %v3152_v6, %v3151_v9  ;;  %v2561_v15 = vadd.f32 %v2560_v13, %v2559_v8  ;;  %v2212_v6 = vld [vmem:[#allocation2 + $0x588] sm:$0xff]  ;;  %v2580_v8 = vsel %vm1838_vm3, %v2210_v58, 0.0  ;;  %v2582_v9 = vsel %vm1838_vm3, %v2211_v59, 0.0  ;;  %v2221_v59 = vld [vmem:[#allocation2 + $0x5d0] sm:$0xff] }
 0x233   :  { %v3174_v13 = vsel %vm1838_vm3, %v2804_v1, 0.0 }
 0x234   :  { %v2563_v20 = vadd.f32 %v2562_v16, %v2561_v15  ;;  %v3155_v21 = vadd.f32 %v3154_v18, %v3153_v14  ;;  %v3176_v14 = vsel %vm1838_vm3, %v2805_v3, 0.0  ;;  %v2806_v15 = vmul.f32 %v2212_v6, %v2212_v6  ;;  %v2214_v18 = vld [vmem:[#allocation2 + $0x598] sm:$0xff]  ;;  %v2223_v3 = vld [vmem:[#allocation2 + $0x5e0] sm:$0xff] }
 0x236   :  { %v3157_v26 = vadd.f32 %v3156_v23, %v3155_v21  ;;  %v2565_v28 = vadd.f32 %v2564_v24, %v2563_v20  ;;  %v2807_v20 = vmul.f32 %v2213_v11, %v2213_v11  ;;  %v2584_v21 = vsel %vm1838_vm3, %v2212_v6, 0.0 }
 0x237   :  { %v2586_v24 = vsel %vm1838_vm3, %v2213_v11, 0.0  ;;  %v2817_v11 = vmul.f32 %v2223_v3, %v2223_v3 }
 0x238   :  { %v2567_v32 = vadd.f32 %v2566_v25, %v2565_v28  ;;  %v3159_v33 = vadd.f32 %v3158_v29, %v3157_v26  ;;  %v2808_v25 = vmul.f32 %v2214_v18, %v2214_v18  ;;  %v3178_v26 = vsel %vm1838_vm3, %v2806_v15, 0.0 }
 0x239   :  { %v3180_v31 = vsel %vm1838_vm3, %v2807_v20, 0.0 }
 0x23a   :  { %v3161_v38 = vadd.f32 %v3160_v30, %v3159_v33  ;;  %v2569_v39 = vadd.f32 %v2568_v37, %v2567_v32  ;;  %v2216_v30 = vld [vmem:[#allocation2 + $0x5a8] sm:$0xff]  ;;  %v2588_v32 = vsel %vm1838_vm3, %v2214_v18, 0.0  ;;  %v2590_v33 = vsel %vm1838_vm3, %v2215_v19, 0.0  ;;  %v2225_v19 = vld [vmem:[#allocation2 + $0x5f0] sm:$0xff] }
 0x23b   :  { %v3182_v37 = vsel %vm1838_vm3, %v2808_v25, 0.0 }
 0x23c   :  { %v2571_v44 = vadd.f32 %v2570_v40, %v2569_v39  ;;  %v3163_v45 = vadd.f32 %v3162_v42, %v3161_v38  ;;  %v3184_v38 = vsel %vm1838_vm3, %v2809_v27, 0.0  ;;  %v2810_v39 = vmul.f32 %v2216_v30, %v2216_v30  ;;  %v2218_v42 = vld [vmem:[#allocation2 + $0x5b8] sm:$0xff]  ;;  %v2227_v27 = vld [vmem:[#allocation2 + $0x600] sm:$0xff] }
 0x23e   :  { %v3165_v50 = vadd.f32 %v3164_v47, %v3163_v45  ;;  %v2573_v52 = vadd.f32 %v2572_v48, %v2571_v44  ;;  %v2811_v44 = vmul.f32 %v2217_v35, %v2217_v35  ;;  %v2592_v45 = vsel %vm1838_vm3, %v2216_v30, 0.0 }
 0x23f   :  { %v2594_v48 = vsel %vm1838_vm3, %v2217_v35, 0.0  ;;  %v2821_v35 = vmul.f32 %v2227_v27, %v2227_v27 }
 0x240   :  { %v2575_v56 = vadd.f32 %v2574_v49, %v2573_v52  ;;  %v3167_v57 = vadd.f32 %v3166_v53, %v3165_v50  ;;  %v2812_v49 = vmul.f32 %v2218_v42, %v2218_v42  ;;  %v3186_v50 = vsel %vm1838_vm3, %v2810_v39, 0.0 }
 0x241   :  { %v3188_v55 = vsel %vm1838_vm3, %v2811_v44, 0.0 }
 0x242   :  { %v3169_v62 = vadd.f32 %v3168_v54, %v3167_v57  ;;  %v2577_v63 = vadd.f32 %v2576_v61, %v2575_v56  ;;  %v2220_v54 = vld [vmem:[#allocation2 + $0x5c8] sm:$0xff]  ;;  %v2596_v56 = vsel %vm1838_vm3, %v2218_v42, 0.0  ;;  %v2598_v57 = vsel %vm1838_vm3, %v2219_v43, 0.0  ;;  %v2229_v43 = vld [vmem:[#allocation2 + $0x610] sm:$0xff] }
 0x243   :  { %v3190_v61 = vsel %vm1838_vm3, %v2812_v49, 0.0 }
 0x244   :  { %v2579_v4 = vadd.f32 %v2578_v0, %v2577_v63  ;;  %v3171_v5 = vadd.f32 %v3170_v2, %v3169_v62  ;;  %v3192_v62 = vsel %vm1838_vm3, %v2813_v51, 0.0  ;;  %v2814_v63 = vmul.f32 %v2220_v54, %v2220_v54  ;;  %v2222_v2 = vld [vmem:[#allocation2 + $0x5d8] sm:$0xff] }
 0x245   :  { %v2823_v51 = vmul.f32 %v2229_v43, %v2229_v43 }
 0x246   :  { %v3173_v10 = vadd.f32 %v3172_v7, %v3171_v5  ;;  %v2581_v12 = vadd.f32 %v2580_v8, %v2579_v4  ;;  %v2815_v4 = vmul.f32 %v2221_v59, %v2221_v59  ;;  %v2600_v5 = vsel %vm1838_vm3, %v2220_v54, 0.0 }
 0x247   :  { %v2602_v8 = vsel %vm1838_vm3, %v2221_v59, 0.0 }
 0x248   :  { %v2583_v16 = vadd.f32 %v2582_v9, %v2581_v12  ;;  %v3175_v17 = vadd.f32 %v3174_v13, %v3173_v10  ;;  %v2816_v9 = vmul.f32 %v2222_v2, %v2222_v2  ;;  %v3194_v10 = vsel %vm1838_vm3, %v2814_v63, 0.0 }
 0x249   :  { %v3196_v15 = vsel %vm1838_vm3, %v2815_v4, 0.0 }
 0x24a   :  { %v3177_v22 = vadd.f32 %v3176_v14, %v3175_v17  ;;  %v2585_v23 = vadd.f32 %v2584_v21, %v2583_v16  ;;  %v2224_v14 = vld [vmem:[#allocation2 + $0x5e8] sm:$0xff]  ;;  %v2604_v16 = vsel %vm1838_vm3, %v2222_v2, 0.0  ;;  %v2606_v17 = vsel %vm1838_vm3, %v2223_v3, 0.0 }
 0x24b   :  { %v3198_v21 = vsel %vm1838_vm3, %v2816_v9, 0.0 }
 0x24c   :  { %v2587_v28 = vadd.f32 %v2586_v24, %v2585_v23  ;;  %v3179_v29 = vadd.f32 %v3178_v26, %v3177_v22  ;;  %v3200_v22 = vsel %vm1838_vm3, %v2817_v11, 0.0  ;;  %v2818_v23 = vmul.f32 %v2224_v14, %v2224_v14  ;;  %v2226_v26 = vld [vmem:[#allocation2 + $0x5f8] sm:$0xff] }
 0x24e   :  { %v3181_v34 = vadd.f32 %v3180_v31, %v3179_v29  ;;  %v2589_v36 = vadd.f32 %v2588_v32, %v2587_v28  ;;  %v2819_v28 = vmul.f32 %v2225_v19, %v2225_v19  ;;  %v2608_v29 = vsel %vm1838_vm3, %v2224_v14, 0.0 }
 0x24f   :  { %v2610_v32 = vsel %vm1838_vm3, %v2225_v19, 0.0 }
 0x250   :  { %v2591_v40 = vadd.f32 %v2590_v33, %v2589_v36  ;;  %v3183_v41 = vadd.f32 %v3182_v37, %v3181_v34  ;;  %v2820_v33 = vmul.f32 %v2226_v26, %v2226_v26  ;;  %v3202_v34 = vsel %vm1838_vm3, %v2818_v23, 0.0 }
 0x251   :  { %v3204_v39 = vsel %vm1838_vm3, %v2819_v28, 0.0 }
 0x252   :  { %v3185_v46 = vadd.f32 %v3184_v38, %v3183_v41  ;;  %v2593_v47 = vadd.f32 %v2592_v45, %v2591_v40  ;;  %v2228_v38 = vld [vmem:[#allocation2 + $0x608] sm:$0xff]  ;;  %v2612_v40 = vsel %vm1838_vm3, %v2226_v26, 0.0  ;;  %v2614_v41 = vsel %vm1838_vm3, %v2227_v27, 0.0  ;;  %v6151_v26 = vld [vmem:[%s8339_s3] sm:$0x1] }
 0x253   :  { %v3206_v45 = vsel %vm1838_vm3, %v2820_v33, 0.0 }
 0x254   :  { %v2595_v52 = vadd.f32 %v2594_v48, %v2593_v47  ;;  %v3187_v53 = vadd.f32 %v3186_v50, %v3185_v46  ;;  %v3208_v46 = vsel %vm1838_vm3, %v2821_v35, 0.0  ;;  %v2822_v47 = vmul.f32 %v2228_v38, %v2228_v38  ;;  %v2230_v50 = vld [vmem:[#allocation2 + $0x618] sm:$0xff] }
 0x256   :  { %v3189_v58 = vadd.f32 %v3188_v55, %v3187_v53  ;;  %v2597_v60 = vadd.f32 %v2596_v56, %v2595_v52  ;;  %v2616_v52 = vsel %vm1838_vm3, %v2228_v38, 0.0  ;;  %v2618_v55 = vsel %vm1838_vm3, %v2229_v43, 0.0  ;;  %v4938_v38 = vld [vmem:[#allocation2 + $0x20] sm:$0xff] }
 0x257   :  { %v2824_v56 = vmul.f32 %v2230_v50, %v2230_v50 }
 0x258   :  { %v2599_v0 = vadd.f32 %v2598_v57, %v2597_v60  ;;  %v3191_v1 = vadd.f32 %v3190_v61, %v3189_v58  ;;  %v3210_v57 = vsel %vm1838_vm3, %v2822_v47, 0.0  ;;  %v3212_v60 = vsel %vm1838_vm3, %v2823_v51, 0.0 }
 0x259   :  { %v2620_v61 = vsel %vm1838_vm3, %v2230_v50, 0.0  ;;  %v4944_v50 = vld [vmem:[#allocation2 + $0x50] sm:$0xff] }
 0x25a   :  { %v3193_v6 = vadd.f32 %v3192_v62, %v3191_v1  ;;  %v2601_v7 = vadd.f32 %v2600_v5, %v2599_v0  ;;  %v3214_v0 = vsel %vm1838_vm3, %v2824_v56, 0.0  ;;  %v4947_v56 = vld [vmem:[#allocation2 + $0x68] sm:$0xff] }
 0x25c   :  { %v2603_v12 = vadd.f32 %v2602_v8, %v2601_v7  ;;  %v3195_v13 = vadd.f32 %v3194_v10, %v3193_v6 }
 0x25e   :  { %v3197_v18 = vadd.f32 %v3196_v15, %v3195_v13  ;;  %v2605_v20 = vadd.f32 %v2604_v16, %v2603_v12 }
 0x260   :  { %v2607_v24 = vadd.f32 %v2606_v17, %v2605_v20  ;;  %v3199_v25 = vadd.f32 %v3198_v21, %v3197_v18  ;;  %v3234_v20 = vlaneseq }
 0x262   :  { %v3201_v30 = vadd.f32 %v3200_v22, %v3199_v25  ;;  %v2609_v31 = vadd.f32 %v2608_v29, %v2607_v24  ;;  %v6142_v21 = vshrl.u32 %v3234_v20, 7  ;;  %v3226_v22 = vld [vmem:[%s8338_s2] sm:$0x1]  ;;  %v4961_v20 = vld [vmem:[#allocation2 + $0xd8] sm:$0xff] }
 0x264   :  { %v2611_v36 = vadd.f32 %v2610_v32, %v2609_v31  ;;  %v3203_v37 = vadd.f32 %v3202_v34, %v3201_v30  ;;  %v3236_v23 = vsub.s32 0, %v6142_v21  ;;  %v4934_v30 = vld [vmem:[#allocation2] sm:$0xff]  ;;  %v4935_v32 = vld [vmem:[#allocation2 + $0x8] sm:$0xff]  ;;  %v4936_v34 = vld [vmem:[#allocation2 + $0x10] sm:$0xff] }
 0x266   :  { %v3205_v42 = vadd.f32 %v3204_v39, %v3203_v37  ;;  %v2613_v44 = vadd.f32 %v2612_v40, %v2611_v36  ;;  %v4937_v36 = vld [vmem:[#allocation2 + $0x18] sm:$0xff]  ;;  %v4939_v40 = vld [vmem:[#allocation2 + $0x28] sm:$0xff] }
 0x268   :  { %v2615_v48 = vadd.f32 %v2614_v41, %v2613_v44  ;;  %v3207_v49 = vadd.f32 %v3206_v45, %v3205_v42  ;;  %v4940_v42 = vld [vmem:[#allocation2 + $0x30] sm:$0xff]  ;;  %v4941_v44 = vld [vmem:[#allocation2 + $0x38] sm:$0xff] }
 0x26a   :  { %v3209_v53 = vadd.f32 %v3208_v46, %v3207_v49  ;;  %v2617_v54 = vadd.f32 %v2616_v52, %v2615_v48  ;;  %v4942_v46 = vld [vmem:[#allocation2 + $0x40] sm:$0xff]  ;;  %v4943_v48 = vld [vmem:[#allocation2 + $0x48] sm:$0xff]  ;;  %v4945_v52 = vld [vmem:[#allocation2 + $0x58] sm:$0xff] }
 0x26c   :  { %v2619_v58 = vadd.f32 %v2618_v55, %v2617_v54  ;;  %v3211_v59 = vadd.f32 %v3210_v57, %v3209_v53  ;;  %v4946_v54 = vld [vmem:[#allocation2 + $0x60] sm:$0xff] }
 0x26e   :  { %v2621_v62 = vadd.f32 %v2620_v61, %v2619_v58  ;;  %v3213_v63 = vadd.f32 %v3212_v60, %v3211_v59  ;;  %v4948_v58 = vld [vmem:[#allocation2 + $0x70] sm:$0xff]  ;;  %v4949_v60 = vld [vmem:[#allocation2 + $0x78] sm:$0xff] }
 0x270   :  { %v2622_v1 = vrot.slane %v2621_v62, 4  ;;  %v3215_v2 = vadd.f32 %v3214_v0, %v3213_v63  ;;  %v4951_v0 = vld [vmem:[#allocation2 + $0x88] sm:$0xff] }
 0x272   :  { %v2623_v3 = vadd.f32 %v2622_v1, %v2621_v62  ;;  %v3216_v4 = vrot.slane %v3215_v2, 4  ;;  %v4950_v62 = vld [vmem:[#allocation2 + $0x80] sm:$0xff] }
 0x274   :  { %v2624_v5 = vrot.slane %v2623_v3, 2  ;;  %v3217_v6 = vadd.f32 %v3216_v4, %v3215_v2  ;;  %v4952_v2 = vld [vmem:[#allocation2 + $0x90] sm:$0xff]  ;;  %v4953_v4 = vld [vmem:[#allocation2 + $0x98] sm:$0xff] }
 0x276   :  { %v2625_v7 = vadd.f32 %v2624_v5, %v2623_v3  ;;  %v3218_v8 = vrot.slane %v3217_v6, 2 }
 0x278   :  { %v2626_v9 = vrot.slane %v2625_v7, 1  ;;  %v3219_v10 = vadd.f32 %v3218_v8, %v3217_v6  ;;  %v4954_v6 = vld [vmem:[#allocation2 + $0xa0] sm:$0xff]  ;;  %v4955_v8 = vld [vmem:[#allocation2 + $0xa8] sm:$0xff] }
 0x27a   :  { %v2627_v11 = vadd.f32 %v2626_v9, %v2625_v7  ;;  %v3220_v12 = vrot.slane %v3219_v10, 1 }
 0x27c   :  { %v2628_v13 = vmul.f32 0.0006377551, %v2627_v11  ;;  %v3221_v14 = vadd.f32 %v3220_v12, %v3219_v10  ;;  %v4956_v10 = vld [vmem:[#allocation2 + $0xb0] sm:$0xff]  ;;  %v4957_v12 = vld [vmem:[#allocation2 + $0xb8] sm:$0xff] }
 0x27e   :  { %v3222_v15 = vmul.f32 0.0006377551, %v3221_v14  ;;  %v3223_v16 = vmul.f32 %v2628_v13, %v2628_v13  ;;  %v4958_v14 = vld [vmem:[#allocation2 + $0xc0] sm:$0xff] }
 0x280   :  { %v3224_v17 = vsub.f32 %v3222_v15, %v3223_v16  ;;  %v4959_v16 = vld [vmem:[#allocation2 + $0xc8] sm:$0xff] }
 0x282   :  { %v3225_v18 = vmax.f32 %v3224_v17, 0.0 }
 0x284   :  { %v3227_v19 = vadd.f32 1e-05, %v3225_v18  ;;  %v4960_v18 = vld [vmem:[#allocation2 + $0xd0] sm:$0xff] }
 0x286   :  { %4932 = vrsqrt.f32 %v3227_v19 }
 0x290   :  { %v4933_v24 = vpop.eup %4932 }
 0x291   :  { %v3229_v25 = vmul.f32 %v4933_v24, %v3226_v22  ;;  %v4962_v24 = vld [vmem:[#allocation2 + $0xe0] sm:$0xff] }
 0x293   :  { %v6153_v27 = vmul.f32 %v3229_v25, %v2628_v13  ;;  %v6157_v28 = vrot.slane %v3229_v25, %v3236_v23 }
 0x295   :  { %8436 = vst [vmem:[#allocation3_spill] sm:$0xff] %v6157_v28  ;;  %v3232_v29 = vsub.f32 %v6151_v26, %v6153_v27  ;;  %v6162_v31 = vmul.f32 %v4934_v30, %v6157_v28  ;;  %v6165_v33 = vmul.f32 %v4935_v32, %v6157_v28  ;;  %v6168_v35 = vmul.f32 %v4936_v34, %v6157_v28  ;;  %v4963_v30 = vld [vmem:[#allocation2 + $0xe8] sm:$0xff]  ;;  %v4964_v34 = vld [vmem:[#allocation2 + $0xf0] sm:$0xff] }
 0x296   :  { %v6171_v37 = vmul.f32 %v4937_v36, %v6157_v28  ;;  %v6174_v39 = vmul.f32 %v4938_v38, %v6157_v28  ;;  %v6177_v41 = vmul.f32 %v4939_v40, %v6157_v28  ;;  %v6180_v43 = vmul.f32 %v4940_v42, %v6157_v28  ;;  %v4965_v38 = vld [vmem:[#allocation2 + $0xf8] sm:$0xff]  ;;  %v4966_v42 = vld [vmem:[#allocation2 + $0x100] sm:$0xff] }
 0x297   :  { %v6183_v45 = vmul.f32 %v4941_v44, %v6157_v28  ;;  %v6186_v47 = vmul.f32 %v4942_v46, %v6157_v28  ;;  %v6189_v49 = vmul.f32 %v4943_v48, %v6157_v28  ;;  %v6192_v51 = vmul.f32 %v4944_v50, %v6157_v28  ;;  %v4967_v46 = vld [vmem:[#allocation2 + $0x108] sm:$0xff]  ;;  %v4968_v50 = vld [vmem:[#allocation2 + $0x110] sm:$0xff] }
 0x298   :  { %v6195_v53 = vmul.f32 %v4945_v52, %v6157_v28  ;;  %v6198_v55 = vmul.f32 %v4946_v54, %v6157_v28  ;;  %v6201_v57 = vmul.f32 %v4947_v56, %v6157_v28  ;;  %v6204_v59 = vmul.f32 %v4948_v58, %v6157_v28  ;;  %v4969_v54 = vld [vmem:[#allocation2 + $0x118] sm:$0xff]  ;;  %v4970_v58 = vld [vmem:[#allocation2 + $0x120] sm:$0xff] }
 0x299   :  { %v6207_v61 = vmul.f32 %v4949_v60, %v6157_v28  ;;  %v6210_v63 = vmul.f32 %v4950_v62, %v6157_v28  ;;  %v6213_v1 = vmul.f32 %v4951_v0, %v6157_v28  ;;  %v6216_v3 = vmul.f32 %v4952_v2, %v6157_v28  ;;  %v4971_v62 = vld [vmem:[#allocation2 + $0x128] sm:$0xff]  ;;  %v4972_v2 = vld [vmem:[#allocation2 + $0x130] sm:$0xff] }
 0x29a   :  { %v6219_v5 = vmul.f32 %v4953_v4, %v6157_v28  ;;  %v6222_v7 = vmul.f32 %v4954_v6, %v6157_v28  ;;  %v6225_v9 = vmul.f32 %v4955_v8, %v6157_v28  ;;  %v6228_v11 = vmul.f32 %v4956_v10, %v6157_v28  ;;  %v4973_v6 = vld [vmem:[#allocation2 + $0x138] sm:$0xff]  ;;  %v4974_v10 = vld [vmem:[#allocation2 + $0x140] sm:$0xff] }
 0x29b   :  { %v6231_v13 = vmul.f32 %v4957_v12, %v6157_v28  ;;  %v6234_v15 = vmul.f32 %v4958_v14, %v6157_v28  ;;  %v6237_v17 = vmul.f32 %v4959_v16, %v6157_v28  ;;  %v6240_v19 = vmul.f32 %v4960_v18, %v6157_v28  ;;  %v4975_v14 = vld [vmem:[#allocation2 + $0x148] sm:$0xff]  ;;  %v4976_v18 = vld [vmem:[#allocation2 + $0x150] sm:$0xff] }
 0x29c   :  { %v6243_v22 = vmul.f32 %v4961_v20, %v6157_v28  ;;  %v6246_v25 = vmul.f32 %v4962_v24, %v6157_v28  ;;  %v6249_v32 = vmul.f32 %v4963_v30, %v6157_v28  ;;  %v6252_v36 = vmul.f32 %v4964_v34, %v6157_v28  ;;  %v4977_v24 = vld [vmem:[#allocation2 + $0x158] sm:$0xff]  ;;  %v4978_v34 = vld [vmem:[#allocation2 + $0x160] sm:$0xff] }
 0x29d   :  { %v6255_v40 = vmul.f32 %v4965_v38, %v6157_v28  ;;  %v6258_v44 = vmul.f32 %v4966_v42, %v6157_v28  ;;  %v6261_v48 = vmul.f32 %v4967_v46, %v6157_v28  ;;  %v6264_v52 = vmul.f32 %v4968_v50, %v6157_v28  ;;  %v4979_v42 = vld [vmem:[#allocation2 + $0x168] sm:$0xff]  ;;  %v4980_v50 = vld [vmem:[#allocation2 + $0x170] sm:$0xff] }
 0x29e   :  { %v6267_v56 = vmul.f32 %v4969_v54, %v6157_v28  ;;  %v6270_v60 = vmul.f32 %v4970_v58, %v6157_v28  ;;  %v6273_v0 = vmul.f32 %v4971_v62, %v6157_v28  ;;  %v6276_v4 = vmul.f32 %v4972_v2, %v6157_v28  ;;  %v4981_v58 = vld [vmem:[#allocation2 + $0x178] sm:$0xff]  ;;  %v4982_v2 = vld [vmem:[#allocation2 + $0x180] sm:$0xff] }
 0x29f   :  { %v6279_v8 = vmul.f32 %v4973_v6, %v6157_v28  ;;  %v6282_v12 = vmul.f32 %v4974_v10, %v6157_v28  ;;  %v6285_v16 = vmul.f32 %v4975_v14, %v6157_v28  ;;  %v6288_v20 = vmul.f32 %v4976_v18, %v6157_v28  ;;  %v4983_v14 = vld [vmem:[#allocation2 + $0x188] sm:$0xff] }
 0x2a0   :  { %v6291_v30 = vmul.f32 %v4977_v24, %v6157_v28  ;;  %v6294_v38 = vmul.f32 %v4978_v34, %v6157_v28  ;;  %v6297_v46 = vmul.f32 %v4979_v42, %v6157_v28  ;;  %v3285_v54 = vmul.f32 %v4980_v50, %v6157_v28  ;;  %v4984_v24 = vld [vmem:[#allocation2 + $0x190] sm:$0xff]  ;;  %v4985_v42 = vld [vmem:[#allocation2 + $0x198] sm:$0xff] }
 0x2a1   :  { %v3286_v62 = vmul.f32 %v4981_v58, %v6157_v28  ;;  %v3287_v6 = vmul.f32 %v4982_v2, %v6157_v28  ;;  %v6307_v10 = vrot.slane %v3232_v29, %v3236_v23  ;;  %v6310_v18 = vmul.f32 %v4983_v14, %v6157_v28  ;;  %v4986_v58 = vld [vmem:[#allocation2 + $0x1a0] sm:$0xff]  ;;  %v4987_v2 = vld [vmem:[#allocation2 + $0x1a8] sm:$0xff] }
 0x2a2   :  { %v6313_v34 = vmul.f32 %v4984_v24, %v6157_v28  ;;  %v6316_v50 = vmul.f32 %v4985_v42, %v6157_v28  ;;  %v6319_v21 = vmul.f32 %v4986_v58, %v6157_v28  ;;  %v6322_v23 = vmul.f32 %v4987_v2, %v6157_v28 }
 0x2a3   :  { %8437 = vst [vmem:[#allocation4_spill] sm:$0xff] %v6307_v10  ;;  %v6326_v26 = vadd.f32 %v6307_v10, %v6162_v31  ;;  %v6330_v27 = vadd.f32 %v6307_v10, %v6165_v33  ;;  %v6334_v29 = vadd.f32 %v6307_v10, %v6168_v35  ;;  %v6338_v14 = vadd.f32 %v6307_v10, %v6171_v37 }
 0x2a4   :  { %8438 = vst [vmem:[#allocation5_spill] sm:$0xff] %v6319_v21  ;;  %8439 = vst [vmem:[#allocation6_spill] sm:$0xff] %v6322_v23  ;;  %v6342_v24 = vadd.f32 %v6307_v10, %v6174_v39  ;;  %v6346_v31 = vadd.f32 %v6307_v10, %v6177_v41  ;;  %v6350_v33 = vadd.f32 %v6307_v10, %v6180_v43  ;;  %v4993_v21 = vld [vmem:[#allocation2 + $0x1d8] sm:$0xff] }
 0x2a5   :  { %v6354_v35 = vadd.f32 %v6307_v10, %v6183_v45  ;;  %v6358_v37 = vadd.f32 %v6307_v10, %v6186_v47  ;;  %v6362_v39 = vadd.f32 %v6307_v10, %v6189_v49  ;;  %v6366_v41 = vadd.f32 %v6307_v10, %v6192_v51 }
 0x2a6   :  { %8440 = vst [vmem:[#allocation7_spill] sm:$0xff] %v6342_v24  ;;  %8441 = vst [vmem:[#allocation8_spill] sm:$0xff] %v6346_v31  ;;  %v6370_v43 = vadd.f32 %v6307_v10, %v6195_v53  ;;  %v6374_v45 = vadd.f32 %v6307_v10, %v6198_v55  ;;  %v6378_v47 = vadd.f32 %v6307_v10, %v6201_v57 }
 0x2a7   :  { %8442 = vst [vmem:[#allocation9_spill] sm:$0xff] %v6350_v33  ;;  %8443 = vst [vmem:[#allocation10_spill] sm:$0xff] %v6354_v35  ;;  %v6382_v49 = vadd.f32 %v6307_v10, %v6204_v59  ;;  %v6386_v51 = vadd.f32 %v6307_v10, %v6207_v61  ;;  %v6390_v53 = vadd.f32 %v6307_v10, %v6210_v63 }
 0x2a8   :  { %8444 = vst [vmem:[#allocation11_spill] sm:$0xff] %v6358_v37  ;;  %8445 = vst [vmem:[#allocation12_spill] sm:$0xff] %v6362_v39  ;;  %v6394_v55 = vadd.f32 %v6307_v10, %v6213_v1  ;;  %v6398_v57 = vadd.f32 %v6307_v10, %v6216_v3  ;;  %v6402_v59 = vadd.f32 %v6307_v10, %v6219_v5  ;;  %v5030_v39 = vld [vmem:[#allocation2 + $0x300] sm:$0xff]  ;;  %v5031_v37 = vld [vmem:[#allocation2 + $0x308] sm:$0xff] }
 0x2a9   :  { %8446 = vst [vmem:[#allocation13_spill] sm:$0xff] %v6366_v41  ;;  %8447 = vst [vmem:[#allocation14_spill] sm:$0xff] %v6370_v43  ;;  %v6406_v61 = vadd.f32 %v6307_v10, %v6222_v7  ;;  %v6410_v63 = vadd.f32 %v6307_v10, %v6225_v9  ;;  %v6414_v1 = vadd.f32 %v6307_v10, %v6228_v11  ;;  %v5028_v43 = vld [vmem:[#allocation2 + $0x2f0] sm:$0xff]  ;;  %v5029_v41 = vld [vmem:[#allocation2 + $0x2f8] sm:$0xff] }
 0x2aa   :  { %8448 = vst [vmem:[#allocation15_spill] sm:$0xff] %v6374_v45  ;;  %8449 = vst [vmem:[#allocation16_spill] sm:$0xff] %v6378_v47  ;;  %v6418_v3 = vadd.f32 %v6307_v10, %v6231_v13  ;;  %v6422_v5 = vadd.f32 %v6307_v10, %v6234_v15  ;;  %v6426_v7 = vadd.f32 %v6307_v10, %v6237_v17  ;;  %v5026_v47 = vld [vmem:[#allocation2 + $0x2e0] sm:$0xff]  ;;  %v5027_v45 = vld [vmem:[#allocation2 + $0x2e8] sm:$0xff] }
 0x2ab   :  { %8450 = vst [vmem:[#allocation17_spill] sm:$0xff] %v6382_v49  ;;  %8451 = vst [vmem:[#allocation18_spill] sm:$0xff] %v6386_v51  ;;  %v6430_v9 = vadd.f32 %v6307_v10, %v6240_v19  ;;  %v6434_v11 = vadd.f32 %v6307_v10, %v6243_v22  ;;  %v6438_v13 = vadd.f32 %v6307_v10, %v6246_v25  ;;  %v5025_v49 = vld [vmem:[#allocation2 + $0x2d8] sm:$0xff] }
 0x2ac   :  { %8452 = vst [vmem:[#allocation19_spill] sm:$0xff] %v6390_v53  ;;  %8453 = vst [vmem:[#allocation20_spill] sm:$0xff] %v6394_v55  ;;  %v6442_v15 = vadd.f32 %v6307_v10, %v6249_v32  ;;  %v6446_v17 = vadd.f32 %v6307_v10, %v6252_v36  ;;  %v6450_v19 = vadd.f32 %v6307_v10, %v6255_v40  ;;  %v5023_v55 = vld [vmem:[#allocation2 + $0x2c8] sm:$0xff] }
 0x2ad   :  { %8454 = vst [vmem:[#allocation21_spill] sm:$0xff] %v6398_v57  ;;  %8455 = vst [vmem:[#allocation22_spill] sm:$0xff] %v6402_v59  ;;  %v6454_v22 = vadd.f32 %v6307_v10, %v6258_v44  ;;  %v6458_v25 = vadd.f32 %v6307_v10, %v6261_v48  ;;  %v6462_v32 = vadd.f32 %v6307_v10, %v6264_v52  ;;  %v5021_v59 = vld [vmem:[#allocation2 + $0x2b8] sm:$0xff]  ;;  %v5022_v57 = vld [vmem:[#allocation2 + $0x2c0] sm:$0xff] }
 0x2ae   :  { %8456 = vst [vmem:[#allocation23_spill] sm:$0xff] %v6406_v61  ;;  %8457 = vst [vmem:[#allocation24_spill] sm:$0xff] %v6410_v63  ;;  %v6466_v36 = vadd.f32 %v6307_v10, %v6267_v56  ;;  %v6470_v40 = vadd.f32 %v6307_v10, %v6270_v60  ;;  %v6474_v44 = vadd.f32 %v6307_v10, %v6273_v0 }
 0x2af   :  { %8458 = vst [vmem:[#allocation25_spill] sm:$0xff] %v6414_v1  ;;  %8459 = vst [vmem:[#allocation26_spill] sm:$0xff] %v6418_v3  ;;  %v6478_v48 = vadd.f32 %v6307_v10, %v6276_v4  ;;  %v6482_v52 = vadd.f32 %v6307_v10, %v6279_v8  ;;  %v6486_v56 = vadd.f32 %v6307_v10, %v6282_v12  ;;  %v5018_v3 = vld [vmem:[#allocation2 + $0x2a0] sm:$0xff]  ;;  %v5019_v1 = vld [vmem:[#allocation2 + $0x2a8] sm:$0xff] }
 0x2b0   :  { %8460 = vst [vmem:[#allocation27_spill] sm:$0xff] %v6422_v5  ;;  %8461 = vst [vmem:[#allocation28_spill] sm:$0xff] %v6426_v7  ;;  %v6490_v60 = vadd.f32 %v6307_v10, %v6285_v16  ;;  %v6494_v0 = vadd.f32 %v6307_v10, %v6288_v20  ;;  %v6498_v4 = vadd.f32 %v6307_v10, %v6291_v30  ;;  %v4989_v30 = vld [vmem:[#allocation2 + $0x1b8] sm:$0xff]  ;;  %v5016_v7 = vld [vmem:[#allocation2 + $0x290] sm:$0xff] }
 0x2b1   :  { %8462 = vst [vmem:[#allocation29_spill] sm:$0xff] %v6430_v9  ;;  %8463 = vst [vmem:[#allocation30_spill] sm:$0xff] %v6434_v11  ;;  %v6502_v8 = vadd.f32 %v6307_v10, %v6294_v38  ;;  %v6506_v12 = vadd.f32 %v6307_v10, %v6297_v46  ;;  %v6509_v42 = vadd.f32 %v6307_v10, %v3285_v54  ;;  %v4990_v38 = vld [vmem:[#allocation2 + $0x1c0] sm:$0xff]  ;;  %v4991_v46 = vld [vmem:[#allocation2 + $0x1c8] sm:$0xff] }
 0x2b2   :  { %8464 = vst [vmem:[#allocation31_spill] sm:$0xff] %v6438_v13  ;;  %8465 = vst [vmem:[#allocation32_spill] sm:$0xff] %v6442_v15  ;;  %v6512_v16 = vadd.f32 %v6307_v10, %v3286_v62  ;;  %v6515_v20 = vadd.f32 %v6307_v10, %v3287_v6  ;;  %v6570_v58 = vmul.f32 %v4989_v30, %v6157_v28  ;;  %v4992_v54 = vld [vmem:[#allocation2 + $0x1d0] sm:$0xff]  ;;  %v5013_v13 = vld [vmem:[#allocation2 + $0x278] sm:$0xff] }
 0x2b3   :  { %8466 = vst [vmem:[#allocation33_spill] sm:$0xff] %v6446_v17  ;;  %8467 = vst [vmem:[#allocation34_spill] sm:$0xff] %v6450_v19  ;;  %v6573_v2 = vmul.f32 %v4990_v38, %v6157_v28  ;;  %v6576_v23 = vmul.f32 %v4991_v46, %v6157_v28  ;;  %v6579_v62 = vmul.f32 %v4992_v54, %v6157_v28  ;;  %v5010_v19 = vld [vmem:[#allocation2 + $0x260] sm:$0xff]  ;;  %v5011_v17 = vld [vmem:[#allocation2 + $0x268] sm:$0xff] }
 0x2b4   :  { %8468 = vst [vmem:[#allocation35_spill] sm:$0xff] %v6454_v22  ;;  %8469 = vst [vmem:[#allocation36_spill] sm:$0xff] %v6458_v25  ;;  %v5008_v25 = vld [vmem:[#allocation2 + $0x250] sm:$0xff]  ;;  %v5009_v22 = vld [vmem:[#allocation2 + $0x258] sm:$0xff]  ;;  %v3428_v63 = vmul.f32 %v5019_v1, %v6157_v28  ;;  %v3432_v53 = vmul.f32 %v5023_v55, %v6157_v28  ;;  %v3435_v1 = vmul.f32 %v5026_v47, %v6157_v28 }
 0x2b5   :  { %8470 = vst [vmem:[#allocation37_spill] sm:$0xff] %v6462_v32  ;;  %8471 = vst [vmem:[#allocation38_spill] sm:$0xff] %v6466_v36  ;;  %v5006_v36 = vld [vmem:[#allocation2 + $0x240] sm:$0xff]  ;;  %v5007_v32 = vld [vmem:[#allocation2 + $0x248] sm:$0xff]  ;;  %v3439_v55 = vmul.f32 %v5030_v39, %v6157_v28  ;;  %v6676_v47 = vadd.f32 %v6313_v34, %v6307_v10  ;;  %v6696_v34 = vadd.f32 %v6570_v58, %v6307_v10 }
 0x2b6   :  { %8472 = vst [vmem:[#allocation39_spill] sm:$0xff] %v6470_v40  ;;  %8473 = vst [vmem:[#allocation40_spill] sm:$0xff] %v6474_v44  ;;  %v5004_v44 = vld [vmem:[#allocation2 + $0x230] sm:$0xff]  ;;  %v5005_v40 = vld [vmem:[#allocation2 + $0x238] sm:$0xff] }
 0x2b7   :  { %8474 = vst [vmem:[#allocation41_spill] sm:$0xff] %v6478_v48  ;;  %8475 = vst [vmem:[#allocation42_spill] sm:$0xff] %v6482_v52  ;;  %v4988_v48 = vld [vmem:[#allocation2 + $0x1b0] sm:$0xff]  ;;  %v5003_v52 = vld [vmem:[#allocation2 + $0x228] sm:$0xff] }
 0x2b8   :  { %8476 = vst [vmem:[#allocation43_spill] sm:$0xff] %v6486_v56  ;;  %8477 = vst [vmem:[#allocation44_spill] sm:$0xff] %v6490_v60  ;;  %v6567_v6 = vmul.f32 %v4988_v48, %v6157_v28  ;;  %v6582_v48 = vmul.f32 %v4993_v21, %v6157_v28  ;;  %v5001_v60 = vld [vmem:[#allocation2 + $0x218] sm:$0xff]  ;;  %v5002_v56 = vld [vmem:[#allocation2 + $0x220] sm:$0xff] }
 0x2b9   :  { %8478 = vst [vmem:[#allocation45_spill] sm:$0xff] %v6494_v0  ;;  %8479 = vst [vmem:[#allocation46_spill] sm:$0xff] %v6498_v4  ;;  %v4999_v4 = vld [vmem:[#allocation2 + $0x208] sm:$0xff]  ;;  %v5000_v0 = vld [vmem:[#allocation2 + $0x210] sm:$0xff] }
 0x2ba   :  { %8480 = vst [vmem:[#allocation47_spill] sm:$0xff] %v6502_v8  ;;  %8481 = vst [vmem:[#allocation48_spill] sm:$0xff] %v6506_v12  ;;  %v4997_v12 = vld [vmem:[#allocation2 + $0x1f8] sm:$0xff]  ;;  %v4998_v8 = vld [vmem:[#allocation2 + $0x200] sm:$0xff] }
 0x2bb   :  { %8482 = vst [vmem:[#allocation49_spill] sm:$0xff] %v6509_v42  ;;  %8483 = vst [vmem:[#allocation50_spill] sm:$0xff] %v6512_v16  ;;  %v4995_v16 = vld [vmem:[#allocation2 + $0x1e8] sm:$0xff]  ;;  %v4996_v42 = vld [vmem:[#allocation2 + $0x1f0] sm:$0xff]  ;;  %v6594_v54 = vmul.f32 %v4997_v12, %v6157_v28  ;;  %v6597_v21 = vmul.f32 %v4998_v8, %v6157_v28  ;;  %v6609_v12 = vmul.f32 %v5002_v56, %v6157_v28 }
 0x2bc   :  { %8484 = vst [vmem:[#allocation51_spill] sm:$0xff] %v6515_v20  ;;  %v4994_v20 = vld [vmem:[#allocation2 + $0x1e0] sm:$0xff]  ;;  %v6588_v38 = vmul.f32 %v4995_v16, %v6157_v28  ;;  %v6591_v46 = vmul.f32 %v4996_v42, %v6157_v28  ;;  %v6603_v16 = vmul.f32 %v5000_v0, %v6157_v28  ;;  %v6606_v42 = vmul.f32 %v5001_v60, %v6157_v28  ;;  %v5012_v15 = vld [vmem:[#allocation2 + $0x270] sm:$0xff]  ;;  %v5015_v9 = vld [vmem:[#allocation2 + $0x288] sm:$0xff] }
 0x2bd   :  { %v6585_v30 = vmul.f32 %v4994_v20, %v6157_v28  ;;  %v6600_v20 = vmul.f32 %v4999_v4, %v6157_v28  ;;  %v6612_v8 = vmul.f32 %v5003_v52, %v6157_v28  ;;  %v6615_v4 = vmul.f32 %v5004_v44, %v6157_v28  ;;  %v5014_v11 = vld [vmem:[#allocation2 + $0x280] sm:$0xff]  ;;  %v5017_v5 = vld [vmem:[#allocation2 + $0x298] sm:$0xff] }
 0x2be   :  { %v6618_v0 = vmul.f32 %v5005_v40, %v6157_v28  ;;  %v6621_v60 = vmul.f32 %v5006_v36, %v6157_v28  ;;  %v6624_v56 = vmul.f32 %v5007_v32, %v6157_v28  ;;  %v6627_v52 = vmul.f32 %v5008_v25, %v6157_v28  ;;  %v8486_v39 = vld [vmem:[#allocation6_spill] sm:$0xff] }
 0x2bf   :  { %v6630_v44 = vmul.f32 %v5009_v22, %v6157_v28  ;;  %v6633_v40 = vmul.f32 %v5010_v19, %v6157_v28  ;;  %v6636_v36 = vmul.f32 %v5011_v17, %v6157_v28  ;;  %v6639_v32 = vmul.f32 %v5012_v15, %v6157_v28 }
 0x2c0   :  { %v6642_v25 = vmul.f32 %v5013_v13, %v6157_v28  ;;  %v6645_v22 = vmul.f32 %v5014_v11, %v6157_v28  ;;  %v6648_v19 = vmul.f32 %v5015_v9, %v6157_v28  ;;  %v6651_v17 = vmul.f32 %v5016_v7, %v6157_v28  ;;  %v5020_v11 = vld [vmem:[#allocation2 + $0x2b0] sm:$0xff] }
 0x2c1   :  { %v6654_v15 = vmul.f32 %v5017_v5, %v6157_v28  ;;  %v3427_v13 = vmul.f32 %v5018_v3, %v6157_v28  ;;  %v3429_v61 = vmul.f32 %v5020_v11, %v6157_v28  ;;  %v3430_v9 = vmul.f32 %v5021_v59, %v6157_v28  ;;  %v5024_v5 = vld [vmem:[#allocation2 + $0x2d0] sm:$0xff] }
 0x2c2   :  { %v3431_v7 = vmul.f32 %v5022_v57, %v6157_v28  ;;  %v3433_v51 = vmul.f32 %v5024_v5, %v6157_v28  ;;  %v3434_v3 = vmul.f32 %v5025_v49, %v6157_v28  ;;  %v3436_v11 = vmul.f32 %v5027_v45, %v6157_v28 }
 0x2c3   :  { %v3437_v59 = vmul.f32 %v5028_v43, %v6157_v28  ;;  %v3438_v57 = vmul.f32 %v5029_v41, %v6157_v28  ;;  %v3440_v5 = vmul.f32 %v5031_v37, %v6157_v28  ;;  %v6672_v49 = vadd.f32 %v6310_v18, %v6307_v10  ;;  %v8485_v41 = vld [vmem:[#allocation5_spill] sm:$0xff] }
 0x2c4   :  { %v6680_v43 = vadd.f32 %v6316_v50, %v6307_v10  ;;  %v6684_v45 = vadd.f32 %v8485_v41, %v6307_v10  ;;  %v6688_v35 = vadd.f32 %v8486_v39, %v6307_v10  ;;  %v6692_v18 = vadd.f32 %v6567_v6, %v6307_v10 }
 0x2c5   :  { %v6700_v50 = vadd.f32 %v6573_v2, %v6307_v10  ;;  %v6704_v37 = vadd.f32 %v6576_v23, %v6307_v10  ;;  %v6708_v41 = vadd.f32 %v6579_v62, %v6307_v10  ;;  %v6712_v6 = vadd.f32 %v6582_v48, %v6307_v10 }
 0x2c6   :  { %v6716_v58 = vadd.f32 %v6585_v30, %v6307_v10  ;;  %v6720_v2 = vadd.f32 %v6588_v38, %v6307_v10  ;;  %v6724_v23 = vadd.f32 %v6591_v46, %v6307_v10  ;;  %v6728_v62 = vadd.f32 %v6594_v54, %v6307_v10 }
 0x2c7   :  { %v6732_v48 = vadd.f32 %v6597_v21, %v6307_v10  ;;  %v6736_v30 = vadd.f32 %v6600_v20, %v6307_v10  ;;  %v6740_v38 = vadd.f32 %v6603_v16, %v6307_v10  ;;  %v6744_v46 = vadd.f32 %v6606_v42, %v6307_v10 }
 0x2c8   :  { %v6748_v54 = vadd.f32 %v6609_v12, %v6307_v10  ;;  %v6752_v21 = vadd.f32 %v6612_v8, %v6307_v10  ;;  %v6756_v20 = vadd.f32 %v6615_v4, %v6307_v10  ;;  %v6760_v16 = vadd.f32 %v6618_v0, %v6307_v10 }
 0x2c9   :  { %v6764_v42 = vadd.f32 %v6621_v60, %v6307_v10  ;;  %v6768_v12 = vadd.f32 %v6624_v56, %v6307_v10  ;;  %v6772_v8 = vadd.f32 %v6627_v52, %v6307_v10  ;;  %v6776_v4 = vadd.f32 %v6630_v44, %v6307_v10 }
 0x2ca   :  { %v6780_v0 = vadd.f32 %v6633_v40, %v6307_v10  ;;  %v6784_v60 = vadd.f32 %v6636_v36, %v6307_v10  ;;  %v6788_v56 = vadd.f32 %v6639_v32, %v6307_v10  ;;  %v6792_v52 = vadd.f32 %v6642_v25, %v6307_v10 }
 0x2cb   :  { %v6796_v44 = vadd.f32 %v6645_v22, %v6307_v10  ;;  %v6800_v40 = vadd.f32 %v6648_v19, %v6307_v10  ;;  %v6804_v36 = vadd.f32 %v6651_v17, %v6307_v10  ;;  %v6808_v32 = vadd.f32 %v6654_v15, %v6307_v10 }
 0x2cc   :  { %v6811_v39 = vadd.f32 %v3427_v13, %v6307_v10  ;;  %v6814_v25 = vadd.f32 %v3428_v63, %v6307_v10  ;;  %v6817_v22 = vadd.f32 %v3429_v61, %v6307_v10  ;;  %v6820_v19 = vadd.f32 %v3430_v9, %v6307_v10 }
 0x2cd   :  { %v6823_v28 = vadd.f32 %v3431_v7, %v6307_v10  ;;  %v6826_v17 = vadd.f32 %v3432_v53, %v6307_v10  ;;  %v6829_v15 = vadd.f32 %v3433_v51, %v6307_v10  ;;  %v6832_v13 = vadd.f32 %v3434_v3, %v6307_v10 }
 0x2ce   :  { %v6835_v63 = vadd.f32 %v3435_v1, %v6307_v10  ;;  %v6838_v61 = vadd.f32 %v3436_v11, %v6307_v10  ;;  %v6841_v9 = vadd.f32 %v3437_v59, %v6307_v10  ;;  %v6844_v7 = vadd.f32 %v3438_v57, %v6307_v10 }
 0x2cf   :  { %v6847_v53 = vadd.f32 %v3439_v55, %v6307_v10  ;;  %v6850_v51 = vadd.f32 %v3440_v5, %v6307_v10  ;;  %v3490_v3 = vmax.f32 %v6672_v49, 0.0  ;;  %v3491_v1 = vmax.f32 %v6676_v47, 0.0 }
 0x2d0   :  { %v3492_v33 = vmax.f32 %v6680_v43, 0.0  ;;  %v3493_v11 = vmax.f32 %v6684_v45, 0.0  ;;  %v3494_v59 = vmax.f32 %v6688_v35, 0.0  ;;  %v3495_v31 = vmax.f32 %v6692_v18, 0.0 }
 0x2d1   :  { %v3496_v57 = vmax.f32 %v6696_v34, 0.0  ;;  %v3497_v55 = vmax.f32 %v6700_v50, 0.0  ;;  %v3498_v24 = vmax.f32 %v6704_v37, 0.0  ;;  %v3499_v5 = vmax.f32 %v6708_v41, 0.0 }
 0x2d2   :  { %v3500_v49 = vmax.f32 %v6712_v6, 0.0  ;;  %v3501_v47 = vmax.f32 %v6716_v58, 0.0  ;;  %v3502_v43 = vmax.f32 %v6720_v2, 0.0  ;;  %v3503_v45 = vmax.f32 %v6724_v23, 0.0 }
 0x2d3   :  { %v3504_v35 = vmax.f32 %v6728_v62, 0.0  ;;  %v3505_v18 = vmax.f32 %v6732_v48, 0.0  ;;  %v3506_v34 = vmax.f32 %v6736_v30, 0.0  ;;  %v3507_v50 = vmax.f32 %v6740_v38, 0.0 }
 0x2d4   :  { %v3508_v37 = vmax.f32 %v6744_v46, 0.0  ;;  %v3509_v41 = vmax.f32 %v6748_v54, 0.0  ;;  %v3510_v6 = vmax.f32 %v6752_v21, 0.0  ;;  %v3511_v58 = vmax.f32 %v6756_v20, 0.0 }
 0x2d5   :  { %v3512_v2 = vmax.f32 %v6760_v16, 0.0  ;;  %v3513_v23 = vmax.f32 %v6764_v42, 0.0  ;;  %v3514_v62 = vmax.f32 %v6768_v12, 0.0  ;;  %v3515_v48 = vmax.f32 %v6772_v8, 0.0 }
 0x2d6   :  { %v3516_v30 = vmax.f32 %v6776_v4, 0.0  ;;  %v3517_v38 = vmax.f32 %v6780_v0, 0.0  ;;  %v3518_v46 = vmax.f32 %v6784_v60, 0.0  ;;  %v3519_v54 = vmax.f32 %v6788_v56, 0.0 }
 0x2d7   :  { %v3520_v21 = vmax.f32 %v6792_v52, 0.0  ;;  %v3521_v20 = vmax.f32 %v6796_v44, 0.0  ;;  %v3522_v16 = vmax.f32 %v6800_v40, 0.0  ;;  %v3523_v42 = vmax.f32 %v6804_v36, 0.0 }
 0x2d8   :  { %v3524_v12 = vmax.f32 %v6808_v32, 0.0  ;;  %v3525_v8 = vmax.f32 %v6811_v39, 0.0  ;;  %v3526_v4 = vmax.f32 %v6814_v25, 0.0  ;;  %v3527_v0 = vmax.f32 %v6817_v22, 0.0 }
 0x2d9   :  { %v3528_v60 = vmax.f32 %v6820_v19, 0.0  ;;  %v3529_v56 = vmax.f32 %v6823_v28, 0.0  ;;  %v3530_v52 = vmax.f32 %v6826_v17, 0.0  ;;  %v3531_v44 = vmax.f32 %v6829_v15, 0.0 }
 0x2da   :  { %v3532_v40 = vmax.f32 %v6832_v13, 0.0  ;;  %v3533_v36 = vmax.f32 %v6835_v63, 0.0  ;;  %v3534_v32 = vmax.f32 %v6838_v61, 0.0  ;;  %v3535_v39 = vmax.f32 %v6841_v9, 0.0 }
 0x2db   :  { %v3536_v25 = vmax.f32 %v6844_v7, 0.0  ;;  %v3537_v22 = vmax.f32 %v6847_v53, 0.0  ;;  %v3538_v19 = vmax.f32 %v6850_v51, 0.0  ;;  %v8487_v28 = vmax.f32 %v6326_v26, 0.0  ;;  %v8495_v7 = vld [vmem:[#allocation7_spill] sm:$0xff]  ;;  %v8498_v26 = vld [vmem:[#allocation8_spill] sm:$0xff] }
 0x2dc   :  { %v8489_v17 = vmax.f32 %v6330_v27, 0.0  ;;  %v8491_v13 = vmax.f32 %v6334_v29, 0.0  ;;  %v8493_v61 = vmax.f32 %v6338_v14, 0.0  ;;  %v8496_v53 = vmax.f32 %v8495_v7, 0.0 }
 0x2dd   :  { %v6903_v10 = vmax.f32 %v8487_v28, %v3490_v3  ;;  %v8499_v3 = vmax.f32 %v8498_v26, 0.0 }
 0x2de   :  { %v6907_v15 = vmax.f32 %v8489_v17, %v3491_v1  ;;  %v6911_v63 = vmax.f32 %v8491_v13, %v3492_v33  ;;  %v6915_v9 = vmax.f32 %v8493_v61, %v3493_v11  ;;  %v6919_v51 = vmax.f32 %v8496_v53, %v3494_v59  ;;  %v8504_v17 = vld [vmem:[#allocation10_spill] sm:$0xff]  ;;  %v8507_v13 = vld [vmem:[#allocation11_spill] sm:$0xff]  ;;  %v8510_v61 = vld [vmem:[#allocation12_spill] sm:$0xff] }
 0x2df   :  { %8488 = vst [vmem:[#allocation5_spill] sm:$0xff] %v6903_v10  ;;  %v6923_v28 = vmax.f32 %v8499_v3, %v3495_v31  ;;  %v8501_v10 = vld [vmem:[#allocation9_spill] sm:$0xff]  ;;  %v8505_v29 = vmax.f32 %v8504_v17, 0.0  ;;  %v8508_v14 = vmax.f32 %v8507_v13, 0.0  ;;  %v8511_v7 = vmax.f32 %v8510_v61, 0.0  ;;  %v8516_v3 = vld [vmem:[#allocation14_spill] sm:$0xff] }
 0x2e0   :  { %8490 = vst [vmem:[#allocation6_spill] sm:$0xff] %v6907_v15  ;;  %8492 = vst [vmem:[#allocation52_spill] sm:$0xff] %v6911_v63  ;;  %v8502_v27 = vmax.f32 %v8501_v10, 0.0  ;;  %v8513_v53 = vld [vmem:[#allocation13_spill] sm:$0xff]  ;;  %v8517_v10 = vmax.f32 %v8516_v3, 0.0  ;;  %v5087_v63 = vld [vmem:[#allocation2 + $0x4c8] sm:$0xff] }
 0x2e1   :  { %8494 = vst [vmem:[#allocation53_spill] sm:$0xff] %v6915_v9  ;;  %8497 = vst [vmem:[#allocation7_spill] sm:$0xff] %v6919_v51  ;;  %v6931_v33 = vmax.f32 %v8505_v29, %v3497_v55  ;;  %v6935_v11 = vmax.f32 %v8508_v14, %v3498_v24  ;;  %v6939_v59 = vmax.f32 %v8511_v7, %v3499_v5  ;;  %v8514_v26 = vmax.f32 %v8513_v53, 0.0  ;;  %v8522_v29 = vld [vmem:[#allocation16_spill] sm:$0xff]  ;;  %v8525_v14 = vld [vmem:[#allocation17_spill] sm:$0xff] }
 0x2e2   :  { %8500 = vst [vmem:[#allocation8_spill] sm:$0xff] %v6923_v28  ;;  %v6927_v1 = vmax.f32 %v8502_v27, %v3496_v57  ;;  %v6947_v57 = vmax.f32 %v8517_v10, %v3501_v47  ;;  %v8519_v27 = vld [vmem:[#allocation15_spill] sm:$0xff]  ;;  %v8523_v13 = vmax.f32 %v8522_v29, 0.0  ;;  %v8526_v61 = vmax.f32 %v8525_v14, 0.0  ;;  %v8528_v7 = vld [vmem:[#allocation18_spill] sm:$0xff]  ;;  %v8534_v10 = vld [vmem:[#allocation20_spill] sm:$0xff] }
 0x2e3   :  { %8506 = vst [vmem:[#allocation10_spill] sm:$0xff] %v6931_v33  ;;  %8509 = vst [vmem:[#allocation11_spill] sm:$0xff] %v6935_v11  ;;  %v6943_v31 = vmax.f32 %v8514_v26, %v3500_v49  ;;  %v8520_v17 = vmax.f32 %v8519_v27, 0.0  ;;  %v8529_v53 = vmax.f32 %v8528_v7, 0.0  ;;  %v8531_v26 = vld [vmem:[#allocation19_spill] sm:$0xff]  ;;  %v8535_v27 = vmax.f32 %v8534_v10, 0.0 }
 0x2e4   :  { %8503 = vst [vmem:[#allocation9_spill] sm:$0xff] %v6927_v1  ;;  %8512 = vst [vmem:[#allocation12_spill] sm:$0xff] %v6939_v59  ;;  %v6955_v24 = vmax.f32 %v8523_v13, %v3503_v45  ;;  %v6959_v5 = vmax.f32 %v8526_v61, %v3504_v35  ;;  %v8532_v3 = vmax.f32 %v8531_v26, 0.0  ;;  %v8540_v13 = vld [vmem:[#allocation22_spill] sm:$0xff]  ;;  %v8543_v61 = vld [vmem:[#allocation23_spill] sm:$0xff] }
 0x2e5   :  { %8515 = vst [vmem:[#allocation13_spill] sm:$0xff] %v6943_v31  ;;  %8518 = vst [vmem:[#allocation14_spill] sm:$0xff] %v6947_v57  ;;  %v6951_v55 = vmax.f32 %v8520_v17, %v3502_v43  ;;  %v6963_v49 = vmax.f32 %v8529_v53, %v3505_v18  ;;  %v6971_v43 = vmax.f32 %v8535_v27, %v3507_v50  ;;  %v8537_v17 = vld [vmem:[#allocation21_spill] sm:$0xff]  ;;  %v8541_v14 = vmax.f32 %v8540_v13, 0.0  ;;  %v8546_v53 = vld [vmem:[#allocation24_spill] sm:$0xff] }
 0x2e6   :  { %8524 = vst [vmem:[#allocation16_spill] sm:$0xff] %v6955_v24  ;;  %8527 = vst [vmem:[#allocation17_spill] sm:$0xff] %v6959_v5  ;;  %v6967_v47 = vmax.f32 %v8532_v3, %v3506_v34  ;;  %v8538_v29 = vmax.f32 %v8537_v17, 0.0  ;;  %v8544_v7 = vmax.f32 %v8543_v61, 0.0  ;;  %v8547_v26 = vmax.f32 %v8546_v53, 0.0  ;;  %v8549_v3 = vld [vmem:[#allocation25_spill] sm:$0xff] }
 0x2e7   :  { %8521 = vst [vmem:[#allocation15_spill] sm:$0xff] %v6951_v55  ;;  %8530 = vst [vmem:[#allocation18_spill] sm:$0xff] %v6963_v49  ;;  %v6979_v35 = vmax.f32 %v8541_v14, %v3509_v41  ;;  %v8550_v10 = vmax.f32 %v8549_v3, 0.0  ;;  %v8552_v27 = vld [vmem:[#allocation26_spill] sm:$0xff]  ;;  %v8558_v14 = vld [vmem:[#allocation28_spill] sm:$0xff] }
 0x2e8   :  { %8533 = vst [vmem:[#allocation19_spill] sm:$0xff] %v6967_v47  ;;  %8536 = vst [vmem:[#allocation20_spill] sm:$0xff] %v6971_v43  ;;  %v6975_v45 = vmax.f32 %v8538_v29, %v3508_v37  ;;  %v6983_v18 = vmax.f32 %v8544_v7, %v3510_v6  ;;  %v6987_v34 = vmax.f32 %v8547_v26, %v3511_v58  ;;  %v8553_v17 = vmax.f32 %v8552_v27, 0.0  ;;  %v8555_v29 = vld [vmem:[#allocation27_spill] sm:$0xff]  ;;  %v8561_v7 = vld [vmem:[#allocation29_spill] sm:$0xff] }
 0x2e9   :  { %8542 = vst [vmem:[#allocation22_spill] sm:$0xff] %v6979_v35  ;;  %v6991_v50 = vmax.f32 %v8550_v10, %v3512_v2  ;;  %v8556_v13 = vmax.f32 %v8555_v29, 0.0  ;;  %v8559_v61 = vmax.f32 %v8558_v14, 0.0  ;;  %v8562_v53 = vmax.f32 %v8561_v7, 0.0  ;;  %v8564_v26 = vld [vmem:[#allocation30_spill] sm:$0xff]  ;;  %v8567_v10 = vld [vmem:[#allocation31_spill] sm:$0xff] }
 0x2ea   :  { %8539 = vst [vmem:[#allocation21_spill] sm:$0xff] %v6975_v45  ;;  %8545 = vst [vmem:[#allocation23_spill] sm:$0xff] %v6983_v18  ;;  %v6995_v37 = vmax.f32 %v8553_v17, %v3513_v23  ;;  %v8565_v3 = vmax.f32 %v8564_v26, 0.0  ;;  %v8568_v27 = vmax.f32 %v8567_v10, 0.0  ;;  %v8570_v17 = vld [vmem:[#allocation32_spill] sm:$0xff]  ;;  %v5070_v35 = vld [vmem:[#allocation2 + $0x440] sm:$0xff] }
 0x2eb   :  { %8548 = vst [vmem:[#allocation24_spill] sm:$0xff] %v6987_v34  ;;  %8551 = vst [vmem:[#allocation25_spill] sm:$0xff] %v6991_v50  ;;  %v6999_v41 = vmax.f32 %v8556_v13, %v3514_v62  ;;  %v7003_v6 = vmax.f32 %v8559_v61, %v3515_v48  ;;  %v7007_v58 = vmax.f32 %v8562_v53, %v3516_v30  ;;  %v8571_v29 = vmax.f32 %v8570_v17, 0.0  ;;  %v8573_v13 = vld [vmem:[#allocation33_spill] sm:$0xff]  ;;  %v8576_v61 = vld [vmem:[#allocation34_spill] sm:$0xff] }
 0x2ec   :  { %8554 = vst [vmem:[#allocation26_spill] sm:$0xff] %v6995_v37  ;;  %v7011_v2 = vmax.f32 %v8565_v3, %v3517_v38  ;;  %v7015_v23 = vmax.f32 %v8568_v27, %v3518_v46  ;;  %v8574_v14 = vmax.f32 %v8573_v13, 0.0  ;;  %v8577_v7 = vmax.f32 %v8576_v61, 0.0  ;;  %v8579_v53 = vld [vmem:[#allocation35_spill] sm:$0xff]  ;;  %v8582_v3 = vld [vmem:[#allocation36_spill] sm:$0xff]  ;;  %v8585_v27 = vld [vmem:[#allocation37_spill] sm:$0xff] }
 0x2ed   :  { %8557 = vst [vmem:[#allocation27_spill] sm:$0xff] %v6999_v41  ;;  %8560 = vst [vmem:[#allocation28_spill] sm:$0xff] %v7003_v6  ;;  %v7019_v62 = vmax.f32 %v8571_v29, %v3519_v54  ;;  %v8580_v26 = vmax.f32 %v8579_v53, 0.0  ;;  %v8583_v10 = vmax.f32 %v8582_v3, 0.0  ;;  %v8586_v17 = vmax.f32 %v8585_v27, 0.0  ;;  %v8588_v29 = vld [vmem:[#allocation38_spill] sm:$0xff] }
 0x2ee   :  { %8563 = vst [vmem:[#allocation29_spill] sm:$0xff] %v7007_v58  ;;  %8566 = vst [vmem:[#allocation30_spill] sm:$0xff] %v7011_v2  ;;  %v7023_v48 = vmax.f32 %v8574_v14, %v3520_v21  ;;  %v7027_v30 = vmax.f32 %v8577_v7, %v3521_v20  ;;  %v8589_v13 = vmax.f32 %v8588_v29, 0.0  ;;  %v8591_v14 = vld [vmem:[#allocation39_spill] sm:$0xff]  ;;  %v8594_v7 = vld [vmem:[#allocation40_spill] sm:$0xff] }
 0x2ef   :  { %8569 = vst [vmem:[#allocation31_spill] sm:$0xff] %v7015_v23  ;;  %8572 = vst [vmem:[#allocation32_spill] sm:$0xff] %v7019_v62  ;;  %v7031_v38 = vmax.f32 %v8580_v26, %v3522_v16  ;;  %v7035_v46 = vmax.f32 %v8583_v10, %v3523_v42  ;;  %v7039_v54 = vmax.f32 %v8586_v17, %v3524_v12  ;;  %v8592_v61 = vmax.f32 %v8591_v14, 0.0  ;;  %v8597_v26 = vld [vmem:[#allocation41_spill] sm:$0xff]  ;;  %v8600_v10 = vld [vmem:[#allocation42_spill] sm:$0xff] }
 0x2f0   :  { %8575 = vst [vmem:[#allocation33_spill] sm:$0xff] %v7023_v48  ;;  %8578 = vst [vmem:[#allocation34_spill] sm:$0xff] %v7027_v30  ;;  %v7043_v21 = vmax.f32 %v8589_v13, %v3525_v8  ;;  %v8595_v53 = vmax.f32 %v8594_v7, 0.0  ;;  %v8598_v3 = vmax.f32 %v8597_v26, 0.0  ;;  %v8601_v27 = vmax.f32 %v8600_v10, 0.0  ;;  %v8603_v17 = vld [vmem:[#allocation43_spill] sm:$0xff] }
 0x2f1   :  { %8581 = vst [vmem:[#allocation35_spill] sm:$0xff] %v7031_v38  ;;  %8584 = vst [vmem:[#allocation36_spill] sm:$0xff] %v7035_v46  ;;  %v7047_v20 = vmax.f32 %v8592_v61, %v3526_v4  ;;  %v8604_v29 = vmax.f32 %v8603_v17, 0.0  ;;  %v8606_v13 = vld [vmem:[#allocation44_spill] sm:$0xff]  ;;  %v8609_v61 = vld [vmem:[#allocation45_spill] sm:$0xff] }
 0x2f2   :  { %8587 = vst [vmem:[#allocation37_spill] sm:$0xff] %v7039_v54  ;;  %8590 = vst [vmem:[#allocation38_spill] sm:$0xff] %v7043_v21  ;;  %v7051_v16 = vmax.f32 %v8595_v53, %v3527_v0  ;;  %v7055_v42 = vmax.f32 %v8598_v3, %v3528_v60  ;;  %v7059_v12 = vmax.f32 %v8601_v27, %v3529_v56  ;;  %v8607_v14 = vmax.f32 %v8606_v13, 0.0  ;;  %v8612_v53 = vld [vmem:[#allocation46_spill] sm:$0xff]  ;;  %v8615_v3 = vld [vmem:[#allocation47_spill] sm:$0xff] }
 0x2f3   :  { %8593 = vst [vmem:[#allocation39_spill] sm:$0xff] %v7047_v20  ;;  %v7063_v8 = vmax.f32 %v8604_v29, %v3530_v52  ;;  %v8610_v7 = vmax.f32 %v8609_v61, 0.0  ;;  %v8613_v26 = vmax.f32 %v8612_v53, 0.0  ;;  %v8616_v10 = vmax.f32 %v8615_v3, 0.0  ;;  %v8618_v27 = vld [vmem:[#allocation48_spill] sm:$0xff]  ;;  %v8621_v29 = vld [vmem:[#allocation49_spill] sm:$0xff] }
 0x2f4   :  { %8596 = vst [vmem:[#allocation40_spill] sm:$0xff] %v7051_v16  ;;  %8599 = vst [vmem:[#allocation41_spill] sm:$0xff] %v7055_v42  ;;  %v7067_v4 = vmax.f32 %v8607_v14, %v3531_v44  ;;  %v8619_v17 = vmax.f32 %v8618_v27, 0.0  ;;  %v8622_v13 = vmax.f32 %v8621_v29, 0.0  ;;  %v8624_v14 = vld [vmem:[#allocation50_spill] sm:$0xff]  ;;  %v8630_v3 = vld [vmem:[#allocation3_spill] sm:$0xff] }
 0x2f5   :  { %8602 = vst [vmem:[#allocation42_spill] sm:$0xff] %v7059_v12  ;;  %8605 = vst [vmem:[#allocation43_spill] sm:$0xff] %v7063_v8  ;;  %v7071_v0 = vmax.f32 %v8610_v7, %v3532_v40  ;;  %v7075_v60 = vmax.f32 %v8613_v26, %v3533_v36  ;;  %v7079_v56 = vmax.f32 %v8616_v10, %v3534_v32  ;;  %v8625_v61 = vmax.f32 %v8624_v14, 0.0  ;;  %v8627_v7 = vld [vmem:[#allocation51_spill] sm:$0xff]  ;;  %v5032_v26 = vld [vmem:[#allocation2 + $0x310] sm:$0xff] }
 0x2f6   :  { %8608 = vst [vmem:[#allocation44_spill] sm:$0xff] %v7067_v4  ;;  %v7083_v52 = vmax.f32 %v8619_v17, %v3535_v39  ;;  %v7087_v44 = vmax.f32 %v8622_v13, %v3536_v25  ;;  %v8628_v53 = vmax.f32 %v8627_v7, 0.0  ;;  %v7098_v32 = vmul.f32 %v5032_v26, %v8630_v3  ;;  %v5033_v10 = vld [vmem:[#allocation2 + $0x318] sm:$0xff]  ;;  %v5034_v27 = vld [vmem:[#allocation2 + $0x320] sm:$0xff]  ;;  %v5035_v17 = vld [vmem:[#allocation2 + $0x328] sm:$0xff] }
 0x2f7   :  { %8611 = vst [vmem:[#allocation45_spill] sm:$0xff] %v7071_v0  ;;  %8614 = vst [vmem:[#allocation46_spill] sm:$0xff] %v7075_v60  ;;  %v7091_v40 = vmax.f32 %v8625_v61, %v3537_v22  ;;  %v7101_v39 = vmul.f32 %v5033_v10, %v8630_v3  ;;  %v7104_v25 = vmul.f32 %v5034_v27, %v8630_v3  ;;  %v5036_v29 = vld [vmem:[#allocation2 + $0x330] sm:$0xff]  ;;  %v5037_v13 = vld [vmem:[#allocation2 + $0x338] sm:$0xff] }
 0x2f8   :  { %8617 = vst [vmem:[#allocation47_spill] sm:$0xff] %v7079_v56  ;;  %8620 = vst [vmem:[#allocation48_spill] sm:$0xff] %v7083_v52  ;;  %v7095_v36 = vmax.f32 %v8628_v53, %v3538_v19  ;;  %v7107_v22 = vmul.f32 %v5035_v17, %v8630_v3  ;;  %v7110_v19 = vmul.f32 %v5036_v29, %v8630_v3  ;;  %v5038_v61 = vld [vmem:[#allocation2 + $0x340] sm:$0xff]  ;;  %v5039_v53 = vld [vmem:[#allocation2 + $0x348] sm:$0xff] }
 0x2f9   :  { %8623 = vst [vmem:[#allocation49_spill] sm:$0xff] %v7087_v44  ;;  %8626 = vst [vmem:[#allocation50_spill] sm:$0xff] %v7091_v40  ;;  %v7113_v14 = vmul.f32 %v5037_v13, %v8630_v3  ;;  %v7116_v7 = vmul.f32 %v5038_v61, %v8630_v3  ;;  %v7119_v26 = vmul.f32 %v5039_v53, %v8630_v3  ;;  %v5040_v10 = vld [vmem:[#allocation2 + $0x350] sm:$0xff]  ;;  %v5041_v17 = vld [vmem:[#allocation2 + $0x358] sm:$0xff] }
 0x2fa   :  { %8629 = vst [vmem:[#allocation51_spill] sm:$0xff] %v7095_v36  ;;  %v7122_v27 = vmul.f32 %v5040_v10, %v8630_v3  ;;  %v7125_v29 = vmul.f32 %v5041_v17, %v8630_v3  ;;  %v5042_v36 = vld [vmem:[#allocation2 + $0x360] sm:$0xff]  ;;  %v5043_v40 = vld [vmem:[#allocation2 + $0x368] sm:$0xff]  ;;  %v5044_v44 = vld [vmem:[#allocation2 + $0x370] sm:$0xff] }
 0x2fb   :  { %v7128_v13 = vmul.f32 %v5042_v36, %v8630_v3  ;;  %v7131_v61 = vmul.f32 %v5043_v40, %v8630_v3  ;;  %v7134_v53 = vmul.f32 %v5044_v44, %v8630_v3  ;;  %v5045_v52 = vld [vmem:[#allocation2 + $0x378] sm:$0xff]  ;;  %v5046_v56 = vld [vmem:[#allocation2 + $0x380] sm:$0xff]  ;;  %v5047_v60 = vld [vmem:[#allocation2 + $0x388] sm:$0xff] }
 0x2fc   :  { %v7137_v10 = vmul.f32 %v5045_v52, %v8630_v3  ;;  %v7140_v17 = vmul.f32 %v5046_v56, %v8630_v3  ;;  %v7143_v36 = vmul.f32 %v5047_v60, %v8630_v3  ;;  %v5048_v0 = vld [vmem:[#allocation2 + $0x390] sm:$0xff]  ;;  %v5049_v4 = vld [vmem:[#allocation2 + $0x398] sm:$0xff]  ;;  %v5050_v8 = vld [vmem:[#allocation2 + $0x3a0] sm:$0xff] }
 0x2fd   :  { %v7146_v40 = vmul.f32 %v5048_v0, %v8630_v3  ;;  %v7149_v44 = vmul.f32 %v5049_v4, %v8630_v3  ;;  %v7152_v52 = vmul.f32 %v5050_v8, %v8630_v3  ;;  %v5051_v12 = vld [vmem:[#allocation2 + $0x3a8] sm:$0xff]  ;;  %v5052_v42 = vld [vmem:[#allocation2 + $0x3b0] sm:$0xff]  ;;  %v5053_v16 = vld [vmem:[#allocation2 + $0x3b8] sm:$0xff] }
 0x2fe   :  { %v7155_v56 = vmul.f32 %v5051_v12, %v8630_v3  ;;  %v7158_v60 = vmul.f32 %v5052_v42, %v8630_v3  ;;  %v7161_v0 = vmul.f32 %v5053_v16, %v8630_v3  ;;  %v5054_v20 = vld [vmem:[#allocation2 + $0x3c0] sm:$0xff]  ;;  %v5055_v21 = vld [vmem:[#allocation2 + $0x3c8] sm:$0xff]  ;;  %v5056_v54 = vld [vmem:[#allocation2 + $0x3d0] sm:$0xff] }
 0x2ff   :  { %v7164_v4 = vmul.f32 %v5054_v20, %v8630_v3  ;;  %v7167_v8 = vmul.f32 %v5055_v21, %v8630_v3  ;;  %v7170_v12 = vmul.f32 %v5056_v54, %v8630_v3  ;;  %v5057_v46 = vld [vmem:[#allocation2 + $0x3d8] sm:$0xff]  ;;  %v5058_v38 = vld [vmem:[#allocation2 + $0x3e0] sm:$0xff]  ;;  %v5059_v30 = vld [vmem:[#allocation2 + $0x3e8] sm:$0xff] }
 0x300   :  { %v7173_v42 = vmul.f32 %v5057_v46, %v8630_v3  ;;  %v7176_v16 = vmul.f32 %v5058_v38, %v8630_v3  ;;  %v7179_v20 = vmul.f32 %v5059_v30, %v8630_v3  ;;  %v5060_v48 = vld [vmem:[#allocation2 + $0x3f0] sm:$0xff]  ;;  %v5061_v62 = vld [vmem:[#allocation2 + $0x3f8] sm:$0xff]  ;;  %v5062_v23 = vld [vmem:[#allocation2 + $0x400] sm:$0xff] }
 0x301   :  { %v7182_v21 = vmul.f32 %v5060_v48, %v8630_v3  ;;  %v7185_v54 = vmul.f32 %v5061_v62, %v8630_v3  ;;  %v7188_v46 = vmul.f32 %v5062_v23, %v8630_v3  ;;  %v5063_v2 = vld [vmem:[#allocation2 + $0x408] sm:$0xff]  ;;  %v5064_v58 = vld [vmem:[#allocation2 + $0x410] sm:$0xff]  ;;  %v5065_v6 = vld [vmem:[#allocation2 + $0x418] sm:$0xff] }
 0x302   :  { %v7191_v38 = vmul.f32 %v5063_v2, %v8630_v3  ;;  %v7194_v30 = vmul.f32 %v5064_v58, %v8630_v3  ;;  %v7197_v48 = vmul.f32 %v5065_v6, %v8630_v3  ;;  %v5066_v41 = vld [vmem:[#allocation2 + $0x420] sm:$0xff]  ;;  %v5067_v37 = vld [vmem:[#allocation2 + $0x428] sm:$0xff]  ;;  %v5068_v50 = vld [vmem:[#allocation2 + $0x430] sm:$0xff]  ;;  %v3626_v58 = vmul.f32 %v5070_v35, %v8630_v3 }
 0x303   :  { %v7200_v62 = vmul.f32 %v5066_v41, %v8630_v3  ;;  %v3623_v23 = vmul.f32 %v5067_v37, %v8630_v3  ;;  %v3624_v34 = vmul.f32 %v5068_v50, %v8630_v3  ;;  %v5069_v2 = vld [vmem:[#allocation2 + $0x438] sm:$0xff]  ;;  %v5071_v45 = vld [vmem:[#allocation2 + $0x448] sm:$0xff]  ;;  %v5072_v43 = vld [vmem:[#allocation2 + $0x450] sm:$0xff] }
 0x304   :  { %v3625_v18 = vmul.f32 %v5069_v2, %v8630_v3  ;;  %v3627_v6 = vmul.f32 %v5071_v45, %v8630_v3  ;;  %v3628_v47 = vmul.f32 %v5072_v43, %v8630_v3  ;;  %v5073_v41 = vld [vmem:[#allocation2 + $0x458] sm:$0xff]  ;;  %v5074_v5 = vld [vmem:[#allocation2 + $0x460] sm:$0xff]  ;;  %v5075_v24 = vld [vmem:[#allocation2 + $0x468] sm:$0xff] }
 0x305   :  { %v3629_v49 = vmul.f32 %v5073_v41, %v8630_v3  ;;  %v3630_v37 = vmul.f32 %v5074_v5, %v8630_v3  ;;  %v3631_v50 = vmul.f32 %v5075_v24, %v8630_v3  ;;  %v5076_v55 = vld [vmem:[#allocation2 + $0x470] sm:$0xff]  ;;  %v5077_v57 = vld [vmem:[#allocation2 + $0x478] sm:$0xff]  ;;  %v5078_v31 = vld [vmem:[#allocation2 + $0x480] sm:$0xff] }
 0x306   :  { %v3632_v2 = vmul.f32 %v5076_v55, %v8630_v3  ;;  %v3633_v35 = vmul.f32 %v5077_v57, %v8630_v3  ;;  %v3634_v45 = vmul.f32 %v5078_v31, %v8630_v3  ;;  %v5079_v59 = vld [vmem:[#allocation2 + $0x488] sm:$0xff]  ;;  %v5080_v11 = vld [vmem:[#allocation2 + $0x490] sm:$0xff]  ;;  %v5081_v9 = vld [vmem:[#allocation2 + $0x498] sm:$0xff] }
 0x307   :  { %v3635_v43 = vmul.f32 %v5079_v59, %v8630_v3  ;;  %v3636_v41 = vmul.f32 %v5080_v11, %v8630_v3  ;;  %v8631_v33 = vld [vmem:[#allocation4_spill] sm:$0xff]  ;;  %v5086_v51 = vld [vmem:[#allocation2 + $0x4c0] sm:$0xff]  ;;  %v5088_v15 = vld [vmem:[#allocation2 + $0x4d0] sm:$0xff] }
 0x308   :  { %v7218_v5 = vadd.f32 %v7098_v32, %v8631_v33  ;;  %v7222_v24 = vadd.f32 %v7101_v39, %v8631_v33  ;;  %v7226_v57 = vadd.f32 %v7104_v25, %v8631_v33  ;;  %v7230_v31 = vadd.f32 %v7107_v22, %v8631_v33  ;;  %v5083_v1 = vld [vmem:[#allocation2 + $0x4a8] sm:$0xff] }
 0x309   :  { %v7234_v59 = vadd.f32 %v7110_v19, %v8631_v33  ;;  %v7238_v11 = vadd.f32 %v7113_v14, %v8631_v33  ;;  %v7242_v55 = vadd.f32 %v7116_v7, %v8631_v33  ;;  %v7246_v32 = vadd.f32 %v7119_v26, %v8631_v33 }
 0x30a   :  { %8632 = vst [vmem:[#allocation3_spill] sm:$0xff] %v7230_v31  ;;  %v7250_v39 = vadd.f32 %v7122_v27, %v8631_v33  ;;  %v7254_v25 = vadd.f32 %v7125_v29, %v8631_v33  ;;  %v7258_v22 = vadd.f32 %v7128_v13, %v8631_v33  ;;  %v7262_v19 = vadd.f32 %v7131_v61, %v8631_v33 }
 0x30b   :  { %8633 = vst [vmem:[#allocation4_spill] sm:$0xff] %v7234_v59  ;;  %8634 = vst [vmem:[#allocation54_spill] sm:$0xff] %v7238_v11  ;;  %v7266_v14 = vadd.f32 %v7134_v53, %v8631_v33  ;;  %v7270_v7 = vadd.f32 %v7137_v10, %v8631_v33  ;;  %v7274_v26 = vadd.f32 %v7140_v17, %v8631_v33 }
 0x30c   :  { %8635 = vst [vmem:[#allocation55_spill] sm:$0xff] %v7242_v55  ;;  %8636 = vst [vmem:[#allocation56_spill] sm:$0xff] %v7246_v32  ;;  %v7278_v27 = vadd.f32 %v7143_v36, %v8631_v33  ;;  %v7282_v29 = vadd.f32 %v7146_v40, %v8631_v33  ;;  %v7286_v13 = vadd.f32 %v7149_v44, %v8631_v33  ;;  %v5128_v32 = vld [vmem:[#allocation2 + $0x610] sm:$0xff]  ;;  %v5129_v55 = vld [vmem:[#allocation2 + $0x618] sm:$0xff] }
 0x30d   :  { %8637 = vst [vmem:[#allocation57_spill] sm:$0xff] %v7250_v39  ;;  %8638 = vst [vmem:[#allocation58_spill] sm:$0xff] %v7254_v25  ;;  %v7290_v61 = vadd.f32 %v7152_v52, %v8631_v33  ;;  %v7294_v53 = vadd.f32 %v7155_v56, %v8631_v33  ;;  %v7298_v10 = vadd.f32 %v7158_v60, %v8631_v33  ;;  %v5126_v25 = vld [vmem:[#allocation2 + $0x600] sm:$0xff]  ;;  %v5127_v39 = vld [vmem:[#allocation2 + $0x608] sm:$0xff] }
 0x30e   :  { %8639 = vst [vmem:[#allocation59_spill] sm:$0xff] %v7258_v22  ;;  %8640 = vst [vmem:[#allocation60_spill] sm:$0xff] %v7262_v19  ;;  %v7302_v17 = vadd.f32 %v7161_v0, %v8631_v33  ;;  %v7306_v36 = vadd.f32 %v7164_v4, %v8631_v33  ;;  %v7310_v40 = vadd.f32 %v7167_v8, %v8631_v33  ;;  %v5124_v19 = vld [vmem:[#allocation2 + $0x5f0] sm:$0xff]  ;;  %v5125_v22 = vld [vmem:[#allocation2 + $0x5f8] sm:$0xff] }
 0x30f   :  { %8641 = vst [vmem:[#allocation61_spill] sm:$0xff] %v7266_v14  ;;  %8642 = vst [vmem:[#allocation62_spill] sm:$0xff] %v7270_v7  ;;  %v7314_v44 = vadd.f32 %v7170_v12, %v8631_v33  ;;  %v7318_v52 = vadd.f32 %v7173_v42, %v8631_v33  ;;  %v7322_v56 = vadd.f32 %v7176_v16, %v8631_v33  ;;  %v5123_v14 = vld [vmem:[#allocation2 + $0x5e8] sm:$0xff] }
 0x310   :  { %8643 = vst [vmem:[#allocation63_spill] sm:$0xff] %v7274_v26  ;;  %8644 = vst [vmem:[#allocation64_spill] sm:$0xff] %v7278_v27  ;;  %v7326_v60 = vadd.f32 %v7179_v20, %v8631_v33  ;;  %v7330_v0 = vadd.f32 %v7182_v21, %v8631_v33  ;;  %v7334_v4 = vadd.f32 %v7185_v54, %v8631_v33  ;;  %v5121_v27 = vld [vmem:[#allocation2 + $0x5d8] sm:$0xff] }
 0x311   :  { %8645 = vst [vmem:[#allocation65_spill] sm:$0xff] %v7282_v29  ;;  %8646 = vst [vmem:[#allocation66_spill] sm:$0xff] %v7286_v13  ;;  %v7338_v8 = vadd.f32 %v7188_v46, %v8631_v33  ;;  %v7342_v12 = vadd.f32 %v7191_v38, %v8631_v33  ;;  %v7346_v42 = vadd.f32 %v7194_v30, %v8631_v33  ;;  %v5119_v13 = vld [vmem:[#allocation2 + $0x5c8] sm:$0xff]  ;;  %v5120_v29 = vld [vmem:[#allocation2 + $0x5d0] sm:$0xff] }
 0x312   :  { %8647 = vst [vmem:[#allocation67_spill] sm:$0xff] %v7290_v61  ;;  %8648 = vst [vmem:[#allocation68_spill] sm:$0xff] %v7294_v53  ;;  %v7350_v16 = vadd.f32 %v7197_v48, %v8631_v33  ;;  %v7354_v20 = vadd.f32 %v7200_v62, %v8631_v33  ;;  %v7357_v21 = vadd.f32 %v3623_v23, %v8631_v33 }
 0x313   :  { %8649 = vst [vmem:[#allocation69_spill] sm:$0xff] %v7298_v10  ;;  %8650 = vst [vmem:[#allocation70_spill] sm:$0xff] %v7302_v17  ;;  %v7360_v54 = vadd.f32 %v3624_v34, %v8631_v33  ;;  %v7363_v46 = vadd.f32 %v3625_v18, %v8631_v33  ;;  %v7366_v38 = vadd.f32 %v3626_v58, %v8631_v33  ;;  %v5116_v17 = vld [vmem:[#allocation2 + $0x5b0] sm:$0xff]  ;;  %v5117_v10 = vld [vmem:[#allocation2 + $0x5b8] sm:$0xff] }
 0x314   :  { %8651 = vst [vmem:[#allocation71_spill] sm:$0xff] %v7306_v36  ;;  %8652 = vst [vmem:[#allocation72_spill] sm:$0xff] %v7310_v40  ;;  %v7369_v30 = vadd.f32 %v3627_v6, %v8631_v33  ;;  %v7372_v48 = vadd.f32 %v3628_v47, %v8631_v33  ;;  %v7375_v62 = vadd.f32 %v3629_v49, %v8631_v33  ;;  %v5114_v40 = vld [vmem:[#allocation2 + $0x5a0] sm:$0xff]  ;;  %v5115_v36 = vld [vmem:[#allocation2 + $0x5a8] sm:$0xff] }
 0x315   :  { %8653 = vst [vmem:[#allocation73_spill] sm:$0xff] %v7314_v44  ;;  %8654 = vst [vmem:[#allocation74_spill] sm:$0xff] %v7318_v52  ;;  %v7378_v23 = vadd.f32 %v3630_v37, %v8631_v33  ;;  %v7381_v34 = vadd.f32 %v3631_v50, %v8631_v33  ;;  %v7384_v18 = vadd.f32 %v3632_v2, %v8631_v33  ;;  %v5082_v37 = vld [vmem:[#allocation2 + $0x4a0] sm:$0xff]  ;;  %v5112_v52 = vld [vmem:[#allocation2 + $0x590] sm:$0xff] }
 0x316   :  { %8655 = vst [vmem:[#allocation75_spill] sm:$0xff] %v7322_v56  ;;  %8656 = vst [vmem:[#allocation76_spill] sm:$0xff] %v7326_v60  ;;  %v7387_v58 = vadd.f32 %v3633_v35, %v8631_v33  ;;  %v7390_v6 = vadd.f32 %v3634_v45, %v8631_v33  ;;  %v7393_v47 = vadd.f32 %v3635_v43, %v8631_v33  ;;  %v5084_v35 = vld [vmem:[#allocation2 + $0x4b0] sm:$0xff]  ;;  %v5085_v45 = vld [vmem:[#allocation2 + $0x4b8] sm:$0xff] }
 0x317   :  { %8657 = vst [vmem:[#allocation77_spill] sm:$0xff] %v7330_v0  ;;  %8658 = vst [vmem:[#allocation78_spill] sm:$0xff] %v7334_v4  ;;  %v7396_v49 = vadd.f32 %v3636_v41, %v8631_v33  ;;  %v7448_v41 = vmul.f32 %v5081_v9, %v8630_v3  ;;  %v7451_v50 = vmul.f32 %v5082_v37, %v8630_v3  ;;  %v5108_v4 = vld [vmem:[#allocation2 + $0x570] sm:$0xff]  ;;  %v5109_v0 = vld [vmem:[#allocation2 + $0x578] sm:$0xff] }
 0x318   :  { %8659 = vst [vmem:[#allocation79_spill] sm:$0xff] %v7338_v8  ;;  %8660 = vst [vmem:[#allocation80_spill] sm:$0xff] %v7342_v12  ;;  %v7454_v2 = vmul.f32 %v5083_v1, %v8630_v3  ;;  %v7457_v28 = vmul.f32 %v5084_v35, %v8630_v3  ;;  %v7460_v43 = vmul.f32 %v5085_v45, %v8630_v3  ;;  %v5106_v12 = vld [vmem:[#allocation2 + $0x560] sm:$0xff]  ;;  %v5107_v8 = vld [vmem:[#allocation2 + $0x568] sm:$0xff] }
 0x319   :  { %8661 = vst [vmem:[#allocation81_spill] sm:$0xff] %v7346_v42  ;;  %8662 = vst [vmem:[#allocation82_spill] sm:$0xff] %v7350_v16  ;;  %v7463_v9 = vmul.f32 %v5086_v51, %v8630_v3  ;;  %v7466_v37 = vmul.f32 %v5087_v63, %v8630_v3  ;;  %v7469_v1 = vmul.f32 %v5088_v15, %v8630_v3  ;;  %v5104_v16 = vld [vmem:[#allocation2 + $0x550] sm:$0xff]  ;;  %v5105_v42 = vld [vmem:[#allocation2 + $0x558] sm:$0xff] }
 0x31a   :  { %8663 = vst [vmem:[#allocation83_spill] sm:$0xff] %v7354_v20  ;;  %8664 = vst [vmem:[#allocation84_spill] sm:$0xff] %v7357_v21  ;;  %v5102_v21 = vld [vmem:[#allocation2 + $0x540] sm:$0xff]  ;;  %v5103_v20 = vld [vmem:[#allocation2 + $0x548] sm:$0xff]  ;;  %v3771_v53 = vmul.f32 %v5117_v10, %v8630_v3  ;;  %v3775_v26 = vmul.f32 %v5121_v27, %v8630_v3  ;;  %v3778_v10 = vmul.f32 %v5124_v19, %v8630_v3 }
 0x31b   :  { %8665 = vst [vmem:[#allocation85_spill] sm:$0xff] %v7360_v54  ;;  %8666 = vst [vmem:[#allocation86_spill] sm:$0xff] %v7363_v46  ;;  %v5100_v46 = vld [vmem:[#allocation2 + $0x530] sm:$0xff]  ;;  %v5101_v54 = vld [vmem:[#allocation2 + $0x538] sm:$0xff]  ;;  %v3782_v27 = vmul.f32 %v5128_v32, %v8630_v3  ;;  %v7572_v19 = vadd.f32 %v7451_v50, %v8631_v33  ;;  %v7584_v32 = vadd.f32 %v7460_v43, %v8631_v33 }
 0x31c   :  { %8667 = vst [vmem:[#allocation87_spill] sm:$0xff] %v7366_v38  ;;  %8668 = vst [vmem:[#allocation88_spill] sm:$0xff] %v7369_v30  ;;  %v5098_v30 = vld [vmem:[#allocation2 + $0x520] sm:$0xff]  ;;  %v5099_v38 = vld [vmem:[#allocation2 + $0x528] sm:$0xff] }
 0x31d   :  { %8669 = vst [vmem:[#allocation89_spill] sm:$0xff] %v7372_v48  ;;  %8670 = vst [vmem:[#allocation90_spill] sm:$0xff] %v7375_v62  ;;  %v5096_v62 = vld [vmem:[#allocation2 + $0x510] sm:$0xff]  ;;  %v5097_v48 = vld [vmem:[#allocation2 + $0x518] sm:$0xff] }
 0x31e   :  { %8671 = vst [vmem:[#allocation91_spill] sm:$0xff] %v7378_v23  ;;  %8672 = vst [vmem:[#allocation92_spill] sm:$0xff] %v7381_v34  ;;  %v5094_v34 = vld [vmem:[#allocation2 + $0x500] sm:$0xff]  ;;  %v5095_v23 = vld [vmem:[#allocation2 + $0x508] sm:$0xff] }
 0x31f   :  { %8673 = vst [vmem:[#allocation93_spill] sm:$0xff] %v7384_v18  ;;  %8674 = vst [vmem:[#allocation94_spill] sm:$0xff] %v7387_v58  ;;  %v5092_v58 = vld [vmem:[#allocation2 + $0x4f0] sm:$0xff]  ;;  %v5093_v18 = vld [vmem:[#allocation2 + $0x4f8] sm:$0xff] }
 0x320   :  { %8675 = vst [vmem:[#allocation95_spill] sm:$0xff] %v7390_v6  ;;  %8676 = vst [vmem:[#allocation96_spill] sm:$0xff] %v7393_v47  ;;  %v5090_v47 = vld [vmem:[#allocation2 + $0x4e0] sm:$0xff]  ;;  %v5091_v6 = vld [vmem:[#allocation2 + $0x4e8] sm:$0xff]  ;;  %v7481_v63 = vmul.f32 %v5092_v58, %v8630_v3  ;;  %v7484_v15 = vmul.f32 %v5093_v18, %v8630_v3  ;;  %v7496_v58 = vmul.f32 %v5097_v48, %v8630_v3 }
 0x321   :  { %8677 = vst [vmem:[#allocation97_spill] sm:$0xff] %v7396_v49  ;;  %v5089_v49 = vld [vmem:[#allocation2 + $0x4d8] sm:$0xff]  ;;  %v7475_v45 = vmul.f32 %v5090_v47, %v8630_v3  ;;  %v7478_v51 = vmul.f32 %v5091_v6, %v8630_v3  ;;  %v7490_v47 = vmul.f32 %v5095_v23, %v8630_v3  ;;  %v7493_v6 = vmul.f32 %v5096_v62, %v8630_v3  ;;  %v5110_v60 = vld [vmem:[#allocation2 + $0x580] sm:$0xff]  ;;  %v5111_v56 = vld [vmem:[#allocation2 + $0x588] sm:$0xff] }
 0x322   :  { %v7472_v35 = vmul.f32 %v5089_v49, %v8630_v3  ;;  %v7487_v49 = vmul.f32 %v5094_v34, %v8630_v3  ;;  %v7499_v18 = vmul.f32 %v5098_v30, %v8630_v3  ;;  %v7502_v34 = vmul.f32 %v5099_v38, %v8630_v3  ;;  %v5113_v44 = vld [vmem:[#allocation2 + $0x598] sm:$0xff] }
 0x323   :  { %v7505_v23 = vmul.f32 %v5100_v46, %v8630_v3  ;;  %v7508_v62 = vmul.f32 %v5101_v54, %v8630_v3  ;;  %v7511_v48 = vmul.f32 %v5102_v21, %v8630_v3  ;;  %v7514_v30 = vmul.f32 %v5103_v20, %v8630_v3 }
 0x324   :  { %v7517_v38 = vmul.f32 %v5104_v16, %v8630_v3  ;;  %v7520_v46 = vmul.f32 %v5105_v42, %v8630_v3  ;;  %v7523_v54 = vmul.f32 %v5106_v12, %v8630_v3  ;;  %v7526_v21 = vmul.f32 %v5107_v8, %v8630_v3 }
 0x325   :  { %v7529_v20 = vmul.f32 %v5108_v4, %v8630_v3  ;;  %v7532_v16 = vmul.f32 %v5109_v0, %v8630_v3  ;;  %v7535_v42 = vmul.f32 %v5110_v60, %v8630_v3  ;;  %v7538_v12 = vmul.f32 %v5111_v56, %v8630_v3 }
 0x326   :  { %v7541_v8 = vmul.f32 %v5112_v52, %v8630_v3  ;;  %v7544_v4 = vmul.f32 %v5113_v44, %v8630_v3  ;;  %v7547_v0 = vmul.f32 %v5114_v40, %v8630_v3  ;;  %v7550_v60 = vmul.f32 %v5115_v36, %v8630_v3  ;;  %v5118_v52 = vld [vmem:[#allocation2 + $0x5c0] sm:$0xff] }
 0x327   :  { %v3770_v56 = vmul.f32 %v5116_v17, %v8630_v3  ;;  %v3772_v61 = vmul.f32 %v5118_v52, %v8630_v3  ;;  %v3773_v44 = vmul.f32 %v5119_v13, %v8630_v3  ;;  %v3774_v40 = vmul.f32 %v5120_v29, %v8630_v3  ;;  %v5122_v36 = vld [vmem:[#allocation2 + $0x5e0] sm:$0xff] }
 0x328   :  { %v3776_v7 = vmul.f32 %v5122_v36, %v8630_v3  ;;  %v3777_v17 = vmul.f32 %v5123_v14, %v8630_v3  ;;  %v3779_v52 = vmul.f32 %v5125_v22, %v8630_v3  ;;  %v3780_v13 = vmul.f32 %v5126_v25, %v8630_v3 }
 0x329   :  { %v3781_v29 = vmul.f32 %v5127_v39, %v8630_v3  ;;  %v3783_v36 = vmul.f32 %v5129_v55, %v8630_v3  ;;  %v7568_v14 = vadd.f32 %v7448_v41, %v8631_v33  ;;  %v7576_v25 = vadd.f32 %v7454_v2, %v8631_v33 }
 0x32a   :  { %v7580_v39 = vadd.f32 %v7457_v28, %v8631_v33  ;;  %v7588_v3 = vadd.f32 %v7463_v9, %v8631_v33  ;;  %v7592_v55 = vadd.f32 %v7466_v37, %v8631_v33  ;;  %v7596_v22 = vadd.f32 %v7469_v1, %v8631_v33 }
 0x32b   :  { %v7600_v28 = vadd.f32 %v7472_v35, %v8631_v33  ;;  %v7604_v50 = vadd.f32 %v7475_v45, %v8631_v33  ;;  %v7608_v2 = vadd.f32 %v7478_v51, %v8631_v33  ;;  %v7612_v43 = vadd.f32 %v7481_v63, %v8631_v33 }
 0x32c   :  { %v7616_v41 = vadd.f32 %v7484_v15, %v8631_v33  ;;  %v7620_v9 = vadd.f32 %v7487_v49, %v8631_v33  ;;  %v7624_v37 = vadd.f32 %v7490_v47, %v8631_v33  ;;  %v7628_v1 = vadd.f32 %v7493_v6, %v8631_v33 }
 0x32d   :  { %v7632_v35 = vadd.f32 %v7496_v58, %v8631_v33  ;;  %v7636_v45 = vadd.f32 %v7499_v18, %v8631_v33  ;;  %v7640_v51 = vadd.f32 %v7502_v34, %v8631_v33  ;;  %v7644_v63 = vadd.f32 %v7505_v23, %v8631_v33 }
 0x32e   :  { %v7648_v15 = vadd.f32 %v7508_v62, %v8631_v33  ;;  %v7652_v49 = vadd.f32 %v7511_v48, %v8631_v33  ;;  %v7656_v47 = vadd.f32 %v7514_v30, %v8631_v33  ;;  %v7660_v6 = vadd.f32 %v7517_v38, %v8631_v33 }
 0x32f   :  { %v7664_v58 = vadd.f32 %v7520_v46, %v8631_v33  ;;  %v7668_v18 = vadd.f32 %v7523_v54, %v8631_v33  ;;  %v7672_v34 = vadd.f32 %v7526_v21, %v8631_v33  ;;  %v7676_v23 = vadd.f32 %v7529_v20, %v8631_v33 }
 0x330   :  { %v7680_v62 = vadd.f32 %v7532_v16, %v8631_v33  ;;  %v7684_v48 = vadd.f32 %v7535_v42, %v8631_v33  ;;  %v7688_v30 = vadd.f32 %v7538_v12, %v8631_v33  ;;  %v7692_v38 = vadd.f32 %v7541_v8, %v8631_v33 }
 0x331   :  { %v7696_v46 = vadd.f32 %v7544_v4, %v8631_v33  ;;  %v7700_v54 = vadd.f32 %v7547_v0, %v8631_v33  ;;  %v7704_v21 = vadd.f32 %v7550_v60, %v8631_v33  ;;  %v7707_v20 = vadd.f32 %v3770_v56, %v8631_v33 }
 0x332   :  { %v7710_v16 = vadd.f32 %v3771_v53, %v8631_v33  ;;  %v7713_v42 = vadd.f32 %v3772_v61, %v8631_v33  ;;  %v7716_v12 = vadd.f32 %v3773_v44, %v8631_v33  ;;  %v7719_v8 = vadd.f32 %v3774_v40, %v8631_v33 }
 0x333   :  { %v7722_v4 = vadd.f32 %v3775_v26, %v8631_v33  ;;  %v7725_v0 = vadd.f32 %v3776_v7, %v8631_v33  ;;  %v7728_v60 = vadd.f32 %v3777_v17, %v8631_v33  ;;  %v7731_v53 = vadd.f32 %v3778_v10, %v8631_v33 }
 0x334   :  { %v7734_v61 = vadd.f32 %v3779_v52, %v8631_v33  ;;  %v7737_v56 = vadd.f32 %v3780_v13, %v8631_v33  ;;  %v7740_v44 = vadd.f32 %v3781_v29, %v8631_v33  ;;  %v7743_v26 = vadd.f32 %v3782_v27, %v8631_v33 }
 0x335   :  { %v7746_v7 = vadd.f32 %v3783_v36, %v8631_v33  ;;  %v3833_v40 = vmax.f32 %v7568_v14, 0.0  ;;  %v3834_v17 = vmax.f32 %v7572_v19, 0.0  ;;  %v3835_v10 = vmax.f32 %v7576_v25, 0.0 }
 0x336   :  { %v3836_v52 = vmax.f32 %v7580_v39, 0.0  ;;  %v3837_v13 = vmax.f32 %v7584_v32, 0.0  ;;  %v3838_v11 = vmax.f32 %v7588_v3, 0.0  ;;  %v3839_v29 = vmax.f32 %v7592_v55, 0.0 }
 0x337   :  { %v3840_v27 = vmax.f32 %v7596_v22, 0.0  ;;  %v3841_v59 = vmax.f32 %v7600_v28, 0.0  ;;  %v3842_v33 = vmax.f32 %v7604_v50, 0.0  ;;  %v3843_v36 = vmax.f32 %v7608_v2, 0.0 }
 0x338   :  { %v3844_v14 = vmax.f32 %v7612_v43, 0.0  ;;  %v3845_v19 = vmax.f32 %v7616_v41, 0.0  ;;  %v3846_v25 = vmax.f32 %v7620_v9, 0.0  ;;  %v3847_v39 = vmax.f32 %v7624_v37, 0.0 }
 0x339   :  { %v3848_v32 = vmax.f32 %v7628_v1, 0.0  ;;  %v3849_v3 = vmax.f32 %v7632_v35, 0.0  ;;  %v3850_v55 = vmax.f32 %v7636_v45, 0.0  ;;  %v3851_v22 = vmax.f32 %v7640_v51, 0.0 }
 0x33a   :  { %v3852_v28 = vmax.f32 %v7644_v63, 0.0  ;;  %v3853_v50 = vmax.f32 %v7648_v15, 0.0  ;;  %v3854_v2 = vmax.f32 %v7652_v49, 0.0  ;;  %v3855_v43 = vmax.f32 %v7656_v47, 0.0 }
 0x33b   :  { %v3856_v41 = vmax.f32 %v7660_v6, 0.0  ;;  %v3857_v9 = vmax.f32 %v7664_v58, 0.0  ;;  %v3858_v37 = vmax.f32 %v7668_v18, 0.0  ;;  %v3859_v1 = vmax.f32 %v7672_v34, 0.0 }
 0x33c   :  { %v3860_v35 = vmax.f32 %v7676_v23, 0.0  ;;  %v3861_v45 = vmax.f32 %v7680_v62, 0.0  ;;  %v3862_v51 = vmax.f32 %v7684_v48, 0.0  ;;  %v3863_v63 = vmax.f32 %v7688_v30, 0.0 }
 0x33d   :  { %v3864_v15 = vmax.f32 %v7692_v38, 0.0  ;;  %v3865_v49 = vmax.f32 %v7696_v46, 0.0  ;;  %v3866_v47 = vmax.f32 %v7700_v54, 0.0  ;;  %v3867_v6 = vmax.f32 %v7704_v21, 0.0 }
 0x33e   :  { %v3868_v58 = vmax.f32 %v7707_v20, 0.0  ;;  %v3869_v18 = vmax.f32 %v7710_v16, 0.0  ;;  %v3870_v34 = vmax.f32 %v7713_v42, 0.0  ;;  %v3871_v23 = vmax.f32 %v7716_v12, 0.0 }
 0x33f   :  { %v3872_v62 = vmax.f32 %v7719_v8, 0.0  ;;  %v3873_v48 = vmax.f32 %v7722_v4, 0.0  ;;  %v3874_v30 = vmax.f32 %v7725_v0, 0.0  ;;  %v3875_v38 = vmax.f32 %v7728_v60, 0.0 }
 0x340   :  { %v3876_v46 = vmax.f32 %v7731_v53, 0.0  ;;  %v3877_v54 = vmax.f32 %v7734_v61, 0.0  ;;  %v3878_v21 = vmax.f32 %v7737_v56, 0.0  ;;  %v3879_v20 = vmax.f32 %v7740_v44, 0.0  ;;  %v8681_v53 = vld [vmem:[#allocation3_spill] sm:$0xff]  ;;  %v8683_v44 = vld [vmem:[#allocation4_spill] sm:$0xff] }
 0x341   :  { %v3880_v16 = vmax.f32 %v7743_v26, 0.0  ;;  %v3881_v42 = vmax.f32 %v7746_v7, 0.0  ;;  %v8678_v12 = vmax.f32 %v7218_v5, 0.0  ;;  %v8679_v4 = vmax.f32 %v7222_v24, 0.0  ;;  %v8685_v5 = vld [vmem:[#allocation54_spill] sm:$0xff]  ;;  %v8687_v24 = vld [vmem:[#allocation55_spill] sm:$0xff] }
 0x342   :  { %v8680_v60 = vmax.f32 %v7226_v57, 0.0  ;;  %v8682_v61 = vmax.f32 %v8681_v53, 0.0  ;;  %v8684_v26 = vmax.f32 %v8683_v44, 0.0  ;;  %v8689_v57 = vld [vmem:[#allocation56_spill] sm:$0xff]  ;;  %v8691_v53 = vld [vmem:[#allocation57_spill] sm:$0xff]  ;;  %v8693_v44 = vld [vmem:[#allocation58_spill] sm:$0xff] }
 0x343   :  { %v3882_v8 = vmax.f32 %v8678_v12, %v3833_v40  ;;  %v3883_v0 = vmax.f32 %v8679_v4, %v3834_v17  ;;  %v8686_v12 = vmax.f32 %v8685_v5, 0.0  ;;  %v8688_v4 = vmax.f32 %v8687_v24, 0.0  ;;  %v8695_v5 = vld [vmem:[#allocation59_spill] sm:$0xff]  ;;  %v8697_v24 = vld [vmem:[#allocation60_spill] sm:$0xff] }
 0x344   :  { %v3884_v31 = vmax.f32 %v8680_v60, %v3835_v10  ;;  %v3885_v56 = vmax.f32 %v8682_v61, %v3836_v52  ;;  %v3886_v7 = vmax.f32 %v8684_v26, %v3837_v13  ;;  %v8690_v10 = vmax.f32 %v8689_v57, 0.0  ;;  %v8699_v57 = vld [vmem:[#allocation61_spill] sm:$0xff] }
 0x345   :  { %v3887_v40 = vmax.f32 %v8686_v12, %v3838_v11  ;;  %v3888_v17 = vmax.f32 %v8688_v4, %v3839_v29  ;;  %v8692_v52 = vmax.f32 %v8691_v53, 0.0  ;;  %v8694_v13 = vmax.f32 %v8693_v44, 0.0  ;;  %v8701_v53 = vld [vmem:[#allocation62_spill] sm:$0xff]  ;;  %v8703_v44 = vld [vmem:[#allocation63_spill] sm:$0xff] }
 0x346   :  { %v3889_v60 = vmax.f32 %v8690_v10, %v3840_v27  ;;  %v8696_v11 = vmax.f32 %v8695_v5, 0.0  ;;  %v8698_v4 = vmax.f32 %v8697_v24, 0.0  ;;  %v8700_v10 = vmax.f32 %v8699_v57, 0.0  ;;  %v8705_v5 = vld [vmem:[#allocation64_spill] sm:$0xff]  ;;  %v8707_v24 = vld [vmem:[#allocation65_spill] sm:$0xff]  ;;  %v8709_v57 = vld [vmem:[#allocation66_spill] sm:$0xff] }
 0x347   :  { %v3890_v61 = vmax.f32 %v8692_v52, %v3841_v59  ;;  %v3891_v26 = vmax.f32 %v8694_v13, %v3842_v33  ;;  %v8702_v52 = vmax.f32 %v8701_v53, 0.0  ;;  %v8704_v13 = vmax.f32 %v8703_v44, 0.0  ;;  %v8711_v53 = vld [vmem:[#allocation67_spill] sm:$0xff]  ;;  %v8713_v44 = vld [vmem:[#allocation68_spill] sm:$0xff] }
 0x348   :  { %v3892_v12 = vmax.f32 %v8696_v11, %v3843_v36  ;;  %v3893_v29 = vmax.f32 %v8698_v4, %v3844_v14  ;;  %v3894_v27 = vmax.f32 %v8700_v10, %v3845_v19  ;;  %v8706_v11 = vmax.f32 %v8705_v5, 0.0  ;;  %v8715_v5 = vld [vmem:[#allocation69_spill] sm:$0xff] }
 0x349   :  { %v3895_v59 = vmax.f32 %v8702_v52, %v3846_v25  ;;  %v3896_v33 = vmax.f32 %v8704_v13, %v3847_v39  ;;  %v8708_v4 = vmax.f32 %v8707_v24, 0.0  ;;  %v8710_v10 = vmax.f32 %v8709_v57, 0.0  ;;  %v8717_v24 = vld [vmem:[#allocation70_spill] sm:$0xff]  ;;  %v8719_v57 = vld [vmem:[#allocation71_spill] sm:$0xff] }
 0x34a   :  { %v3897_v36 = vmax.f32 %v8706_v11, %v3848_v32  ;;  %v8712_v25 = vmax.f32 %v8711_v53, 0.0  ;;  %v8714_v13 = vmax.f32 %v8713_v44, 0.0  ;;  %v8716_v11 = vmax.f32 %v8715_v5, 0.0  ;;  %v8721_v53 = vld [vmem:[#allocation72_spill] sm:$0xff]  ;;  %v8723_v44 = vld [vmem:[#allocation73_spill] sm:$0xff]  ;;  %v8725_v5 = vld [vmem:[#allocation74_spill] sm:$0xff] }
 0x34b   :  { %v3898_v14 = vmax.f32 %v8708_v4, %v3849_v3  ;;  %v3899_v19 = vmax.f32 %v8710_v10, %v3850_v55  ;;  %v8718_v3 = vmax.f32 %v8717_v24, 0.0  ;;  %v8720_v10 = vmax.f32 %v8719_v57, 0.0  ;;  %v8727_v24 = vld [vmem:[#allocation75_spill] sm:$0xff]  ;;  %v8729_v57 = vld [vmem:[#allocation76_spill] sm:$0xff] }
 0x34c   :  { %v3900_v52 = vmax.f32 %v8712_v25, %v3851_v22  ;;  %v3901_v39 = vmax.f32 %v8714_v13, %v3852_v28  ;;  %v3902_v32 = vmax.f32 %v8716_v11, %v3853_v50  ;;  %v8722_v22 = vmax.f32 %v8721_v53, 0.0  ;;  %v8731_v53 = vld [vmem:[#allocation77_spill] sm:$0xff] }
 0x34d   :  { %v3903_v4 = vmax.f32 %v8718_v3, %v3854_v2  ;;  %v3904_v55 = vmax.f32 %v8720_v10, %v3855_v43  ;;  %v8724_v13 = vmax.f32 %v8723_v44, 0.0  ;;  %v8726_v11 = vmax.f32 %v8725_v5, 0.0  ;;  %v8733_v44 = vld [vmem:[#allocation78_spill] sm:$0xff]  ;;  %v8735_v5 = vld [vmem:[#allocation79_spill] sm:$0xff] }
 0x34e   :  { %v3905_v25 = vmax.f32 %v8722_v22, %v3856_v41  ;;  %v8728_v2 = vmax.f32 %v8727_v24, 0.0  ;;  %v8730_v10 = vmax.f32 %v8729_v57, 0.0  ;;  %v8732_v22 = vmax.f32 %v8731_v53, 0.0  ;;  %v8737_v24 = vld [vmem:[#allocation80_spill] sm:$0xff]  ;;  %v8739_v57 = vld [vmem:[#allocation81_spill] sm:$0xff]  ;;  %v8741_v53 = vld [vmem:[#allocation82_spill] sm:$0xff] }
 0x34f   :  { %v3906_v28 = vmax.f32 %v8724_v13, %v3857_v9  ;;  %v3907_v50 = vmax.f32 %v8726_v11, %v3858_v37  ;;  %v8734_v9 = vmax.f32 %v8733_v44, 0.0  ;;  %v8736_v11 = vmax.f32 %v8735_v5, 0.0  ;;  %v8743_v44 = vld [vmem:[#allocation83_spill] sm:$0xff]  ;;  %v8745_v5 = vld [vmem:[#allocation84_spill] sm:$0xff] }
 0x350   :  { %v3908_v3 = vmax.f32 %v8728_v2, %v3859_v1  ;;  %v3909_v43 = vmax.f32 %v8730_v10, %v3860_v35  ;;  %v3910_v41 = vmax.f32 %v8732_v22, %v3861_v45  ;;  %v8738_v1 = vmax.f32 %v8737_v24, 0.0  ;;  %v8747_v24 = vld [vmem:[#allocation85_spill] sm:$0xff] }
 0x351   :  { %v3911_v13 = vmax.f32 %v8734_v9, %v3862_v51  ;;  %v3912_v37 = vmax.f32 %v8736_v11, %v3863_v63  ;;  %v8740_v10 = vmax.f32 %v8739_v57, 0.0  ;;  %v8742_v22 = vmax.f32 %v8741_v53, 0.0  ;;  %v8749_v57 = vld [vmem:[#allocation86_spill] sm:$0xff]  ;;  %v8751_v53 = vld [vmem:[#allocation87_spill] sm:$0xff] }
 0x352   :  { %v3913_v2 = vmax.f32 %v8738_v1, %v3864_v15  ;;  %v8744_v9 = vmax.f32 %v8743_v44, 0.0  ;;  %v8746_v11 = vmax.f32 %v8745_v5, 0.0  ;;  %v8748_v1 = vmax.f32 %v8747_v24, 0.0  ;;  %v8753_v44 = vld [vmem:[#allocation88_spill] sm:$0xff]  ;;  %v8755_v5 = vld [vmem:[#allocation89_spill] sm:$0xff]  ;;  %v8757_v24 = vld [vmem:[#allocation90_spill] sm:$0xff] }
 0x353   :  { %v3914_v35 = vmax.f32 %v8740_v10, %v3865_v49  ;;  %v3915_v45 = vmax.f32 %v8742_v22, %v3866_v47  ;;  %v8750_v10 = vmax.f32 %v8749_v57, 0.0  ;;  %v8752_v22 = vmax.f32 %v8751_v53, 0.0  ;;  %v8759_v57 = vld [vmem:[#allocation91_spill] sm:$0xff]  ;;  %v8761_v53 = vld [vmem:[#allocation92_spill] sm:$0xff] }
 0x354   :  { %v3916_v51 = vmax.f32 %v8744_v9, %v3867_v6  ;;  %v3917_v63 = vmax.f32 %v8746_v11, %v3868_v58  ;;  %v3918_v15 = vmax.f32 %v8748_v1, %v3869_v18  ;;  %v8754_v6 = vmax.f32 %v8753_v44, 0.0  ;;  %v8763_v44 = vld [vmem:[#allocation93_spill] sm:$0xff] }
 0x355   :  { %v3919_v49 = vmax.f32 %v8750_v10, %v3870_v34  ;;  %v3920_v47 = vmax.f32 %v8752_v22, %v3871_v23  ;;  %v8756_v11 = vmax.f32 %v8755_v5, 0.0  ;;  %v8758_v1 = vmax.f32 %v8757_v24, 0.0  ;;  %v8765_v5 = vld [vmem:[#allocation94_spill] sm:$0xff]  ;;  %v8767_v24 = vld [vmem:[#allocation95_spill] sm:$0xff] }
 0x356   :  { %v3921_v9 = vmax.f32 %v8754_v6, %v3872_v62  ;;  %v8760_v10 = vmax.f32 %v8759_v57, 0.0  ;;  %v8762_v22 = vmax.f32 %v8761_v53, 0.0  ;;  %v8764_v6 = vmax.f32 %v8763_v44, 0.0  ;;  %v8769_v57 = vld [vmem:[#allocation96_spill] sm:$0xff]  ;;  %v8771_v53 = vld [vmem:[#allocation97_spill] sm:$0xff] }
 0x357   :  { %v3922_v58 = vmax.f32 %v8756_v11, %v3873_v48  ;;  %v3923_v18 = vmax.f32 %v8758_v1, %v3874_v30  ;;  %v8766_v11 = vmax.f32 %v8765_v5, 0.0  ;;  %v8768_v1 = vmax.f32 %v8767_v24, 0.0  ;;  %v8773_v44 = vld [vmem:[#allocation5_spill] sm:$0xff] }
 0x358   :  { %v3924_v34 = vmax.f32 %v8760_v10, %v3875_v38  ;;  %v3925_v23 = vmax.f32 %v8762_v22, %v3876_v46  ;;  %v3926_v62 = vmax.f32 %v8764_v6, %v3877_v54  ;;  %v8770_v10 = vmax.f32 %v8769_v57, 0.0  ;;  %v8774_v54 = vld [vmem:[#allocation6_spill] sm:$0xff]  ;;  %v8776_v24 = vld [vmem:[#allocation53_spill] sm:$0xff] }
 0x359   :  { %v3927_v48 = vmax.f32 %v8766_v11, %v3878_v21  ;;  %v3928_v30 = vmax.f32 %v8768_v1, %v3879_v20  ;;  %v8772_v22 = vmax.f32 %v8771_v53, 0.0  ;;  %v7896_v6 = vmax.f32 %v8773_v44, %v3882_v8  ;;  %v8775_v11 = vld [vmem:[#allocation52_spill] sm:$0xff]  ;;  %v8777_v20 = vld [vmem:[#allocation7_spill] sm:$0xff]  ;;  %v8779_v53 = vld [vmem:[#allocation9_spill] sm:$0xff] }
 0x35a   :  { %v3929_v38 = vmax.f32 %v8770_v10, %v3880_v16  ;;  %v7899_v5 = vmax.f32 %v8774_v54, %v3883_v0  ;;  %v7902_v21 = vmax.f32 %v8775_v11, %v3884_v31  ;;  %v7905_v1 = vmax.f32 %v8776_v24, %v3885_v56  ;;  %v8778_v10 = vld [vmem:[#allocation8_spill] sm:$0xff]  ;;  %v8780_v8 = vld [vmem:[#allocation10_spill] sm:$0xff]  ;;  %v8781_v0 = vld [vmem:[#allocation11_spill] sm:$0xff] }
 0x35b   :  { %v3930_v46 = vmax.f32 %v8772_v22, %v3881_v42  ;;  %v7908_v57 = vmax.f32 %v8777_v20, %v3886_v7  ;;  %v7911_v16 = vmax.f32 %v8778_v10, %v3887_v40  ;;  %v7914_v42 = vmax.f32 %v8779_v53, %v3888_v17  ;;  %v8782_v31 = vld [vmem:[#allocation12_spill] sm:$0xff]  ;;  %v8783_v56 = vld [vmem:[#allocation13_spill] sm:$0xff]  ;;  %v8784_v7 = vld [vmem:[#allocation14_spill] sm:$0xff] }
 0x35c   :  { %v7917_v22 = vmax.f32 %v8780_v8, %v3889_v60  ;;  %v7920_v44 = vmax.f32 %v8781_v0, %v3890_v61  ;;  %v7923_v54 = vmax.f32 %v8782_v31, %v3891_v26  ;;  %v7926_v11 = vmax.f32 %v8783_v56, %v3892_v12  ;;  %v8785_v40 = vld [vmem:[#allocation15_spill] sm:$0xff]  ;;  %v8786_v17 = vld [vmem:[#allocation16_spill] sm:$0xff]  ;;  %v8787_v60 = vld [vmem:[#allocation17_spill] sm:$0xff] }
 0x35d   :  { %v7929_v24 = vmax.f32 %v8784_v7, %v3893_v29  ;;  %v7932_v20 = vmax.f32 %v8785_v40, %v3894_v27  ;;  %v7935_v10 = vmax.f32 %v8786_v17, %v3895_v59  ;;  %v7938_v53 = vmax.f32 %v8787_v60, %v3896_v33  ;;  %v8788_v61 = vld [vmem:[#allocation18_spill] sm:$0xff]  ;;  %v8789_v26 = vld [vmem:[#allocation19_spill] sm:$0xff]  ;;  %v8790_v12 = vld [vmem:[#allocation20_spill] sm:$0xff] }
 0x35e   :  { %v7941_v8 = vmax.f32 %v8788_v61, %v3897_v36  ;;  %v7944_v0 = vmax.f32 %v8789_v26, %v3898_v14  ;;  %v7947_v31 = vmax.f32 %v8790_v12, %v3899_v19  ;;  %v8791_v29 = vld [vmem:[#allocation21_spill] sm:$0xff]  ;;  %v8792_v27 = vld [vmem:[#allocation22_spill] sm:$0xff]  ;;  %v8793_v59 = vld [vmem:[#allocation23_spill] sm:$0xff] }
 0x35f   :  { %v7950_v56 = vmax.f32 %v8791_v29, %v3900_v52  ;;  %v7953_v7 = vmax.f32 %v8792_v27, %v3901_v39  ;;  %v7956_v40 = vmax.f32 %v8793_v59, %v3902_v32  ;;  %v8794_v33 = vld [vmem:[#allocation24_spill] sm:$0xff]  ;;  %v8795_v36 = vld [vmem:[#allocation25_spill] sm:$0xff]  ;;  %v8796_v14 = vld [vmem:[#allocation26_spill] sm:$0xff] }
 0x360   :  { %v7959_v17 = vmax.f32 %v8794_v33, %v3903_v4  ;;  %v7962_v60 = vmax.f32 %v8795_v36, %v3904_v55  ;;  %v7965_v61 = vmax.f32 %v8796_v14, %v3905_v25  ;;  %v8797_v19 = vld [vmem:[#allocation27_spill] sm:$0xff]  ;;  %v8798_v52 = vld [vmem:[#allocation28_spill] sm:$0xff]  ;;  %v8799_v39 = vld [vmem:[#allocation29_spill] sm:$0xff] }
 0x361   :  { %v7968_v26 = vmax.f32 %v8797_v19, %v3906_v28  ;;  %v7971_v12 = vmax.f32 %v8798_v52, %v3907_v50  ;;  %v7974_v29 = vmax.f32 %v8799_v39, %v3908_v3  ;;  %v8800_v32 = vld [vmem:[#allocation30_spill] sm:$0xff]  ;;  %v8801_v4 = vld [vmem:[#allocation31_spill] sm:$0xff]  ;;  %v8802_v55 = vld [vmem:[#allocation32_spill] sm:$0xff] }
 0x362   :  { %v7977_v27 = vmax.f32 %v8800_v32, %v3909_v43  ;;  %v7980_v59 = vmax.f32 %v8801_v4, %v3910_v41  ;;  %v7983_v33 = vmax.f32 %v8802_v55, %v3911_v13  ;;  %v8803_v25 = vld [vmem:[#allocation33_spill] sm:$0xff]  ;;  %v8804_v28 = vld [vmem:[#allocation34_spill] sm:$0xff]  ;;  %v8805_v50 = vld [vmem:[#allocation35_spill] sm:$0xff] }
 0x363   :  { %v7986_v36 = vmax.f32 %v8803_v25, %v3912_v37  ;;  %v7989_v14 = vmax.f32 %v8804_v28, %v3913_v2  ;;  %v7992_v19 = vmax.f32 %v8805_v50, %v3914_v35  ;;  %v8806_v3 = vld [vmem:[#allocation36_spill] sm:$0xff]  ;;  %v8807_v43 = vld [vmem:[#allocation37_spill] sm:$0xff]  ;;  %v8808_v41 = vld [vmem:[#allocation38_spill] sm:$0xff] }
 0x364   :  { %v7995_v52 = vmax.f32 %v8806_v3, %v3915_v45  ;;  %v7998_v39 = vmax.f32 %v8807_v43, %v3916_v51  ;;  %v8001_v32 = vmax.f32 %v8808_v41, %v3917_v63  ;;  %v8809_v13 = vld [vmem:[#allocation39_spill] sm:$0xff]  ;;  %v8810_v37 = vld [vmem:[#allocation40_spill] sm:$0xff]  ;;  %v8811_v2 = vld [vmem:[#allocation41_spill] sm:$0xff] }
 0x365   :  { %v8004_v4 = vmax.f32 %v8809_v13, %v3918_v15  ;;  %v8007_v55 = vmax.f32 %v8810_v37, %v3919_v49  ;;  %v8010_v25 = vmax.f32 %v8811_v2, %v3920_v47  ;;  %v8812_v35 = vld [vmem:[#allocation42_spill] sm:$0xff]  ;;  %v8813_v45 = vld [vmem:[#allocation43_spill] sm:$0xff]  ;;  %v8814_v51 = vld [vmem:[#allocation44_spill] sm:$0xff] }
 0x366   :  { %v8013_v28 = vmax.f32 %v8812_v35, %v3921_v9  ;;  %v8016_v50 = vmax.f32 %v8813_v45, %v3922_v58  ;;  %v8019_v3 = vmax.f32 %v8814_v51, %v3923_v18  ;;  %v8815_v63 = vld [vmem:[#allocation45_spill] sm:$0xff]  ;;  %v8816_v15 = vld [vmem:[#allocation46_spill] sm:$0xff]  ;;  %v8817_v49 = vld [vmem:[#allocation47_spill] sm:$0xff] }
 0x367   :  { %v8022_v43 = vmax.f32 %v8815_v63, %v3924_v34  ;;  %v8025_v41 = vmax.f32 %v8816_v15, %v3925_v23  ;;  %v8028_v13 = vmax.f32 %v8817_v49, %v3926_v62  ;;  %v8818_v47 = vld [vmem:[#allocation48_spill] sm:$0xff]  ;;  %v8819_v9 = vld [vmem:[#allocation49_spill] sm:$0xff]  ;;  %v8820_v58 = vld [vmem:[#allocation50_spill] sm:$0xff]  ;;  %v4478_v34 = vpack.c.bf16 %v7896_v6, %v7896_v6 }
 0x368   :  { %v8031_v37 = vmax.f32 %v8818_v47, %v3927_v48  ;;  %v8034_v2 = vmax.f32 %v8819_v9, %v3928_v30  ;;  %v8037_v35 = vmax.f32 %v8820_v58, %v3929_v38  ;;  %v8821_v18 = vld [vmem:[#allocation51_spill] sm:$0xff]  ;;  %v4479_v23 = vpack.c.bf16 %v7899_v5, %v7899_v5 }
 0x369   :  { %v8040_v45 = vmax.f32 %v8821_v18, %v3930_v46  ;;  %v4480_v62 = vpack.c.bf16 %v7902_v21, %v7902_v21  ;;  %v4481_v48 = vpack.c.bf16 %v7905_v1, %v7905_v1  ;;  %v4482_v30 = vpack.c.bf16 %v7908_v57, %v7908_v57  ;;  %4178 = vst.msk [vmem:[%s8340_s4] sm:$0xf] %vm4177_vm4, %v4478_v34 }
 0x36a   :  { %v4483_v38 = vpack.c.bf16 %v7911_v16, %v7911_v16  ;;  %v4484_v46 = vpack.c.bf16 %v7914_v42, %v7914_v42  ;;  %v4485_v6 = vpack.c.bf16 %v7917_v22, %v7917_v22  ;;  %v4486_v5 = vpack.c.bf16 %v7920_v44, %v7920_v44  ;;  %4179 = vst.msk [vmem:[%s8340_s4 + $0x4] sm:$0xf] %vm4177_vm4, %v4479_v23 }
 0x36b   :  { %v4487_v21 = vpack.c.bf16 %v7923_v54, %v7923_v54  ;;  %v4488_v1 = vpack.c.bf16 %v7926_v11, %v7926_v11  ;;  %v4489_v57 = vpack.c.bf16 %v7929_v24, %v7929_v24  ;;  %v4490_v16 = vpack.c.bf16 %v7932_v20, %v7932_v20  ;;  %4180 = vst.msk [vmem:[%s8340_s4 + $0x8] sm:$0xf] %vm4177_vm4, %v4480_v62 }
 0x36c   :  { %v4491_v42 = vpack.c.bf16 %v7935_v10, %v7935_v10  ;;  %v4492_v22 = vpack.c.bf16 %v7938_v53, %v7938_v53  ;;  %v4493_v44 = vpack.c.bf16 %v7941_v8, %v7941_v8  ;;  %v4494_v54 = vpack.c.bf16 %v7944_v0, %v7944_v0  ;;  %4181 = vst.msk [vmem:[%s8340_s4 + $0xc] sm:$0xf] %vm4177_vm4, %v4481_v48 }
 0x36d   :  { %v4495_v11 = vpack.c.bf16 %v7947_v31, %v7947_v31  ;;  %v4496_v24 = vpack.c.bf16 %v7950_v56, %v7950_v56  ;;  %v4497_v20 = vpack.c.bf16 %v7953_v7, %v7953_v7  ;;  %v4498_v10 = vpack.c.bf16 %v7956_v40, %v7956_v40  ;;  %4182 = vst.msk [vmem:[%s8340_s4 + $0x10] sm:$0xf] %vm4177_vm4, %v4482_v30 }
 0x36e   :  { %v4499_v53 = vpack.c.bf16 %v7959_v17, %v7959_v17  ;;  %v4500_v8 = vpack.c.bf16 %v7962_v60, %v7962_v60  ;;  %v4501_v0 = vpack.c.bf16 %v7965_v61, %v7965_v61  ;;  %v4502_v31 = vpack.c.bf16 %v7968_v26, %v7968_v26  ;;  %4183 = vst.msk [vmem:[%s8340_s4 + $0x14] sm:$0xf] %vm4177_vm4, %v4483_v38 }
 0x36f   :  { %v4503_v56 = vpack.c.bf16 %v7971_v12, %v7971_v12  ;;  %v4504_v7 = vpack.c.bf16 %v7974_v29, %v7974_v29  ;;  %v4505_v40 = vpack.c.bf16 %v7977_v27, %v7977_v27  ;;  %v4506_v17 = vpack.c.bf16 %v7980_v59, %v7980_v59  ;;  %4184 = vst.msk [vmem:[%s8340_s4 + $0x18] sm:$0xf] %vm4177_vm4, %v4484_v46 }
 0x370   :  { %v4507_v60 = vpack.c.bf16 %v7983_v33, %v7983_v33  ;;  %v4508_v61 = vpack.c.bf16 %v7986_v36, %v7986_v36  ;;  %v4509_v26 = vpack.c.bf16 %v7989_v14, %v7989_v14  ;;  %v4510_v12 = vpack.c.bf16 %v7992_v19, %v7992_v19  ;;  %4185 = vst.msk [vmem:[%s8340_s4 + $0x1c] sm:$0xf] %vm4177_vm4, %v4485_v6 }
 0x371   :  { %v4511_v29 = vpack.c.bf16 %v7995_v52, %v7995_v52  ;;  %v4512_v27 = vpack.c.bf16 %v7998_v39, %v7998_v39  ;;  %v4513_v59 = vpack.c.bf16 %v8001_v32, %v8001_v32  ;;  %v4514_v33 = vpack.c.bf16 %v8004_v4, %v8004_v4  ;;  %4186 = vst.msk [vmem:[%s8340_s4 + $0x20] sm:$0xf] %vm4177_vm4, %v4486_v5 }
 0x372   :  { %v4515_v36 = vpack.c.bf16 %v8007_v55, %v8007_v55  ;;  %v4516_v14 = vpack.c.bf16 %v8010_v25, %v8010_v25  ;;  %v4517_v19 = vpack.c.bf16 %v8013_v28, %v8013_v28  ;;  %v4518_v52 = vpack.c.bf16 %v8016_v50, %v8016_v50  ;;  %4187 = vst.msk [vmem:[%s8340_s4 + $0x24] sm:$0xf] %vm4177_vm4, %v4487_v21 }
 0x373   :  { %v4519_v39 = vpack.c.bf16 %v8019_v3, %v8019_v3  ;;  %v4520_v32 = vpack.c.bf16 %v8022_v43, %v8022_v43  ;;  %v4521_v4 = vpack.c.bf16 %v8025_v41, %v8025_v41  ;;  %v4522_v55 = vpack.c.bf16 %v8028_v13, %v8028_v13  ;;  %4188 = vst.msk [vmem:[%s8340_s4 + $0x28] sm:$0xf] %vm4177_vm4, %v4488_v1 }
 0x374   :  { %v4523_v25 = vpack.c.bf16 %v8031_v37, %v8031_v37  ;;  %v4524_v28 = vpack.c.bf16 %v8034_v2, %v8034_v2  ;;  %v4525_v50 = vpack.c.bf16 %v8037_v35, %v8037_v35  ;;  %v4526_v51 = vpack.c.bf16 %v8040_v45, %v8040_v45  ;;  %4189 = vst.msk [vmem:[%s8340_s4 + $0x2c] sm:$0xf] %vm4177_vm4, %v4489_v57 }
 0x375   :  { %4190 = vst.msk [vmem:[%s8340_s4 + $0x30] sm:$0xf] %vm4177_vm4, %v4490_v16  ;;  %4191 = vst.msk [vmem:[%s8340_s4 + $0x34] sm:$0xf] %vm4177_vm4, %v4491_v42 }
 0x376   :  { %4192 = vst.msk [vmem:[%s8340_s4 + $0x38] sm:$0xf] %vm4177_vm4, %v4492_v22  ;;  %4193 = vst.msk [vmem:[%s8340_s4 + $0x3c] sm:$0xf] %vm4177_vm4, %v4493_v44 }
 0x377   :  { %4194 = vst.msk [vmem:[%s8340_s4 + $0x40] sm:$0xf] %vm4177_vm4, %v4494_v54  ;;  %4195 = vst.msk [vmem:[%s8340_s4 + $0x44] sm:$0xf] %vm4177_vm4, %v4495_v11 }
 0x378   :  { %4196 = vst.msk [vmem:[%s8340_s4 + $0x48] sm:$0xf] %vm4177_vm4, %v4496_v24  ;;  %4197 = vst.msk [vmem:[%s8340_s4 + $0x4c] sm:$0xf] %vm4177_vm4, %v4497_v20 }
 0x379   :  { %4198 = vst.msk [vmem:[%s8340_s4 + $0x50] sm:$0xf] %vm4177_vm4, %v4498_v10  ;;  %4199 = vst.msk [vmem:[%s8340_s4 + $0x54] sm:$0xf] %vm4177_vm4, %v4499_v53 }
 0x37a   :  { %4200 = vst.msk [vmem:[%s8340_s4 + $0x58] sm:$0xf] %vm4177_vm4, %v4500_v8  ;;  %4201 = vst.msk [vmem:[%s8340_s4 + $0x5c] sm:$0xf] %vm4177_vm4, %v4501_v0 }
 0x37b   :  { %4202 = vst.msk [vmem:[%s8340_s4 + $0x60] sm:$0xf] %vm4177_vm4, %v4502_v31  ;;  %4203 = vst.msk [vmem:[%s8340_s4 + $0x64] sm:$0xf] %vm4177_vm4, %v4503_v56 }
 0x37c   :  { %4204 = vst.msk [vmem:[%s8340_s4 + $0x68] sm:$0xf] %vm4177_vm4, %v4504_v7  ;;  %4205 = vst.msk [vmem:[%s8340_s4 + $0x6c] sm:$0xf] %vm4177_vm4, %v4505_v40 }
 0x37d   :  { %4206 = vst.msk [vmem:[%s8340_s4 + $0x70] sm:$0xf] %vm4177_vm4, %v4506_v17  ;;  %4207 = vst.msk [vmem:[%s8340_s4 + $0x74] sm:$0xf] %vm4177_vm4, %v4507_v60 }
 0x37e   :  { %4208 = vst.msk [vmem:[%s8340_s4 + $0x78] sm:$0xf] %vm4177_vm4, %v4508_v61  ;;  %4209 = vst.msk [vmem:[%s8340_s4 + $0x7c] sm:$0xf] %vm4177_vm4, %v4509_v26 }
 0x37f   :  { %4210 = vst.msk [vmem:[%s8340_s4 + $0x80] sm:$0xf] %vm4177_vm4, %v4510_v12  ;;  %4211 = vst.msk [vmem:[%s8340_s4 + $0x84] sm:$0xf] %vm4177_vm4, %v4511_v29 }
 0x380   :  { %4212 = vst.msk [vmem:[%s8340_s4 + $0x88] sm:$0xf] %vm4177_vm4, %v4512_v27  ;;  %4213 = vst.msk [vmem:[%s8340_s4 + $0x8c] sm:$0xf] %vm4177_vm4, %v4513_v59 }
 0x381   :  { %4214 = vst.msk [vmem:[%s8340_s4 + $0x90] sm:$0xf] %vm4177_vm4, %v4514_v33  ;;  %4215 = vst.msk [vmem:[%s8340_s4 + $0x94] sm:$0xf] %vm4177_vm4, %v4515_v36 }
 0x382   :  { %4216 = vst.msk [vmem:[%s8340_s4 + $0x98] sm:$0xf] %vm4177_vm4, %v4516_v14  ;;  %4217 = vst.msk [vmem:[%s8340_s4 + $0x9c] sm:$0xf] %vm4177_vm4, %v4517_v19 }
 0x383   :  { %4218 = vst.msk [vmem:[%s8340_s4 + $0xa0] sm:$0xf] %vm4177_vm4, %v4518_v52  ;;  %4219 = vst.msk [vmem:[%s8340_s4 + $0xa4] sm:$0xf] %vm4177_vm4, %v4519_v39 }
 0x384   :  { %4220 = vst.msk [vmem:[%s8340_s4 + $0xa8] sm:$0xf] %vm4177_vm4, %v4520_v32  ;;  %4221 = vst.msk [vmem:[%s8340_s4 + $0xac] sm:$0xf] %vm4177_vm4, %v4521_v4 }
 0x385   :  { %4222 = vst.msk [vmem:[%s8340_s4 + $0xb0] sm:$0xf] %vm4177_vm4, %v4522_v55  ;;  %4223 = vst.msk [vmem:[%s8340_s4 + $0xb4] sm:$0xf] %vm4177_vm4, %v4523_v25 }
 0x386   :  { %4224 = vst.msk [vmem:[%s8340_s4 + $0xb8] sm:$0xf] %vm4177_vm4, %v4524_v28  ;;  %4225 = vst.msk [vmem:[%s8340_s4 + $0xbc] sm:$0xf] %vm4177_vm4, %v4525_v50 }
 0x387   :  { %4226 = vst.msk [vmem:[%s8340_s4 + $0xc0] sm:$0xf] %vm4177_vm4, %v4526_v51 }

// kernel: convnet_forward.4
= control target key start
LH: loop header
LB: loop body
LE: loop exit
PB: predicated region body
PF: predicated region fallthrough
CT: control target
= control target key end

     0   :  { %v2628_v0 = vmov 0   ;;  %vm862_vm0 = vcmask 130048   ;;  %vm1461_vm1 = vcmask 261120   ;;  %vm2154_vm2 = vcmask 257024   ;;  %s3971_s1 = inlined_call_operand.vmem [shape: bf16[400,32], index: 1, kind: input, shape index: {}]   ;;  %s3972_s0 = inlined_call_operand.vmem [shape: bf16[448,400], index: 0, kind: input, shape index: {}]   ;;  %s3973_s2 = inlined_call_operand.vmem [shape: f32[1,32], index: 2, kind: input, shape index: {}]   ;;  %s3974_s3 = inlined_call_operand.vmem [shape: f32[1,32], index: 3, kind: input, shape index: {}]   ;;  %s3975_s4 = inlined_call_operand.vmem [shape: bf16[112,32], index: 4, kind: output, shape index: {}]  }
   0x1   :  { %947 = vmatprep.subr.bf16.mxu1 %v2628_v0  ;;  %v2423_v1 = vld [vmem:[%s3971_s1] sm:$0xff]   ;;  %1204 = vmatprep.subr.bf16.mxu0 %v2628_v0  ;;  %v2424_v2 = vld [vmem:[%s3971_s1 + $0x8] sm:$0xff]   ;;  %v2425_v3 = vld [vmem:[%s3971_s1 + $0x10] sm:$0xff]  }
   0x2   :  { %948 = vmatpush1.bf16.msra.mxu1 %v2423_v1  ;;  %v2430_v4 = vld [vmem:[%s3971_s1 + $0x80] sm:$0xff]   ;;  %v2432_v5 = vld [vmem:[%s3971_s1 + $0x88] sm:$0xff]   ;;  %v2426_v6 = vld [vmem:[%s3971_s1 + $0x18] sm:$0xff]  }
   0x3   :  { %949 = vmatprep.subr.bf16.mxu1 %v2628_v0  ;;  %1205 = vmatpush1.bf16.msra.mxu0 %v2430_v4  ;;  %v2434_v7 = vld [vmem:[%s3971_s1 + $0x90] sm:$0xff]   ;;  %v2427_v8 = vld [vmem:[%s3971_s1 + $0x20] sm:$0xff]   ;;  %v2436_v9 = vld [vmem:[%s3971_s1 + $0x98] sm:$0xff]  }
   0x4   :  { %1206 = vmatprep.subr.bf16.mxu0 %v2628_v0  ;;  %v2428_v10 = vld [vmem:[%s3971_s1 + $0x28] sm:$0xff]   ;;  %v2438_v11 = vld [vmem:[%s3971_s1 + $0xa0] sm:$0xff]   ;;  %v2429_v12 = vld [vmem:[%s3971_s1 + $0x30] sm:$0xff]  }
   0x5   :  { %v2440_v13 = vld [vmem:[%s3971_s1 + $0xa8] sm:$0xff]   ;;  %v2431_v15 = vld [vmem:[%s3971_s1 + $0x38] sm:$0xff]   ;;  %v2453_v16 = vld [vmem:[%s3972_s0 + $0x4] ss:$16 sps:$4 sm:$0xff]  }
   0x6   :  { %950 = vmatpush1.bf16.msra.mxu1 %v2424_v2  ;;  %v2449_v14 = vld [vmem:[%s3972_s0 + $0xc] ss:$16 sps:$4 sm:$0xff]   ;;  %v2442_v17 = vld [vmem:[%s3971_s1 + $0xb0] sm:$0xff]   ;;  %979 = vmatprep.mubr.bf16.mxu1 %v2453_v16  ;;  %v2433_v18 = vld [vmem:[%s3971_s1 + $0x40] sm:$0xff]  }
   0x7   :  { %951 = vmatprep.subr.bf16.mxu1 %v2628_v0  ;;  %1207 = vmatpush1.bf16.msra.mxu0 %v2432_v5  ;;  %v2444_v19 = vld [vmem:[%s3971_s1 + $0xb8] sm:$0xff]   ;;  %v2435_v20 = vld [vmem:[%s3971_s1 + $0x48] sm:$0xff]   ;;  %v2446_v21 = vld [vmem:[%s3971_s1 + $0xc0] sm:$0xff]  }
   0x8   :  { %1208 = vmatprep.subr.bf16.mxu0 %v2628_v0  ;;  %2310 = vmatprep.mubr.msk.bf16.mxu0 %vm862_vm0, %v2449_v14  ;;  %v2437_v22 = vld [vmem:[%s3971_s1 + $0x50] sm:$0xff]   ;;  %v2447_v23 = vld [vmem:[%s3972_s0 + $0x8] ss:$16 sps:$4 sm:$0xff]   ;;  %v2454_v24 = vld [vmem:[%s3972_s0 + $0x2c] ss:$16 sps:$4 sm:$0xff]  }
   0x9   :  { %v2439_v25 = vld [vmem:[%s3971_s1 + $0x58] sm:$0xff]   ;;  %v2441_v26 = vld [vmem:[%s3971_s1 + $0x60] sm:$0xff]   ;;  %v2443_v29 = vld [vmem:[%s3971_s1 + $0x68] sm:$0xff]  }
   0xa   :  { %952 = vmatpush1.bf16.msra.mxu1 %v2425_v3  ;;  %v2456_v27 = vld [vmem:[%s3972_s0 + $0x28] ss:$16 sps:$4 sm:$0xff]   ;;  %v2460_v28 = vld [vmem:[%s3972_s0 + $0x4c] ss:$16 sps:$4 sm:$0xff]   ;;  %v2445_v30 = vld [vmem:[%s3971_s1 + $0x70] sm:$0xff]  }
   0xb   :  { %953 = vmatprep.subr.bf16.mxu1 %v2628_v0  ;;  %1209 = vmatpush1.bf16.msra.mxu0 %v2434_v7  ;;  %v2462_v31 = vld [vmem:[%s3972_s0 + $0x48] ss:$16 sps:$4 sm:$0xff]   ;;  %v2466_v32 = vld [vmem:[%s3972_s0 + $0x6c] ss:$16 sps:$4 sm:$0xff]   ;;  %v2451_v34 = vld [vmem:[%s3972_s0] ss:$16 sps:$4 sm:$0xff]  }
   0xc   :  { %1210 = vmatprep.subr.bf16.mxu0 %v2628_v0  ;;  %v2450_v33 = vld [vmem:[%s3971_s1 + $0x78] sm:$0xff]   ;;  %v2457_v35 = vld [vmem:[%s3972_s0 + $0x24] ss:$16 sps:$4 sm:$0xff]   ;;  %v2459_v38 = vld [vmem:[%s3972_s0 + $0x20] ss:$16 sps:$4 sm:$0xff]  }
   0xd   :  { %v2468_v36 = vld [vmem:[%s3972_s0 + $0x68] ss:$16 sps:$4 sm:$0xff]   ;;  %v2472_v37 = vld [vmem:[%s3972_s0 + $0x8c] ss:$16 sps:$4 sm:$0xff]   ;;  %v2463_v39 = vld [vmem:[%s3972_s0 + $0x44] ss:$16 sps:$4 sm:$0xff]  }
   0xe   :  { %954 = vmatpush1.bf16.msra.mxu1 %v2426_v6  ;;  %v2474_v40 = vld [vmem:[%s3972_s0 + $0x88] ss:$16 sps:$4 sm:$0xff]   ;;  %v2478_v41 = vld [vmem:[%s3972_s0 + $0xac] ss:$16 sps:$4 sm:$0xff]   ;;  %v2465_v42 = vld [vmem:[%s3972_s0 + $0x40] ss:$16 sps:$4 sm:$0xff]  }
   0xf   :  { %955 = vmatprep.subr.bf16.mxu1 %v2628_v0  ;;  %1211 = vmatpush1.bf16.msra.mxu0 %v2436_v9  ;;  %v2469_v43 = vld [vmem:[%s3972_s0 + $0x64] ss:$16 sps:$4 sm:$0xff]   ;;  %v2480_v44 = vld [vmem:[%s3972_s0 + $0xa8] ss:$16 sps:$4 sm:$0xff]   ;;  %v2484_v45 = vld [vmem:[%s3972_s0 + $0xcc] ss:$16 sps:$4 sm:$0xff]  }
  0x10   :  { %1212 = vmatprep.subr.bf16.mxu0 %v2628_v0  ;;  %v2471_v46 = vld [vmem:[%s3972_s0 + $0x60] ss:$16 sps:$4 sm:$0xff]   ;;  %v2475_v47 = vld [vmem:[%s3972_s0 + $0x84] ss:$16 sps:$4 sm:$0xff]   ;;  %v2486_v48 = vld [vmem:[%s3972_s0 + $0xc8] ss:$16 sps:$4 sm:$0xff]  }
  0x11   :  { %v2490_v49 = vld [vmem:[%s3972_s0 + $0xec] ss:$16 sps:$4 sm:$0xff]   ;;  %v2477_v50 = vld [vmem:[%s3972_s0 + $0x80] ss:$16 sps:$4 sm:$0xff]   ;;  %v2481_v51 = vld [vmem:[%s3972_s0 + $0xa4] ss:$16 sps:$4 sm:$0xff]  }
  0x12   :  { %956 = vmatpush1.bf16.msra.mxu1 %v2427_v8  ;;  %v2492_v52 = vld [vmem:[%s3972_s0 + $0xe8] ss:$16 sps:$4 sm:$0xff]   ;;  %v2496_v53 = vld [vmem:[%s3972_s0 + $0x10c] ss:$16 sps:$4 sm:$0xff]   ;;  %v2483_v54 = vld [vmem:[%s3972_s0 + $0xa0] ss:$16 sps:$4 sm:$0xff]  }
  0x13   :  { %957 = vmatprep.subr.bf16.mxu1 %v2628_v0  ;;  %1213 = vmatpush1.bf16.msra.mxu0 %v2438_v11  ;;  %v2487_v55 = vld [vmem:[%s3972_s0 + $0xc4] ss:$16 sps:$4 sm:$0xff]   ;;  %v2498_v56 = vld [vmem:[%s3972_s0 + $0x108] ss:$16 sps:$4 sm:$0xff]   ;;  %v2502_v57 = vld [vmem:[%s3972_s0 + $0x12c] ss:$16 sps:$4 sm:$0xff]  }
  0x14   :  { %1214 = vmatprep.subr.bf16.mxu0 %v2628_v0  ;;  %v2489_v58 = vld [vmem:[%s3972_s0 + $0xc0] ss:$16 sps:$4 sm:$0xff]   ;;  %v2493_v59 = vld [vmem:[%s3972_s0 + $0xe4] ss:$16 sps:$4 sm:$0xff]   ;;  %v2504_v60 = vld [vmem:[%s3972_s0 + $0x128] ss:$16 sps:$4 sm:$0xff]  }
  0x15   :  { %v2508_v61 = vld [vmem:[%s3972_s0 + $0x14c] ss:$16 sps:$4 sm:$0xff]   ;;  %v2495_v62 = vld [vmem:[%s3972_s0 + $0xe0] ss:$16 sps:$4 sm:$0xff]   ;;  %v2499_v63 = vld [vmem:[%s3972_s0 + $0x104] ss:$16 sps:$4 sm:$0xff]  }
  0x16   :  { %958 = vmatpush1.bf16.msra.mxu1 %v2428_v10  ;;  %v2514_v1 = vld [vmem:[%s3972_s0 + $0x16c] ss:$16 sps:$4 sm:$0xff]   ;;  %v2501_v2 = vld [vmem:[%s3972_s0 + $0x100] ss:$16 sps:$4 sm:$0xff]   ;;  %v2505_v3 = vld [vmem:[%s3972_s0 + $0x124] ss:$16 sps:$4 sm:$0xff]  }
  0x17   :  { %959 = vmatprep.subr.bf16.mxu1 %v2628_v0  ;;  %1215 = vmatpush1.bf16.msra.mxu0 %v2440_v13  ;;  %v2516_v4 = vld [vmem:[%s3972_s0 + $0x168] ss:$16 sps:$4 sm:$0xff]   ;;  %v2520_v5 = vld [vmem:[%s3972_s0 + $0x18c] ss:$16 sps:$4 sm:$0xff]   ;;  %v2507_v6 = vld [vmem:[%s3972_s0 + $0x120] ss:$16 sps:$4 sm:$0xff]  }
  0x18   :  { %1216 = vmatprep.subr.bf16.mxu0 %v2628_v0  ;;  %v2511_v7 = vld [vmem:[%s3972_s0 + $0x144] ss:$16 sps:$4 sm:$0xff]   ;;  %v2522_v8 = vld [vmem:[%s3972_s0 + $0x188] ss:$16 sps:$4 sm:$0xff]   ;;  %v2526_v9 = vld [vmem:[%s3972_s0 + $0x1ac] ss:$16 sps:$4 sm:$0xff]  }
  0x19   :  { %v2513_v10 = vld [vmem:[%s3972_s0 + $0x140] ss:$16 sps:$4 sm:$0xff]   ;;  %v2517_v11 = vld [vmem:[%s3972_s0 + $0x164] ss:$16 sps:$4 sm:$0xff]   ;;  %v2532_v13 = vld [vmem:[%s3972_s0 + $0x1cc] ss:$16 sps:$4 sm:$0xff]  }
  0x1a   :  { %960 = vmatpush1.bf16.msra.mxu1 %v2429_v12  ;;  %v2528_v12 = vld [vmem:[%s3972_s0 + $0x1a8] ss:$16 sps:$4 sm:$0xff]   ;;  %v2519_v14 = vld [vmem:[%s3972_s0 + $0x160] ss:$16 sps:$4 sm:$0xff]  }
  0x1b   :  { %961 = vmatprep.subr.bf16.mxu1 %v2628_v0  ;;  %1217 = vmatpush1.bf16.msra.mxu0 %v2442_v17  ;;  %v2534_v16 = vld [vmem:[%s3972_s0 + $0x1c8] ss:$16 sps:$4 sm:$0xff]   ;;  %v2538_v17 = vld [vmem:[%s3972_s0 + $0x1ec] ss:$16 sps:$4 sm:$0xff]  }
  0x1c   :  { %1218 = vmatprep.subr.bf16.mxu0 %v2628_v0 }
  0x1e   :  { %962 = vmatpush1.bf16.msra.mxu1 %v2431_v15  ;;  %v2523_v15 = vld [vmem:[%s3972_s0 + $0x184] ss:$16 sps:$4 sm:$0xff]  }
  0x1f   :  { %963 = vmatprep.subr.bf16.mxu1 %v2628_v0  ;;  %1219 = vmatpush1.bf16.msra.mxu0 %v2444_v19  ;;  %v2529_v19 = vld [vmem:[%s3972_s0 + $0x1a4] ss:$16 sps:$4 sm:$0xff]  }
  0x20   :  { %1220 = vmatprep.subr.bf16.mxu0 %v2628_v0 }
  0x22   :  { %964 = vmatpush1.bf16.msra.mxu1 %v2433_v18  ;;  %v2525_v18 = vld [vmem:[%s3972_s0 + $0x180] ss:$16 sps:$4 sm:$0xff]  }
  0x23   :  { %965 = vmatprep.subr.bf16.mxu1 %v2628_v0  ;;  %1221 = vmatpush1.bf16.msra.mxu0 %v2446_v21  ;;  %v2544_v21 = vld [vmem:[%s3972_s0 + $0x20c] ss:$16 sps:$4 sm:$0xff]  }
  0x26   :  { %966 = vmatpush1.bf16.msra.mxu1 %v2435_v20  ;;  %1237 = vmatmul.mubr.bf16.vlgmr.msra.gmra.mrb[0].mxu0 %v2447_v23  ;;  %v2540_v20 = vld [vmem:[%s3972_s0 + $0x1e8] ss:$16 sps:$4 sm:$0xff]   ;;  %v2535_v23 = vld [vmem:[%s3972_s0 + $0x1c4] ss:$16 sps:$4 sm:$0xff]  }
  0x27   :  { %967 = vmatprep.subr.bf16.mxu1 %v2628_v0  ;;  %2311 = vmatprep.mubr.msk.bf16.mxu0 %vm862_vm0, %v2454_v24  ;;  %v2546_v24 = vld [vmem:[%s3972_s0 + $0x208] ss:$16 sps:$4 sm:$0xff]  }
  0x2a   :  { %968 = vmatpush1.bf16.msra.mxu1 %v2437_v22  ;;  %v2531_v22 = vld [vmem:[%s3972_s0 + $0x1a0] ss:$16 sps:$4 sm:$0xff]  }
  0x2b   :  { %969 = vmatprep.subr.bf16.mxu1 %v2628_v0 }
  0x2e   :  { %970 = vmatpush1.bf16.msra.mxu1 %v2439_v25  ;;  %1245 = vmatmul.mubr.bf16.gmra.mrb[4].mxu0 %v2456_v27  ;;  %v2550_v25 = vld [vmem:[%s3972_s0 + $0x22c] ss:$16 sps:$4 sm:$0xff]   ;;  %v2541_v27 = vld [vmem:[%s3972_s0 + $0x1e4] ss:$16 sps:$4 sm:$0xff]  }
  0x2f   :  { %971 = vmatprep.subr.bf16.mxu1 %v2628_v0  ;;  %2312 = vmatprep.mubr.msk.bf16.mxu0 %vm862_vm0, %v2460_v28  ;;  %v2552_v28 = vld [vmem:[%s3972_s0 + $0x228] ss:$16 sps:$4 sm:$0xff]  }
  0x32   :  { %972 = vmatpush1.bf16.msra.mxu1 %v2441_v26  ;;  %v2537_v26 = vld [vmem:[%s3972_s0 + $0x1c0] ss:$16 sps:$4 sm:$0xff]  }
  0x33   :  { %973 = vmatprep.subr.bf16.mxu1 %v2628_v0 }
  0x36   :  { %974 = vmatpush1.bf16.msra.mxu1 %v2443_v29  ;;  %1253 = vmatmul.mubr.bf16.gmra.mrb[8].mxu0 %v2462_v31  ;;  %v2556_v29 = vld [vmem:[%s3972_s0 + $0x24c] ss:$16 sps:$4 sm:$0xff]   ;;  %v2547_v31 = vld [vmem:[%s3972_s0 + $0x204] ss:$16 sps:$4 sm:$0xff]  }
  0x37   :  { %975 = vmatprep.subr.bf16.mxu1 %v2628_v0  ;;  %2313 = vmatprep.mubr.msk.bf16.mxu0 %vm862_vm0, %v2466_v32  ;;  %v2558_v32 = vld [vmem:[%s3972_s0 + $0x248] ss:$16 sps:$4 sm:$0xff]  }
  0x3a   :  { %976 = vmatpush1.bf16.msra.mxu1 %v2445_v30  ;;  %v2543_v30 = vld [vmem:[%s3972_s0 + $0x1e0] ss:$16 sps:$4 sm:$0xff]  }
  0x3b   :  { %977 = vmatprep.subr.bf16.mxu1 %v2628_v0  ;;  %v2510_v0 = vld [vmem:[%s3972_s0 + $0x148] ss:$16 sps:$4 sm:$0xff]  }
  0x3e   :  { %978 = vmatpush1.bf16.msra.mxu1 %v2450_v33  ;;  %1261 = vmatmul.mubr.bf16.gmra.mrb[12].mxu0 %v2468_v36  ;;  %v2562_v33 = vld [vmem:[%s3972_s0 + $0x26c] ss:$16 sps:$4 sm:$0xff]   ;;  %v2564_v36 = vld [vmem:[%s3972_s0 + $0x268] ss:$16 sps:$4 sm:$0xff]  }
  0x3f   :  { %2314 = vmatprep.mubr.msk.bf16.mxu0 %vm862_vm0, %v2472_v37  ;;  %v2568_v37 = vld [vmem:[%s3972_s0 + $0x28c] ss:$16 sps:$4 sm:$0xff]  }
  0x41   :  { %980 = vmatmul.mubr.bf16.vlgmr.msra.gmra.mrb[0].mxu1 %v2451_v34  ;;  %v2549_v34 = vld [vmem:[%s3972_s0 + $0x200] ss:$16 sps:$4 sm:$0xff]  }
  0x42   :  { %987 = vmatprep.mubr.bf16.mxu1 %v2457_v35  ;;  %v2553_v35 = vld [vmem:[%s3972_s0 + $0x224] ss:$16 sps:$4 sm:$0xff]  }
  0x46   :  { %1269 = vmatmul.mubr.bf16.gmra.mrb[16].mxu0 %v2474_v40  ;;  %v2570_v40 = vld [vmem:[%s3972_s0 + $0x288] ss:$16 sps:$4 sm:$0xff]  }
  0x47   :  { %2315 = vmatprep.mubr.msk.bf16.mxu0 %vm862_vm0, %v2478_v41  ;;  %v2574_v41 = vld [vmem:[%s3972_s0 + $0x2ac] ss:$16 sps:$4 sm:$0xff]  }
  0x49   :  { %988 = vmatmul.mubr.bf16.gmra.mrb[4].mxu1 %v2459_v38  ;;  %v2555_v38 = vld [vmem:[%s3972_s0 + $0x220] ss:$16 sps:$4 sm:$0xff]  }
  0x4a   :  { %995 = vmatprep.mubr.bf16.mxu1 %v2463_v39  ;;  %v2559_v39 = vld [vmem:[%s3972_s0 + $0x244] ss:$16 sps:$4 sm:$0xff]  }
  0x4e   :  { %1277 = vmatmul.mubr.bf16.gmra.mrb[20].mxu0 %v2480_v44  ;;  %v2576_v44 = vld [vmem:[%s3972_s0 + $0x2a8] ss:$16 sps:$4 sm:$0xff]  }
  0x4f   :  { %2316 = vmatprep.mubr.msk.bf16.mxu0 %vm862_vm0, %v2484_v45  ;;  %v2580_v45 = vld [vmem:[%s3972_s0 + $0x2cc] ss:$16 sps:$4 sm:$0xff]  }
  0x51   :  { %996 = vmatmul.mubr.bf16.gmra.mrb[8].mxu1 %v2465_v42  ;;  %v2561_v42 = vld [vmem:[%s3972_s0 + $0x240] ss:$16 sps:$4 sm:$0xff]  }
  0x52   :  { %1003 = vmatprep.mubr.bf16.mxu1 %v2469_v43  ;;  %v2565_v43 = vld [vmem:[%s3972_s0 + $0x264] ss:$16 sps:$4 sm:$0xff]  }
  0x56   :  { %1285 = vmatmul.mubr.bf16.gmra.mrb[24].mxu0 %v2486_v48  ;;  %v2582_v48 = vld [vmem:[%s3972_s0 + $0x2c8] ss:$16 sps:$4 sm:$0xff]  }
  0x57   :  { %2317 = vmatprep.mubr.msk.bf16.mxu0 %vm862_vm0, %v2490_v49  ;;  %v2586_v49 = vld [vmem:[%s3972_s0 + $0x2ec] ss:$16 sps:$4 sm:$0xff]  }
  0x59   :  { %1004 = vmatmul.mubr.bf16.gmra.mrb[12].mxu1 %v2471_v46  ;;  %v2567_v46 = vld [vmem:[%s3972_s0 + $0x260] ss:$16 sps:$4 sm:$0xff]  }
  0x5a   :  { %1011 = vmatprep.mubr.bf16.mxu1 %v2475_v47  ;;  %v2571_v47 = vld [vmem:[%s3972_s0 + $0x284] ss:$16 sps:$4 sm:$0xff]  }
  0x5e   :  { %1293 = vmatmul.mubr.bf16.gmra.mrb[28].mxu0 %v2492_v52  ;;  %v2588_v52 = vld [vmem:[%s3972_s0 + $0x2e8] ss:$16 sps:$4 sm:$0xff]  }
  0x5f   :  { %2318 = vmatprep.mubr.msk.bf16.mxu0 %vm862_vm0, %v2496_v53  ;;  %v2592_v53 = vld [vmem:[%s3972_s0 + $0x30c] ss:$16 sps:$4 sm:$0xff]  }
  0x61   :  { %1012 = vmatmul.mubr.bf16.gmra.mrb[16].mxu1 %v2477_v50  ;;  %v2573_v50 = vld [vmem:[%s3972_s0 + $0x280] ss:$16 sps:$4 sm:$0xff]  }
  0x62   :  { %1019 = vmatprep.mubr.bf16.mxu1 %v2481_v51  ;;  %v2577_v51 = vld [vmem:[%s3972_s0 + $0x2a4] ss:$16 sps:$4 sm:$0xff]  }
  0x66   :  { %1301 = vmatmul.mubr.bf16.gmra.mrb[32].mxu0 %v2498_v56  ;;  %v2594_v56 = vld [vmem:[%s3972_s0 + $0x308] ss:$16 sps:$4 sm:$0xff]  }
  0x67   :  { %2319 = vmatprep.mubr.msk.bf16.mxu0 %vm862_vm0, %v2502_v57  ;;  %v2598_v57 = vld [vmem:[%s3972_s0 + $0x32c] ss:$16 sps:$4 sm:$0xff]  }
  0x69   :  { %1020 = vmatmul.mubr.bf16.gmra.mrb[20].mxu1 %v2483_v54  ;;  %v2579_v54 = vld [vmem:[%s3972_s0 + $0x2a0] ss:$16 sps:$4 sm:$0xff]  }
  0x6a   :  { %1027 = vmatprep.mubr.bf16.mxu1 %v2487_v55  ;;  %v2583_v55 = vld [vmem:[%s3972_s0 + $0x2c4] ss:$16 sps:$4 sm:$0xff]  }
  0x6e   :  { %1309 = vmatmul.mubr.bf16.gmra.mrb[36].mxu0 %v2504_v60  ;;  %v2600_v60 = vld [vmem:[%s3972_s0 + $0x328] ss:$16 sps:$4 sm:$0xff]  }
  0x6f   :  { %2320 = vmatprep.mubr.msk.bf16.mxu0 %vm862_vm0, %v2508_v61  ;;  %v2604_v61 = vld [vmem:[%s3972_s0 + $0x34c] ss:$16 sps:$4 sm:$0xff]  }
  0x71   :  { %1028 = vmatmul.mubr.bf16.gmra.mrb[24].mxu1 %v2489_v58  ;;  %v2585_v58 = vld [vmem:[%s3972_s0 + $0x2c0] ss:$16 sps:$4 sm:$0xff]  }
  0x72   :  { %1035 = vmatprep.mubr.bf16.mxu1 %v2493_v59  ;;  %v2589_v59 = vld [vmem:[%s3972_s0 + $0x2e4] ss:$16 sps:$4 sm:$0xff]  }
  0x76   :  { %1317 = vmatmul.mubr.bf16.gmra.mrb[40].mxu0 %v2510_v0  ;;  %v2606_v0 = vld [vmem:[%s3972_s0 + $0x348] ss:$16 sps:$4 sm:$0xff]  }
  0x77   :  { %2321 = vmatprep.mubr.msk.bf16.mxu0 %vm862_vm0, %v2514_v1  ;;  %v2610_v1 = vld [vmem:[%s3972_s0 + $0x36c] ss:$16 sps:$4 sm:$0xff]  }
  0x79   :  { %1036 = vmatmul.mubr.bf16.gmra.mrb[28].mxu1 %v2495_v62  ;;  %v2591_v62 = vld [vmem:[%s3972_s0 + $0x2e0] ss:$16 sps:$4 sm:$0xff]  }
  0x7a   :  { %1043 = vmatprep.mubr.bf16.mxu1 %v2499_v63  ;;  %v2595_v63 = vld [vmem:[%s3972_s0 + $0x304] ss:$16 sps:$4 sm:$0xff]  }
  0x7e   :  { %1325 = vmatmul.mubr.bf16.gmra.mrb[44].mxu0 %v2516_v4  ;;  %v129_v4 = vld [vmem:[%s3972_s0 + $0x378] sm:$0xff] }
  0x7f   :  { %2322 = vmatprep.mubr.msk.bf16.mxu0 %vm862_vm0, %v2520_v5  ;;  %v2601_v5 = vld [vmem:[%s3972_s0 + $0x324] ss:$16 sps:$4 sm:$0xff]  }
  0x81   :  { %1044 = vmatmul.mubr.bf16.gmra.mrb[32].mxu1 %v2501_v2  ;;  %v2597_v2 = vld [vmem:[%s3972_s0 + $0x300] ss:$16 sps:$4 sm:$0xff]  }
  0x82   :  { %1051 = vmatprep.mubr.bf16.mxu1 %v2505_v3  ;;  %v127_v3 = vld [vmem:[%s3972_s0 + $0x368] sm:$0xff] }
  0x86   :  { %1333 = vmatmul.mubr.bf16.gmra.mrb[48].mxu0 %v2522_v8  ;;  %v2283_v8 = vcombine.low %v127_v3, %v129_v4 }
  0x87   :  { %2323 = vmatprep.mubr.msk.bf16.mxu0 %vm862_vm0, %v2526_v9 }
  0x89   :  { %1052 = vmatmul.mubr.bf16.gmra.mrb[36].mxu1 %v2507_v6 }
  0x8a   :  { %1059 = vmatprep.mubr.bf16.mxu1 %v2511_v7 }
  0x8e   :  { %1341 = vmatmul.mubr.bf16.gmra.mrb[52].mxu0 %v2528_v12  ;;  %v2607_v12 = vld [vmem:[%s3972_s0 + $0x344] ss:$16 sps:$4 sm:$0xff]  }
  0x8f   :  { %2324 = vmatprep.mubr.msk.bf16.mxu0 %vm862_vm0, %v2532_v13 }
  0x91   :  { %1060 = vmatmul.mubr.bf16.gmra.mrb[40].mxu1 %v2513_v10 }
  0x92   :  { %1067 = vmatprep.mubr.bf16.mxu1 %v2517_v11  ;;  %v2603_v11 = vld [vmem:[%s3972_s0 + $0x320] ss:$16 sps:$4 sm:$0xff]  }
  0x96   :  { %1349 = vmatmul.mubr.bf16.gmra.mrb[56].mxu0 %v2534_v16 }
  0x97   :  { %2325 = vmatprep.mubr.msk.bf16.mxu0 %vm862_vm0, %v2538_v17  ;;  %v2609_v17 = vld [vmem:[%s3972_s0 + $0x340] ss:$16 sps:$4 sm:$0xff]  }
  0x99   :  { %1068 = vmatmul.mubr.bf16.gmra.mrb[44].mxu1 %v2519_v14 }
  0x9a   :  { %1075 = vmatprep.mubr.bf16.mxu1 %v2523_v15 }
  0x9e   :  { %1357 = vmatmul.mubr.bf16.gmra.mrb[60].mxu0 %v2540_v20 }
  0x9f   :  { %2326 = vmatprep.mubr.msk.bf16.mxu0 %vm862_vm0, %v2544_v21 }
  0xa1   :  { %1076 = vmatmul.mubr.bf16.gmra.mrb[48].mxu1 %v2525_v18  ;;  %v2612_v18 = vld [vmem:[%s3972_s0 + $0x364] ss:$16 sps:$4 sm:$0xff]  }
  0xa2   :  { %1083 = vmatprep.mubr.bf16.mxu1 %v2529_v19 }
  0xa6   :  { %1365 = vmatmul.mubr.bf16.gmra.mrb[64].mxu0 %v2546_v24 }
  0xa7   :  { %2327 = vmatprep.mubr.msk.bf16.mxu0 %vm862_vm0, %v2550_v25 }
  0xa9   :  { %1084 = vmatmul.mubr.bf16.gmra.mrb[52].mxu1 %v2531_v22 }
  0xaa   :  { %1091 = vmatprep.mubr.bf16.mxu1 %v2535_v23 }
  0xae   :  { %1373 = vmatmul.mubr.bf16.gmra.mrb[68].mxu0 %v2552_v28 }
  0xaf   :  { %2328 = vmatprep.mubr.msk.bf16.mxu0 %vm862_vm0, %v2556_v29 }
  0xb1   :  { %1092 = vmatmul.mubr.bf16.gmra.mrb[56].mxu1 %v2537_v26  ;;  %v2614_v26 = vld [vmem:[%s3972_s0 + $0x360] ss:$16 sps:$4 sm:$0xff]  }
  0xb2   :  { %1099 = vmatprep.mubr.bf16.mxu1 %v2541_v27 }
  0xb6   :  { %1381 = vmatmul.mubr.bf16.gmra.mrb[72].mxu0 %v2558_v32 }
  0xb7   :  { %2329 = vmatprep.mubr.msk.bf16.mxu0 %vm862_vm0, %v2562_v33 }
  0xb9   :  { %1100 = vmatmul.mubr.bf16.gmra.mrb[60].mxu1 %v2543_v30 }
  0xba   :  { %1107 = vmatprep.mubr.bf16.mxu1 %v2547_v31 }
  0xbe   :  { %1389 = vmatmul.mubr.bf16.gmra.mrb[76].mxu0 %v2564_v36 }
  0xbf   :  { %2330 = vmatprep.mubr.msk.bf16.mxu0 %vm862_vm0, %v2568_v37 }
  0xc1   :  { %1108 = vmatmul.mubr.bf16.gmra.mrb[64].mxu1 %v2549_v34 }
  0xc2   :  { %1115 = vmatprep.mubr.bf16.mxu1 %v2553_v35 }
  0xc6   :  { %1397 = vmatmul.mubr.bf16.gmra.mrb[80].mxu0 %v2570_v40 }
  0xc7   :  { %2331 = vmatprep.mubr.msk.bf16.mxu0 %vm862_vm0, %v2574_v41 }
  0xc9   :  { %1116 = vmatmul.mubr.bf16.gmra.mrb[68].mxu1 %v2555_v38 }
  0xca   :  { %1123 = vmatprep.mubr.bf16.mxu1 %v2559_v39 }
  0xce   :  { %1405 = vmatmul.mubr.bf16.gmra.mrb[84].mxu0 %v2576_v44 }
  0xcf   :  { %2332 = vmatprep.mubr.msk.bf16.mxu0 %vm862_vm0, %v2580_v45 }
  0xd1   :  { %1124 = vmatmul.mubr.bf16.gmra.mrb[72].mxu1 %v2561_v42 }
  0xd2   :  { %1131 = vmatprep.mubr.bf16.mxu1 %v2565_v43 }
  0xd6   :  { %1413 = vmatmul.mubr.bf16.gmra.mrb[88].mxu0 %v2582_v48 }
  0xd7   :  { %2333 = vmatprep.mubr.msk.bf16.mxu0 %vm862_vm0, %v2586_v49 }
  0xd9   :  { %1132 = vmatmul.mubr.bf16.gmra.mrb[76].mxu1 %v2567_v46 }
  0xda   :  { %1139 = vmatprep.mubr.bf16.mxu1 %v2571_v47 }
  0xde   :  { %1421 = vmatmul.mubr.bf16.gmra.mrb[92].mxu0 %v2588_v52 }
  0xdf   :  { %2334 = vmatprep.mubr.msk.bf16.mxu0 %vm862_vm0, %v2592_v53 }
  0xe1   :  { %1140 = vmatmul.mubr.bf16.gmra.mrb[80].mxu1 %v2573_v50 }
  0xe2   :  { %1147 = vmatprep.mubr.bf16.mxu1 %v2577_v51 }
  0xe6   :  { %1429 = vmatmul.mubr.bf16.gmra.mrb[96].mxu0 %v2594_v56 }
  0xe7   :  { %2335 = vmatprep.mubr.msk.bf16.mxu0 %vm862_vm0, %v2598_v57 }
  0xe9   :  { %1148 = vmatmul.mubr.bf16.gmra.mrb[84].mxu1 %v2579_v54 }
  0xea   :  { %1155 = vmatprep.mubr.bf16.mxu1 %v2583_v55 }
  0xee   :  { %1437 = vmatmul.mubr.bf16.gmra.mrb[100].mxu0 %v2600_v60 }
  0xef   :  { %2336 = vmatprep.mubr.msk.bf16.mxu0 %vm862_vm0, %v2604_v61 }
  0xf1   :  { %1156 = vmatmul.mubr.bf16.gmra.mrb[88].mxu1 %v2585_v58 }
  0xf2   :  { %1163 = vmatprep.mubr.bf16.mxu1 %v2589_v59 }
  0xf6   :  { %1445 = vmatmul.mubr.bf16.gmra.mrb[104].mxu0 %v2606_v0 }
  0xf7   :  { %2337 = vmatprep.mubr.msk.bf16.mxu0 %vm862_vm0, %v2610_v1 }
  0xf9   :  { %1164 = vmatmul.mubr.bf16.gmra.mrb[92].mxu1 %v2591_v62  ;;  %v1238_v6 = vpop.f32.mrb[0].mxu0 }
  0xfa   :  { %1171 = vmatprep.mubr.bf16.mxu1 %v2595_v63  ;;  %v1240_v7 = vpop.f32.mrb[1].mxu0 }
  0xfb   :  { %v1241_v9 = vpop.f32.mrb[2].mxu0 }
  0xfc   :  { %v1243_v10 = vpop.f32.mrb[3].mxu0 }
  0xfe   :  { %1453 = vmatmul.mubr.bf16.gmra.mrb[108].mxu0 %v2283_v8 }
 0x101   :  { %1172 = vmatmul.mubr.bf16.gmra.mrb[96].mxu1 %v2597_v2  ;;  %v1246_v13 = vpop.f32.mrb[4].mxu0 }
 0x102   :  { %1179 = vmatprep.mubr.bf16.mxu1 %v2601_v5  ;;  %v1248_v14 = vpop.f32.mrb[5].mxu0 }
 0x103   :  { %v1249_v15 = vpop.f32.mrb[6].mxu0 }
 0x104   :  { %v1251_v16 = vpop.f32.mrb[7].mxu0 }
 0x109   :  { %1180 = vmatmul.mubr.bf16.gmra.mrb[100].mxu1 %v2603_v11  ;;  %v1254_v19 = vpop.f32.mrb[8].mxu0 }
 0x10a   :  { %1187 = vmatprep.mubr.bf16.mxu1 %v2607_v12  ;;  %v1256_v20 = vpop.f32.mrb[9].mxu0 }
 0x10b   :  { %v1257_v21 = vpop.f32.mrb[10].mxu0 }
 0x10c   :  { %v1259_v22 = vpop.f32.mrb[11].mxu0 }
 0x111   :  { %1188 = vmatmul.mubr.bf16.gmra.mrb[104].mxu1 %v2609_v17  ;;  %v1262_v30 = vpop.f32.mrb[12].mxu0 }
 0x112   :  { %1195 = vmatprep.mubr.bf16.mxu1 %v2612_v18  ;;  %v1264_v31 = vpop.f32.mrb[13].mxu0 }
 0x113   :  { %v1265_v32 = vpop.f32.mrb[14].mxu0 }
 0x114   :  { %v981_v23 = vpop.f32.mrb[0].mxu1  ;;  %v1267_v33 = vpop.f32.mrb[15].mxu0 }
 0x115   :  { %v1239_v24 = vadd.f32 %v1238_v6, %v981_v23  ;;  %v983_v25 = vpop.f32.mrb[1].mxu1 }
 0x116   :  { %v984_v27 = vpop.f32.mrb[2].mxu1 }
 0x117   :  { %1462 = vst.msk [vmem:[#allocation2] sm:$0xff] %vm1461_vm1, %v1239_v24  ;;  %v1242_v28 = vadd.f32 %v1241_v9, %v984_v27  ;;  %v986_v29 = vpop.f32.mrb[3].mxu1 }
 0x119   :  { %1463 = vst.msk [vmem:[#allocation2 + $0x8] sm:$0xff] %vm1461_vm1, %v1242_v28  ;;  %1196 = vmatmul.mubr.bf16.gmra.mrb[108].mxu1 %v2614_v26  ;;  %v1270_v40 = vpop.f32.mrb[16].mxu0 }
 0x11a   :  { %v1272_v41 = vpop.f32.mrb[17].mxu0 }
 0x11b   :  { %v1273_v42 = vpop.f32.mrb[18].mxu0 }
 0x11c   :  { %v989_v34 = vpop.f32.mrb[4].mxu1  ;;  %v1275_v43 = vpop.f32.mrb[19].mxu0 }
 0x11d   :  { %v1247_v35 = vadd.f32 %v1246_v13, %v989_v34  ;;  %v991_v36 = vpop.f32.mrb[5].mxu1 }
 0x11e   :  { %v992_v37 = vpop.f32.mrb[6].mxu1  ;;  %v1518_v41 = vld [vmem:[#allocation2] sm:$0xff] }
 0x11f   :  { %1464 = vst.msk [vmem:[#allocation2 + $0x10] sm:$0xff] %vm1461_vm1, %v1247_v35  ;;  %v1250_v38 = vadd.f32 %v1249_v15, %v992_v37  ;;  %v994_v39 = vpop.f32.mrb[7].mxu1 }
 0x120   :  { %v1519_v39 = vld [vmem:[#allocation2 + $0x8] sm:$0xff] }
 0x121   :  { %1465 = vst.msk [vmem:[#allocation2 + $0x18] sm:$0xff] %vm1461_vm1, %v1250_v38  ;;  %v1278_v50 = vpop.f32.mrb[20].mxu0 }
 0x122   :  { %v1280_v51 = vpop.f32.mrb[21].mxu0 }
 0x123   :  { %v1281_v52 = vpop.f32.mrb[22].mxu0 }
 0x124   :  { %v997_v44 = vpop.f32.mrb[8].mxu1  ;;  %v1283_v53 = vpop.f32.mrb[23].mxu0 }
 0x125   :  { %v1255_v45 = vadd.f32 %v1254_v19, %v997_v44  ;;  %v999_v46 = vpop.f32.mrb[9].mxu1  ;;  %v1693_v44 = vmul.f32 %v1519_v39, %v1519_v39 }
 0x126   :  { %v1000_v47 = vpop.f32.mrb[10].mxu1 }
 0x127   :  { %1466 = vst.msk [vmem:[#allocation2 + $0x20] sm:$0xff] %vm1461_vm1, %v1255_v45  ;;  %v1258_v48 = vadd.f32 %v1257_v21, %v1000_v47  ;;  %v1002_v49 = vpop.f32.mrb[11].mxu1 }
 0x128   :  { %v1575_v49 = vsel %vm1461_vm1, %v1519_v39, 0.0 }
 0x129   :  { %1467 = vst.msk [vmem:[#allocation2 + $0x28] sm:$0xff] %vm1461_vm1, %v1258_v48  ;;  %v1286_v60 = vpop.f32.mrb[24].mxu0  ;;  %v1692_v48 = vmul.f32 %v1518_v41, %v1518_v41 }
 0x12a   :  { %v1288_v61 = vpop.f32.mrb[25].mxu0 }
 0x12b   :  { %v1289_v62 = vpop.f32.mrb[26].mxu0 }
 0x12c   :  { %v1005_v54 = vpop.f32.mrb[12].mxu1  ;;  %v1291_v63 = vpop.f32.mrb[27].mxu0 }
 0x12d   :  { %v1263_v55 = vadd.f32 %v1262_v30, %v1005_v54  ;;  %v1007_v56 = vpop.f32.mrb[13].mxu1  ;;  %v1521_v54 = vld [vmem:[#allocation2 + $0x18] sm:$0xff]  ;;  %v1748_v63 = vsel %vm1461_vm1, %v1692_v48, 0.0 }
 0x12e   :  { %v1008_v57 = vpop.f32.mrb[14].mxu1  ;;  %v1574_v56 = vsel %vm1461_vm1, %v1518_v41, 0.0  ;;  %v1522_v61 = vld [vmem:[#allocation2 + $0x20] sm:$0xff] }
 0x12f   :  { %1468 = vst.msk [vmem:[#allocation2 + $0x30] sm:$0xff] %vm1461_vm1, %v1263_v55  ;;  %v1266_v58 = vadd.f32 %v1265_v32, %v1008_v57  ;;  %v1010_v59 = vpop.f32.mrb[15].mxu1  ;;  %v1749_v57 = vsel %vm1461_vm1, %v1693_v44, 0.0 }
 0x131   :  { %1469 = vst.msk [vmem:[#allocation2 + $0x38] sm:$0xff] %vm1461_vm1, %v1266_v58  ;;  %v1294_v6 = vpop.f32.mrb[28].mxu0 }
 0x132   :  { %v1296_v7 = vpop.f32.mrb[29].mxu0 }
 0x133   :  { %v1297_v8 = vpop.f32.mrb[30].mxu0 }
 0x134   :  { %v1013_v0 = vpop.f32.mrb[16].mxu1  ;;  %v1299_v9 = vpop.f32.mrb[31].mxu0 }
 0x135   :  { %v1271_v1 = vadd.f32 %v1270_v40, %v1013_v0  ;;  %v1015_v2 = vpop.f32.mrb[17].mxu1 }
 0x136   :  { %v1016_v3 = vpop.f32.mrb[18].mxu1  ;;  %v1750_v2 = vadd.f32 %v1749_v57, %v1748_v63 }
 0x137   :  { %1470 = vst.msk [vmem:[#allocation2 + $0x40] sm:$0xff] %vm1461_vm1, %v1271_v1  ;;  %v1274_v4 = vadd.f32 %v1273_v42, %v1016_v3  ;;  %v1018_v5 = vpop.f32.mrb[19].mxu1  ;;  %v1520_v42 = vld [vmem:[#allocation2 + $0x10] sm:$0xff]  ;;  %v1695_v1 = vmul.f32 %v1521_v54, %v1521_v54 }
 0x138   :  { %v1577_v58 = vsel %vm1461_vm1, %v1520_v42, 0.0  ;;  %v1579_v5 = vsel %vm1461_vm1, %v1521_v54, 0.0 }
 0x139   :  { %1471 = vst.msk [vmem:[#allocation2 + $0x48] sm:$0xff] %vm1461_vm1, %v1274_v4  ;;  %v1302_v16 = vpop.f32.mrb[32].mxu0 }
 0x13a   :  { %v1304_v17 = vpop.f32.mrb[33].mxu0 }
 0x13b   :  { %v1305_v18 = vpop.f32.mrb[34].mxu0 }
 0x13c   :  { %v1021_v10 = vpop.f32.mrb[20].mxu1  ;;  %v1307_v19 = vpop.f32.mrb[35].mxu0 }
 0x13d   :  { %v1279_v11 = vadd.f32 %v1278_v50, %v1021_v10  ;;  %v1023_v12 = vpop.f32.mrb[21].mxu1  ;;  %v1694_v50 = vmul.f32 %v1520_v42, %v1520_v42  ;;  %v1523_v10 = vld [vmem:[#allocation2 + $0x28] sm:$0xff] }
 0x13e   :  { %v1024_v13 = vpop.f32.mrb[22].mxu1  ;;  %v1753_v12 = vsel %vm1461_vm1, %v1695_v1, 0.0 }
 0x13f   :  { %1472 = vst.msk [vmem:[#allocation2 + $0x50] sm:$0xff] %vm1461_vm1, %v1279_v11  ;;  %v1282_v14 = vadd.f32 %v1281_v52, %v1024_v13  ;;  %v1026_v15 = vpop.f32.mrb[23].mxu1  ;;  %v1751_v0 = vsel %vm1461_vm1, %v1694_v50, 0.0  ;;  %v1581_v13 = vsel %vm1461_vm1, %v1522_v61, 0.0 }
 0x140   :  { %v1752_v9 = vadd.f32 %v1751_v0, %v1750_v2 }
 0x141   :  { %1473 = vst.msk [vmem:[#allocation2 + $0x58] sm:$0xff] %vm1461_vm1, %v1282_v14  ;;  %v1310_v26 = vpop.f32.mrb[36].mxu0 }
 0x142   :  { %v1312_v27 = vpop.f32.mrb[37].mxu0 }
 0x143   :  { %v1313_v28 = vpop.f32.mrb[38].mxu0 }
 0x144   :  { %v1029_v20 = vpop.f32.mrb[24].mxu1  ;;  %v1315_v29 = vpop.f32.mrb[39].mxu0 }
 0x145   :  { %v1287_v21 = vadd.f32 %v1286_v60, %v1029_v20  ;;  %v1031_v22 = vpop.f32.mrb[25].mxu1  ;;  %v1576_v60 = vadd.f32 %v1575_v49, %v1574_v56  ;;  %v1525_v29 = vld [vmem:[#allocation2 + $0x38] sm:$0xff] }
 0x146   :  { %v1032_v23 = vpop.f32.mrb[26].mxu1  ;;  %v1699_v41 = vmul.f32 %v1525_v29, %v1525_v29  ;;  %v1587_v48 = vsel %vm1461_vm1, %v1525_v29, 0.0  ;;  %v1528_v56 = vld [vmem:[#allocation2 + $0x50] sm:$0xff] }
 0x147   :  { %1474 = vst.msk [vmem:[#allocation2 + $0x60] sm:$0xff] %vm1461_vm1, %v1287_v21  ;;  %v1290_v24 = vadd.f32 %v1289_v62, %v1032_v23  ;;  %v1034_v25 = vpop.f32.mrb[27].mxu1  ;;  %v1578_v3 = vadd.f32 %v1577_v58, %v1576_v60  ;;  %v1697_v21 = vmul.f32 %v1523_v10, %v1523_v10  ;;  %v1754_v23 = vadd.f32 %v1753_v12, %v1752_v9 }
 0x148   :  { %v1761_v54 = vsel %vm1461_vm1, %v1699_v41, 0.0 }
 0x149   :  { %1475 = vst.msk [vmem:[#allocation2 + $0x68] sm:$0xff] %vm1461_vm1, %v1290_v24  ;;  %v3136_v36 = vpop.f32.mrb[40].mxu0  ;;  %v1580_v17 = vadd.f32 %v1579_v5, %v1578_v3  ;;  %v1702_v3 = vmul.f32 %v1528_v56, %v1528_v56 }
 0x14a   :  { %v1320_v37 = vpop.f32.mrb[41].mxu0 }
 0x14b   :  { %v3139_v38 = vpop.f32.mrb[42].mxu0  ;;  %v1582_v24 = vadd.f32 %v1581_v13, %v1580_v17  ;;  %v1526_v37 = vld [vmem:[#allocation2 + $0x40] sm:$0xff] }
 0x14c   :  { %v1037_v30 = vpop.f32.mrb[28].mxu1  ;;  %v1323_v40 = vpop.f32.mrb[43].mxu0 }
 0x14d   :  { %v1295_v31 = vadd.f32 %v1294_v6, %v1037_v30  ;;  %v1039_v32 = vpop.f32.mrb[29].mxu1  ;;  %v1696_v6 = vmul.f32 %v1522_v61, %v1522_v61 }
 0x14e   :  { %v1040_v33 = vpop.f32.mrb[30].mxu1  ;;  %v3192_v13 = vld [vmem:[#allocation2 + $0x60] sm:$0xff] }
 0x14f   :  { %1476 = vst.msk [vmem:[#allocation2 + $0x70] sm:$0xff] %vm1461_vm1, %v1295_v31  ;;  %v1298_v34 = vadd.f32 %v1297_v8, %v1040_v33  ;;  %v1042_v35 = vpop.f32.mrb[31].mxu1  ;;  %v1755_v20 = vsel %vm1461_vm1, %v1696_v6, 0.0  ;;  %v1757_v31 = vsel %vm1461_vm1, %v1697_v21, 0.0  ;;  %v1704_v21 = vmul.f32 %v3192_v13, %v3192_v13 }
 0x150   :  { %v1597_v29 = vsel %vm1461_vm1, %v3192_v13, 0.0 }
 0x151   :  { %1477 = vst.msk [vmem:[#allocation2 + $0x78] sm:$0xff] %vm1461_vm1, %v1298_v34  ;;  %v3143_v53 = vpop.f32.mrb[44].mxu0 }
 0x152   :  { %v1328_v55 = vpop.f32.mrb[45].mxu0 }
 0x153   :  { %v3149_v59 = vpop.f32.mrb[46].mxu0 }
 0x154   :  { %v1045_v43 = vpop.f32.mrb[32].mxu1  ;;  %v1331_v62 = vpop.f32.mrb[47].mxu0 }
 0x155   :  { %v1303_v45 = vadd.f32 %v1302_v16, %v1045_v43  ;;  %v1047_v46 = vpop.f32.mrb[33].mxu1 }
 0x156   :  { %v1048_v47 = vpop.f32.mrb[34].mxu1 }
 0x157   :  { %1478 = vst.msk [vmem:[#allocation2 + $0x80] sm:$0xff] %vm1461_vm1, %v1303_v45  ;;  %v1306_v51 = vadd.f32 %v1305_v18, %v1048_v47  ;;  %v1050_v52 = vpop.f32.mrb[35].mxu1  ;;  %v1524_v18 = vld [vmem:[#allocation2 + $0x30] sm:$0xff] }
 0x158   :  { %v1698_v27 = vmul.f32 %v1524_v18, %v1524_v18  ;;  %v1585_v32 = vsel %vm1461_vm1, %v1524_v18, 0.0 }
 0x159   :  { %1479 = vst.msk [vmem:[#allocation2 + $0x88] sm:$0xff] %vm1461_vm1, %v1306_v51  ;;  %v3157_v16 = vpop.f32.mrb[48].mxu0  ;;  %v1527_v51 = vld [vmem:[#allocation2 + $0x48] sm:$0xff] }
 0x15a   :  { %v1336_v19 = vpop.f32.mrb[49].mxu0  ;;  %v1759_v40 = vsel %vm1461_vm1, %v1698_v27, 0.0  ;;  %v1701_v60 = vmul.f32 %v1527_v51, %v1527_v51  ;;  %v1591_v2 = vsel %vm1461_vm1, %v1527_v51, 0.0 }
 0x15b   :  { %v3161_v22 = vpop.f32.mrb[50].mxu0 }
 0x15c   :  { %v1053_v4 = vpop.f32.mrb[36].mxu1  ;;  %v1339_v25 = vpop.f32.mrb[51].mxu0 }
 0x15d   :  { %v1311_v7 = vadd.f32 %v1310_v26, %v1053_v4  ;;  %v1055_v8 = vpop.f32.mrb[37].mxu1  ;;  %v1583_v26 = vsel %vm1461_vm1, %v1523_v10, 0.0  ;;  %v1593_v10 = vsel %vm1461_vm1, %v1528_v56, 0.0 }
 0x15e   :  { %v1056_v11 = vpop.f32.mrb[38].mxu1  ;;  %v1584_v35 = vadd.f32 %v1583_v26, %v1582_v24  ;;  %v3185_v8 = vld [vmem:[#allocation2 + $0x58] sm:$0xff]  ;;  %v3202_v26 = vld [vmem:[#allocation2 + $0x68] sm:$0xff] }
 0x15f   :  { %1480 = vst.msk [vmem:[#allocation2 + $0x90] sm:$0xff] %vm1461_vm1, %v1311_v7  ;;  %v1314_v14 = vadd.f32 %v1313_v28, %v1056_v11  ;;  %v1058_v15 = vpop.f32.mrb[39].mxu1  ;;  %v1756_v28 = vadd.f32 %v1755_v20, %v1754_v23  ;;  %v1595_v20 = vsel %vm1461_vm1, %v3185_v8, 0.0 }
 0x160   :  { %v1586_v46 = vadd.f32 %v1585_v32, %v1584_v35  ;;  %v1703_v15 = vmul.f32 %v3185_v8, %v3185_v8  ;;  %v1771_v35 = vsel %vm1461_vm1, %v1704_v21, 0.0 }
 0x161   :  { %1481 = vst.msk [vmem:[#allocation2 + $0x98] sm:$0xff] %vm1461_vm1, %v1314_v14  ;;  %v3170_v44 = vpop.f32.mrb[52].mxu0  ;;  %v1758_v45 = vadd.f32 %v1757_v31, %v1756_v28 }
 0x162   :  { %v1344_v47 = vpop.f32.mrb[53].mxu0  ;;  %v1588_v55 = vadd.f32 %v1587_v48, %v1586_v46  ;;  %v1769_v28 = vsel %vm1461_vm1, %v1703_v15, 0.0  ;;  %v3223_v46 = vld [vmem:[#allocation2 + $0x78] sm:$0xff] }
 0x163   :  { %v3174_v49 = vpop.f32.mrb[54].mxu0  ;;  %v1760_v50 = vadd.f32 %v1759_v40, %v1758_v45  ;;  %v1707_v56 = vmul.f32 %v3223_v46, %v3223_v46 }
 0x164   :  { %v1061_v30 = vpop.f32.mrb[40].mxu1  ;;  %v1347_v52 = vpop.f32.mrb[55].mxu0 }
 0x165   :  { %v1319_v33 = vadd.f32 %v3136_v36, %v1061_v30  ;;  %v1063_v34 = vpop.f32.mrb[41].mxu1  ;;  %v1700_v36 = vmul.f32 %v1526_v37, %v1526_v37  ;;  %v1762_v63 = vadd.f32 %v1761_v54, %v1760_v50  ;;  %v3229_v54 = vld [vmem:[#allocation2 + $0x80] sm:$0xff] }
 0x166   :  { %v1064_v39 = vpop.f32.mrb[42].mxu1  ;;  %v3211_v34 = vld [vmem:[#allocation2 + $0x70] sm:$0xff] }
 0x167   :  { %1482 = vst.msk [vmem:[#allocation2 + $0xa0] sm:$0xff] %vm1461_vm1, %v1319_v33  ;;  %v1322_v42 = vadd.f32 %v3139_v38, %v1064_v39  ;;  %v1066_v43 = vpop.f32.mrb[43].mxu1  ;;  %v1589_v38 = vsel %vm1461_vm1, %v1526_v37, 0.0  ;;  %v1763_v58 = vsel %vm1461_vm1, %v1700_v36, 0.0  ;;  %v1705_v37 = vmul.f32 %v3202_v26, %v3202_v26 }
 0x168   :  { %v1590_v0 = vadd.f32 %v1589_v38, %v1588_v55  ;;  %v1764_v7 = vadd.f32 %v1763_v58, %v1762_v63  ;;  %v1706_v43 = vmul.f32 %v3211_v34, %v3211_v34  ;;  %v1601_v36 = vsel %vm1461_vm1, %v3211_v34, 0.0 }
 0x169   :  { %1483 = vst.msk [vmem:[#allocation2 + $0xa8] sm:$0xff] %vm1461_vm1, %v1322_v42  ;;  %v3183_v6 = vpop.f32.mrb[56].mxu0  ;;  %v1773_v48 = vsel %vm1461_vm1, %v1705_v37, 0.0  ;;  %v1603_v63 = vsel %vm1461_vm1, %v3223_v46, 0.0 }
 0x16a   :  { %v1352_v9 = vpop.f32.mrb[57].mxu0  ;;  %v1592_v12 = vadd.f32 %v1591_v2, %v1590_v0  ;;  %v1775_v55 = vsel %vm1461_vm1, %v1706_v43, 0.0  ;;  %v1708_v0 = vmul.f32 %v3229_v54, %v3229_v54 }
 0x16b   :  { %v3190_v11 = vpop.f32.mrb[58].mxu0  ;;  %v3250_v9 = vld [vmem:[#allocation2 + $0x90] sm:$0xff] }
 0x16c   :  { %v1069_v57 = vpop.f32.mrb[44].mxu1  ;;  %v1355_v14 = vpop.f32.mrb[59].mxu0  ;;  %v1594_v18 = vadd.f32 %v1593_v10, %v1592_v12  ;;  %v1779_v10 = vsel %vm1461_vm1, %v1708_v0, 0.0 }
 0x16d   :  { %v1327_v61 = vadd.f32 %v3143_v53, %v1069_v57  ;;  %v1071_v62 = vpop.f32.mrb[45].mxu1  ;;  %v1765_v53 = vsel %vm1461_vm1, %v1701_v60, 0.0 }
 0x16e   :  { %v1072_v1 = vpop.f32.mrb[46].mxu1  ;;  %v1766_v17 = vadd.f32 %v1765_v53, %v1764_v7  ;;  %v1596_v33 = vadd.f32 %v1595_v20, %v1594_v18  ;;  %v1710_v20 = vmul.f32 %v3250_v9, %v3250_v9 }
 0x16f   :  { %1484 = vst.msk [vmem:[#allocation2 + $0xb0] sm:$0xff] %vm1461_vm1, %v1327_v61  ;;  %v1330_v4 = vadd.f32 %v3149_v59, %v1072_v1  ;;  %v1074_v5 = vpop.f32.mrb[47].mxu1  ;;  %v1767_v59 = vsel %vm1461_vm1, %v1702_v3, 0.0  ;;  %v3245_v3 = vld [vmem:[#allocation2 + $0x88] sm:$0xff] }
 0x170   :  { %v1768_v25 = vadd.f32 %v1767_v59, %v1766_v17  ;;  %v1598_v41 = vadd.f32 %v1597_v29, %v1596_v33  ;;  %v1605_v5 = vsel %vm1461_vm1, %v3229_v54, 0.0  ;;  %v1709_v12 = vmul.f32 %v3245_v3, %v3245_v3  ;;  %v3272_v33 = vld [vmem:[#allocation2 + $0xa0] sm:$0xff] }
 0x171   :  { %1485 = vst.msk [vmem:[#allocation2 + $0xb8] sm:$0xff] %vm1461_vm1, %v1330_v4  ;;  %v3209_v32 = vpop.f32.mrb[60].mxu0  ;;  %v1777_v4 = vsel %vm1461_vm1, %v1707_v56, 0.0  ;;  %v1609_v29 = vsel %vm1461_vm1, %v3250_v9, 0.0 }
 0x172   :  { %v1770_v40 = vadd.f32 %v1769_v28, %v1768_v25  ;;  %v1781_v28 = vsel %vm1461_vm1, %v1709_v12, 0.0 }
 0x174   :  { %v1077_v19 = vpop.f32.mrb[48].mxu1  ;;  %v1772_v45 = vadd.f32 %v1771_v35, %v1770_v40 }
 0x175   :  { %v1335_v23 = vadd.f32 %v3157_v16, %v1077_v19  ;;  %v1079_v24 = vpop.f32.mrb[49].mxu1  ;;  %v1360_v16 = vpop.f32.mrb[61].mxu0  ;;  %v1607_v19 = vsel %vm1461_vm1, %v3245_v3, 0.0 }
 0x176   :  { %v1080_v27 = vpop.f32.mrb[50].mxu1  ;;  %v3217_v39 = vpop.f32.mrb[62].mxu0  ;;  %v1774_v61 = vadd.f32 %v1773_v48, %v1772_v45  ;;  %v1783_v16 = vsel %vm1461_vm1, %v1710_v20, 0.0  ;;  %v3282_v48 = vld [vmem:[#allocation2 + $0xa8] sm:$0xff] }
 0x177   :  { %1486 = vst.msk [vmem:[#allocation2 + $0xc0] sm:$0xff] %vm1461_vm1, %v1335_v23  ;;  %v1338_v30 = vadd.f32 %v3161_v22, %v1080_v27  ;;  %v1082_v31 = vpop.f32.mrb[51].mxu1  ;;  %v1363_v42 = vpop.f32.mrb[63].mxu0  ;;  %v1599_v22 = vsel %vm1461_vm1, %v3202_v26, 0.0  ;;  %v3264_v27 = vld [vmem:[#allocation2 + $0x98] sm:$0xff] }
 0x178   :  { %v1600_v52 = vadd.f32 %v1599_v22, %v1598_v41  ;;  %v1776_v2 = vadd.f32 %v1775_v55, %v1774_v61  ;;  %v1711_v35 = vmul.f32 %v3264_v27, %v3264_v27  ;;  %v1611_v42 = vsel %vm1461_vm1, %v3264_v27, 0.0 }
 0x179   :  { %1487 = vst.msk [vmem:[#allocation2 + $0xc8] sm:$0xff] %vm1461_vm1, %v1338_v30  ;;  %v3236_v60 = vpop.f32.mrb[64].mxu0  ;;  %v1712_v22 = vmul.f32 %v3272_v33, %v3272_v33  ;;  %v1713_v61 = vmul.f32 %v3282_v48, %v3282_v48 }
 0x17a   :  { %v1602_v62 = vadd.f32 %v1601_v36, %v1600_v52  ;;  %v1778_v15 = vadd.f32 %v1777_v4, %v1776_v2  ;;  %v3303_v4 = vld [vmem:[#allocation2 + $0xb8] sm:$0xff] }
 0x17c   :  { %v1085_v47 = vpop.f32.mrb[52].mxu1  ;;  %v1604_v7 = vadd.f32 %v1603_v63, %v1602_v62  ;;  %v1780_v25 = vadd.f32 %v1779_v10, %v1778_v15 }
 0x17d   :  { %v1343_v50 = vadd.f32 %v3170_v44, %v1085_v47  ;;  %v1087_v51 = vpop.f32.mrb[53].mxu1  ;;  %v1368_v44 = vpop.f32.mrb[65].mxu0 }
 0x17e   :  { %v1088_v38 = vpop.f32.mrb[54].mxu1  ;;  %v3243_v1 = vpop.f32.mrb[66].mxu0  ;;  %v1606_v17 = vadd.f32 %v1605_v5, %v1604_v7  ;;  %v1782_v37 = vadd.f32 %v1781_v28, %v1780_v25  ;;  %v1613_v51 = vsel %vm1461_vm1, %v3272_v33, 0.0  ;;  %v1789_v7 = vsel %vm1461_vm1, %v1713_v61, 0.0 }
 0x17f   :  { %1488 = vst.msk [vmem:[#allocation2 + $0xd0] sm:$0xff] %vm1461_vm1, %v1343_v50  ;;  %v1346_v57 = vadd.f32 %v3174_v49, %v1088_v38  ;;  %v1090_v58 = vpop.f32.mrb[55].mxu1  ;;  %v1371_v49 = vpop.f32.mrb[67].mxu0  ;;  %v1785_v50 = vsel %vm1461_vm1, %v1711_v35, 0.0 }
 0x180   :  { %v1608_v31 = vadd.f32 %v1607_v19, %v1606_v17  ;;  %v1784_v47 = vadd.f32 %v1783_v16, %v1782_v37  ;;  %v1787_v58 = vsel %vm1461_vm1, %v1712_v22, 0.0 }
 0x181   :  { %1489 = vst.msk [vmem:[#allocation2 + $0xd8] sm:$0xff] %vm1461_vm1, %v1346_v57  ;;  %v3262_v24 = vpop.f32.mrb[68].mxu0  ;;  %v3291_v57 = vld [vmem:[#allocation2 + $0xb0] sm:$0xff] }
 0x182   :  { %v1610_v40 = vadd.f32 %v1609_v29, %v1608_v31  ;;  %v1786_v44 = vadd.f32 %v1785_v50, %v1784_v47  ;;  %v1714_v2 = vmul.f32 %v3291_v57, %v3291_v57 }
 0x184   :  { %v1093_v53 = vpop.f32.mrb[56].mxu1  ;;  %v1612_v56 = vadd.f32 %v1611_v42, %v1610_v40  ;;  %v1788_v49 = vadd.f32 %v1787_v58, %v1786_v44  ;;  %v1791_v17 = vsel %vm1461_vm1, %v1714_v2, 0.0 }
 0x185   :  { %v1351_v14 = vadd.f32 %v3183_v6, %v1093_v53  ;;  %v1095_v59 = vpop.f32.mrb[57].mxu1  ;;  %v1376_v6 = vpop.f32.mrb[69].mxu0  ;;  %v1617_v53 = vsel %vm1461_vm1, %v3291_v57, 0.0 }
 0x186   :  { %v1096_v18 = vpop.f32.mrb[58].mxu1  ;;  %v3270_v30 = vpop.f32.mrb[70].mxu0  ;;  %v1614_v63 = vadd.f32 %v1613_v51, %v1612_v56  ;;  %v3309_v59 = vld [vmem:[#allocation2 + $0xc0] sm:$0xff]  ;;  %v1619_v6 = vsel %vm1461_vm1, %v3303_v4, 0.0  ;;  %v3330_v40 = vld [vmem:[#allocation2 + $0xd0] sm:$0xff] }
 0x187   :  { %1490 = vst.msk [vmem:[#allocation2 + $0xe0] sm:$0xff] %vm1461_vm1, %v1351_v14  ;;  %v1354_v21 = vadd.f32 %v3190_v11, %v1096_v18  ;;  %v1098_v23 = vpop.f32.mrb[59].mxu1  ;;  %v1379_v11 = vpop.f32.mrb[71].mxu0  ;;  %v1715_v18 = vmul.f32 %v3303_v4, %v3303_v4  ;;  %v1716_v28 = vmul.f32 %v3309_v59, %v3309_v59  ;;  %v1621_v35 = vsel %vm1461_vm1, %v3309_v59, 0.0 }
 0x188   :  { %v1790_v23 = vadd.f32 %v1789_v7, %v1788_v49  ;;  %v3325_v11 = vld [vmem:[#allocation2 + $0xc8] sm:$0xff]  ;;  %v3344_v61 = vld [vmem:[#allocation2 + $0xd8] sm:$0xff] }
 0x189   :  { %1491 = vst.msk [vmem:[#allocation2 + $0xe8] sm:$0xff] %vm1461_vm1, %v1354_v21  ;;  %v3289_v55 = vpop.f32.mrb[72].mxu0  ;;  %v1793_v16 = vsel %vm1461_vm1, %v1715_v18, 0.0  ;;  %v1795_v42 = vsel %vm1461_vm1, %v1716_v28, 0.0  ;;  %v1717_v22 = vmul.f32 %v3325_v11, %v3325_v11  ;;  %v1623_v51 = vsel %vm1461_vm1, %v3325_v11, 0.0 }
 0x18a   :  { %v1792_v31 = vadd.f32 %v1791_v17, %v1790_v23 }
 0x18b   :  { %v1797_v44 = vsel %vm1461_vm1, %v1717_v22, 0.0 }
 0x18c   :  { %v1101_v41 = vpop.f32.mrb[60].mxu1  ;;  %v1794_v47 = vadd.f32 %v1793_v16, %v1792_v31 }
 0x18d   :  { %v1359_v43 = vadd.f32 %v3209_v32, %v1101_v41  ;;  %v1103_v45 = vpop.f32.mrb[61].mxu1  ;;  %v1384_v32 = vpop.f32.mrb[73].mxu0 }
 0x18e   :  { %v1104_v36 = vpop.f32.mrb[62].mxu1  ;;  %v3297_v62 = vpop.f32.mrb[74].mxu0  ;;  %v1796_v58 = vadd.f32 %v1795_v42, %v1794_v47  ;;  %v3352_v2 = vld [vmem:[#allocation2 + $0xe0] sm:$0xff] }
 0x18f   :  { %1492 = vst.msk [vmem:[#allocation2 + $0xf0] sm:$0xff] %vm1461_vm1, %v1359_v43  ;;  %v1362_v52 = vadd.f32 %v3217_v39, %v1104_v36  ;;  %v1106_v38 = vpop.f32.mrb[63].mxu1  ;;  %v1387_v0 = vpop.f32.mrb[75].mxu0  ;;  %v1615_v39 = vsel %vm1461_vm1, %v3282_v48, 0.0 }
 0x190   :  { %v1616_v14 = vadd.f32 %v1615_v39, %v1614_v63  ;;  %v1625_v63 = vsel %vm1461_vm1, %v3330_v40, 0.0  ;;  %v1798_v7 = vadd.f32 %v1797_v44, %v1796_v58 }
 0x191   :  { %1493 = vst.msk [vmem:[#allocation2 + $0xf8] sm:$0xff] %vm1461_vm1, %v1362_v52  ;;  %v3316_v21 = vpop.f32.mrb[76].mxu0  ;;  %v1718_v52 = vmul.f32 %v3330_v40, %v3330_v40 }
 0x192   :  { %v1618_v25 = vadd.f32 %v1617_v53, %v1616_v14  ;;  %v1720_v14 = vmul.f32 %v3352_v2, %v3352_v2 }
 0x193   :  { %v1799_v49 = vsel %vm1461_vm1, %v1718_v52, 0.0 }
 0x194   :  { %v1109_v5 = vpop.f32.mrb[64].mxu1  ;;  %v1620_v37 = vadd.f32 %v1619_v6, %v1618_v25  ;;  %v1800_v18 = vadd.f32 %v1799_v49, %v1798_v7  ;;  %v1629_v25 = vsel %vm1461_vm1, %v3352_v2, 0.0  ;;  %v1803_v16 = vsel %vm1461_vm1, %v1720_v14, 0.0 }
 0x195   :  { %v1367_v10 = vadd.f32 %v3236_v60, %v1109_v5  ;;  %v1111_v12 = vpop.f32.mrb[65].mxu1  ;;  %v1392_v60 = vpop.f32.mrb[77].mxu0  ;;  %v1719_v5 = vmul.f32 %v3344_v61, %v3344_v61 }
 0x196   :  { %v1112_v15 = vpop.f32.mrb[66].mxu1  ;;  %v3323_v29 = vpop.f32.mrb[78].mxu0  ;;  %v1622_v36 = vadd.f32 %v1621_v35, %v1620_v37  ;;  %v1627_v12 = vsel %vm1461_vm1, %v3344_v61, 0.0 }
 0x197   :  { %1494 = vst.msk [vmem:[#allocation2 + $0x100] sm:$0xff] %vm1461_vm1, %v1367_v10  ;;  %v1370_v19 = vadd.f32 %v3243_v1, %v1112_v15  ;;  %v1114_v20 = vpop.f32.mrb[67].mxu1  ;;  %v1395_v1 = vpop.f32.mrb[79].mxu0  ;;  %v1801_v23 = vsel %vm1461_vm1, %v1719_v5, 0.0 }
 0x198   :  { %v1624_v39 = vadd.f32 %v1623_v51, %v1622_v36  ;;  %v3371_v1 = vld [vmem:[#allocation2 + $0xf0] sm:$0xff]  ;;  %v3383_v47 = vld [vmem:[#allocation2 + $0xf8] sm:$0xff] }
 0x199   :  { %1495 = vst.msk [vmem:[#allocation2 + $0x108] sm:$0xff] %vm1461_vm1, %v1370_v19  ;;  %v3342_v32 = vpop.f32.mrb[80].mxu0  ;;  %v3362_v19 = vld [vmem:[#allocation2 + $0xe8] sm:$0xff]  ;;  %v1633_v51 = vsel %vm1461_vm1, %v3371_v1, 0.0 }
 0x19a   :  { %v1626_v53 = vadd.f32 %v1625_v63, %v1624_v39  ;;  %v1721_v35 = vmul.f32 %v3362_v19, %v3362_v19  ;;  %v1723_v63 = vmul.f32 %v3383_v47, %v3383_v47 }
 0x19c   :  { %v1117_v41 = vpop.f32.mrb[68].mxu1  ;;  %v1628_v31 = vadd.f32 %v1627_v12, %v1626_v53  ;;  %v1635_v53 = vsel %vm1461_vm1, %v3383_v47, 0.0 }
 0x19d   :  { %v1375_v43 = vadd.f32 %v3262_v24, %v1117_v41  ;;  %v1119_v45 = vpop.f32.mrb[69].mxu1  ;;  %v1400_v24 = vpop.f32.mrb[81].mxu0  ;;  %v1802_v41 = vadd.f32 %v1801_v23, %v1800_v18 }
 0x19e   :  { %v1120_v50 = vpop.f32.mrb[70].mxu1  ;;  %v3350_v0 = vpop.f32.mrb[82].mxu0  ;;  %v1630_v42 = vadd.f32 %v1629_v25, %v1628_v31  ;;  %v3389_v58 = vld [vmem:[#allocation2 + $0x100] sm:$0xff] }
 0x19f   :  { %1496 = vst.msk [vmem:[#allocation2 + $0x110] sm:$0xff] %vm1461_vm1, %v1375_v43  ;;  %v1378_v38 = vadd.f32 %v3270_v30, %v1120_v50  ;;  %v1122_v56 = vpop.f32.mrb[71].mxu1  ;;  %v1403_v30 = vpop.f32.mrb[83].mxu0  ;;  %v1722_v43 = vmul.f32 %v3371_v1, %v3371_v1  ;;  %v1804_v45 = vadd.f32 %v1803_v16, %v1802_v41  ;;  %v1805_v50 = vsel %vm1461_vm1, %v1721_v35, 0.0 }
 0x1a0   :  { %v1637_v18 = vsel %vm1461_vm1, %v3389_v58, 0.0 }
 0x1a1   :  { %1497 = vst.msk [vmem:[#allocation2 + $0x118] sm:$0xff] %vm1461_vm1, %v1378_v38  ;;  %v3369_v28 = vpop.f32.mrb[84].mxu0  ;;  %v1807_v44 = vsel %vm1461_vm1, %v1722_v43, 0.0  ;;  %v1806_v5 = vadd.f32 %v1805_v50, %v1804_v45 }
 0x1a3   :  { %v1808_v14 = vadd.f32 %v1807_v44, %v1806_v5 }
 0x1a4   :  { %v1125_v10 = vpop.f32.mrb[72].mxu1 }
 0x1a5   :  { %v1383_v15 = vadd.f32 %v3289_v55, %v1125_v10  ;;  %v1127_v17 = vpop.f32.mrb[73].mxu1  ;;  %v1408_v55 = vpop.f32.mrb[85].mxu0  ;;  %v1724_v10 = vmul.f32 %v3389_v58, %v3389_v58 }
 0x1a6   :  { %v1128_v20 = vpop.f32.mrb[74].mxu1  ;;  %v3377_v37 = vpop.f32.mrb[86].mxu0  ;;  %v1809_v17 = vsel %vm1461_vm1, %v1723_v63, 0.0  ;;  %v3410_v23 = vld [vmem:[#allocation2 + $0x110] sm:$0xff] }
 0x1a7   :  { %1498 = vst.msk [vmem:[#allocation2 + $0x120] sm:$0xff] %vm1461_vm1, %v1383_v15  ;;  %v1386_v60 = vadd.f32 %v3297_v62, %v1128_v20  ;;  %v1130_v6 = vpop.f32.mrb[75].mxu1  ;;  %v1411_v22 = vpop.f32.mrb[87].mxu0  ;;  %v1631_v62 = vsel %vm1461_vm1, %v3362_v19, 0.0  ;;  %v3405_v15 = vld [vmem:[#allocation2 + $0x108] sm:$0xff]  ;;  %v1810_v16 = vadd.f32 %v1809_v17, %v1808_v14 }
 0x1a8   :  { %v1632_v56 = vadd.f32 %v1631_v62, %v1630_v42  ;;  %v1725_v6 = vmul.f32 %v3405_v15, %v3405_v15  ;;  %v1639_v42 = vsel %vm1461_vm1, %v3405_v15, 0.0  ;;  %v1726_v22 = vmul.f32 %v3410_v23, %v3410_v23  ;;  %v3424_v50 = vld [vmem:[#allocation2 + $0x118] sm:$0xff] }
 0x1a9   :  { %1499 = vst.msk [vmem:[#allocation2 + $0x128] sm:$0xff] %vm1461_vm1, %v1386_v60  ;;  %v3396_v49 = vpop.f32.mrb[88].mxu0  ;;  %v1811_v60 = vsel %vm1461_vm1, %v1724_v10, 0.0  ;;  %v1727_v63 = vmul.f32 %v3424_v50, %v3424_v50 }
 0x1aa   :  { %v1634_v7 = vadd.f32 %v1633_v51, %v1632_v56  ;;  %v1813_v51 = vsel %vm1461_vm1, %v1725_v6, 0.0  ;;  %v1815_v44 = vsel %vm1461_vm1, %v1726_v22, 0.0 }
 0x1ac   :  { %v1133_v36 = vpop.f32.mrb[76].mxu1  ;;  %v1636_v20 = vadd.f32 %v1635_v53, %v1634_v7  ;;  %v1643_v7 = vsel %vm1461_vm1, %v3424_v50, 0.0 }
 0x1ad   :  { %v1391_v52 = vadd.f32 %v3316_v21, %v1133_v36  ;;  %v1135_v38 = vpop.f32.mrb[77].mxu1  ;;  %v1416_v21 = vpop.f32.mrb[89].mxu0  ;;  %v1812_v36 = vadd.f32 %v1811_v60, %v1810_v16 }
 0x1ae   :  { %v1136_v24 = vpop.f32.mrb[78].mxu1  ;;  %v3403_v12 = vpop.f32.mrb[90].mxu0  ;;  %v1638_v35 = vadd.f32 %v1637_v18, %v1636_v20  ;;  %v1817_v18 = vsel %vm1461_vm1, %v1727_v63, 0.0 }
 0x1af   :  { %1500 = vst.msk [vmem:[#allocation2 + $0x130] sm:$0xff] %vm1461_vm1, %v1391_v52  ;;  %v1394_v39 = vadd.f32 %v3323_v29, %v1136_v24  ;;  %v1138_v30 = vpop.f32.mrb[79].mxu1  ;;  %v1419_v29 = vpop.f32.mrb[91].mxu0  ;;  %v1641_v52 = vsel %vm1461_vm1, %v3410_v23, 0.0  ;;  %v3432_v24 = vld [vmem:[#allocation2 + $0x120] sm:$0xff] }
 0x1b0   :  { %v1640_v56 = vadd.f32 %v1639_v42, %v1638_v35  ;;  %v1728_v21 = vmul.f32 %v3432_v24, %v3432_v24  ;;  %v3442_v29 = vld [vmem:[#allocation2 + $0x128] sm:$0xff]  ;;  %v1645_v20 = vsel %vm1461_vm1, %v3432_v24, 0.0 }
 0x1b1   :  { %1501 = vst.msk [vmem:[#allocation2 + $0x138] sm:$0xff] %vm1461_vm1, %v1394_v39  ;;  %v3422_v45 = vpop.f32.mrb[92].mxu0  ;;  %v1814_v39 = vadd.f32 %v1813_v51, %v1812_v36  ;;  %v1729_v35 = vmul.f32 %v3442_v29, %v3442_v29 }
 0x1b2   :  { %v1642_v30 = vadd.f32 %v1641_v52, %v1640_v56  ;;  %v1819_v16 = vsel %vm1461_vm1, %v1728_v21, 0.0 }
 0x1b3   :  { %v1816_v14 = vadd.f32 %v1815_v44, %v1814_v39  ;;  %v1821_v52 = vsel %vm1461_vm1, %v1729_v35, 0.0 }
 0x1b4   :  { %v1141_v25 = vpop.f32.mrb[80].mxu1 }
 0x1b5   :  { %v1399_v31 = vadd.f32 %v3342_v32, %v1141_v25  ;;  %v1143_v55 = vpop.f32.mrb[81].mxu1  ;;  %v1424_v32 = vpop.f32.mrb[93].mxu0  ;;  %v1818_v42 = vadd.f32 %v1817_v18, %v1816_v14 }
 0x1b6   :  { %v1144_v41 = vpop.f32.mrb[82].mxu1  ;;  %v3430_v38 = vpop.f32.mrb[94].mxu0  ;;  %v3451_v55 = vld [vmem:[#allocation2 + $0x130] sm:$0xff] }
 0x1b7   :  { %1502 = vst.msk [vmem:[#allocation2 + $0x140] sm:$0xff] %vm1461_vm1, %v1399_v31  ;;  %v1402_v62 = vadd.f32 %v3350_v0, %v1144_v41  ;;  %v1146_v43 = vpop.f32.mrb[83].mxu1  ;;  %v1427_v0 = vpop.f32.mrb[95].mxu0  ;;  %v1644_v31 = vadd.f32 %v1643_v7, %v1642_v30  ;;  %v1820_v36 = vadd.f32 %v1819_v16, %v1818_v42  ;;  %v1649_v56 = vsel %vm1461_vm1, %v3451_v55, 0.0 }
 0x1b8   :  { %v1730_v43 = vmul.f32 %v3451_v55, %v3451_v55  ;;  %v3463_v32 = vld [vmem:[#allocation2 + $0x138] sm:$0xff] }
 0x1b9   :  { %1503 = vst.msk [vmem:[#allocation2 + $0x148] sm:$0xff] %vm1461_vm1, %v1402_v62  ;;  %v3449_v6 = vpop.f32.mrb[96].mxu0  ;;  %v1646_v22 = vadd.f32 %v1645_v20, %v1644_v31  ;;  %v1731_v7 = vmul.f32 %v3463_v32, %v3463_v32  ;;  %v1822_v14 = vadd.f32 %v1821_v52, %v1820_v36  ;;  %v1651_v18 = vsel %vm1461_vm1, %v3463_v32, 0.0 }
 0x1bc   :  { %v1149_v5 = vpop.f32.mrb[84].mxu1 }
 0x1bd   :  { %v1407_v53 = vadd.f32 %v3369_v28, %v1149_v5  ;;  %v1151_v10 = vpop.f32.mrb[85].mxu1  ;;  %v1432_v28 = vpop.f32.mrb[97].mxu0  ;;  %v1823_v5 = vsel %vm1461_vm1, %v1730_v43, 0.0 }
 0x1be   :  { %v1152_v17 = vpop.f32.mrb[86].mxu1  ;;  %v3457_v41 = vpop.f32.mrb[98].mxu0  ;;  %v3469_v39 = vld [vmem:[#allocation2 + $0x140] sm:$0xff]  ;;  %v1825_v28 = vsel %vm1461_vm1, %v1731_v7, 0.0 }
 0x1bf   :  { %1504 = vst.msk [vmem:[#allocation2 + $0x150] sm:$0xff] %vm1461_vm1, %v1407_v53  ;;  %v1410_v25 = vadd.f32 %v3377_v37, %v1152_v17  ;;  %v1154_v60 = vpop.f32.mrb[87].mxu1  ;;  %v1435_v62 = vpop.f32.mrb[99].mxu0  ;;  %v1647_v37 = vsel %vm1461_vm1, %v3442_v29, 0.0  ;;  %v1732_v20 = vmul.f32 %v3469_v39, %v3469_v39  ;;  %v1653_v16 = vsel %vm1461_vm1, %v3469_v39, 0.0 }
 0x1c0   :  { %v1648_v63 = vadd.f32 %v1647_v37, %v1646_v22  ;;  %v1824_v60 = vadd.f32 %v1823_v5, %v1822_v14  ;;  %v3485_v31 = vld [vmem:[#allocation2 + $0x148] sm:$0xff] }
 0x1c1   :  { %1505 = vst.msk [vmem:[#allocation2 + $0x158] sm:$0xff] %vm1461_vm1, %v1410_v25  ;;  %v3476_v10 = vpop.f32.mrb[100].mxu0  ;;  %v1827_v62 = vsel %vm1461_vm1, %v1732_v20, 0.0  ;;  %v1733_v37 = vmul.f32 %v3485_v31, %v3485_v31 }
 0x1c2   :  { %v1650_v17 = vadd.f32 %v1649_v56, %v1648_v63 }
 0x1c4   :  { %v1157_v51 = vpop.f32.mrb[88].mxu1  ;;  %v1652_v35 = vadd.f32 %v1651_v18, %v1650_v17 }
 0x1c5   :  { %v1415_v0 = vadd.f32 %v3396_v49, %v1157_v51  ;;  %v1159_v44 = vpop.f32.mrb[89].mxu1  ;;  %v1440_v49 = vpop.f32.mrb[101].mxu0  ;;  %v1826_v51 = vadd.f32 %v1825_v28, %v1824_v60 }
 0x1c6   :  { %v1160_v30 = vpop.f32.mrb[90].mxu1  ;;  %v3483_v25 = vpop.f32.mrb[102].mxu0  ;;  %v3490_v42 = vld [vmem:[#allocation2 + $0x150] sm:$0xff]  ;;  %v1654_v52 = vadd.f32 %v1653_v16, %v1652_v35 }
 0x1c7   :  { %1506 = vst.msk [vmem:[#allocation2 + $0x160] sm:$0xff] %vm1461_vm1, %v1415_v0  ;;  %v1418_v21 = vadd.f32 %v3403_v12, %v1160_v30  ;;  %v1162_v53 = vpop.f32.mrb[91].mxu1  ;;  %v1443_v12 = vpop.f32.mrb[103].mxu0  ;;  %v1655_v0 = vsel %vm1461_vm1, %v3485_v31, 0.0  ;;  %v1734_v44 = vmul.f32 %v3490_v42, %v3490_v42  ;;  %v1828_v7 = vadd.f32 %v1827_v62, %v1826_v51 }
 0x1c8   :  { %v1829_v53 = vsel %vm1461_vm1, %v1733_v37, 0.0  ;;  %v1657_v14 = vsel %vm1461_vm1, %v3490_v42, 0.0  ;;  %v1656_v49 = vadd.f32 %v1655_v0, %v1654_v52 }
 0x1c9   :  { %1507 = vst.msk [vmem:[#allocation2 + $0x168] sm:$0xff] %vm1461_vm1, %v1418_v21  ;;  %v3502_v5 = vpop.f32.mrb[104].mxu0  ;;  %v3504_v21 = vld [vmem:[#allocation2 + $0x158] sm:$0xff]  ;;  %v1831_v20 = vsel %vm1461_vm1, %v1734_v44, 0.0  ;;  %v1830_v12 = vadd.f32 %v1829_v53, %v1828_v7 }
 0x1ca   :  { %v1735_v60 = vmul.f32 %v3504_v21, %v3504_v21  ;;  %v1658_v28 = vadd.f32 %v1657_v14, %v1656_v49  ;;  %v1659_v35 = vsel %vm1461_vm1, %v3504_v21, 0.0 }
 0x1cc   :  { %v1165_v22 = vpop.f32.mrb[92].mxu1  ;;  %v1833_v52 = vsel %vm1461_vm1, %v1735_v60, 0.0 }
 0x1cd   :  { %v1423_v43 = vadd.f32 %v3422_v45, %v1165_v22  ;;  %v1167_v36 = vpop.f32.mrb[93].mxu1  ;;  %v1448_v45 = vpop.f32.mrb[105].mxu0 }
 0x1ce   :  { %v1168_v56 = vpop.f32.mrb[94].mxu1  ;;  %v3510_v17 = vpop.f32.mrb[106].mxu0  ;;  %v3512_v18 = vld [vmem:[#allocation2 + $0x160] sm:$0xff] }
 0x1cf   :  { %1508 = vst.msk [vmem:[#allocation2 + $0x170] sm:$0xff] %vm1461_vm1, %v1423_v43  ;;  %v1426_v63 = vadd.f32 %v3430_v38, %v1168_v56  ;;  %v1170_v30 = vpop.f32.mrb[95].mxu1  ;;  %3988 = vst [vmem:[#allocation3_spill] sm:$0xff] %v3512_v18  ;;  %v1451_v38 = vpop.f32.mrb[107].mxu0  ;;  %v1736_v22 = vmul.f32 %v3512_v18, %v3512_v18  ;;  %v1832_v43 = vadd.f32 %v1831_v20, %v1830_v12  ;;  %v1661_v56 = vsel %vm1461_vm1, %v3512_v18, 0.0 }
 0x1d0   :  { %v3522_v36 = vld [vmem:[#allocation2 + $0x168] sm:$0xff]  ;;  %v1660_v30 = vadd.f32 %v1659_v35, %v1658_v28 }
 0x1d1   :  { %1509 = vst.msk [vmem:[#allocation2 + $0x178] sm:$0xff] %vm1461_vm1, %v1426_v63  ;;  %3989 = vst [vmem:[#allocation4_spill] sm:$0xff] %v3522_v36  ;;  %v3529_v63 = vpop.f32.mrb[108].mxu0  ;;  %v1835_v45 = vsel %vm1461_vm1, %v1736_v22, 0.0  ;;  %v1737_v53 = vmul.f32 %v3522_v36, %v3522_v36  ;;  %v1834_v49 = vadd.f32 %v1833_v52, %v1832_v43 }
 0x1d2   :  { %v1662_v38 = vadd.f32 %v1661_v56, %v1660_v30 }
 0x1d3   :  { %v1836_v12 = vadd.f32 %v1835_v45, %v1834_v49  ;;  %v1837_v35 = vsel %vm1461_vm1, %v1737_v53, 0.0 }
 0x1d4   :  { %v1173_v16 = vpop.f32.mrb[96].mxu1 }
 0x1d5   :  { %v1431_v62 = vadd.f32 %v3449_v6, %v1173_v16  ;;  %v1175_v37 = vpop.f32.mrb[97].mxu1  ;;  %v1456_v6 = vpop.f32.mrb[109].mxu0 }
 0x1d6   :  { %v1176_v51 = vpop.f32.mrb[98].mxu1  ;;  %v3531_v7 = vld [vmem:[#allocation2 + $0x170] sm:$0xff]  ;;  %v3537_v14 = vpop.f32.mrb[110].mxu0  ;;  %v1838_v6 = vadd.f32 %v1837_v35, %v1836_v12 }
 0x1d7   :  { %1510 = vst.msk [vmem:[#allocation2 + $0x180] sm:$0xff] %vm1461_vm1, %v1431_v62  ;;  %v1434_v0 = vadd.f32 %v3457_v41, %v1176_v51  ;;  %v1178_v44 = vpop.f32.mrb[99].mxu1  ;;  %3990 = vst [vmem:[#allocation5_spill] sm:$0xff] %v3531_v7  ;;  %v1459_v20 = vpop.f32.mrb[111].mxu0  ;;  %v1663_v41 = vsel %vm1461_vm1, %v3522_v36, 0.0  ;;  %v1738_v60 = vmul.f32 %v3531_v7, %v3531_v7  ;;  %v1665_v22 = vsel %vm1461_vm1, %v3531_v7, 0.0 }
 0x1d8   :  { %v3543_v28 = vld [vmem:[#allocation2 + $0x178] sm:$0xff]  ;;  %v1664_v43 = vadd.f32 %v1663_v41, %v1662_v38 }
 0x1d9   :  { %1511 = vst.msk [vmem:[#allocation2 + $0x188] sm:$0xff] %vm1461_vm1, %v1434_v0  ;;  %3991 = vst [vmem:[#allocation6_spill] sm:$0xff] %v3543_v28  ;;  %v1839_v56 = vsel %vm1461_vm1, %v1738_v60, 0.0  ;;  %v1739_v0 = vmul.f32 %v3543_v28, %v3543_v28 }
 0x1da   :  { %v1666_v45 = vadd.f32 %v1665_v22, %v1664_v43  ;;  %v1840_v49 = vadd.f32 %v1839_v56, %v1838_v6 }
 0x1db   :  { %v1841_v20 = vsel %vm1461_vm1, %v1739_v0, 0.0 }
 0x1dc   :  { %v1181_v16 = vpop.f32.mrb[100].mxu1 }
 0x1dd   :  { %v1439_v62 = vadd.f32 %v3476_v10, %v1181_v16  ;;  %v1183_v37 = vpop.f32.mrb[101].mxu1  ;;  %v1667_v10 = vsel %vm1461_vm1, %v3543_v28, 0.0 }
 0x1de   :  { %v3549_v51 = vld [vmem:[#allocation2 + $0x180] sm:$0xff]  ;;  %v1184_v52 = vpop.f32.mrb[102].mxu1 }
 0x1df   :  { %3992 = vst [vmem:[#allocation7_spill] sm:$0xff] %v3549_v51  ;;  %1512 = vst.msk [vmem:[#allocation2 + $0x190] sm:$0xff] %vm1461_vm1, %v1439_v62  ;;  %v1442_v44 = vadd.f32 %v3483_v25, %v1184_v52  ;;  %v1186_v30 = vpop.f32.mrb[103].mxu1  ;;  %v1740_v53 = vmul.f32 %v3549_v51, %v3549_v51  ;;  %v1669_v41 = vsel %vm1461_vm1, %v3549_v51, 0.0  ;;  %v1668_v25 = vadd.f32 %v1667_v10, %v1666_v45 }
 0x1e0   :  { %v3561_v38 = vld [vmem:[#allocation2 + $0x188] sm:$0xff]  ;;  %v1842_v62 = vadd.f32 %v1841_v20, %v1840_v49 }
 0x1e1   :  { %1513 = vst.msk [vmem:[#allocation2 + $0x198] sm:$0xff] %vm1461_vm1, %v1442_v44  ;;  %3993 = vst [vmem:[#allocation8_spill] sm:$0xff] %v3561_v38  ;;  %v1843_v12 = vsel %vm1461_vm1, %v1740_v53, 0.0  ;;  %v1741_v16 = vmul.f32 %v3561_v38, %v3561_v38  ;;  %v1670_v37 = vadd.f32 %v1669_v41, %v1668_v25  ;;  %v1671_v56 = vsel %vm1461_vm1, %v3561_v38, 0.0 }
 0x1e2   :  { %v1844_v6 = vadd.f32 %v1843_v12, %v1842_v62 }
 0x1e3   :  { %v1672_v53 = vadd.f32 %v1671_v56, %v1670_v37 }
 0x1e4   :  { %v1189_v60 = vpop.f32.mrb[104].mxu1 }
 0x1e5   :  { %v1447_v35 = vadd.f32 %v3502_v5, %v1189_v60  ;;  %v1191_v22 = vpop.f32.mrb[105].mxu1  ;;  %v1845_v5 = vsel %vm1461_vm1, %v1741_v16, 0.0 }
 0x1e6   :  { %v3570_v43 = vld [vmem:[#allocation2 + $0x190] sm:$0xff]  ;;  %v1192_v52 = vpop.f32.mrb[106].mxu1  ;;  %v1846_v41 = vadd.f32 %v1845_v5, %v1844_v6 }
 0x1e7   :  { %3994 = vst [vmem:[#allocation9_spill] sm:$0xff] %v3570_v43  ;;  %v1742_v0 = vmul.f32 %v3570_v43, %v3570_v43  ;;  %1514 = vst.msk [vmem:[#allocation2 + $0x1a0] sm:$0xff] %vm1461_vm1, %v1447_v35  ;;  %v1450_v44 = vadd.f32 %v3510_v17, %v1192_v52  ;;  %v1194_v30 = vpop.f32.mrb[107].mxu1  ;;  %v1673_v10 = vsel %vm1461_vm1, %v3570_v43, 0.0 }
 0x1e8   :  { %v3578_v45 = vld [vmem:[#allocation2 + $0x198] sm:$0xff]  ;;  %v1674_v25 = vadd.f32 %v1673_v10, %v1672_v53 }
 0x1e9   :  { %3995 = vst [vmem:[#allocation10_spill] sm:$0xff] %v3578_v45  ;;  %1515 = vst.msk [vmem:[#allocation2 + $0x1a8] sm:$0xff] %vm1461_vm1, %v1450_v44  ;;  %v1847_v49 = vsel %vm1461_vm1, %v1742_v0, 0.0  ;;  %v1743_v20 = vmul.f32 %v3578_v45, %v3578_v45  ;;  %v1675_v60 = vsel %vm1461_vm1, %v3578_v45, 0.0 }
 0x1ea   :  { %v1848_v35 = vadd.f32 %v1847_v49, %v1846_v41  ;;  %v1676_v30 = vadd.f32 %v1675_v60, %v1674_v25 }
 0x1eb   :  { %v1849_v37 = vsel %vm1461_vm1, %v1743_v20, 0.0 }
 0x1ec   :  { %v1197_v17 = vpop.f32.mrb[108].mxu1  ;;  %v1850_v10 = vadd.f32 %v1849_v37, %v1848_v35 }
 0x1ed   :  { %v1455_v12 = vadd.f32 %v3529_v63, %v1197_v17  ;;  %v1199_v16 = vpop.f32.mrb[109].mxu1 }
 0x1ee   :  { %v3590_v22 = vld [vmem:[#allocation2 + $0x1a0] sm:$0xff]  ;;  %v1200_v62 = vpop.f32.mrb[110].mxu1 }
 0x1ef   :  { %3996 = vst [vmem:[#allocation11_spill] sm:$0xff] %v3590_v22  ;;  %v1677_v52 = vsel %vm1461_vm1, %v3590_v22, 0.0  ;;  %v1744_v56 = vmul.f32 %v3590_v22, %v3590_v22  ;;  %1516 = vst.msk [vmem:[#allocation2 + $0x1b0] sm:$0xff] %vm1461_vm1, %v1455_v12  ;;  %v1458_v0 = vadd.f32 %v3537_v14, %v1200_v62  ;;  %v1202_v44 = vpop.f32.mrb[111].mxu1 }
 0x1f0   :  { %v3599_v63 = vld [vmem:[#allocation2 + $0x1a8] sm:$0xff]  ;;  %v1678_v53 = vadd.f32 %v1677_v52, %v1676_v30 }
 0x1f1   :  { %3997 = vst [vmem:[#allocation12_spill] sm:$0xff] %v3599_v63  ;;  %v1851_v6 = vsel %vm1461_vm1, %v1744_v56, 0.0  ;;  %v1745_v5 = vmul.f32 %v3599_v63, %v3599_v63  ;;  %1517 = vst.msk [vmem:[#allocation2 + $0x1b8] sm:$0xff] %vm1461_vm1, %v1458_v0  ;;  %v1679_v49 = vsel %vm1461_vm1, %v3599_v63, 0.0 }
 0x1f2   :  { %v1852_v20 = vadd.f32 %v1851_v6, %v1850_v10  ;;  %v1680_v14 = vadd.f32 %v1679_v49, %v1678_v53 }
 0x1f3   :  { %v1853_v41 = vsel %vm1461_vm1, %v1745_v5, 0.0 }
 0x1f4   :  { %v1854_v12 = vadd.f32 %v1853_v41, %v1852_v20 }
 0x1f6   :  { %v3608_v17 = vld [vmem:[#allocation2 + $0x1b0] sm:$0xff] }
 0x1f7   :  { %3998 = vst [vmem:[#allocation13_spill] sm:$0xff] %v3608_v17  ;;  %v1681_v25 = vsel %vm1461_vm1, %v3608_v17, 0.0  ;;  %v1746_v60 = vmul.f32 %v3608_v17, %v3608_v17 }
 0x1f8   :  { %v1682_v16 = vadd.f32 %v1681_v25, %v1680_v14  ;;  %v3614_v62 = vld [vmem:[#allocation2 + $0x1b8] sm:$0xff] }
 0x1f9   :  { %3999 = vst [vmem:[#allocation14_spill] sm:$0xff] %v3614_v62  ;;  %v1855_v35 = vsel %vm1461_vm1, %v1746_v60, 0.0  ;;  %v1683_v37 = vsel %vm1461_vm1, %v3614_v62, 0.0  ;;  %v1747_v52 = vmul.f32 %v3614_v62, %v3614_v62 }
 0x1fa   :  { %v1856_v56 = vadd.f32 %v1855_v35, %v1854_v12  ;;  %v1684_v0 = vadd.f32 %v1683_v37, %v1682_v16  ;;  %v1877_v37 = vlaneseq }
 0x1fb   :  { %v1857_v44 = vsel %vm1461_vm1, %v1747_v52, 0.0 }
 0x1fc   :  { %v1685_v30 = vrot.slane %v1684_v0, 4  ;;  %v1858_v6 = vadd.f32 %v1857_v44, %v1856_v56  ;;  %v1878_v52 = vshrl.u32 %v1877_v37, 7  ;;  %v1869_v56 = vld [vmem:[%s3973_s2] sm:$0x1]  ;;  %v2624_v37 = vld [vmem:[#allocation2 + $0x38] sm:$0xff] }
 0x1fe   :  { %v1686_v5 = vadd.f32 %v1685_v30, %v1684_v0  ;;  %v1859_v10 = vrot.slane %v1858_v6, 4  ;;  %v1879_v0 = vsub.s32 0, %v1878_v52 }
 0x200   :  { %v1687_v53 = vrot.slane %v1686_v5, 2  ;;  %v1860_v49 = vadd.f32 %v1859_v10, %v1858_v6  ;;  %v1873_v6 = vld [vmem:[%s3974_s3] sm:$0x1]  ;;  %v2618_v10 = vld [vmem:[#allocation2 + $0x8] sm:$0xff] }
 0x202   :  { %v1688_v20 = vadd.f32 %v1687_v53, %v1686_v5  ;;  %v1861_v41 = vrot.slane %v1860_v49, 2 }
 0x204   :  { %v1689_v14 = vrot.slane %v1688_v20, 1  ;;  %v1862_v25 = vadd.f32 %v1861_v41, %v1860_v49  ;;  %v2619_v49 = vld [vmem:[#allocation2 + $0x10] sm:$0xff]  ;;  %v2620_v41 = vld [vmem:[#allocation2 + $0x18] sm:$0xff] }
 0x206   :  { %v1690_v60 = vadd.f32 %v1689_v14, %v1688_v20  ;;  %v1863_v17 = vrot.slane %v1862_v25, 1 }
 0x208   :  { %v1691_v63 = vmul.f32 0.0025510204, %v1690_v60  ;;  %v1864_v22 = vadd.f32 %v1863_v17, %v1862_v25  ;;  %v2621_v25 = vld [vmem:[#allocation2 + $0x20] sm:$0xff] }
 0x20a   :  { %v1865_v45 = vmul.f32 0.0025510204, %v1864_v22  ;;  %v1866_v62 = vmul.f32 %v1691_v63, %v1691_v63 }
 0x20c   :  { %v1867_v12 = vsub.f32 %v1865_v45, %v1866_v62  ;;  %v2617_v62 = vld [vmem:[#allocation2] sm:$0xff] }
 0x20e   :  { %v1868_v16 = vmax.f32 %v1867_v12, 0.0  ;;  %v2622_v12 = vld [vmem:[#allocation2 + $0x28] sm:$0xff] }
 0x210   :  { %v1870_v35 = vadd.f32 1e-05, %v1868_v16  ;;  %v2623_v16 = vld [vmem:[#allocation2 + $0x30] sm:$0xff] }
 0x212   :  { %2615 = vrsqrt.f32 %v1870_v35 }
 0x21c   :  { %v2616_v44 = vpop.eup %2615 }
 0x21d   :  { %v1872_v30 = vmul.f32 %v2616_v44, %v1869_v56  ;;  %v2625_v56 = vld [vmem:[#allocation2 + $0x40] sm:$0xff] }
 0x21f   :  { %v1874_v17 = vmul.f32 %v1872_v30, %v1691_v63  ;;  %v3628_v22 = vrot.slane %v1872_v30, %v1879_v0  ;;  %v2626_v30 = vld [vmem:[#allocation2 + $0x48] sm:$0xff] }
 0x221   :  { %v1875_v45 = vsub.f32 %v1873_v6, %v1874_v17  ;;  %v1882_v5 = vmul.f32 %v2617_v62, %v3628_v22  ;;  %v1883_v53 = vmul.f32 %v2618_v10, %v3628_v22  ;;  %v1884_v20 = vmul.f32 %v2619_v49, %v3628_v22  ;;  %v2627_v17 = vld [vmem:[#allocation2 + $0x50] sm:$0xff] }
 0x222   :  { %v1885_v14 = vmul.f32 %v2620_v41, %v3628_v22  ;;  %v1886_v60 = vmul.f32 %v2621_v25, %v3628_v22  ;;  %v1887_v63 = vmul.f32 %v2622_v12, %v3628_v22  ;;  %v1888_v35 = vmul.f32 %v2623_v16, %v3628_v22 }
 0x223   :  { %v1889_v52 = vmul.f32 %v2624_v37, %v3628_v22  ;;  %v1890_v44 = vmul.f32 %v2625_v56, %v3628_v22  ;;  %v1891_v6 = vmul.f32 %v2626_v30, %v3628_v22  ;;  %v1892_v62 = vmul.f32 %v2627_v17, %v3628_v22 }
 0x224   :  { %v1893_v10 = vmul.f32 %v3628_v22, %v3185_v8  ;;  %v1894_v49 = vmul.f32 %v3628_v22, %v3192_v13  ;;  %v1895_v41 = vmul.f32 %v3628_v22, %v3202_v26  ;;  %v3647_v25 = vrot.slane %v1875_v45, %v1879_v0 }
 0x225   :  { %v1930_v12 = vmul.f32 %v3628_v22, %v3211_v34  ;;  %v1931_v16 = vmul.f32 %v3628_v22, %v3223_v46  ;;  %v1932_v37 = vmul.f32 %v3628_v22, %v3229_v54  ;;  %v1933_v8 = vmul.f32 %v3628_v22, %v3245_v3 }
 0x226   :  { %v3658_v56 = vadd.f32 %v3647_v25, %v1882_v5  ;;  %v3661_v13 = vadd.f32 %v3647_v25, %v1883_v53  ;;  %v3664_v26 = vadd.f32 %v3647_v25, %v1884_v20  ;;  %v3667_v34 = vadd.f32 %v3647_v25, %v1885_v14 }
 0x227   :  { %v3670_v46 = vadd.f32 %v3647_v25, %v1886_v60  ;;  %v3673_v54 = vadd.f32 %v3647_v25, %v1887_v63  ;;  %v3676_v3 = vadd.f32 %v3647_v25, %v1888_v35  ;;  %v3679_v0 = vadd.f32 %v3647_v25, %v1889_v52 }
 0x228   :  { %v3682_v45 = vadd.f32 %v3647_v25, %v1890_v44  ;;  %v3685_v5 = vadd.f32 %v3647_v25, %v1891_v6  ;;  %v3688_v53 = vadd.f32 %v3647_v25, %v1892_v62  ;;  %v3691_v20 = vadd.f32 %v3647_v25, %v1893_v10 }
 0x229   :  { %v3694_v14 = vadd.f32 %v3647_v25, %v1894_v49  ;;  %v3697_v60 = vadd.f32 %v3647_v25, %v1895_v41  ;;  %v1916_v63 = vmax.f32 %v3658_v56, 0.0  ;;  %v1917_v35 = vmax.f32 %v3661_v13, 0.0 }
 0x22a   :  { %v1918_v52 = vmax.f32 %v3664_v26, 0.0  ;;  %v1919_v44 = vmax.f32 %v3667_v34, 0.0  ;;  %v1920_v30 = vmax.f32 %v3670_v46, 0.0  ;;  %v1921_v6 = vmax.f32 %v3673_v54, 0.0 }
 0x22b   :  { %v1922_v17 = vmax.f32 %v3676_v3, 0.0  ;;  %v1923_v62 = vmax.f32 %v3679_v0, 0.0  ;;  %v1924_v10 = vmax.f32 %v3682_v45, 0.0  ;;  %v1925_v49 = vmax.f32 %v3685_v5, 0.0 }
 0x22c   :  { %v1926_v41 = vmax.f32 %v3688_v53, 0.0  ;;  %v1927_v56 = vmax.f32 %v3691_v20, 0.0  ;;  %v1928_v13 = vmax.f32 %v3694_v14, 0.0  ;;  %v1929_v26 = vmax.f32 %v3697_v60, 0.0 }
 0x22d   :  { %v1934_v34 = vmul.f32 %v3628_v22, %v3250_v9  ;;  %v1935_v46 = vmul.f32 %v3628_v22, %v3264_v27  ;;  %v1936_v54 = vmul.f32 %v3628_v22, %v3272_v33  ;;  %v1937_v3 = vmul.f32 %v3628_v22, %v3282_v48 }
 0x22e   :  { %v1938_v0 = vmul.f32 %v3628_v22, %v3291_v57  ;;  %v1939_v45 = vmul.f32 %v3628_v22, %v3303_v4  ;;  %v1940_v5 = vmul.f32 %v3628_v22, %v3309_v59  ;;  %v1941_v9 = vmul.f32 %v3628_v22, %v3325_v11 }
 0x22f   :  { %v1942_v27 = vmul.f32 %v3628_v22, %v3330_v40  ;;  %v1943_v33 = vmul.f32 %v3628_v22, %v3344_v61  ;;  %v1944_v48 = vadd.f32 %v1930_v12, %v3647_v25  ;;  %v1945_v53 = vadd.f32 %v1931_v16, %v3647_v25 }
 0x230   :  { %v1946_v57 = vadd.f32 %v1932_v37, %v3647_v25  ;;  %v1947_v4 = vadd.f32 %v1933_v8, %v3647_v25  ;;  %v1948_v20 = vadd.f32 %v1934_v34, %v3647_v25  ;;  %v1949_v59 = vadd.f32 %v1935_v46, %v3647_v25 }
 0x231   :  { %v1950_v11 = vadd.f32 %v1936_v54, %v3647_v25  ;;  %v1951_v14 = vadd.f32 %v1937_v3, %v3647_v25  ;;  %v1952_v40 = vadd.f32 %v1938_v0, %v3647_v25  ;;  %v1953_v61 = vadd.f32 %v1939_v45, %v3647_v25 }
 0x232   :  { %v1954_v12 = vadd.f32 %v1940_v5, %v3647_v25  ;;  %v1955_v16 = vadd.f32 %v1941_v9, %v3647_v25  ;;  %v1956_v37 = vadd.f32 %v1942_v27, %v3647_v25  ;;  %v1957_v8 = vadd.f32 %v1943_v33, %v3647_v25 }
 0x233   :  { %v1958_v60 = vmax.f32 %v1944_v48, 0.0  ;;  %v1959_v34 = vmax.f32 %v1945_v53, 0.0  ;;  %v1960_v43 = vmax.f32 %v1946_v57, 0.0  ;;  %v1961_v46 = vmax.f32 %v1947_v4, 0.0 }
 0x234   :  { %v1962_v38 = vmax.f32 %v1948_v20, 0.0  ;;  %v1963_v54 = vmax.f32 %v1949_v59, 0.0  ;;  %v1964_v51 = vmax.f32 %v1950_v11, 0.0  ;;  %v1965_v3 = vmax.f32 %v1951_v14, 0.0 }
 0x235   :  { %v1966_v28 = vmax.f32 %v1952_v40, 0.0  ;;  %v1967_v0 = vmax.f32 %v1953_v61, 0.0  ;;  %v1968_v7 = vmax.f32 %v1954_v12, 0.0  ;;  %v1969_v45 = vmax.f32 %v1955_v16, 0.0 }
 0x236   :  { %v1970_v36 = vmax.f32 %v1956_v37, 0.0  ;;  %v1971_v5 = vmax.f32 %v1957_v8, 0.0  ;;  %v3747_v18 = vmax.f32 %v1916_v63, %v1958_v60  ;;  %v3749_v9 = vmax.f32 %v1917_v35, %v1959_v34 }
 0x237   :  { %v3751_v27 = vmax.f32 %v1918_v52, %v1960_v43  ;;  %v3753_v33 = vmax.f32 %v1919_v44, %v1961_v46  ;;  %v3755_v48 = vmax.f32 %v1920_v30, %v1962_v38  ;;  %v3757_v53 = vmax.f32 %v1921_v6, %v1963_v54 }
 0x238   :  { %v3759_v57 = vmax.f32 %v1922_v17, %v1964_v51  ;;  %v3761_v4 = vmax.f32 %v1923_v62, %v1965_v3  ;;  %v3763_v20 = vmax.f32 %v1924_v10, %v1966_v28  ;;  %v3765_v59 = vmax.f32 %v1925_v49, %v1967_v0 }
 0x239   :  { %v3767_v63 = vmax.f32 %v1926_v41, %v1968_v7  ;;  %v3769_v35 = vmax.f32 %v1927_v56, %v1969_v45  ;;  %v3771_v43 = vmax.f32 %v1928_v13, %v1970_v36  ;;  %v3773_v52 = vmax.f32 %v1929_v26, %v1971_v5  ;;  %v4000_v45 = vld [vmem:[#allocation3_spill] sm:$0xff] }
 0x23a   :  { %v1986_v38 = vmul.f32 %v3628_v22, %v3352_v2  ;;  %v1987_v51 = vmul.f32 %v3628_v22, %v3362_v19  ;;  %v1988_v28 = vmul.f32 %v3628_v22, %v3371_v1  ;;  %v1989_v44 = vmul.f32 %v3628_v22, %v3383_v47 }
 0x23b   :  { %v1990_v7 = vmul.f32 %v3628_v22, %v3389_v58  ;;  %v1991_v36 = vmul.f32 %v3628_v22, %v3405_v15  ;;  %v1992_v30 = vmul.f32 %v3628_v22, %v3410_v23  ;;  %v1993_v2 = vmul.f32 %v3628_v22, %v3424_v50 }
 0x23c   :  { %v1994_v19 = vmul.f32 %v3628_v22, %v3432_v24  ;;  %v1995_v1 = vmul.f32 %v3628_v22, %v3442_v29  ;;  %v1996_v47 = vmul.f32 %v3628_v22, %v3451_v55  ;;  %v1997_v58 = vmul.f32 %v3628_v22, %v3463_v32 }
 0x23d   :  { %v1998_v15 = vmul.f32 %v3628_v22, %v3469_v39  ;;  %v1999_v23 = vmul.f32 %v3628_v22, %v3485_v31  ;;  %v3804_v50 = vadd.f32 %v1986_v38, %v3647_v25  ;;  %v3807_v24 = vadd.f32 %v1987_v51, %v3647_v25  ;;  %v4001_v38 = vld [vmem:[#allocation4_spill] sm:$0xff] }
 0x23e   :  { %v3810_v29 = vadd.f32 %v1988_v28, %v3647_v25  ;;  %v3813_v55 = vadd.f32 %v1989_v44, %v3647_v25  ;;  %v3816_v32 = vadd.f32 %v1990_v7, %v3647_v25  ;;  %v3819_v39 = vadd.f32 %v1991_v36, %v3647_v25  ;;  %v4002_v28 = vld [vmem:[#allocation5_spill] sm:$0xff]  ;;  %v4003_v7 = vld [vmem:[#allocation6_spill] sm:$0xff] }
 0x23f   :  { %v3822_v31 = vadd.f32 %v1992_v30, %v3647_v25  ;;  %v3825_v6 = vadd.f32 %v1993_v2, %v3647_v25  ;;  %v3828_v17 = vadd.f32 %v1994_v19, %v3647_v25  ;;  %v3831_v62 = vadd.f32 %v1995_v1, %v3647_v25  ;;  %v4004_v30 = vld [vmem:[#allocation7_spill] sm:$0xff]  ;;  %v4005_v19 = vld [vmem:[#allocation8_spill] sm:$0xff]  ;;  %v4006_v1 = vld [vmem:[#allocation9_spill] sm:$0xff] }
 0x240   :  { %v3834_v10 = vadd.f32 %v1996_v47, %v3647_v25  ;;  %v3837_v49 = vadd.f32 %v1997_v58, %v3647_v25  ;;  %v3840_v41 = vadd.f32 %v1998_v15, %v3647_v25  ;;  %v3843_v56 = vadd.f32 %v1999_v23, %v3647_v25  ;;  %v4007_v47 = vld [vmem:[#allocation10_spill] sm:$0xff]  ;;  %v4008_v15 = vld [vmem:[#allocation11_spill] sm:$0xff] }
 0x241   :  { %v2014_v13 = vmax.f32 %v3804_v50, 0.0  ;;  %v2015_v26 = vmax.f32 %v3807_v24, 0.0  ;;  %v2016_v11 = vmax.f32 %v3810_v29, 0.0  ;;  %v2017_v14 = vmax.f32 %v3813_v55, 0.0  ;;  %v4009_v50 = vld [vmem:[#allocation12_spill] sm:$0xff]  ;;  %v4010_v29 = vld [vmem:[#allocation13_spill] sm:$0xff] }
 0x242   :  { %v2018_v40 = vmax.f32 %v3816_v32, 0.0  ;;  %v2019_v61 = vmax.f32 %v3819_v39, 0.0  ;;  %v2020_v12 = vmax.f32 %v3822_v31, 0.0  ;;  %v2021_v16 = vmax.f32 %v3825_v6, 0.0  ;;  %v4011_v32 = vld [vmem:[#allocation14_spill] sm:$0xff] }
 0x243   :  { %v2022_v37 = vmax.f32 %v3828_v17, 0.0  ;;  %v2023_v8 = vmax.f32 %v3831_v62, 0.0  ;;  %v2024_v60 = vmax.f32 %v3834_v10, 0.0  ;;  %v2025_v34 = vmax.f32 %v3837_v49, 0.0 }
 0x244   :  { %v2026_v46 = vmax.f32 %v3840_v41, 0.0  ;;  %v2027_v54 = vmax.f32 %v3843_v56, 0.0  ;;  %v2028_v3 = vmul.f32 %v3628_v22, %v3490_v42  ;;  %v2029_v0 = vmul.f32 %v3628_v22, %v3504_v21 }
 0x245   :  { %v2030_v5 = vmul.f32 %v3628_v22, %v4000_v45  ;;  %v2031_v51 = vmul.f32 %v3628_v22, %v4001_v38  ;;  %v2032_v44 = vmul.f32 %v3628_v22, %v4002_v28  ;;  %v2033_v36 = vmul.f32 %v3628_v22, %v4003_v7 }
 0x246   :  { %v2034_v2 = vmul.f32 %v3628_v22, %v4004_v30  ;;  %v2035_v42 = vmul.f32 %v3628_v22, %v4005_v19  ;;  %v2036_v21 = vmul.f32 %v3628_v22, %v4006_v1  ;;  %v2037_v58 = vmul.f32 %v3628_v22, %v4007_v47 }
 0x247   :  { %v2038_v23 = vmul.f32 %v3628_v22, %v4008_v15  ;;  %v2039_v24 = vmul.f32 %v3628_v22, %v4009_v50  ;;  %v2040_v55 = vmul.f32 %v3628_v22, %v4010_v29  ;;  %v2041_v39 = vmul.f32 %v3628_v22, %v4011_v32 }
 0x248   :  { %v2042_v31 = vadd.f32 %v2028_v3, %v3647_v25  ;;  %v2043_v6 = vadd.f32 %v2029_v0, %v3647_v25  ;;  %v2044_v17 = vadd.f32 %v2030_v5, %v3647_v25  ;;  %v2045_v62 = vadd.f32 %v2031_v51, %v3647_v25 }
 0x249   :  { %v2046_v10 = vadd.f32 %v2032_v44, %v3647_v25  ;;  %v2047_v49 = vadd.f32 %v2033_v36, %v3647_v25  ;;  %v2048_v41 = vadd.f32 %v2034_v2, %v3647_v25  ;;  %v2049_v56 = vadd.f32 %v2035_v42, %v3647_v25 }
 0x24a   :  { %v2050_v45 = vadd.f32 %v2036_v21, %v3647_v25  ;;  %v2051_v22 = vadd.f32 %v2037_v58, %v3647_v25  ;;  %v2052_v3 = vadd.f32 %v2038_v23, %v3647_v25  ;;  %v2053_v0 = vadd.f32 %v2039_v24, %v3647_v25 }
 0x24b   :  { %v2054_v5 = vadd.f32 %v2040_v55, %v3647_v25  ;;  %v2055_v38 = vadd.f32 %v2041_v39, %v3647_v25  ;;  %v2056_v51 = vmax.f32 %v2042_v31, 0.0  ;;  %v2057_v28 = vmax.f32 %v2043_v6, 0.0 }
 0x24c   :  { %v2058_v44 = vmax.f32 %v2044_v17, 0.0  ;;  %v2059_v7 = vmax.f32 %v2045_v62, 0.0  ;;  %v2060_v36 = vmax.f32 %v2046_v10, 0.0  ;;  %v2061_v30 = vmax.f32 %v2047_v49, 0.0 }
 0x24d   :  { %v2062_v2 = vmax.f32 %v2048_v41, 0.0  ;;  %v2063_v19 = vmax.f32 %v2049_v56, 0.0  ;;  %v2064_v42 = vmax.f32 %v2050_v45, 0.0  ;;  %v2065_v1 = vmax.f32 %v2051_v22, 0.0 }
 0x24e   :  { %v2066_v21 = vmax.f32 %v2052_v3, 0.0  ;;  %v2067_v47 = vmax.f32 %v2053_v0, 0.0  ;;  %v2068_v58 = vmax.f32 %v2054_v5, 0.0  ;;  %v2069_v15 = vmax.f32 %v2055_v38, 0.0 }
 0x24f   :  { %v2070_v23 = vmax.f32 %v2014_v13, %v2056_v51  ;;  %v2071_v50 = vmax.f32 %v2015_v26, %v2057_v28  ;;  %v2072_v24 = vmax.f32 %v2016_v11, %v2058_v44  ;;  %v2073_v29 = vmax.f32 %v2017_v14, %v2059_v7 }
 0x250   :  { %v2074_v25 = vmax.f32 %v2018_v40, %v2060_v36  ;;  %v2075_v55 = vmax.f32 %v2019_v61, %v2061_v30  ;;  %v2076_v32 = vmax.f32 %v2020_v12, %v2062_v2  ;;  %v2077_v39 = vmax.f32 %v2021_v16, %v2063_v19 }
 0x251   :  { %v2078_v31 = vmax.f32 %v2022_v37, %v2064_v42  ;;  %v2079_v6 = vmax.f32 %v2023_v8, %v2065_v1  ;;  %v2080_v17 = vmax.f32 %v2024_v60, %v2066_v21  ;;  %v2081_v62 = vmax.f32 %v2025_v34, %v2067_v47 }
 0x252   :  { %v2082_v10 = vmax.f32 %v2026_v46, %v2068_v58  ;;  %v2083_v49 = vmax.f32 %v2027_v54, %v2069_v15  ;;  %v2084_v41 = vmax.f32 %v3747_v18, %v2070_v23  ;;  %v2085_v56 = vmax.f32 %v3749_v9, %v2071_v50 }
 0x253   :  { %v2086_v45 = vmax.f32 %v3751_v27, %v2072_v24  ;;  %v2087_v13 = vmax.f32 %v3753_v33, %v2073_v29  ;;  %v2088_v26 = vmax.f32 %v3755_v48, %v2074_v25  ;;  %v2089_v11 = vmax.f32 %v3757_v53, %v2075_v55 }
 0x254   :  { %v2090_v14 = vmax.f32 %v3759_v57, %v2076_v32  ;;  %v2091_v40 = vmax.f32 %v3761_v4, %v2077_v39  ;;  %v2092_v61 = vmax.f32 %v3763_v20, %v2078_v31  ;;  %v2093_v12 = vmax.f32 %v3765_v59, %v2079_v6 }
 0x255   :  { %v2094_v18 = vmax.f32 %v3767_v63, %v2080_v17  ;;  %v2095_v9 = vmax.f32 %v3769_v35, %v2081_v62  ;;  %v2096_v27 = vmax.f32 %v3771_v43, %v2082_v10  ;;  %v2097_v33 = vmax.f32 %v3773_v52, %v2083_v49 }
 0x256   :  { %v2352_v16 = vpack.c.bf16 %v2084_v41, %v2084_v41  ;;  %v2353_v48 = vpack.c.bf16 %v2085_v56, %v2085_v56  ;;  %v2354_v37 = vpack.c.bf16 %v2086_v45, %v2086_v45  ;;  %v2355_v53 = vpack.c.bf16 %v2087_v13, %v2087_v13 }
 0x257   :  { %v2356_v8 = vpack.c.bf16 %v2088_v26, %v2088_v26  ;;  %v2357_v57 = vpack.c.bf16 %v2089_v11, %v2089_v11  ;;  %v2358_v60 = vpack.c.bf16 %v2090_v14, %v2090_v14  ;;  %v2359_v4 = vpack.c.bf16 %v2091_v40, %v2091_v40 }
 0x258   :  { %v2360_v34 = vpack.c.bf16 %v2092_v61, %v2092_v61  ;;  %v2361_v20 = vpack.c.bf16 %v2093_v12, %v2093_v12  ;;  %v2362_v46 = vpack.c.bf16 %v2094_v18, %v2094_v18  ;;  %v2363_v59 = vpack.c.bf16 %v2095_v9, %v2095_v9  ;;  %2155 = vst.msk [vmem:[%s3975_s4] sm:$0xf] %vm2154_vm2, %v2352_v16 }
 0x259   :  { %2156 = vst.msk [vmem:[%s3975_s4 + $0x4] sm:$0xf] %vm2154_vm2, %v2353_v48  ;;  %2157 = vst.msk [vmem:[%s3975_s4 + $0x8] sm:$0xf] %vm2154_vm2, %v2354_v37  ;;  %v2364_v63 = vpack.c.bf16 %v2096_v27, %v2096_v27  ;;  %v2365_v35 = vpack.c.bf16 %v2097_v33, %v2097_v33 }
 0x25a   :  { %2158 = vst.msk [vmem:[%s3975_s4 + $0xc] sm:$0xf] %vm2154_vm2, %v2355_v53  ;;  %2159 = vst.msk [vmem:[%s3975_s4 + $0x10] sm:$0xf] %vm2154_vm2, %v2356_v8 }
 0x25b   :  { %2160 = vst.msk [vmem:[%s3975_s4 + $0x14] sm:$0xf] %vm2154_vm2, %v2357_v57  ;;  %2161 = vst.msk [vmem:[%s3975_s4 + $0x18] sm:$0xf] %vm2154_vm2, %v2358_v60 }
 0x25c   :  { %2162 = vst.msk [vmem:[%s3975_s4 + $0x1c] sm:$0xf] %vm2154_vm2, %v2359_v4  ;;  %2163 = vst.msk [vmem:[%s3975_s4 + $0x20] sm:$0xf] %vm2154_vm2, %v2360_v34 }
 0x25d   :  { %2164 = vst.msk [vmem:[%s3975_s4 + $0x24] sm:$0xf] %vm2154_vm2, %v2361_v20  ;;  %2165 = vst.msk [vmem:[%s3975_s4 + $0x28] sm:$0xf] %vm2154_vm2, %v2362_v46 }
 0x25e   :  { %2166 = vst.msk [vmem:[%s3975_s4 + $0x2c] sm:$0xf] %vm2154_vm2, %v2363_v59  ;;  %2167 = vst.msk [vmem:[%s3975_s4 + $0x30] sm:$0xf] %vm2154_vm2, %v2364_v63 }
 0x25f   :  { %2168 = vst.msk [vmem:[%s3975_s4 + $0x34] sm:$0xf] %vm2154_vm2, %v2365_v35 }

// kernel: convnet_forward.5
= control target key start
LH: loop header
LB: loop body
LE: loop exit
PB: predicated region body
PF: predicated region fallthrough
CT: control target
= control target key end

     0   :  { %v227_v29 = vlaneseq  ;;  %v1582_v35 = vmov 1966171168   ;;  %s1939_s0 = inlined_call_operand.vmem [shape: bf16[2,1568], index: 0, kind: input, shape index: {}]   ;;  %s1940_s1 = inlined_call_operand.vmem [shape: bf16[1568,10], index: 1, kind: input, shape index: {}]   ;;  %s1941_s2 = inlined_call_operand.vmem [shape: f32[1,10], index: 2, kind: input, shape index: {}]   ;;  %s1942_s3 = inlined_call_operand.hbm [shape: f32[2,10], index: 3, kind: output, shape index: {}]  }
   0x1   :  { %v1458_v0 = vld [vmem:[%s1940_s1 + $0x40] sm:$0xff]   ;;  %v1462_v4 = vld [vmem:[%s1940_s1 + $0x48] sm:$0xff]   ;;  %v1466_v8 = vld [vmem:[%s1940_s1 + $0x50] sm:$0xff]   ;;  %v225_v36 = vunpack.c.l.s4 %v1582_v35 }
   0x2   :  { %v1459_v1 = vld [vmem:[%s1940_s1] sm:$0xff]   ;;  %1311 = vmatprep.subr.bf16.mxu0 %v1458_v0  ;;  %v1463_v5 = vld [vmem:[%s1940_s1 + $0x8] sm:$0xff]   ;;  %v1467_v9 = vld [vmem:[%s1940_s1 + $0x10] sm:$0xff]   ;;  %v228_v33 = vshrl.u32 %v227_v29, 7 }
   0x3   :  { %v1460_v2 = vld [vmem:[%s1940_s1 + $0xc0] sm:$0xff]   ;;  %1312 = vmatpush3.bf16.msra.mxu0 %v1459_v1  ;;  %v1464_v6 = vld [vmem:[%s1940_s1 + $0xc8] sm:$0xff]   ;;  %v1468_v10 = vld [vmem:[%s1940_s1 + $0xd0] sm:$0xff]   ;;  %v226_v39 = vunpack.c.0.s8 %v225_v36 }
   0x4   :  { %v1461_v3 = vld [vmem:[%s1940_s1 + $0x80] sm:$0xff]   ;;  %1333 = vmatprep.subr.bf16.mxu1 %v1460_v2  ;;  %1313 = vmatprep.subr.bf16.mxu0 %v1462_v4  ;;  %v1465_v7 = vld [vmem:[%s1940_s1 + $0x88] sm:$0xff]   ;;  %v1469_v11 = vld [vmem:[%s1940_s1 + $0x90] sm:$0xff]  }
   0x5   :  { %1334 = vmatpush3.bf16.msra.mxu1 %v1461_v3  ;;  %v1470_v12 = vld [vmem:[%s1940_s1 + $0x58] sm:$0xff]   ;;  %v1474_v16 = vld [vmem:[%s1940_s1 + $0x60] sm:$0xff]   ;;  %v1478_v20 = vld [vmem:[%s1940_s1 + $0x68] sm:$0xff]   ;;  %v1711_v41 = vsub.s32 %v226_v39, %v228_v33 }
   0x6   :  { %1335 = vmatprep.subr.bf16.mxu1 %v1464_v6  ;;  %v1471_v13 = vld [vmem:[%s1940_s1 + $0x18] sm:$0xff]   ;;  %v1475_v17 = vld [vmem:[%s1940_s1 + $0x20] sm:$0xff]   ;;  %v1479_v21 = vld [vmem:[%s1940_s1 + $0x28] sm:$0xff]  }
   0x7   :  { %1314 = vmatpush3.bf16.msra.mxu0 %v1463_v5  ;;  %v1472_v14 = vld [vmem:[%s1940_s1 + $0xd8] sm:$0xff]   ;;  %v1476_v18 = vld [vmem:[%s1940_s1 + $0xe0] sm:$0xff]   ;;  %v1480_v22 = vld [vmem:[%s1940_s1 + $0xe8] sm:$0xff]  }
   0x8   :  { %1315 = vmatprep.subr.bf16.mxu0 %v1466_v8  ;;  %v1473_v15 = vld [vmem:[%s1940_s1 + $0x98] sm:$0xff]   ;;  %v1477_v19 = vld [vmem:[%s1940_s1 + $0xa0] sm:$0xff]   ;;  %v1481_v23 = vld [vmem:[%s1940_s1 + $0xa8] sm:$0xff]  }
   0x9   :  { %1336 = vmatpush3.bf16.msra.mxu1 %v1465_v7  ;;  %v1482_v24 = vld [vmem:[%s1940_s1 + $0x70] sm:$0xff]   ;;  %v1486_v28 = vld [vmem:[%s1940_s1 + $0x78] sm:$0xff]   ;;  %v1491_v34 = vld [vmem:[%s1940_s1 + $0x140] sm:$0xff]  }
   0xa   :  { %1337 = vmatprep.subr.bf16.mxu1 %v1468_v10  ;;  %v1483_v25 = vld [vmem:[%s1940_s1 + $0x30] sm:$0xff]   ;;  %v1487_v30 = vld [vmem:[%s1940_s1 + $0x38] sm:$0xff]   ;;  %v16_v37 = vld [vmem:[%s1939_s0] sm:$0xff] }
   0xb   :  { %1316 = vmatpush3.bf16.msra.mxu0 %v1467_v9  ;;  %v1484_v26 = vld [vmem:[%s1940_s1 + $0xf0] sm:$0xff]   ;;  %v1488_v31 = vld [vmem:[%s1940_s1 + $0xf8] sm:$0xff]   ;;  %v223_v38 = vcombine.high %v16_v37, %v16_v37  ;;  %v1493_v40 = vld [vmem:[%s1940_s1 + $0x1c0] sm:$0xff]   ;;  %v230_v42 = vrot.slane %v16_v37, %v1711_v41 }
   0xc   :  { %1317 = vmatprep.subr.bf16.mxu0 %v1470_v12  ;;  %v1485_v27 = vld [vmem:[%s1940_s1 + $0xb0] sm:$0xff]   ;;  %v1489_v32 = vld [vmem:[%s1940_s1 + $0xb8] sm:$0xff]   ;;  %v1492_v48 = vld [vmem:[%s1940_s1 + $0x100] sm:$0xff]  }
   0xd   :  { %1338 = vmatpush3.bf16.msra.mxu1 %v1469_v11  ;;  %v1715_v43 = vrot.slane %v223_v38, %v1711_v41  ;;  %v238_v44 = vcombine.high %v230_v42, %v230_v42  ;;  %v246_v45 = vrot.slane %v230_v42, %v1711_v41  ;;  %v1495_v51 = vld [vmem:[%s1940_s1 + $0x148] sm:$0xff]   ;;  %v1494_v53 = vld [vmem:[%s1940_s1 + $0x180] sm:$0xff]   ;;  %v1499_v57 = vld [vmem:[%s1940_s1 + $0x150] sm:$0xff]  }
   0xe   :  { %1339 = vmatprep.subr.bf16.mxu1 %v1472_v14  ;;  %v1497_v54 = vld [vmem:[%s1940_s1 + $0x1c8] sm:$0xff]   ;;  %v1501_v59 = vld [vmem:[%s1940_s1 + $0x1d0] sm:$0xff]   ;;  %v1503_v61 = vld [vmem:[%s1940_s1 + $0x158] sm:$0xff]  }
   0xf   :  { %1318 = vmatpush3.bf16.msra.mxu0 %v1471_v13  ;;  %v239_v46 = vcombine.high %v1715_v43, %v1715_v43  ;;  %v260_v47 = vrot.slane %v238_v44, %v1711_v41  ;;  %v268_v50 = vcombine.high %v246_v45, %v246_v45  ;;  %v1496_v56 = vld [vmem:[%s1940_s1 + $0x108] sm:$0xff]   ;;  %v1500_v60 = vld [vmem:[%s1940_s1 + $0x110] sm:$0xff]   ;;  %v1505_v63 = vld [vmem:[%s1940_s1 + $0x1d8] sm:$0xff]  }
  0x10   :  { %1319 = vmatprep.subr.bf16.mxu0 %v1474_v16  ;;  %v1498_v58 = vld [vmem:[%s1940_s1 + $0x188] sm:$0xff]   ;;  %v1502_v62 = vld [vmem:[%s1940_s1 + $0x190] sm:$0xff]   ;;  %v1504_v0 = vld [vmem:[%s1940_s1 + $0x118] sm:$0xff]  }
  0x11   :  { %1340 = vmatpush3.bf16.msra.mxu1 %v1473_v15  ;;  %v267_v49 = vrot.slane %v239_v46, %v1711_v41  ;;  %947 = vmatprep.mubr.bf16.mxu0 %v260_v47  ;;  %v270_v52 = vcombine.high %v260_v47, %v260_v47  ;;  %v1507_v1 = vld [vmem:[%s1940_s1 + $0x160] sm:$0xff]   ;;  %v1506_v2 = vld [vmem:[%s1940_s1 + $0x198] sm:$0xff]   ;;  %v1511_v5 = vld [vmem:[%s1940_s1 + $0x168] sm:$0xff]  }
  0x12   :  { %1341 = vmatprep.subr.bf16.mxu1 %v1476_v18  ;;  %v1509_v3 = vld [vmem:[%s1940_s1 + $0x1e0] sm:$0xff]   ;;  %v1513_v7 = vld [vmem:[%s1940_s1 + $0x1e8] sm:$0xff]   ;;  %v1515_v9 = vld [vmem:[%s1940_s1 + $0x170] sm:$0xff]  }
  0x13   :  { %1320 = vmatpush3.bf16.msra.mxu0 %v1475_v17  ;;  %v271_v55 = vcombine.high %v267_v49, %v267_v49  ;;  %987 = vmatprep.mubr.bf16.mxu1 %v270_v52  ;;  %v1508_v4 = vld [vmem:[%s1940_s1 + $0x120] sm:$0xff]   ;;  %v1512_v8 = vld [vmem:[%s1940_s1 + $0x128] sm:$0xff]   ;;  %v1517_v11 = vld [vmem:[%s1940_s1 + $0x1f0] sm:$0xff]   ;;  %v253_v17 = vrot.slane %v1715_v43, %v1711_v41 }
  0x14   :  { %1321 = vmatprep.subr.bf16.mxu0 %v1478_v20  ;;  %v1510_v6 = vld [vmem:[%s1940_s1 + $0x1a0] sm:$0xff]   ;;  %v1514_v10 = vld [vmem:[%s1940_s1 + $0x1a8] sm:$0xff]   ;;  %v1516_v12 = vld [vmem:[%s1940_s1 + $0x130] sm:$0xff]  }
  0x15   :  { %1342 = vmatpush3.bf16.msra.mxu1 %v1477_v19  ;;  %v1519_v13 = vld [vmem:[%s1940_s1 + $0x178] sm:$0xff]   ;;  %v1518_v14 = vld [vmem:[%s1940_s1 + $0x1b0] sm:$0xff]   ;;  %v1523_v18 = vld [vmem:[%s1940_s1 + $0x240] sm:$0xff]  }
  0x16   :  { %1343 = vmatprep.subr.bf16.mxu1 %v1480_v22  ;;  %v1521_v15 = vld [vmem:[%s1940_s1 + $0x1f8] sm:$0xff]   ;;  %v1525_v20 = vld [vmem:[%s1940_s1 + $0x2c0] sm:$0xff]   ;;  %v269_v22 = vcombine.high %v253_v17, %v253_v17  ;;  %v1533_v29 = vld [vmem:[%s1940_s1 + $0x2d0] sm:$0xff]  }
  0x17   :  { %1322 = vmatpush3.bf16.msra.mxu0 %v1479_v21  ;;  %v1520_v16 = vld [vmem:[%s1940_s1 + $0x138] sm:$0xff]   ;;  %v1524_v21 = vld [vmem:[%s1940_s1 + $0x200] sm:$0xff]   ;;  %v1543_v39 = vld [vmem:[%s1940_s1 + $0x268] sm:$0xff]  }
  0x18   :  { %1323 = vmatprep.subr.bf16.mxu0 %v1482_v24  ;;  %v1522_v19 = vld [vmem:[%s1940_s1 + $0x1b8] sm:$0xff]   ;;  %v1526_v24 = vld [vmem:[%s1940_s1 + $0x280] sm:$0xff]   ;;  %v1545_v42 = vld [vmem:[%s1940_s1 + $0x2e8] sm:$0xff]  }
  0x19   :  { %1344 = vmatpush3.bf16.msra.mxu1 %v1481_v23  ;;  %v1527_v23 = vld [vmem:[%s1940_s1 + $0x248] sm:$0xff]   ;;  %v1537_v33 = vld [vmem:[%s1940_s1 + $0x2d8] sm:$0xff]   ;;  %v1539_v35 = vld [vmem:[%s1940_s1 + $0x260] sm:$0xff]  }
  0x1a   :  { %1345 = vmatprep.subr.bf16.mxu1 %v1484_v26  ;;  %v1528_v26 = vld [vmem:[%s1940_s1 + $0x208] sm:$0xff]   ;;  %v1538_v36 = vld [vmem:[%s1940_s1 + $0x298] sm:$0xff]   ;;  %v1541_v37 = vld [vmem:[%s1940_s1 + $0x2e0] sm:$0xff]  }
  0x1b   :  { %1324 = vmatpush3.bf16.msra.mxu0 %v1483_v25  ;;  %v1529_v25 = vld [vmem:[%s1940_s1 + $0x2c8] sm:$0xff]   ;;  %v1540_v38 = vld [vmem:[%s1940_s1 + $0x220] sm:$0xff]   ;;  %v1547_v44 = vld [vmem:[%s1940_s1 + $0x270] sm:$0xff]  }
  0x1c   :  { %1325 = vmatprep.subr.bf16.mxu0 %v1486_v28  ;;  %v1530_v28 = vld [vmem:[%s1940_s1 + $0x288] sm:$0xff]  }
  0x1d   :  { %1346 = vmatpush3.bf16.msra.mxu1 %v1485_v27  ;;  %v1531_v27 = vld [vmem:[%s1940_s1 + $0x250] sm:$0xff]   ;;  %v1544_v43 = vld [vmem:[%s1940_s1 + $0x228] sm:$0xff]  }
  0x1e   :  { %1347 = vmatprep.subr.bf16.mxu1 %v1488_v31  ;;  %v1535_v31 = vld [vmem:[%s1940_s1 + $0x258] sm:$0xff]   ;;  %v1546_v46 = vld [vmem:[%s1940_s1 + $0x2a8] sm:$0xff]  }
  0x1f   :  { %1326 = vmatpush3.bf16.msra.mxu0 %v1487_v30  ;;  %v1532_v30 = vld [vmem:[%s1940_s1 + $0x210] sm:$0xff]  }
  0x20   :  { %1355 = vmatprep.subr.bf16.mxu0 %v1491_v34  ;;  %v1536_v34 = vld [vmem:[%s1940_s1 + $0x218] sm:$0xff]  }
  0x21   :  { %1348 = vmatpush3.bf16.msra.mxu1 %v1489_v32  ;;  %v1534_v32 = vld [vmem:[%s1940_s1 + $0x290] sm:$0xff]  }
  0x22   :  { %1377 = vmatprep.subr.bf16.mxu1 %v1493_v40  ;;  %948 = vmatmul.mubr.bf16.vlgmr.msra.gmra.mrb[0].mxu0 %v246_v45  ;;  %v1542_v40 = vld [vmem:[%s1940_s1 + $0x2a0] sm:$0xff]   ;;  %v17_v45 = vld [vmem:[%s1939_s0 + $0x8] sm:$0x1f] }
  0x23   :  { %1356 = vmatpush3.bf16.msra.mxu0 %v1492_v48  ;;  %1027 = vmatprep.mubr.bf16.mxu0 %v267_v49  ;;  %v279_v47 = vrot.slane %v17_v45, %v1711_v41  ;;  %v1549_v48 = vld [vmem:[%s1940_s1 + $0x2f0] sm:$0xff]  }
  0x24   :  { %988 = vmatmul.mubr.bf16.vlgmr.msra.gmra.mrb[0].mxu1 %v268_v50  ;;  %1357 = vmatprep.subr.bf16.mxu0 %v1495_v51 }
  0x25   :  { %1378 = vmatpush3.bf16.msra.mxu1 %v1494_v53  ;;  %1067 = vmatprep.mubr.bf16.mxu1 %v271_v55 }
  0x26   :  { %1379 = vmatprep.subr.bf16.mxu1 %v1497_v54 }
  0x27   :  { %1358 = vmatpush3.bf16.msra.mxu0 %v1496_v56 }
  0x28   :  { %1359 = vmatprep.subr.bf16.mxu0 %v1499_v57 }
  0x29   :  { %1380 = vmatpush3.bf16.msra.mxu1 %v1498_v58 }
  0x2a   :  { %1381 = vmatprep.subr.bf16.mxu1 %v1501_v59 }
  0x2b   :  { %1360 = vmatpush3.bf16.msra.mxu0 %v1500_v60 }
  0x2c   :  { %1361 = vmatprep.subr.bf16.mxu0 %v1503_v61 }
  0x2d   :  { %1382 = vmatpush3.bf16.msra.mxu1 %v1502_v62 }
  0x2e   :  { %1383 = vmatprep.subr.bf16.mxu1 %v1505_v63 }
  0x2f   :  { %1362 = vmatpush3.bf16.msra.mxu0 %v1504_v0 }
  0x30   :  { %1363 = vmatprep.subr.bf16.mxu0 %v1507_v1 }
  0x31   :  { %1384 = vmatpush3.bf16.msra.mxu1 %v1506_v2 }
  0x32   :  { %1385 = vmatprep.subr.bf16.mxu1 %v1509_v3 }
  0x33   :  { %1364 = vmatpush3.bf16.msra.mxu0 %v1508_v4 }
  0x34   :  { %1365 = vmatprep.subr.bf16.mxu0 %v1511_v5 }
  0x35   :  { %1386 = vmatpush3.bf16.msra.mxu1 %v1510_v6 }
  0x36   :  { %1387 = vmatprep.subr.bf16.mxu1 %v1513_v7 }
  0x37   :  { %1366 = vmatpush3.bf16.msra.mxu0 %v1512_v8 }
  0x38   :  { %1367 = vmatprep.subr.bf16.mxu0 %v1515_v9 }
  0x39   :  { %1388 = vmatpush3.bf16.msra.mxu1 %v1514_v10 }
  0x3a   :  { %1389 = vmatprep.subr.bf16.mxu1 %v1517_v11 }
  0x3b   :  { %1368 = vmatpush3.bf16.msra.mxu0 %v1516_v12 }
  0x3c   :  { %1369 = vmatprep.subr.bf16.mxu0 %v1519_v13 }
  0x3d   :  { %1390 = vmatpush3.bf16.msra.mxu1 %v1518_v14 }
  0x3e   :  { %1391 = vmatprep.subr.bf16.mxu1 %v1521_v15 }
  0x3f   :  { %1370 = vmatpush3.bf16.msra.mxu0 %v1520_v16 }
  0x40   :  { %1399 = vmatprep.subr.bf16.mxu0 %v1523_v18 }
  0x41   :  { %1392 = vmatpush3.bf16.msra.mxu1 %v1522_v19 }
  0x42   :  { %1028 = vmatmul.mubr.bf16.vlgmr.msra.gmra.mrb[4].mxu0 %v253_v17  ;;  %1421 = vmatprep.subr.bf16.mxu1 %v1525_v20 }
  0x43   :  { %1400 = vmatpush3.bf16.msra.mxu0 %v1524_v21 }
  0x44   :  { %1068 = vmatmul.mubr.bf16.vlgmr.msra.gmra.mrb[4].mxu1 %v269_v22  ;;  %1401 = vmatprep.subr.bf16.mxu0 %v1527_v23 }
  0x45   :  { %1422 = vmatpush3.bf16.msra.mxu1 %v1526_v24 }
  0x46   :  { %1423 = vmatprep.subr.bf16.mxu1 %v1529_v25 }
  0x47   :  { %1402 = vmatpush3.bf16.msra.mxu0 %v1528_v26 }
  0x48   :  { %1403 = vmatprep.subr.bf16.mxu0 %v1531_v27 }
  0x49   :  { %1424 = vmatpush3.bf16.msra.mxu1 %v1530_v28 }
  0x4a   :  { %1425 = vmatprep.subr.bf16.mxu1 %v1533_v29 }
  0x4b   :  { %1404 = vmatpush3.bf16.msra.mxu0 %v1532_v30 }
  0x4c   :  { %1405 = vmatprep.subr.bf16.mxu0 %v1535_v31 }
  0x4d   :  { %1426 = vmatpush3.bf16.msra.mxu1 %v1534_v32 }
  0x4e   :  { %1427 = vmatprep.subr.bf16.mxu1 %v1537_v33 }
  0x4f   :  { %1406 = vmatpush3.bf16.msra.mxu0 %v1536_v34 }
  0x50   :  { %1407 = vmatprep.subr.bf16.mxu0 %v1539_v35 }
  0x51   :  { %1428 = vmatpush3.bf16.msra.mxu1 %v1538_v36 }
  0x52   :  { %1429 = vmatprep.subr.bf16.mxu1 %v1541_v37 }
  0x53   :  { %1408 = vmatpush3.bf16.msra.mxu0 %v1540_v38 }
  0x54   :  { %1409 = vmatprep.subr.bf16.mxu0 %v1543_v39 }
  0x55   :  { %1430 = vmatpush3.bf16.msra.mxu1 %v1542_v40 }
  0x56   :  { %1431 = vmatprep.subr.bf16.mxu1 %v1545_v42 }
  0x57   :  { %8 = vsyncpa [#allocation3], 0  ;;  %1410 = vmatpush3.bf16.msra.mxu0 %v1544_v43  ;;  %v1548_v49 = vld [vmem:[%s1940_s1 + $0x230] sm:$0xff]   ;;  %v287_v50 = vcombine.high %v279_v47, %v279_v47  ;;  %v1551_v51 = vld [vmem:[%s1940_s1 + $0x278] sm:$0xff]   ;;  %v294_v57 = vrot.slane %v279_v47, %v1711_v41  ;;  %v272_v59 = vcombine.high %v17_v45, %v17_v45  ;;  %v1583_v61 = vmov 0.0  }
  0x58   :  { %1411 = vmatprep.subr.bf16.mxu0 %v1547_v44  ;;  %v1550_v52 = vld [vmem:[%s1940_s1 + $0x2b0] sm:$0xff]   ;;  %v1553_v54 = vld [vmem:[%s1940_s1 + $0x2f8] sm:$0xff]   ;;  %v1556_v60 = vld [vmem:[%s1940_s1 + $0x300] sm:$0xff]   ;;  %vm1584_vm0 = vmmov 0   ;;  %vm911_vm1 = vcmask 261120   ;;  %vm1195_vm2 = vcmask 74752  }
  0x59   :  { %1432 = vmatpush3.bf16.msra.mxu1 %v1546_v46  ;;  %v308_v53 = vrot.slane %v287_v50, %v1711_v41  ;;  %v1552_v55 = vld [vmem:[%s1940_s1 + $0x238] sm:$0xff]   ;;  %v309_v62 = vcombine.high %v294_v57, %v294_v57  ;;  %v286_v63 = vrot.slane %v272_v59, %v1711_v41  ;;  %v1557_v0 = vld [vmem:[%s1940_s1 + $0x308] sm:$0xff]   ;;  %v1211_v3 = vld [vmem:[%s1941_s2] ss:$0 sm:$0xff] }
  0x5a   :  { %1433 = vmatprep.subr.bf16.mxu1 %v1549_v48  ;;  %v1554_v58 = vld [vmem:[%s1940_s1 + $0x2b8] sm:$0xff]   ;;  %s1585_s1 = smov [#allocation2]  }
  0x5b   :  { %1412 = vmatpush3.bf16.msra.mxu0 %v1548_v49  ;;  %1107 = vmatprep.mubr.bf16.mxu0 %v308_v53  ;;  %v310_v56 = vcombine.high %v308_v53, %v308_v53  ;;  %v301_v1 = vrot.slane %v286_v63, %v1711_v41  ;;  %s1203_s2 = sshll.u32 %s1585_s1, 4  ;;  %s1204_s2 = int_to_ptr.vmem [resolvable:$true] %s1203_s2 }
  0x5c   :  { %1413 = vmatprep.subr.bf16.mxu0 %v1551_v51  ;;  %s1558_s24 = scalar_lea.vmem %s1204_s2, 32  ;;  %p1563_p1 = scmp.lt.s32.totalorder %s1204_s2, %s1204_s2 }
  0x5d   :  { %1434 = vmatpush3.bf16.msra.mxu1 %v1550_v52  ;;  %1147 = vmatprep.mubr.bf16.mxu1 %v310_v56  ;;  %p1559_p0 = scmp.ne.s32.totalorder %s1204_s2, %s1558_s24  ;;  %p1564_p2 = scmp.lt.s32.totalorder %s1558_s24, %s1558_s24 }
  0x5e   :  { %1435 = vmatprep.subr.bf16.mxu1 %v1553_v54 }
  0x5f   :  { %1414 = vmatpush3.bf16.msra.mxu0 %v1552_v55  ;;  %p1565_p3 = por %p1564_p2, %p1563_p1 }
  0x60   :  { %1446 = vmatprep.subr.bf16.mxu0 %v1583_v61 }
  0x61   :  { %1436 = vmatpush3.bf16.msra.mxu1 %v1554_v58  ;;  %p1566_p4 = pnand %p1565_p3, %p1559_p0 }
  0x62   :  { %1108 = vmatmul.mubr.bf16.vlgmr.msra.gmra.mrb[8].mxu0 %v294_v57 }
  0x63   :  { %1447 = vmatpush3.bf16.msra.mxu0 %v1556_v60  ;;  %1450 = vmatprep.mubr.msk.bf16.mxu0 %vm1584_vm0, %v1583_v61 }
  0x64   :  { %1148 = vmatmul.mubr.bf16.vlgmr.msra.gmra.mrb[8].mxu1 %v309_v62  ;;  %1448 = vmatprep.subr.bf16.mxu0 %v1583_v61 }
  0x67   :  { %1449 = vmatpush3.bf16.msra.mxu0 %v1557_v0 }
  0x6a   :  { %1451 = vmatmul.mubr.msk.bf16.vlgmr.msra.gmra.mrb[12].mxu0 %vm911_vm1, %v301_v1 }
  0xf5   :  { %v1327_v2 = vpop.f32.mrb[0].mxu0 }
  0xf6   :  { %v1328_v4 = vpop.f32.mrb[1].mxu0 }
  0xf7   :  { %v1329_v5 = vadd.f32 %v1328_v4, %v1327_v2  ;;  %v1330_v6 = vpop.f32.mrb[2].mxu0  ;;  %v1349_v7 = vpop.f32.mrb[0].mxu1 }
  0xf8   :  { %v1331_v8 = vpop.f32.mrb[3].mxu0  ;;  %v1350_v9 = vpop.f32.mrb[1].mxu1 }
  0xf9   :  { %v950_v10 = vadd.f32 %v1329_v5, %v1211_v3  ;;  %v1351_v11 = vadd.f32 %v1350_v9, %v1349_v7  ;;  %v1352_v12 = vpop.f32.mrb[2].mxu1 }
  0xfa   :  { %v1353_v13 = vpop.f32.mrb[3].mxu1 }
  0xfb   :  { %v990_v14 = vadd.f32 %v1351_v11, %v950_v10 }
 0x115   :  { %v1371_v41 = vpop.f32.mrb[4].mxu0 }
 0x116   :  { %v1372_v15 = vpop.f32.mrb[5].mxu0 }
 0x117   :  { %v1373_v16 = vadd.f32 %v1372_v15, %v1371_v41  ;;  %v1374_v17 = vpop.f32.mrb[6].mxu0  ;;  %v1393_v18 = vpop.f32.mrb[4].mxu1 }
 0x118   :  { %v1375_v19 = vpop.f32.mrb[7].mxu0  ;;  %v1394_v20 = vpop.f32.mrb[5].mxu1 }
 0x119   :  { %v1030_v21 = vadd.f32 %v1373_v16, %v990_v14  ;;  %v1395_v22 = vadd.f32 %v1394_v20, %v1393_v18  ;;  %v1396_v23 = vpop.f32.mrb[6].mxu1 }
 0x11a   :  { %v1397_v24 = vpop.f32.mrb[7].mxu1 }
 0x11b   :  { %v1070_v25 = vadd.f32 %v1395_v22, %v1030_v21 }
 0x135   :  { %v1415_v26 = vpop.f32.mrb[8].mxu0 }
 0x136   :  { %v1416_v27 = vpop.f32.mrb[9].mxu0 }
 0x137   :  { %v1417_v28 = vadd.f32 %v1416_v27, %v1415_v26  ;;  %v1437_v29 = vpop.f32.mrb[8].mxu1  ;;  %v1418_v30 = vpop.f32.mrb[10].mxu0 }
 0x138   :  { %v1438_v31 = vpop.f32.mrb[9].mxu1  ;;  %v1419_v32 = vpop.f32.mrb[11].mxu0 }
 0x139   :  { %v1110_v33 = vadd.f32 %v1417_v28, %v1070_v25  ;;  %v1439_v34 = vadd.f32 %v1438_v31, %v1437_v29  ;;  %v1440_v35 = vpop.f32.mrb[10].mxu1 }
 0x13a   :  { %v1441_v36 = vpop.f32.mrb[11].mxu1 }
 0x13b   :  { %v1150_v37 = vadd.f32 %v1439_v34, %v1110_v33 }
 0x13d   :  { %v1189_v38 = vpop.f32.mrb[12].mxu0 }
 0x13e   :  { %v1190_v39 = vadd.f32 %v1189_v38, %v1150_v37  ;;  %v1452_v40 = vpop.f32.mrb[13].mxu0 }
 0x13f   :  { %v1192_v42 = vpop.f32.mrb[14].mxu0 }
 0x140   :  { %v1453_v43 = vpop.f32.mrb[15].mxu0  ;;  %1196 = vst.msk [vmem:[#allocation2] sm:$0x3] %vm1195_vm2, %v1190_v39 }
 0x141   :  { %1569 = shalt.err (!%p1566_p4)
}
 0x142   :  { %s1570_s27 = scalar_lea.hbm %s1942_s3, 32 }
 0x143   :  { %p1571_p5 = scmp.ne.s32.totalorder %s1942_s3, %s1570_s27  ;;  %p1574_p6 = scmp.lt.u32.totalorder %s1570_s27, %s1942_s3 }
 0x145   :  { %p1576_p7 = pnand %p1574_p6, %p1571_p5 }
 0x147   :  { %1579 = shalt.err (!%p1576_p7)
}
 0x148   :  { %1206 = dma.vmem_to_hbm [thread:$0]  %s1204_s2, 32, %s1942_s3, [#allocation3]  }
 0x149   :  { %1580 = dma.done.wait [#allocation3], 32  }
 0x14a   :  { %1581 = vsyncadd [#allocation3], 4294967264 }
 0x14b   :  { %1210 = vsyncpa [#allocation3], 1 }

</bundles_post_ra>
